<compile_context>
chip_gen: v6e
topology: v6e:2x2x1
jax: 0.10.0
libtpu: 0.0.40
codegen_flags: <defaults>
</compile_context>

<pallas_src>
import jax
import jax.numpy as jnp
from jax.experimental import pallas as pl
from jax.experimental.pallas import tpu as pltpu


# -------------------- in-kernel math helpers --------------------

def _erf(x):
    # Abramowitz & Stegun 7.1.26 (float32-exact); exp goes to the EUP slot.
    a1, a2, a3, a4, a5 = (0.254829592, -0.284496736, 1.421413741,
                          -1.453152027, 1.061405429)
    p = 0.3275911
    ax = jnp.abs(x)
    t = 1.0 / (1.0 + p * ax)
    poly = ((((a5 * t + a4) * t + a3) * t + a2) * t + a1) * t
    y = 1.0 - poly * jnp.exp(-ax * ax)
    return jnp.where(x >= 0.0, y, -y)


def _gelu(x):
    # exact (erf-based) GELU == torch.nn.GELU() default
    return 0.5 * x * (1.0 + _erf(x * 0.7071067811865476))


def _layernorm(x, gamma, beta, eps=1e-5):
    mu = jnp.mean(x, axis=-1, keepdims=True)
    var = jnp.mean((x - mu) ** 2, axis=-1, keepdims=True)
    return (x - mu) * jax.lax.rsqrt(var + eps) * gamma + beta


def _batchnorm_train(x, gamma, beta, eps=1e-5):
    # training-mode BatchNorm2d: stats over (N,H,W) == axis 0 of [N*H*W, C]
    mu = jnp.mean(x, axis=0, keepdims=True)
    var = jnp.mean((x - mu) ** 2, axis=0, keepdims=True)
    return (x - mu) * jax.lax.rsqrt(var + eps) * gamma + beta


# -------------------- the single fused Pallas kernel --------------------

def _fused_kernel(pre10_ref, post10_ref, pre20_ref, post20_ref,
                  wconv_ref,
                  g1a, b1a, g1b, b1b, g1c, b1c, g1d, b1d,
                  w1a, w1b, w1c, w1d,
                  g2, b2, w2,
                  g3, b3, w3,
                  g4, b4, w4,
                  wc2_ref,
                  fc1w, fc1b, ln1g, ln1b,
                  fc2w, fc2b, ln2g, ln2b,
                  fc3w, fc3b,
                  o_ref):
    f32 = jnp.float32

    # ---- stage 1: shared 2x2/s2 conv on both halves of img10 (MXU matmuls).
    wconv = wconv_ref[...]
    pre10c = jnp.dot(pre10_ref[...], wconv, preferred_element_type=f32)   # [9B,16]
    post10c = jnp.dot(post10_ref[...], wconv, preferred_element_type=f32)  # [9B,16]

    # ---- stage 2: 4x (BatchNorm -> GELU -> 1x1 conv).
    def bn_gelu(x, g, b):
        return _gelu(_batchnorm_train(x, g[...], b[...]))

    # Layer 1 without materializing the 44-ch concat: BN stats are
    # per-channel, so per-block BN + summed row-block matmuls are identical.
    h = (jnp.dot(bn_gelu(pre10c, g1a, b1a), w1a[...], preferred_element_type=f32)
         + jnp.dot(bn_gelu(pre20_ref[...], g1b, b1b), w1b[...],
                   preferred_element_type=f32)
         + jnp.dot(bn_gelu(post10c, g1c, b1c), w1c[...], preferred_element_type=f32)
         + jnp.dot(bn_gelu(post20_ref[...], g1d, b1d), w1d[...],
                   preferred_element_type=f32))
    h = jnp.dot(bn_gelu(h, g2, b2), w2[...], preferred_element_type=f32)
    h = jnp.dot(bn_gelu(h, g3, b3), w3[...], preferred_element_type=f32)
    h = jnp.dot(bn_gelu(h, g4, b4), w4[...], preferred_element_type=f32)   # [9B,512]

    # ---- stage 3: GELU -> conv2 (3x3/s3 over the whole 3x3 map == sum over
    # the 9 taps).  Rows are ordered (spatial, batch), so tap s is the
    # contiguous row block [s*B, (s+1)*B).  bf16 operands, f32 accumulation.
    gact = _gelu(h)
    bsz = o_ref.shape[0]
    acc = jnp.zeros((bsz, 512), f32)
    for s in range(9):  # static unroll; each iter is a [B,512]@[512,512] matmul
        lhs = gact[s * bsz:(s + 1) * bsz, :].astype(jnp.bfloat16)
        acc = acc + jnp.dot(lhs, wc2_ref[s], preferred_element_type=f32)

    # ---- Mlp head: fc1 -> GELU(LN1) -> fc2 -> GELU(LN2) -> fc3 (lane-padded).
    z = jnp.dot(acc, fc1w[...], preferred_element_type=f32) + fc1b[...]
    z = _gelu(_layernorm(z, ln1g[...], ln1b[...]))
    z = jnp.dot(z, fc2w[...], preferred_element_type=f32) + fc2b[...]
    z = _gelu(_layernorm(z, ln2g[...], ln2b[...]))
    o_ref[...] = jnp.dot(z, fc3w[...], preferred_element_type=f32) + fc3b[...]


# -------------------- wrapper: input layout plumbing only --------------------

def _im2col_2x2_s2(x):
    # [B, C, H, W] NCHW -> [(H//2)*(W//2)*B, C*4]; rows ordered (oh, ow, b),
    # patch columns ordered (c, kh, kw) to match the conv weight layout.
    B, C, H, W = x.shape
    x = x.reshape(B, C, H // 2, 2, W // 2, 2)
    x = x.transpose(2, 4, 0, 1, 3, 5)          # oh, ow, B, C, kh, kw
    return x.reshape((H // 2) * (W // 2) * B, C * 4)


def _flatten_sb(x):
    # [B, C, H, W] -> [H*W*B, C]; rows ordered (h, w, b), channels last.
    B, C, H, W = x.shape
    return x.transpose(2, 3, 0, 1).reshape(H * W * B, C)


def simplenet_forward(img10, img20, p, *, n_class):
    img10 = img10.astype(jnp.float32)
    img20 = img20.astype(jnp.float32)
    B = img10.shape[0]
    c10 = img10.shape[1] // 2
    c20 = img20.shape[1] // 2
    oh, ow = img10.shape[2] // 2, img10.shape[3] // 2
    assert (oh, ow) == (img20.shape[2], img20.shape[3]) == (3, 3), \
        "simplenet's Mlp(512) requires conv2 output 1x1, i.e. 6x6 / 3x3 inputs"

    # Tiny input-side layout work (<2 KiB of data); all weight layout work is
    # done once in init_params.
    pre10p = _im2col_2x2_s2(img10[:, :c10])      # [9B, 16]
    post10p = _im2col_2x2_s2(img10[:, c10:])     # [9B, 16]
    pre20f = _flatten_sb(img20[:, :c20])         # [9B, 6]
    post20f = _flatten_sb(img20[:, c20:])        # [9B, 6]

    inputs = (pre10p, post10p, pre20f, post20f,
              p["wconv"],
              *p["bn1a"], *p["bn1b"], *p["bn1c"], *p["bn1d"],
              p["w1a"], p["w1b"], p["w1c"], p["w1d"],
              *p["bn2"], p["w2"],
              *p["bn3"], p["w3"],
              *p["bn4"], p["w4"],
              p["wc2"],
              p["fc1w"], p["fc1b"], p["ln1g"], p["ln1b"],
              p["fc2w"], p["fc2b"], p["ln2g"], p["ln2b"],
              p["fc3w"], p["fc3b"])

    vmem = pl.BlockSpec(memory_space=pltpu.MemorySpace.VMEM)
    out = pl.pallas_call(
        _fused_kernel,
        out_shape=jax.ShapeDtypeStruct((B, 128), jnp.float32),   # lane-dense
        in_specs=[vmem] * len(inputs),
        out_specs=vmem,
        compiler_params=pltpu.CompilerParams(
            vmem_limit_bytes=32 * 1024 * 1024),
    )(*inputs)
    return out[:, :n_class]                      # drop lane padding


# -------------------- parameter init (weights pre-laid-out here) -----------

def init_params(key, n_class):
    keys = iter(jax.random.split(key, 32))

    def nrm(shape, scale=0.05):
        return (scale * jax.random.normal(next(keys), shape)).astype(jnp.float32)

    def affine(c):
        g = (1.0 + 0.1 * jax.random.normal(next(keys), (1, c))).astype(jnp.float32)
        b = (0.1 * jax.random.normal(next(keys), (1, c))).astype(jnp.float32)
        return g, b

    # torch-layout parameters (what the nn.Module would hold)
    conv_w = nrm((16, 4, 2, 2))                  # Conv2d(4,16,2,2)  (Cout,Cin,kh,kw)
    bn1, bn2, bn3, bn4 = affine(44), affine(64), affine(128), affine(256)
    fn1_w = nrm((64, 44, 1, 1))
    fn2_w = nrm((128, 64, 1, 1))
    fn3_w = nrm((256, 128, 1, 1))
    fn4_w = nrm((512, 256, 1, 1))
    conv2_w = nrm((512, 512, 3, 3))
    fc1_w, fc1_b = nrm((128, 512)), nrm((1, 128))
    fc2_w, fc2_b = nrm((32, 128)), nrm((1, 32))
    fc3_w, fc3_b = nrm((n_class, 32)), nrm((1, n_class))
    ln1, ln2 = affine(128), affine(32)

    # One-time conversion to the kernel layout (init-time, never per-forward).
    def w1x1(w):                                  # (Cout,Cin,1,1) -> (Cin,Cout)
        return w[:, :, 0, 0].T

    w1 = w1x1(fn1_w)                              # [44, 64]
    g1, b1 = bn1
    return {
        "wconv": conv_w.reshape(16, 16).T,        # [(ci,kh,kw), Cout]
        # 44-ch order: pre10c(0:16) pre20(16:22) post10c(22:38) post20(38:44)
        "bn1a": (g1[:, 0:16], b1[:, 0:16]),
        "bn1b": (g1[:, 16:22], b1[:, 16:22]),
        "bn1c": (g1[:, 22:38], b1[:, 22:38]),
        "bn1d": (g1[:, 38:44], b1[:, 38:44]),
        "w1a": w1[0:16], "w1b": w1[16:22], "w1c": w1[22:38], "w1d": w1[38:44],
        "bn2": bn2, "w2": w1x1(fn2_w),
        "bn3": bn3, "w3": w1x1(fn3_w),
        "bn4": bn4, "w4": w1x1(fn4_w),
        # conv2 as [tap = kh*3+kw, Cin, Cout] in bf16 (dominant HBM transfer)
        "wc2": conv2_w.transpose(2, 3, 1, 0).reshape(9, 512, 512)
                      .astype(jnp.bfloat16),
        "fc1w": fc1_w.T, "fc1b": fc1_b, "ln1g": ln1[0], "ln1b": ln1[1],
        "fc2w": fc2_w.T, "fc2b": fc2_b, "ln2g": ln2[0], "ln2b": ln2[1],
        # fc3 zero-padded to a lane-dense 128-wide output
        "fc3w": jnp.pad(fc3_w.T, ((0, 0), (0, 128 - n_class))),
        "fc3b": jnp.pad(fc3_b, ((0, 0), (0, 128 - n_class))),
    }


if __name__ == "__main__":
    key = jax.random.PRNGKey(0)
    k1, k2, kp = jax.random.split(key, 3)
    B, n_class = 2, 10
    # x[0]: 8-channel 6x6 image (split 4+4 for the shared conv),
    # x[1]: 12-channel 3x3 image (split 6+6), NCHW like PyTorch.
    img10 = jax.random.normal(k1, (B, 8, 6, 6), jnp.float32)
    img20 = jax.random.normal(k2, (B, 12, 3, 3), jnp.float32)
    params = init_params(kp, n_class)

    fwd = jax.jit(simplenet_forward, static_argnames="n_class")
    out = fwd(img10, img20, params, n_class=n_class)
    jax.block_until_ready(out)
    assert out.shape == (B, n_class) and out.dtype == jnp.float32
    print("KERNEL_OK")
</pallas_src>

<mosaic_0001>
module attributes {stable_mosaic.version = 11 : i64} {
  func.func @_fused_kernel(%arg0: memref<18x16xf32, #tpu.memory_space<vmem>>, %arg1: memref<18x16xf32, #tpu.memory_space<vmem>>, %arg2: memref<18x6xf32, #tpu.memory_space<vmem>>, %arg3: memref<18x6xf32, #tpu.memory_space<vmem>>, %arg4: memref<16x16xf32, #tpu.memory_space<vmem>>, %arg5: memref<1x16xf32, #tpu.memory_space<vmem>>, %arg6: memref<1x16xf32, #tpu.memory_space<vmem>>, %arg7: memref<1x6xf32, #tpu.memory_space<vmem>>, %arg8: memref<1x6xf32, #tpu.memory_space<vmem>>, %arg9: memref<1x16xf32, #tpu.memory_space<vmem>>, %arg10: memref<1x16xf32, #tpu.memory_space<vmem>>, %arg11: memref<1x6xf32, #tpu.memory_space<vmem>>, %arg12: memref<1x6xf32, #tpu.memory_space<vmem>>, %arg13: memref<16x64xf32, #tpu.memory_space<vmem>>, %arg14: memref<6x64xf32, #tpu.memory_space<vmem>>, %arg15: memref<16x64xf32, #tpu.memory_space<vmem>>, %arg16: memref<6x64xf32, #tpu.memory_space<vmem>>, %arg17: memref<1x64xf32, #tpu.memory_space<vmem>>, %arg18: memref<1x64xf32, #tpu.memory_space<vmem>>, %arg19: memref<64x128xf32, #tpu.memory_space<vmem>>, %arg20: memref<1x128xf32, #tpu.memory_space<vmem>>, %arg21: memref<1x128xf32, #tpu.memory_space<vmem>>, %arg22: memref<128x256xf32, #tpu.memory_space<vmem>>, %arg23: memref<1x256xf32, #tpu.memory_space<vmem>>, %arg24: memref<1x256xf32, #tpu.memory_space<vmem>>, %arg25: memref<256x512xf32, #tpu.memory_space<vmem>>, %arg26: memref<9x512x512xbf16, #tpu.memory_space<vmem>>, %arg27: memref<512x128xf32, #tpu.memory_space<vmem>>, %arg28: memref<1x128xf32, #tpu.memory_space<vmem>>, %arg29: memref<1x128xf32, #tpu.memory_space<vmem>>, %arg30: memref<1x128xf32, #tpu.memory_space<vmem>>, %arg31: memref<128x32xf32, #tpu.memory_space<vmem>>, %arg32: memref<1x32xf32, #tpu.memory_space<vmem>>, %arg33: memref<1x32xf32, #tpu.memory_space<vmem>>, %arg34: memref<1x32xf32, #tpu.memory_space<vmem>>, %arg35: memref<32x128xf32, #tpu.memory_space<vmem>>, %arg36: memref<1x128xf32, #tpu.memory_space<vmem>>, %arg37: memref<2x128xf32, #tpu.memory_space<vmem>>) attributes {dimension_semantics = [], scalar_prefetch = 0 : i64, scratch_operands = 0 : i64, tpu.core_type = #tpu.core_type<tc>} {
    %c0 = arith.constant 0 : index
    %c0_0 = arith.constant 0 : index
    %0 = vector.load %arg4[%c0, %c0_0] : memref<16x16xf32, #tpu.memory_space<vmem>>, vector<16x16xf32>
    %c0_1 = arith.constant 0 : index
    %c0_2 = arith.constant 0 : index
    %1 = vector.load %arg0[%c0_1, %c0_2] : memref<18x16xf32, #tpu.memory_space<vmem>>, vector<18x16xf32>
    %cst = arith.constant dense<0.000000e+00> : vector<18x16xf32>
    %2 = tpu.matmul %1, %0, %cst {dimension_numbers = #tpu.dot_dimension_numbers<[1], [0], [0], [1], [0, 0, 1, 1], [], []>} : vector<18x16xf32>, vector<16x16xf32>, vector<18x16xf32> -> vector<18x16xf32>
    %c0_3 = arith.constant 0 : index
    %c0_4 = arith.constant 0 : index
    %3 = vector.load %arg1[%c0_3, %c0_4] : memref<18x16xf32, #tpu.memory_space<vmem>>, vector<18x16xf32>
    %cst_5 = arith.constant dense<0.000000e+00> : vector<18x16xf32>
    %4 = tpu.matmul %3, %0, %cst_5 {dimension_numbers = #tpu.dot_dimension_numbers<[1], [0], [0], [1], [0, 0, 1, 1], [], []>} : vector<18x16xf32>, vector<16x16xf32>, vector<18x16xf32> -> vector<18x16xf32>
    %c0_6 = arith.constant 0 : index
    %c0_7 = arith.constant 0 : index
    %5 = vector.load %arg5[%c0_6, %c0_7] : memref<1x16xf32, #tpu.memory_space<vmem>>, vector<1x16xf32>
    %c0_8 = arith.constant 0 : index
    %c0_9 = arith.constant 0 : index
    %6 = vector.load %arg6[%c0_8, %c0_9] : memref<1x16xf32, #tpu.memory_space<vmem>>, vector<1x16xf32>
    %cst_10 = arith.constant dense<0.000000e+00> : vector<16xf32>
    %7 = vector.multi_reduction <add>, %2, %cst_10 [0] : vector<18x16xf32> to vector<16xf32>
    %8 = vector.shape_cast %7 : vector<16xf32> to vector<1x16xf32>
    %cst_11 = arith.constant 1.800000e+01 : f32
    %9 = vector.broadcast %cst_11 : f32 to vector<1x16xf32>
    %10 = arith.divf %8, %9 : vector<1x16xf32>
    %11 = vector.broadcast %10 : vector<1x16xf32> to vector<18x16xf32>
    %12 = arith.subf %2, %11 : vector<18x16xf32>
    %13 = arith.mulf %12, %12 : vector<18x16xf32>
    %cst_12 = arith.constant dense<0.000000e+00> : vector<16xf32>
    %14 = vector.multi_reduction <add>, %13, %cst_12 [0] : vector<18x16xf32> to vector<16xf32>
    %15 = vector.shape_cast %14 : vector<16xf32> to vector<1x16xf32>
    %cst_13 = arith.constant 1.800000e+01 : f32
    %16 = vector.broadcast %cst_13 : f32 to vector<1x16xf32>
    %17 = arith.divf %15, %16 : vector<1x16xf32>
    %18 = vector.broadcast %10 : vector<1x16xf32> to vector<18x16xf32>
    %19 = arith.subf %2, %18 : vector<18x16xf32>
    %cst_14 = arith.constant 9.99999974E-6 : f32
    %20 = vector.broadcast %cst_14 : f32 to vector<1x16xf32>
    %21 = arith.addf %17, %20 : vector<1x16xf32>
    %22 = math.rsqrt %21 : vector<1x16xf32>
    %23 = vector.broadcast %22 : vector<1x16xf32> to vector<18x16xf32>
    %24 = arith.mulf %19, %23 : vector<18x16xf32>
    %25 = vector.broadcast %5 : vector<1x16xf32> to vector<18x16xf32>
    %26 = arith.mulf %24, %25 : vector<18x16xf32>
    %27 = vector.broadcast %6 : vector<1x16xf32> to vector<18x16xf32>
    %28 = arith.addf %26, %27 : vector<18x16xf32>
    %cst_15 = arith.constant 5.000000e-01 : f32
    %29 = vector.broadcast %cst_15 : f32 to vector<18x16xf32>
    %30 = arith.mulf %29, %28 : vector<18x16xf32>
    %cst_16 = arith.constant 0.707106769 : f32
    %31 = vector.broadcast %cst_16 : f32 to vector<18x16xf32>
    %32 = arith.mulf %28, %31 : vector<18x16xf32>
    %33 = math.absf %32 : vector<18x16xf32>
    %cst_17 = arith.constant 0.327591091 : f32
    %34 = vector.broadcast %cst_17 : f32 to vector<18x16xf32>
    %35 = arith.mulf %34, %33 : vector<18x16xf32>
    %cst_18 = arith.constant 1.000000e+00 : f32
    %36 = vector.broadcast %cst_18 : f32 to vector<18x16xf32>
    %37 = arith.addf %36, %35 : vector<18x16xf32>
    %cst_19 = arith.constant 1.000000e+00 : f32
    %38 = vector.broadcast %cst_19 : f32 to vector<18x16xf32>
    %39 = arith.divf %38, %37 : vector<18x16xf32>
    %cst_20 = arith.constant 1.06140542 : f32
    %40 = vector.broadcast %cst_20 : f32 to vector<18x16xf32>
    %41 = arith.mulf %40, %39 : vector<18x16xf32>
    %cst_21 = arith.constant -1.45315206 : f32
    %42 = vector.broadcast %cst_21 : f32 to vector<18x16xf32>
    %43 = arith.addf %41, %42 : vector<18x16xf32>
    %44 = arith.mulf %43, %39 : vector<18x16xf32>
    %cst_22 = arith.constant 1.42141378 : f32
    %45 = vector.broadcast %cst_22 : f32 to vector<18x16xf32>
    %46 = arith.addf %44, %45 : vector<18x16xf32>
    %47 = arith.mulf %46, %39 : vector<18x16xf32>
    %cst_23 = arith.constant -0.284496725 : f32
    %48 = vector.broadcast %cst_23 : f32 to vector<18x16xf32>
    %49 = arith.addf %47, %48 : vector<18x16xf32>
    %50 = arith.mulf %49, %39 : vector<18x16xf32>
    %cst_24 = arith.constant 0.254829586 : f32
    %51 = vector.broadcast %cst_24 : f32 to vector<18x16xf32>
    %52 = arith.addf %50, %51 : vector<18x16xf32>
    %53 = arith.mulf %52, %39 : vector<18x16xf32>
    %cst_25 = arith.constant 0.000000e+00 : f32
    %54 = vector.broadcast %cst_25 : f32 to vector<18x16xf32>
    %55 = arith.subf %54, %33 : vector<18x16xf32>
    %56 = arith.mulf %55, %33 : vector<18x16xf32>
    %57 = math.exp %56 : vector<18x16xf32>
    %58 = arith.mulf %53, %57 : vector<18x16xf32>
    %cst_26 = arith.constant 1.000000e+00 : f32
    %59 = vector.broadcast %cst_26 : f32 to vector<18x16xf32>
    %60 = arith.subf %59, %58 : vector<18x16xf32>
    %cst_27 = arith.constant 0.000000e+00 : f32
    %61 = vector.broadcast %cst_27 : f32 to vector<18x16xf32>
    %62 = arith.cmpf oge, %32, %61 : vector<18x16xf32>
    %cst_28 = arith.constant 0.000000e+00 : f32
    %63 = vector.broadcast %cst_28 : f32 to vector<18x16xf32>
    %64 = arith.subf %63, %60 : vector<18x16xf32>
    %65 = arith.select %62, %60, %64 : vector<18x16xi1>, vector<18x16xf32>
    %cst_29 = arith.constant 1.000000e+00 : f32
    %66 = vector.broadcast %cst_29 : f32 to vector<18x16xf32>
    %67 = arith.addf %66, %65 : vector<18x16xf32>
    %68 = arith.mulf %30, %67 : vector<18x16xf32>
    %c0_30 = arith.constant 0 : index
    %c0_31 = arith.constant 0 : index
    %69 = vector.load %arg13[%c0_30, %c0_31] : memref<16x64xf32, #tpu.memory_space<vmem>>, vector<16x64xf32>
    %cst_32 = arith.constant dense<0.000000e+00> : vector<18x64xf32>
    %70 = tpu.matmul %68, %69, %cst_32 {dimension_numbers = #tpu.dot_dimension_numbers<[1], [0], [0], [1], [0, 0, 1, 1], [], []>} : vector<18x16xf32>, vector<16x64xf32>, vector<18x64xf32> -> vector<18x64xf32>
    %c0_33 = arith.constant 0 : index
    %c0_34 = arith.constant 0 : index
    %71 = vector.load %arg2[%c0_33, %c0_34] : memref<18x6xf32, #tpu.memory_space<vmem>>, vector<18x6xf32>
    %c0_35 = arith.constant 0 : index
    %c0_36 = arith.constant 0 : index
    %72 = vector.load %arg7[%c0_35, %c0_36] : memref<1x6xf32, #tpu.memory_space<vmem>>, vector<1x6xf32>
    %c0_37 = arith.constant 0 : index
    %c0_38 = arith.constant 0 : index
    %73 = vector.load %arg8[%c0_37, %c0_38] : memref<1x6xf32, #tpu.memory_space<vmem>>, vector<1x6xf32>
    %cst_39 = arith.constant dense<0.000000e+00> : vector<6xf32>
    %74 = vector.multi_reduction <add>, %71, %cst_39 [0] : vector<18x6xf32> to vector<6xf32>
    %75 = vector.shape_cast %74 : vector<6xf32> to vector<1x6xf32>
    %cst_40 = arith.constant 1.800000e+01 : f32
    %76 = vector.broadcast %cst_40 : f32 to vector<1x6xf32>
    %77 = arith.divf %75, %76 : vector<1x6xf32>
    %78 = vector.broadcast %77 : vector<1x6xf32> to vector<18x6xf32>
    %79 = arith.subf %71, %78 : vector<18x6xf32>
    %80 = arith.mulf %79, %79 : vector<18x6xf32>
    %cst_41 = arith.constant dense<0.000000e+00> : vector<6xf32>
    %81 = vector.multi_reduction <add>, %80, %cst_41 [0] : vector<18x6xf32> to vector<6xf32>
    %82 = vector.shape_cast %81 : vector<6xf32> to vector<1x6xf32>
    %cst_42 = arith.constant 1.800000e+01 : f32
    %83 = vector.broadcast %cst_42 : f32 to vector<1x6xf32>
    %84 = arith.divf %82, %83 : vector<1x6xf32>
    %85 = vector.broadcast %77 : vector<1x6xf32> to vector<18x6xf32>
    %86 = arith.subf %71, %85 : vector<18x6xf32>
    %cst_43 = arith.constant 9.99999974E-6 : f32
    %87 = vector.broadcast %cst_43 : f32 to vector<1x6xf32>
    %88 = arith.addf %84, %87 : vector<1x6xf32>
    %89 = math.rsqrt %88 : vector<1x6xf32>
    %90 = vector.broadcast %89 : vector<1x6xf32> to vector<18x6xf32>
    %91 = arith.mulf %86, %90 : vector<18x6xf32>
    %92 = vector.broadcast %72 : vector<1x6xf32> to vector<18x6xf32>
    %93 = arith.mulf %91, %92 : vector<18x6xf32>
    %94 = vector.broadcast %73 : vector<1x6xf32> to vector<18x6xf32>
    %95 = arith.addf %93, %94 : vector<18x6xf32>
    %cst_44 = arith.constant 5.000000e-01 : f32
    %96 = vector.broadcast %cst_44 : f32 to vector<18x6xf32>
    %97 = arith.mulf %96, %95 : vector<18x6xf32>
    %cst_45 = arith.constant 0.707106769 : f32
    %98 = vector.broadcast %cst_45 : f32 to vector<18x6xf32>
    %99 = arith.mulf %95, %98 : vector<18x6xf32>
    %100 = math.absf %99 : vector<18x6xf32>
    %cst_46 = arith.constant 0.327591091 : f32
    %101 = vector.broadcast %cst_46 : f32 to vector<18x6xf32>
    %102 = arith.mulf %101, %100 : vector<18x6xf32>
    %cst_47 = arith.constant 1.000000e+00 : f32
    %103 = vector.broadcast %cst_47 : f32 to vector<18x6xf32>
    %104 = arith.addf %103, %102 : vector<18x6xf32>
    %cst_48 = arith.constant 1.000000e+00 : f32
    %105 = vector.broadcast %cst_48 : f32 to vector<18x6xf32>
    %106 = arith.divf %105, %104 : vector<18x6xf32>
    %cst_49 = arith.constant 1.06140542 : f32
    %107 = vector.broadcast %cst_49 : f32 to vector<18x6xf32>
    %108 = arith.mulf %107, %106 : vector<18x6xf32>
    %cst_50 = arith.constant -1.45315206 : f32
    %109 = vector.broadcast %cst_50 : f32 to vector<18x6xf32>
    %110 = arith.addf %108, %109 : vector<18x6xf32>
    %111 = arith.mulf %110, %106 : vector<18x6xf32>
    %cst_51 = arith.constant 1.42141378 : f32
    %112 = vector.broadcast %cst_51 : f32 to vector<18x6xf32>
    %113 = arith.addf %111, %112 : vector<18x6xf32>
    %114 = arith.mulf %113, %106 : vector<18x6xf32>
    %cst_52 = arith.constant -0.284496725 : f32
    %115 = vector.broadcast %cst_52 : f32 to vector<18x6xf32>
    %116 = arith.addf %114, %115 : vector<18x6xf32>
    %117 = arith.mulf %116, %106 : vector<18x6xf32>
    %cst_53 = arith.constant 0.254829586 : f32
    %118 = vector.broadcast %cst_53 : f32 to vector<18x6xf32>
    %119 = arith.addf %117, %118 : vector<18x6xf32>
    %120 = arith.mulf %119, %106 : vector<18x6xf32>
    %cst_54 = arith.constant 0.000000e+00 : f32
    %121 = vector.broadcast %cst_54 : f32 to vector<18x6xf32>
    %122 = arith.subf %121, %100 : vector<18x6xf32>
    %123 = arith.mulf %122, %100 : vector<18x6xf32>
    %124 = math.exp %123 : vector<18x6xf32>
    %125 = arith.mulf %120, %124 : vector<18x6xf32>
    %cst_55 = arith.constant 1.000000e+00 : f32
    %126 = vector.broadcast %cst_55 : f32 to vector<18x6xf32>
    %127 = arith.subf %126, %125 : vector<18x6xf32>
    %cst_56 = arith.constant 0.000000e+00 : f32
    %128 = vector.broadcast %cst_56 : f32 to vector<18x6xf32>
    %129 = arith.cmpf oge, %99, %128 : vector<18x6xf32>
    %cst_57 = arith.constant 0.000000e+00 : f32
    %130 = vector.broadcast %cst_57 : f32 to vector<18x6xf32>
    %131 = arith.subf %130, %127 : vector<18x6xf32>
    %132 = arith.select %129, %127, %131 : vector<18x6xi1>, vector<18x6xf32>
    %cst_58 = arith.constant 1.000000e+00 : f32
    %133 = vector.broadcast %cst_58 : f32 to vector<18x6xf32>
    %134 = arith.addf %133, %132 : vector<18x6xf32>
    %135 = arith.mulf %97, %134 : vector<18x6xf32>
    %c0_59 = arith.constant 0 : index
    %c0_60 = arith.constant 0 : index
    %136 = vector.load %arg14[%c0_59, %c0_60] : memref<6x64xf32, #tpu.memory_space<vmem>>, vector<6x64xf32>
    %cst_61 = arith.constant dense<0.000000e+00> : vector<18x64xf32>
    %137 = tpu.matmul %135, %136, %cst_61 {dimension_numbers = #tpu.dot_dimension_numbers<[1], [0], [0], [1], [0, 0, 1, 1], [], []>} : vector<18x6xf32>, vector<6x64xf32>, vector<18x64xf32> -> vector<18x64xf32>
    %138 = arith.addf %70, %137 : vector<18x64xf32>
    %c0_62 = arith.constant 0 : index
    %c0_63 = arith.constant 0 : index
    %139 = vector.load %arg9[%c0_62, %c0_63] : memref<1x16xf32, #tpu.memory_space<vmem>>, vector<1x16xf32>
    %c0_64 = arith.constant 0 : index
    %c0_65 = arith.constant 0 : index
    %140 = vector.load %arg10[%c0_64, %c0_65] : memref<1x16xf32, #tpu.memory_space<vmem>>, vector<1x16xf32>
    %cst_66 = arith.constant dense<0.000000e+00> : vector<16xf32>
    %141 = vector.multi_reduction <add>, %4, %cst_66 [0] : vector<18x16xf32> to vector<16xf32>
    %142 = vector.shape_cast %141 : vector<16xf32> to vector<1x16xf32>
    %cst_67 = arith.constant 1.800000e+01 : f32
    %143 = vector.broadcast %cst_67 : f32 to vector<1x16xf32>
    %144 = arith.divf %142, %143 : vector<1x16xf32>
    %145 = vector.broadcast %144 : vector<1x16xf32> to vector<18x16xf32>
    %146 = arith.subf %4, %145 : vector<18x16xf32>
    %147 = arith.mulf %146, %146 : vector<18x16xf32>
    %cst_68 = arith.constant dense<0.000000e+00> : vector<16xf32>
    %148 = vector.multi_reduction <add>, %147, %cst_68 [0] : vector<18x16xf32> to vector<16xf32>
    %149 = vector.shape_cast %148 : vector<16xf32> to vector<1x16xf32>
    %cst_69 = arith.constant 1.800000e+01 : f32
    %150 = vector.broadcast %cst_69 : f32 to vector<1x16xf32>
    %151 = arith.divf %149, %150 : vector<1x16xf32>
    %152 = vector.broadcast %144 : vector<1x16xf32> to vector<18x16xf32>
    %153 = arith.subf %4, %152 : vector<18x16xf32>
    %cst_70 = arith.constant 9.99999974E-6 : f32
    %154 = vector.broadcast %cst_70 : f32 to vector<1x16xf32>
    %155 = arith.addf %151, %154 : vector<1x16xf32>
    %156 = math.rsqrt %155 : vector<1x16xf32>
    %157 = vector.broadcast %156 : vector<1x16xf32> to vector<18x16xf32>
    %158 = arith.mulf %153, %157 : vector<18x16xf32>
    %159 = vector.broadcast %139 : vector<1x16xf32> to vector<18x16xf32>
    %160 = arith.mulf %158, %159 : vector<18x16xf32>
    %161 = vector.broadcast %140 : vector<1x16xf32> to vector<18x16xf32>
    %162 = arith.addf %160, %161 : vector<18x16xf32>
    %cst_71 = arith.constant 5.000000e-01 : f32
    %163 = vector.broadcast %cst_71 : f32 to vector<18x16xf32>
    %164 = arith.mulf %163, %162 : vector<18x16xf32>
    %cst_72 = arith.constant 0.707106769 : f32
    %165 = vector.broadcast %cst_72 : f32 to vector<18x16xf32>
    %166 = arith.mulf %162, %165 : vector<18x16xf32>
    %167 = math.absf %166 : vector<18x16xf32>
    %cst_73 = arith.constant 0.327591091 : f32
    %168 = vector.broadcast %cst_73 : f32 to vector<18x16xf32>
    %169 = arith.mulf %168, %167 : vector<18x16xf32>
    %cst_74 = arith.constant 1.000000e+00 : f32
    %170 = vector.broadcast %cst_74 : f32 to vector<18x16xf32>
    %171 = arith.addf %170, %169 : vector<18x16xf32>
    %cst_75 = arith.constant 1.000000e+00 : f32
    %172 = vector.broadcast %cst_75 : f32 to vector<18x16xf32>
    %173 = arith.divf %172, %171 : vector<18x16xf32>
    %cst_76 = arith.constant 1.06140542 : f32
    %174 = vector.broadcast %cst_76 : f32 to vector<18x16xf32>
    %175 = arith.mulf %174, %173 : vector<18x16xf32>
    %cst_77 = arith.constant -1.45315206 : f32
    %176 = vector.broadcast %cst_77 : f32 to vector<18x16xf32>
    %177 = arith.addf %175, %176 : vector<18x16xf32>
    %178 = arith.mulf %177, %173 : vector<18x16xf32>
    %cst_78 = arith.constant 1.42141378 : f32
    %179 = vector.broadcast %cst_78 : f32 to vector<18x16xf32>
    %180 = arith.addf %178, %179 : vector<18x16xf32>
    %181 = arith.mulf %180, %173 : vector<18x16xf32>
    %cst_79 = arith.constant -0.284496725 : f32
    %182 = vector.broadcast %cst_79 : f32 to vector<18x16xf32>
    %183 = arith.addf %181, %182 : vector<18x16xf32>
    %184 = arith.mulf %183, %173 : vector<18x16xf32>
    %cst_80 = arith.constant 0.254829586 : f32
    %185 = vector.broadcast %cst_80 : f32 to vector<18x16xf32>
    %186 = arith.addf %184, %185 : vector<18x16xf32>
    %187 = arith.mulf %186, %173 : vector<18x16xf32>
    %cst_81 = arith.constant 0.000000e+00 : f32
    %188 = vector.broadcast %cst_81 : f32 to vector<18x16xf32>
    %189 = arith.subf %188, %167 : vector<18x16xf32>
    %190 = arith.mulf %189, %167 : vector<18x16xf32>
    %191 = math.exp %190 : vector<18x16xf32>
    %192 = arith.mulf %187, %191 : vector<18x16xf32>
    %cst_82 = arith.constant 1.000000e+00 : f32
    %193 = vector.broadcast %cst_82 : f32 to vector<18x16xf32>
    %194 = arith.subf %193, %192 : vector<18x16xf32>
    %cst_83 = arith.constant 0.000000e+00 : f32
    %195 = vector.broadcast %cst_83 : f32 to vector<18x16xf32>
    %196 = arith.cmpf oge, %166, %195 : vector<18x16xf32>
    %cst_84 = arith.constant 0.000000e+00 : f32
    %197 = vector.broadcast %cst_84 : f32 to vector<18x16xf32>
    %198 = arith.subf %197, %194 : vector<18x16xf32>
    %199 = arith.select %196, %194, %198 : vector<18x16xi1>, vector<18x16xf32>
    %cst_85 = arith.constant 1.000000e+00 : f32
    %200 = vector.broadcast %cst_85 : f32 to vector<18x16xf32>
    %201 = arith.addf %200, %199 : vector<18x16xf32>
    %202 = arith.mulf %164, %201 : vector<18x16xf32>
    %c0_86 = arith.constant 0 : index
    %c0_87 = arith.constant 0 : index
    %203 = vector.load %arg15[%c0_86, %c0_87] : memref<16x64xf32, #tpu.memory_space<vmem>>, vector<16x64xf32>
    %cst_88 = arith.constant dense<0.000000e+00> : vector<18x64xf32>
    %204 = tpu.matmul %202, %203, %cst_88 {dimension_numbers = #tpu.dot_dimension_numbers<[1], [0], [0], [1], [0, 0, 1, 1], [], []>} : vector<18x16xf32>, vector<16x64xf32>, vector<18x64xf32> -> vector<18x64xf32>
    %205 = arith.addf %138, %204 : vector<18x64xf32>
    %c0_89 = arith.constant 0 : index
    %c0_90 = arith.constant 0 : index
    %206 = vector.load %arg3[%c0_89, %c0_90] : memref<18x6xf32, #tpu.memory_space<vmem>>, vector<18x6xf32>
    %c0_91 = arith.constant 0 : index
    %c0_92 = arith.constant 0 : index
    %207 = vector.load %arg11[%c0_91, %c0_92] : memref<1x6xf32, #tpu.memory_space<vmem>>, vector<1x6xf32>
    %c0_93 = arith.constant 0 : index
    %c0_94 = arith.constant 0 : index
    %208 = vector.load %arg12[%c0_93, %c0_94] : memref<1x6xf32, #tpu.memory_space<vmem>>, vector<1x6xf32>
    %cst_95 = arith.constant dense<0.000000e+00> : vector<6xf32>
    %209 = vector.multi_reduction <add>, %206, %cst_95 [0] : vector<18x6xf32> to vector<6xf32>
    %210 = vector.shape_cast %209 : vector<6xf32> to vector<1x6xf32>
    %cst_96 = arith.constant 1.800000e+01 : f32
    %211 = vector.broadcast %cst_96 : f32 to vector<1x6xf32>
    %212 = arith.divf %210, %211 : vector<1x6xf32>
    %213 = vector.broadcast %212 : vector<1x6xf32> to vector<18x6xf32>
    %214 = arith.subf %206, %213 : vector<18x6xf32>
    %215 = arith.mulf %214, %214 : vector<18x6xf32>
    %cst_97 = arith.constant dense<0.000000e+00> : vector<6xf32>
    %216 = vector.multi_reduction <add>, %215, %cst_97 [0] : vector<18x6xf32> to vector<6xf32>
    %217 = vector.shape_cast %216 : vector<6xf32> to vector<1x6xf32>
    %cst_98 = arith.constant 1.800000e+01 : f32
    %218 = vector.broadcast %cst_98 : f32 to vector<1x6xf32>
    %219 = arith.divf %217, %218 : vector<1x6xf32>
    %220 = vector.broadcast %212 : vector<1x6xf32> to vector<18x6xf32>
    %221 = arith.subf %206, %220 : vector<18x6xf32>
    %cst_99 = arith.constant 9.99999974E-6 : f32
    %222 = vector.broadcast %cst_99 : f32 to vector<1x6xf32>
    %223 = arith.addf %219, %222 : vector<1x6xf32>
    %224 = math.rsqrt %223 : vector<1x6xf32>
    %225 = vector.broadcast %224 : vector<1x6xf32> to vector<18x6xf32>
    %226 = arith.mulf %221, %225 : vector<18x6xf32>
    %227 = vector.broadcast %207 : vector<1x6xf32> to vector<18x6xf32>
    %228 = arith.mulf %226, %227 : vector<18x6xf32>
    %229 = vector.broadcast %208 : vector<1x6xf32> to vector<18x6xf32>
    %230 = arith.addf %228, %229 : vector<18x6xf32>
    %cst_100 = arith.constant 5.000000e-01 : f32
    %231 = vector.broadcast %cst_100 : f32 to vector<18x6xf32>
    %232 = arith.mulf %231, %230 : vector<18x6xf32>
    %cst_101 = arith.constant 0.707106769 : f32
    %233 = vector.broadcast %cst_101 : f32 to vector<18x6xf32>
    %234 = arith.mulf %230, %233 : vector<18x6xf32>
    %235 = math.absf %234 : vector<18x6xf32>
    %cst_102 = arith.constant 0.327591091 : f32
    %236 = vector.broadcast %cst_102 : f32 to vector<18x6xf32>
    %237 = arith.mulf %236, %235 : vector<18x6xf32>
    %cst_103 = arith.constant 1.000000e+00 : f32
    %238 = vector.broadcast %cst_103 : f32 to vector<18x6xf32>
    %239 = arith.addf %238, %237 : vector<18x6xf32>
    %cst_104 = arith.constant 1.000000e+00 : f32
    %240 = vector.broadcast %cst_104 : f32 to vector<18x6xf32>
    %241 = arith.divf %240, %239 : vector<18x6xf32>
    %cst_105 = arith.constant 1.06140542 : f32
    %242 = vector.broadcast %cst_105 : f32 to vector<18x6xf32>
    %243 = arith.mulf %242, %241 : vector<18x6xf32>
    %cst_106 = arith.constant -1.45315206 : f32
    %244 = vector.broadcast %cst_106 : f32 to vector<18x6xf32>
    %245 = arith.addf %243, %244 : vector<18x6xf32>
    %246 = arith.mulf %245, %241 : vector<18x6xf32>
    %cst_107 = arith.constant 1.42141378 : f32
    %247 = vector.broadcast %cst_107 : f32 to vector<18x6xf32>
    %248 = arith.addf %246, %247 : vector<18x6xf32>
    %249 = arith.mulf %248, %241 : vector<18x6xf32>
    %cst_108 = arith.constant -0.284496725 : f32
    %250 = vector.broadcast %cst_108 : f32 to vector<18x6xf32>
    %251 = arith.addf %249, %250 : vector<18x6xf32>
    %252 = arith.mulf %251, %241 : vector<18x6xf32>
    %cst_109 = arith.constant 0.254829586 : f32
    %253 = vector.broadcast %cst_109 : f32 to vector<18x6xf32>
    %254 = arith.addf %252, %253 : vector<18x6xf32>
    %255 = arith.mulf %254, %241 : vector<18x6xf32>
    %cst_110 = arith.constant 0.000000e+00 : f32
    %256 = vector.broadcast %cst_110 : f32 to vector<18x6xf32>
    %257 = arith.subf %256, %235 : vector<18x6xf32>
    %258 = arith.mulf %257, %235 : vector<18x6xf32>
    %259 = math.exp %258 : vector<18x6xf32>
    %260 = arith.mulf %255, %259 : vector<18x6xf32>
    %cst_111 = arith.constant 1.000000e+00 : f32
    %261 = vector.broadcast %cst_111 : f32 to vector<18x6xf32>
    %262 = arith.subf %261, %260 : vector<18x6xf32>
    %cst_112 = arith.constant 0.000000e+00 : f32
    %263 = vector.broadcast %cst_112 : f32 to vector<18x6xf32>
    %264 = arith.cmpf oge, %234, %263 : vector<18x6xf32>
    %cst_113 = arith.constant 0.000000e+00 : f32
    %265 = vector.broadcast %cst_113 : f32 to vector<18x6xf32>
    %266 = arith.subf %265, %262 : vector<18x6xf32>
    %267 = arith.select %264, %262, %266 : vector<18x6xi1>, vector<18x6xf32>
    %cst_114 = arith.constant 1.000000e+00 : f32
    %268 = vector.broadcast %cst_114 : f32 to vector<18x6xf32>
    %269 = arith.addf %268, %267 : vector<18x6xf32>
    %270 = arith.mulf %232, %269 : vector<18x6xf32>
    %c0_115 = arith.constant 0 : index
    %c0_116 = arith.constant 0 : index
    %271 = vector.load %arg16[%c0_115, %c0_116] : memref<6x64xf32, #tpu.memory_space<vmem>>, vector<6x64xf32>
    %cst_117 = arith.constant dense<0.000000e+00> : vector<18x64xf32>
    %272 = tpu.matmul %270, %271, %cst_117 {dimension_numbers = #tpu.dot_dimension_numbers<[1], [0], [0], [1], [0, 0, 1, 1], [], []>} : vector<18x6xf32>, vector<6x64xf32>, vector<18x64xf32> -> vector<18x64xf32>
    %273 = arith.addf %205, %272 : vector<18x64xf32>
    %c0_118 = arith.constant 0 : index
    %c0_119 = arith.constant 0 : index
    %274 = vector.load %arg17[%c0_118, %c0_119] : memref<1x64xf32, #tpu.memory_space<vmem>>, vector<1x64xf32>
    %c0_120 = arith.constant 0 : index
    %c0_121 = arith.constant 0 : index
    %275 = vector.load %arg18[%c0_120, %c0_121] : memref<1x64xf32, #tpu.memory_space<vmem>>, vector<1x64xf32>
    %cst_122 = arith.constant dense<0.000000e+00> : vector<64xf32>
    %276 = vector.multi_reduction <add>, %273, %cst_122 [0] : vector<18x64xf32> to vector<64xf32>
    %277 = vector.shape_cast %276 : vector<64xf32> to vector<1x64xf32>
    %cst_123 = arith.constant 1.800000e+01 : f32
    %278 = vector.broadcast %cst_123 : f32 to vector<1x64xf32>
    %279 = arith.divf %277, %278 : vector<1x64xf32>
    %280 = vector.broadcast %279 : vector<1x64xf32> to vector<18x64xf32>
    %281 = arith.subf %273, %280 : vector<18x64xf32>
    %282 = arith.mulf %281, %281 : vector<18x64xf32>
    %cst_124 = arith.constant dense<0.000000e+00> : vector<64xf32>
    %283 = vector.multi_reduction <add>, %282, %cst_124 [0] : vector<18x64xf32> to vector<64xf32>
    %284 = vector.shape_cast %283 : vector<64xf32> to vector<1x64xf32>
    %cst_125 = arith.constant 1.800000e+01 : f32
    %285 = vector.broadcast %cst_125 : f32 to vector<1x64xf32>
    %286 = arith.divf %284, %285 : vector<1x64xf32>
    %287 = vector.broadcast %279 : vector<1x64xf32> to vector<18x64xf32>
    %288 = arith.subf %273, %287 : vector<18x64xf32>
    %cst_126 = arith.constant 9.99999974E-6 : f32
    %289 = vector.broadcast %cst_126 : f32 to vector<1x64xf32>
    %290 = arith.addf %286, %289 : vector<1x64xf32>
    %291 = math.rsqrt %290 : vector<1x64xf32>
    %292 = vector.broadcast %291 : vector<1x64xf32> to vector<18x64xf32>
    %293 = arith.mulf %288, %292 : vector<18x64xf32>
    %294 = vector.broadcast %274 : vector<1x64xf32> to vector<18x64xf32>
    %295 = arith.mulf %293, %294 : vector<18x64xf32>
    %296 = vector.broadcast %275 : vector<1x64xf32> to vector<18x64xf32>
    %297 = arith.addf %295, %296 : vector<18x64xf32>
    %cst_127 = arith.constant 5.000000e-01 : f32
    %298 = vector.broadcast %cst_127 : f32 to vector<18x64xf32>
    %299 = arith.mulf %298, %297 : vector<18x64xf32>
    %cst_128 = arith.constant 0.707106769 : f32
    %300 = vector.broadcast %cst_128 : f32 to vector<18x64xf32>
    %301 = arith.mulf %297, %300 : vector<18x64xf32>
    %302 = math.absf %301 : vector<18x64xf32>
    %cst_129 = arith.constant 0.327591091 : f32
    %303 = vector.broadcast %cst_129 : f32 to vector<18x64xf32>
    %304 = arith.mulf %303, %302 : vector<18x64xf32>
    %cst_130 = arith.constant 1.000000e+00 : f32
    %305 = vector.broadcast %cst_130 : f32 to vector<18x64xf32>
    %306 = arith.addf %305, %304 : vector<18x64xf32>
    %cst_131 = arith.constant 1.000000e+00 : f32
    %307 = vector.broadcast %cst_131 : f32 to vector<18x64xf32>
    %308 = arith.divf %307, %306 : vector<18x64xf32>
    %cst_132 = arith.constant 1.06140542 : f32
    %309 = vector.broadcast %cst_132 : f32 to vector<18x64xf32>
    %310 = arith.mulf %309, %308 : vector<18x64xf32>
    %cst_133 = arith.constant -1.45315206 : f32
    %311 = vector.broadcast %cst_133 : f32 to vector<18x64xf32>
    %312 = arith.addf %310, %311 : vector<18x64xf32>
    %313 = arith.mulf %312, %308 : vector<18x64xf32>
    %cst_134 = arith.constant 1.42141378 : f32
    %314 = vector.broadcast %cst_134 : f32 to vector<18x64xf32>
    %315 = arith.addf %313, %314 : vector<18x64xf32>
    %316 = arith.mulf %315, %308 : vector<18x64xf32>
    %cst_135 = arith.constant -0.284496725 : f32
    %317 = vector.broadcast %cst_135 : f32 to vector<18x64xf32>
    %318 = arith.addf %316, %317 : vector<18x64xf32>
    %319 = arith.mulf %318, %308 : vector<18x64xf32>
    %cst_136 = arith.constant 0.254829586 : f32
    %320 = vector.broadcast %cst_136 : f32 to vector<18x64xf32>
    %321 = arith.addf %319, %320 : vector<18x64xf32>
    %322 = arith.mulf %321, %308 : vector<18x64xf32>
    %cst_137 = arith.constant 0.000000e+00 : f32
    %323 = vector.broadcast %cst_137 : f32 to vector<18x64xf32>
    %324 = arith.subf %323, %302 : vector<18x64xf32>
    %325 = arith.mulf %324, %302 : vector<18x64xf32>
    %326 = math.exp %325 : vector<18x64xf32>
    %327 = arith.mulf %322, %326 : vector<18x64xf32>
    %cst_138 = arith.constant 1.000000e+00 : f32
    %328 = vector.broadcast %cst_138 : f32 to vector<18x64xf32>
    %329 = arith.subf %328, %327 : vector<18x64xf32>
    %cst_139 = arith.constant 0.000000e+00 : f32
    %330 = vector.broadcast %cst_139 : f32 to vector<18x64xf32>
    %331 = arith.cmpf oge, %301, %330 : vector<18x64xf32>
    %cst_140 = arith.constant 0.000000e+00 : f32
    %332 = vector.broadcast %cst_140 : f32 to vector<18x64xf32>
    %333 = arith.subf %332, %329 : vector<18x64xf32>
    %334 = arith.select %331, %329, %333 : vector<18x64xi1>, vector<18x64xf32>
    %cst_141 = arith.constant 1.000000e+00 : f32
    %335 = vector.broadcast %cst_141 : f32 to vector<18x64xf32>
    %336 = arith.addf %335, %334 : vector<18x64xf32>
    %337 = arith.mulf %299, %336 : vector<18x64xf32>
    %c0_142 = arith.constant 0 : index
    %c0_143 = arith.constant 0 : index
    %338 = vector.load %arg19[%c0_142, %c0_143] : memref<64x128xf32, #tpu.memory_space<vmem>>, vector<64x128xf32>
    %cst_144 = arith.constant dense<0.000000e+00> : vector<18x128xf32>
    %339 = tpu.matmul %337, %338, %cst_144 {dimension_numbers = #tpu.dot_dimension_numbers<[1], [0], [0], [1], [0, 0, 1, 1], [], []>} : vector<18x64xf32>, vector<64x128xf32>, vector<18x128xf32> -> vector<18x128xf32>
    %c0_145 = arith.constant 0 : index
    %c0_146 = arith.constant 0 : index
    %340 = vector.load %arg20[%c0_145, %c0_146] : memref<1x128xf32, #tpu.memory_space<vmem>>, vector<1x128xf32>
    %c0_147 = arith.constant 0 : index
    %c0_148 = arith.constant 0 : index
    %341 = vector.load %arg21[%c0_147, %c0_148] : memref<1x128xf32, #tpu.memory_space<vmem>>, vector<1x128xf32>
    %cst_149 = arith.constant dense<0.000000e+00> : vector<128xf32>
    %342 = vector.multi_reduction <add>, %339, %cst_149 [0] : vector<18x128xf32> to vector<128xf32>
    %343 = vector.shape_cast %342 : vector<128xf32> to vector<1x128xf32>
    %cst_150 = arith.constant 1.800000e+01 : f32
    %344 = vector.broadcast %cst_150 : f32 to vector<1x128xf32>
    %345 = arith.divf %343, %344 : vector<1x128xf32>
    %346 = vector.broadcast %345 : vector<1x128xf32> to vector<18x128xf32>
    %347 = arith.subf %339, %346 : vector<18x128xf32>
    %348 = arith.mulf %347, %347 : vector<18x128xf32>
    %cst_151 = arith.constant dense<0.000000e+00> : vector<128xf32>
    %349 = vector.multi_reduction <add>, %348, %cst_151 [0] : vector<18x128xf32> to vector<128xf32>
    %350 = vector.shape_cast %349 : vector<128xf32> to vector<1x128xf32>
    %cst_152 = arith.constant 1.800000e+01 : f32
    %351 = vector.broadcast %cst_152 : f32 to vector<1x128xf32>
    %352 = arith.divf %350, %351 : vector<1x128xf32>
    %353 = vector.broadcast %345 : vector<1x128xf32> to vector<18x128xf32>
    %354 = arith.subf %339, %353 : vector<18x128xf32>
    %cst_153 = arith.constant 9.99999974E-6 : f32
    %355 = vector.broadcast %cst_153 : f32 to vector<1x128xf32>
    %356 = arith.addf %352, %355 : vector<1x128xf32>
    %357 = math.rsqrt %356 : vector<1x128xf32>
    %358 = vector.broadcast %357 : vector<1x128xf32> to vector<18x128xf32>
    %359 = arith.mulf %354, %358 : vector<18x128xf32>
    %360 = vector.broadcast %340 : vector<1x128xf32> to vector<18x128xf32>
    %361 = arith.mulf %359, %360 : vector<18x128xf32>
    %362 = vector.broadcast %341 : vector<1x128xf32> to vector<18x128xf32>
    %363 = arith.addf %361, %362 : vector<18x128xf32>
    %cst_154 = arith.constant 5.000000e-01 : f32
    %364 = vector.broadcast %cst_154 : f32 to vector<18x128xf32>
    %365 = arith.mulf %364, %363 : vector<18x128xf32>
    %cst_155 = arith.constant 0.707106769 : f32
    %366 = vector.broadcast %cst_155 : f32 to vector<18x128xf32>
    %367 = arith.mulf %363, %366 : vector<18x128xf32>
    %368 = math.absf %367 : vector<18x128xf32>
    %cst_156 = arith.constant 0.327591091 : f32
    %369 = vector.broadcast %cst_156 : f32 to vector<18x128xf32>
    %370 = arith.mulf %369, %368 : vector<18x128xf32>
    %cst_157 = arith.constant 1.000000e+00 : f32
    %371 = vector.broadcast %cst_157 : f32 to vector<18x128xf32>
    %372 = arith.addf %371, %370 : vector<18x128xf32>
    %cst_158 = arith.constant 1.000000e+00 : f32
    %373 = vector.broadcast %cst_158 : f32 to vector<18x128xf32>
    %374 = arith.divf %373, %372 : vector<18x128xf32>
    %cst_159 = arith.constant 1.06140542 : f32
    %375 = vector.broadcast %cst_159 : f32 to vector<18x128xf32>
    %376 = arith.mulf %375, %374 : vector<18x128xf32>
    %cst_160 = arith.constant -1.45315206 : f32
    %377 = vector.broadcast %cst_160 : f32 to vector<18x128xf32>
    %378 = arith.addf %376, %377 : vector<18x128xf32>
    %379 = arith.mulf %378, %374 : vector<18x128xf32>
    %cst_161 = arith.constant 1.42141378 : f32
    %380 = vector.broadcast %cst_161 : f32 to vector<18x128xf32>
    %381 = arith.addf %379, %380 : vector<18x128xf32>
    %382 = arith.mulf %381, %374 : vector<18x128xf32>
    %cst_162 = arith.constant -0.284496725 : f32
    %383 = vector.broadcast %cst_162 : f32 to vector<18x128xf32>
    %384 = arith.addf %382, %383 : vector<18x128xf32>
    %385 = arith.mulf %384, %374 : vector<18x128xf32>
    %cst_163 = arith.constant 0.254829586 : f32
    %386 = vector.broadcast %cst_163 : f32 to vector<18x128xf32>
    %387 = arith.addf %385, %386 : vector<18x128xf32>
    %388 = arith.mulf %387, %374 : vector<18x128xf32>
    %cst_164 = arith.constant 0.000000e+00 : f32
    %389 = vector.broadcast %cst_164 : f32 to vector<18x128xf32>
    %390 = arith.subf %389, %368 : vector<18x128xf32>
    %391 = arith.mulf %390, %368 : vector<18x128xf32>
    %392 = math.exp %391 : vector<18x128xf32>
    %393 = arith.mulf %388, %392 : vector<18x128xf32>
    %cst_165 = arith.constant 1.000000e+00 : f32
    %394 = vector.broadcast %cst_165 : f32 to vector<18x128xf32>
    %395 = arith.subf %394, %393 : vector<18x128xf32>
    %cst_166 = arith.constant 0.000000e+00 : f32
    %396 = vector.broadcast %cst_166 : f32 to vector<18x128xf32>
    %397 = arith.cmpf oge, %367, %396 : vector<18x128xf32>
    %cst_167 = arith.constant 0.000000e+00 : f32
    %398 = vector.broadcast %cst_167 : f32 to vector<18x128xf32>
    %399 = arith.subf %398, %395 : vector<18x128xf32>
    %400 = arith.select %397, %395, %399 : vector<18x128xi1>, vector<18x128xf32>
    %cst_168 = arith.constant 1.000000e+00 : f32
    %401 = vector.broadcast %cst_168 : f32 to vector<18x128xf32>
    %402 = arith.addf %401, %400 : vector<18x128xf32>
    %403 = arith.mulf %365, %402 : vector<18x128xf32>
    %c0_169 = arith.constant 0 : index
    %c0_170 = arith.constant 0 : index
    %404 = vector.load %arg22[%c0_169, %c0_170] : memref<128x256xf32, #tpu.memory_space<vmem>>, vector<128x256xf32>
    %cst_171 = arith.constant dense<0.000000e+00> : vector<18x256xf32>
    %405 = tpu.matmul %403, %404, %cst_171 {dimension_numbers = #tpu.dot_dimension_numbers<[1], [0], [0], [1], [0, 0, 1, 1], [], []>} : vector<18x128xf32>, vector<128x256xf32>, vector<18x256xf32> -> vector<18x256xf32>
    %c0_172 = arith.constant 0 : index
    %c0_173 = arith.constant 0 : index
    %406 = vector.load %arg23[%c0_172, %c0_173] : memref<1x256xf32, #tpu.memory_space<vmem>>, vector<1x256xf32>
    %c0_174 = arith.constant 0 : index
    %c0_175 = arith.constant 0 : index
    %407 = vector.load %arg24[%c0_174, %c0_175] : memref<1x256xf32, #tpu.memory_space<vmem>>, vector<1x256xf32>
    %cst_176 = arith.constant dense<0.000000e+00> : vector<256xf32>
    %408 = vector.multi_reduction <add>, %405, %cst_176 [0] : vector<18x256xf32> to vector<256xf32>
    %409 = vector.shape_cast %408 : vector<256xf32> to vector<1x256xf32>
    %cst_177 = arith.constant 1.800000e+01 : f32
    %410 = vector.broadcast %cst_177 : f32 to vector<1x256xf32>
    %411 = arith.divf %409, %410 : vector<1x256xf32>
    %412 = vector.broadcast %411 : vector<1x256xf32> to vector<18x256xf32>
    %413 = arith.subf %405, %412 : vector<18x256xf32>
    %414 = arith.mulf %413, %413 : vector<18x256xf32>
    %cst_178 = arith.constant dense<0.000000e+00> : vector<256xf32>
    %415 = vector.multi_reduction <add>, %414, %cst_178 [0] : vector<18x256xf32> to vector<256xf32>
    %416 = vector.shape_cast %415 : vector<256xf32> to vector<1x256xf32>
    %cst_179 = arith.constant 1.800000e+01 : f32
    %417 = vector.broadcast %cst_179 : f32 to vector<1x256xf32>
    %418 = arith.divf %416, %417 : vector<1x256xf32>
    %419 = vector.broadcast %411 : vector<1x256xf32> to vector<18x256xf32>
    %420 = arith.subf %405, %419 : vector<18x256xf32>
    %cst_180 = arith.constant 9.99999974E-6 : f32
    %421 = vector.broadcast %cst_180 : f32 to vector<1x256xf32>
    %422 = arith.addf %418, %421 : vector<1x256xf32>
    %423 = math.rsqrt %422 : vector<1x256xf32>
    %424 = vector.broadcast %423 : vector<1x256xf32> to vector<18x256xf32>
    %425 = arith.mulf %420, %424 : vector<18x256xf32>
    %426 = vector.broadcast %406 : vector<1x256xf32> to vector<18x256xf32>
    %427 = arith.mulf %425, %426 : vector<18x256xf32>
    %428 = vector.broadcast %407 : vector<1x256xf32> to vector<18x256xf32>
    %429 = arith.addf %427, %428 : vector<18x256xf32>
    %cst_181 = arith.constant 5.000000e-01 : f32
    %430 = vector.broadcast %cst_181 : f32 to vector<18x256xf32>
    %431 = arith.mulf %430, %429 : vector<18x256xf32>
    %cst_182 = arith.constant 0.707106769 : f32
    %432 = vector.broadcast %cst_182 : f32 to vector<18x256xf32>
    %433 = arith.mulf %429, %432 : vector<18x256xf32>
    %434 = math.absf %433 : vector<18x256xf32>
    %cst_183 = arith.constant 0.327591091 : f32
    %435 = vector.broadcast %cst_183 : f32 to vector<18x256xf32>
    %436 = arith.mulf %435, %434 : vector<18x256xf32>
    %cst_184 = arith.constant 1.000000e+00 : f32
    %437 = vector.broadcast %cst_184 : f32 to vector<18x256xf32>
    %438 = arith.addf %437, %436 : vector<18x256xf32>
    %cst_185 = arith.constant 1.000000e+00 : f32
    %439 = vector.broadcast %cst_185 : f32 to vector<18x256xf32>
    %440 = arith.divf %439, %438 : vector<18x256xf32>
    %cst_186 = arith.constant 1.06140542 : f32
    %441 = vector.broadcast %cst_186 : f32 to vector<18x256xf32>
    %442 = arith.mulf %441, %440 : vector<18x256xf32>
    %cst_187 = arith.constant -1.45315206 : f32
    %443 = vector.broadcast %cst_187 : f32 to vector<18x256xf32>
    %444 = arith.addf %442, %443 : vector<18x256xf32>
    %445 = arith.mulf %444, %440 : vector<18x256xf32>
    %cst_188 = arith.constant 1.42141378 : f32
    %446 = vector.broadcast %cst_188 : f32 to vector<18x256xf32>
    %447 = arith.addf %445, %446 : vector<18x256xf32>
    %448 = arith.mulf %447, %440 : vector<18x256xf32>
    %cst_189 = arith.constant -0.284496725 : f32
    %449 = vector.broadcast %cst_189 : f32 to vector<18x256xf32>
    %450 = arith.addf %448, %449 : vector<18x256xf32>
    %451 = arith.mulf %450, %440 : vector<18x256xf32>
    %cst_190 = arith.constant 0.254829586 : f32
    %452 = vector.broadcast %cst_190 : f32 to vector<18x256xf32>
    %453 = arith.addf %451, %452 : vector<18x256xf32>
    %454 = arith.mulf %453, %440 : vector<18x256xf32>
    %cst_191 = arith.constant 0.000000e+00 : f32
    %455 = vector.broadcast %cst_191 : f32 to vector<18x256xf32>
    %456 = arith.subf %455, %434 : vector<18x256xf32>
    %457 = arith.mulf %456, %434 : vector<18x256xf32>
    %458 = math.exp %457 : vector<18x256xf32>
    %459 = arith.mulf %454, %458 : vector<18x256xf32>
    %cst_192 = arith.constant 1.000000e+00 : f32
    %460 = vector.broadcast %cst_192 : f32 to vector<18x256xf32>
    %461 = arith.subf %460, %459 : vector<18x256xf32>
    %cst_193 = arith.constant 0.000000e+00 : f32
    %462 = vector.broadcast %cst_193 : f32 to vector<18x256xf32>
    %463 = arith.cmpf oge, %433, %462 : vector<18x256xf32>
    %cst_194 = arith.constant 0.000000e+00 : f32
    %464 = vector.broadcast %cst_194 : f32 to vector<18x256xf32>
    %465 = arith.subf %464, %461 : vector<18x256xf32>
    %466 = arith.select %463, %461, %465 : vector<18x256xi1>, vector<18x256xf32>
    %cst_195 = arith.constant 1.000000e+00 : f32
    %467 = vector.broadcast %cst_195 : f32 to vector<18x256xf32>
    %468 = arith.addf %467, %466 : vector<18x256xf32>
    %469 = arith.mulf %431, %468 : vector<18x256xf32>
    %c0_196 = arith.constant 0 : index
    %c0_197 = arith.constant 0 : index
    %470 = vector.load %arg25[%c0_196, %c0_197] : memref<256x512xf32, #tpu.memory_space<vmem>>, vector<256x512xf32>
    %cst_198 = arith.constant dense<0.000000e+00> : vector<18x512xf32>
    %471 = tpu.matmul %469, %470, %cst_198 {dimension_numbers = #tpu.dot_dimension_numbers<[1], [0], [0], [1], [0, 0, 1, 1], [], []>} : vector<18x256xf32>, vector<256x512xf32>, vector<18x512xf32> -> vector<18x512xf32>
    %cst_199 = arith.constant 5.000000e-01 : f32
    %472 = vector.broadcast %cst_199 : f32 to vector<18x512xf32>
    %473 = arith.mulf %472, %471 : vector<18x512xf32>
    %cst_200 = arith.constant 0.707106769 : f32
    %474 = vector.broadcast %cst_200 : f32 to vector<18x512xf32>
    %475 = arith.mulf %471, %474 : vector<18x512xf32>
    %476 = math.absf %475 : vector<18x512xf32>
    %cst_201 = arith.constant 0.327591091 : f32
    %477 = vector.broadcast %cst_201 : f32 to vector<18x512xf32>
    %478 = arith.mulf %477, %476 : vector<18x512xf32>
    %cst_202 = arith.constant 1.000000e+00 : f32
    %479 = vector.broadcast %cst_202 : f32 to vector<18x512xf32>
    %480 = arith.addf %479, %478 : vector<18x512xf32>
    %cst_203 = arith.constant 1.000000e+00 : f32
    %481 = vector.broadcast %cst_203 : f32 to vector<18x512xf32>
    %482 = arith.divf %481, %480 : vector<18x512xf32>
    %cst_204 = arith.constant 1.06140542 : f32
    %483 = vector.broadcast %cst_204 : f32 to vector<18x512xf32>
    %484 = arith.mulf %483, %482 : vector<18x512xf32>
    %cst_205 = arith.constant -1.45315206 : f32
    %485 = vector.broadcast %cst_205 : f32 to vector<18x512xf32>
    %486 = arith.addf %484, %485 : vector<18x512xf32>
    %487 = arith.mulf %486, %482 : vector<18x512xf32>
    %cst_206 = arith.constant 1.42141378 : f32
    %488 = vector.broadcast %cst_206 : f32 to vector<18x512xf32>
    %489 = arith.addf %487, %488 : vector<18x512xf32>
    %490 = arith.mulf %489, %482 : vector<18x512xf32>
    %cst_207 = arith.constant -0.284496725 : f32
    %491 = vector.broadcast %cst_207 : f32 to vector<18x512xf32>
    %492 = arith.addf %490, %491 : vector<18x512xf32>
    %493 = arith.mulf %492, %482 : vector<18x512xf32>
    %cst_208 = arith.constant 0.254829586 : f32
    %494 = vector.broadcast %cst_208 : f32 to vector<18x512xf32>
    %495 = arith.addf %493, %494 : vector<18x512xf32>
    %496 = arith.mulf %495, %482 : vector<18x512xf32>
    %cst_209 = arith.constant 0.000000e+00 : f32
    %497 = vector.broadcast %cst_209 : f32 to vector<18x512xf32>
    %498 = arith.subf %497, %476 : vector<18x512xf32>
    %499 = arith.mulf %498, %476 : vector<18x512xf32>
    %500 = math.exp %499 : vector<18x512xf32>
    %501 = arith.mulf %496, %500 : vector<18x512xf32>
    %cst_210 = arith.constant 1.000000e+00 : f32
    %502 = vector.broadcast %cst_210 : f32 to vector<18x512xf32>
    %503 = arith.subf %502, %501 : vector<18x512xf32>
    %cst_211 = arith.constant 0.000000e+00 : f32
    %504 = vector.broadcast %cst_211 : f32 to vector<18x512xf32>
    %505 = arith.cmpf oge, %475, %504 : vector<18x512xf32>
    %cst_212 = arith.constant 0.000000e+00 : f32
    %506 = vector.broadcast %cst_212 : f32 to vector<18x512xf32>
    %507 = arith.subf %506, %503 : vector<18x512xf32>
    %508 = arith.select %505, %503, %507 : vector<18x512xi1>, vector<18x512xf32>
    %cst_213 = arith.constant 1.000000e+00 : f32
    %509 = vector.broadcast %cst_213 : f32 to vector<18x512xf32>
    %510 = arith.addf %509, %508 : vector<18x512xf32>
    %511 = arith.mulf %473, %510 : vector<18x512xf32>
    %cst_214 = arith.constant 0.000000e+00 : f32
    %512 = vector.broadcast %cst_214 : f32 to vector<2x512xf32>
    %513 = vector.extract_strided_slice %511 {offsets = [0, 0], sizes = [2, 512], strides = [1, 1]} : vector<18x512xf32> to vector<2x512xf32>
    %514 = arith.truncf %513 : vector<2x512xf32> to vector<2x512xbf16>
    %c0_215 = arith.constant 0 : index
    %c0_216 = arith.constant 0 : index
    %c0_217 = arith.constant 0 : index
    %515 = vector.load %arg26[%c0_215, %c0_216, %c0_217] : memref<9x512x512xbf16, #tpu.memory_space<vmem>>, vector<1x512x512xbf16>
    %516 = vector.shape_cast %515 : vector<1x512x512xbf16> to vector<512x512xbf16>
    %cst_218 = arith.constant dense<0.000000e+00> : vector<2x512xf32>
    %517 = tpu.matmul %514, %516, %cst_218 {dimension_numbers = #tpu.dot_dimension_numbers<[1], [0], [0], [1], [0, 0, 1, 1], [], []>} : vector<2x512xbf16>, vector<512x512xbf16>, vector<2x512xf32> -> vector<2x512xf32>
    %518 = arith.addf %512, %517 : vector<2x512xf32>
    %519 = vector.extract_strided_slice %511 {offsets = [2, 0], sizes = [2, 512], strides = [1, 1]} : vector<18x512xf32> to vector<2x512xf32>
    %520 = arith.truncf %519 : vector<2x512xf32> to vector<2x512xbf16>
    %c1 = arith.constant 1 : index
    %c0_219 = arith.constant 0 : index
    %c0_220 = arith.constant 0 : index
    %521 = vector.load %arg26[%c1, %c0_219, %c0_220] : memref<9x512x512xbf16, #tpu.memory_space<vmem>>, vector<1x512x512xbf16>
    %522 = vector.shape_cast %521 : vector<1x512x512xbf16> to vector<512x512xbf16>
    %cst_221 = arith.constant dense<0.000000e+00> : vector<2x512xf32>
    %523 = tpu.matmul %520, %522, %cst_221 {dimension_numbers = #tpu.dot_dimension_numbers<[1], [0], [0], [1], [0, 0, 1, 1], [], []>} : vector<2x512xbf16>, vector<512x512xbf16>, vector<2x512xf32> -> vector<2x512xf32>
    %524 = arith.addf %518, %523 : vector<2x512xf32>
    %525 = vector.extract_strided_slice %511 {offsets = [4, 0], sizes = [2, 512], strides = [1, 1]} : vector<18x512xf32> to vector<2x512xf32>
    %526 = arith.truncf %525 : vector<2x512xf32> to vector<2x512xbf16>
    %c2 = arith.constant 2 : index
    %c0_222 = arith.constant 0 : index
    %c0_223 = arith.constant 0 : index
    %527 = vector.load %arg26[%c2, %c0_222, %c0_223] : memref<9x512x512xbf16, #tpu.memory_space<vmem>>, vector<1x512x512xbf16>
    %528 = vector.shape_cast %527 : vector<1x512x512xbf16> to vector<512x512xbf16>
    %cst_224 = arith.constant dense<0.000000e+00> : vector<2x512xf32>
    %529 = tpu.matmul %526, %528, %cst_224 {dimension_numbers = #tpu.dot_dimension_numbers<[1], [0], [0], [1], [0, 0, 1, 1], [], []>} : vector<2x512xbf16>, vector<512x512xbf16>, vector<2x512xf32> -> vector<2x512xf32>
    %530 = arith.addf %524, %529 : vector<2x512xf32>
    %531 = vector.extract_strided_slice %511 {offsets = [6, 0], sizes = [2, 512], strides = [1, 1]} : vector<18x512xf32> to vector<2x512xf32>
    %532 = arith.truncf %531 : vector<2x512xf32> to vector<2x512xbf16>
    %c3 = arith.constant 3 : index
    %c0_225 = arith.constant 0 : index
    %c0_226 = arith.constant 0 : index
    %533 = vector.load %arg26[%c3, %c0_225, %c0_226] : memref<9x512x512xbf16, #tpu.memory_space<vmem>>, vector<1x512x512xbf16>
    %534 = vector.shape_cast %533 : vector<1x512x512xbf16> to vector<512x512xbf16>
    %cst_227 = arith.constant dense<0.000000e+00> : vector<2x512xf32>
    %535 = tpu.matmul %532, %534, %cst_227 {dimension_numbers = #tpu.dot_dimension_numbers<[1], [0], [0], [1], [0, 0, 1, 1], [], []>} : vector<2x512xbf16>, vector<512x512xbf16>, vector<2x512xf32> -> vector<2x512xf32>
    %536 = arith.addf %530, %535 : vector<2x512xf32>
    %537 = vector.extract_strided_slice %511 {offsets = [8, 0], sizes = [2, 512], strides = [1, 1]} : vector<18x512xf32> to vector<2x512xf32>
    %538 = arith.truncf %537 : vector<2x512xf32> to vector<2x512xbf16>
    %c4 = arith.constant 4 : index
    %c0_228 = arith.constant 0 : index
    %c0_229 = arith.constant 0 : index
    %539 = vector.load %arg26[%c4, %c0_228, %c0_229] : memref<9x512x512xbf16, #tpu.memory_space<vmem>>, vector<1x512x512xbf16>
    %540 = vector.shape_cast %539 : vector<1x512x512xbf16> to vector<512x512xbf16>
    %cst_230 = arith.constant dense<0.000000e+00> : vector<2x512xf32>
    %541 = tpu.matmul %538, %540, %cst_230 {dimension_numbers = #tpu.dot_dimension_numbers<[1], [0], [0], [1], [0, 0, 1, 1], [], []>} : vector<2x512xbf16>, vector<512x512xbf16>, vector<2x512xf32> -> vector<2x512xf32>
    %542 = arith.addf %536, %541 : vector<2x512xf32>
    %543 = vector.extract_strided_slice %511 {offsets = [10, 0], sizes = [2, 512], strides = [1, 1]} : vector<18x512xf32> to vector<2x512xf32>
    %544 = arith.truncf %543 : vector<2x512xf32> to vector<2x512xbf16>
    %c5 = arith.constant 5 : index
    %c0_231 = arith.constant 0 : index
    %c0_232 = arith.constant 0 : index
    %545 = vector.load %arg26[%c5, %c0_231, %c0_232] : memref<9x512x512xbf16, #tpu.memory_space<vmem>>, vector<1x512x512xbf16>
    %546 = vector.shape_cast %545 : vector<1x512x512xbf16> to vector<512x512xbf16>
    %cst_233 = arith.constant dense<0.000000e+00> : vector<2x512xf32>
    %547 = tpu.matmul %544, %546, %cst_233 {dimension_numbers = #tpu.dot_dimension_numbers<[1], [0], [0], [1], [0, 0, 1, 1], [], []>} : vector<2x512xbf16>, vector<512x512xbf16>, vector<2x512xf32> -> vector<2x512xf32>
    %548 = arith.addf %542, %547 : vector<2x512xf32>
    %549 = vector.extract_strided_slice %511 {offsets = [12, 0], sizes = [2, 512], strides = [1, 1]} : vector<18x512xf32> to vector<2x512xf32>
    %550 = arith.truncf %549 : vector<2x512xf32> to vector<2x512xbf16>
    %c6 = arith.constant 6 : index
    %c0_234 = arith.constant 0 : index
    %c0_235 = arith.constant 0 : index
    %551 = vector.load %arg26[%c6, %c0_234, %c0_235] : memref<9x512x512xbf16, #tpu.memory_space<vmem>>, vector<1x512x512xbf16>
    %552 = vector.shape_cast %551 : vector<1x512x512xbf16> to vector<512x512xbf16>
    %cst_236 = arith.constant dense<0.000000e+00> : vector<2x512xf32>
    %553 = tpu.matmul %550, %552, %cst_236 {dimension_numbers = #tpu.dot_dimension_numbers<[1], [0], [0], [1], [0, 0, 1, 1], [], []>} : vector<2x512xbf16>, vector<512x512xbf16>, vector<2x512xf32> -> vector<2x512xf32>
    %554 = arith.addf %548, %553 : vector<2x512xf32>
    %555 = vector.extract_strided_slice %511 {offsets = [14, 0], sizes = [2, 512], strides = [1, 1]} : vector<18x512xf32> to vector<2x512xf32>
    %556 = arith.truncf %555 : vector<2x512xf32> to vector<2x512xbf16>
    %c7 = arith.constant 7 : index
    %c0_237 = arith.constant 0 : index
    %c0_238 = arith.constant 0 : index
    %557 = vector.load %arg26[%c7, %c0_237, %c0_238] : memref<9x512x512xbf16, #tpu.memory_space<vmem>>, vector<1x512x512xbf16>
    %558 = vector.shape_cast %557 : vector<1x512x512xbf16> to vector<512x512xbf16>
    %cst_239 = arith.constant dense<0.000000e+00> : vector<2x512xf32>
    %559 = tpu.matmul %556, %558, %cst_239 {dimension_numbers = #tpu.dot_dimension_numbers<[1], [0], [0], [1], [0, 0, 1, 1], [], []>} : vector<2x512xbf16>, vector<512x512xbf16>, vector<2x512xf32> -> vector<2x512xf32>
    %560 = arith.addf %554, %559 : vector<2x512xf32>
    %561 = vector.extract_strided_slice %511 {offsets = [16, 0], sizes = [2, 512], strides = [1, 1]} : vector<18x512xf32> to vector<2x512xf32>
    %562 = arith.truncf %561 : vector<2x512xf32> to vector<2x512xbf16>
    %c8 = arith.constant 8 : index
    %c0_240 = arith.constant 0 : index
    %c0_241 = arith.constant 0 : index
    %563 = vector.load %arg26[%c8, %c0_240, %c0_241] : memref<9x512x512xbf16, #tpu.memory_space<vmem>>, vector<1x512x512xbf16>
    %564 = vector.shape_cast %563 : vector<1x512x512xbf16> to vector<512x512xbf16>
    %cst_242 = arith.constant dense<0.000000e+00> : vector<2x512xf32>
    %565 = tpu.matmul %562, %564, %cst_242 {dimension_numbers = #tpu.dot_dimension_numbers<[1], [0], [0], [1], [0, 0, 1, 1], [], []>} : vector<2x512xbf16>, vector<512x512xbf16>, vector<2x512xf32> -> vector<2x512xf32>
    %566 = arith.addf %560, %565 : vector<2x512xf32>
    %c0_243 = arith.constant 0 : index
    %c0_244 = arith.constant 0 : index
    %567 = vector.load %arg27[%c0_243, %c0_244] : memref<512x128xf32, #tpu.memory_space<vmem>>, vector<512x128xf32>
    %cst_245 = arith.constant dense<0.000000e+00> : vector<2x128xf32>
    %568 = tpu.matmul %566, %567, %cst_245 {dimension_numbers = #tpu.dot_dimension_numbers<[1], [0], [0], [1], [0, 0, 1, 1], [], []>} : vector<2x512xf32>, vector<512x128xf32>, vector<2x128xf32> -> vector<2x128xf32>
    %c0_246 = arith.constant 0 : index
    %c0_247 = arith.constant 0 : index
    %569 = vector.load %arg28[%c0_246, %c0_247] : memref<1x128xf32, #tpu.memory_space<vmem>>, vector<1x128xf32>
    %570 = vector.broadcast %569 : vector<1x128xf32> to vector<2x128xf32>
    %571 = arith.addf %568, %570 : vector<2x128xf32>
    %c0_248 = arith.constant 0 : index
    %c0_249 = arith.constant 0 : index
    %572 = vector.load %arg29[%c0_248, %c0_249] : memref<1x128xf32, #tpu.memory_space<vmem>>, vector<1x128xf32>
    %c0_250 = arith.constant 0 : index
    %c0_251 = arith.constant 0 : index
    %573 = vector.load %arg30[%c0_250, %c0_251] : memref<1x128xf32, #tpu.memory_space<vmem>>, vector<1x128xf32>
    %cst_252 = arith.constant dense<0.000000e+00> : vector<2xf32>
    %574 = vector.multi_reduction <add>, %571, %cst_252 [1] : vector<2x128xf32> to vector<2xf32>
    %575 = vector.shape_cast %574 : vector<2xf32> to vector<2x1xf32>
    %cst_253 = arith.constant 1.280000e+02 : f32
    %576 = vector.broadcast %cst_253 : f32 to vector<2x1xf32>
    %577 = arith.divf %575, %576 : vector<2x1xf32>
    %578 = vector.broadcast %577 : vector<2x1xf32> to vector<2x128xf32>
    %579 = arith.subf %571, %578 : vector<2x128xf32>
    %580 = arith.mulf %579, %579 : vector<2x128xf32>
    %cst_254 = arith.constant dense<0.000000e+00> : vector<2xf32>
    %581 = vector.multi_reduction <add>, %580, %cst_254 [1] : vector<2x128xf32> to vector<2xf32>
    %582 = vector.shape_cast %581 : vector<2xf32> to vector<2x1xf32>
    %cst_255 = arith.constant 1.280000e+02 : f32
    %583 = vector.broadcast %cst_255 : f32 to vector<2x1xf32>
    %584 = arith.divf %582, %583 : vector<2x1xf32>
    %585 = vector.broadcast %577 : vector<2x1xf32> to vector<2x128xf32>
    %586 = arith.subf %571, %585 : vector<2x128xf32>
    %cst_256 = arith.constant 9.99999974E-6 : f32
    %587 = vector.broadcast %cst_256 : f32 to vector<2x1xf32>
    %588 = arith.addf %584, %587 : vector<2x1xf32>
    %589 = math.rsqrt %588 : vector<2x1xf32>
    %590 = vector.broadcast %589 : vector<2x1xf32> to vector<2x128xf32>
    %591 = arith.mulf %586, %590 : vector<2x128xf32>
    %592 = vector.broadcast %572 : vector<1x128xf32> to vector<2x128xf32>
    %593 = arith.mulf %591, %592 : vector<2x128xf32>
    %594 = vector.broadcast %573 : vector<1x128xf32> to vector<2x128xf32>
    %595 = arith.addf %593, %594 : vector<2x128xf32>
    %cst_257 = arith.constant 5.000000e-01 : f32
    %596 = vector.broadcast %cst_257 : f32 to vector<2x128xf32>
    %597 = arith.mulf %596, %595 : vector<2x128xf32>
    %cst_258 = arith.constant 0.707106769 : f32
    %598 = vector.broadcast %cst_258 : f32 to vector<2x128xf32>
    %599 = arith.mulf %595, %598 : vector<2x128xf32>
    %600 = math.absf %599 : vector<2x128xf32>
    %cst_259 = arith.constant 0.327591091 : f32
    %601 = vector.broadcast %cst_259 : f32 to vector<2x128xf32>
    %602 = arith.mulf %601, %600 : vector<2x128xf32>
    %cst_260 = arith.constant 1.000000e+00 : f32
    %603 = vector.broadcast %cst_260 : f32 to vector<2x128xf32>
    %604 = arith.addf %603, %602 : vector<2x128xf32>
    %cst_261 = arith.constant 1.000000e+00 : f32
    %605 = vector.broadcast %cst_261 : f32 to vector<2x128xf32>
    %606 = arith.divf %605, %604 : vector<2x128xf32>
    %cst_262 = arith.constant 1.06140542 : f32
    %607 = vector.broadcast %cst_262 : f32 to vector<2x128xf32>
    %608 = arith.mulf %607, %606 : vector<2x128xf32>
    %cst_263 = arith.constant -1.45315206 : f32
    %609 = vector.broadcast %cst_263 : f32 to vector<2x128xf32>
    %610 = arith.addf %608, %609 : vector<2x128xf32>
    %611 = arith.mulf %610, %606 : vector<2x128xf32>
    %cst_264 = arith.constant 1.42141378 : f32
    %612 = vector.broadcast %cst_264 : f32 to vector<2x128xf32>
    %613 = arith.addf %611, %612 : vector<2x128xf32>
    %614 = arith.mulf %613, %606 : vector<2x128xf32>
    %cst_265 = arith.constant -0.284496725 : f32
    %615 = vector.broadcast %cst_265 : f32 to vector<2x128xf32>
    %616 = arith.addf %614, %615 : vector<2x128xf32>
    %617 = arith.mulf %616, %606 : vector<2x128xf32>
    %cst_266 = arith.constant 0.254829586 : f32
    %618 = vector.broadcast %cst_266 : f32 to vector<2x128xf32>
    %619 = arith.addf %617, %618 : vector<2x128xf32>
    %620 = arith.mulf %619, %606 : vector<2x128xf32>
    %cst_267 = arith.constant 0.000000e+00 : f32
    %621 = vector.broadcast %cst_267 : f32 to vector<2x128xf32>
    %622 = arith.subf %621, %600 : vector<2x128xf32>
    %623 = arith.mulf %622, %600 : vector<2x128xf32>
    %624 = math.exp %623 : vector<2x128xf32>
    %625 = arith.mulf %620, %624 : vector<2x128xf32>
    %cst_268 = arith.constant 1.000000e+00 : f32
    %626 = vector.broadcast %cst_268 : f32 to vector<2x128xf32>
    %627 = arith.subf %626, %625 : vector<2x128xf32>
    %cst_269 = arith.constant 0.000000e+00 : f32
    %628 = vector.broadcast %cst_269 : f32 to vector<2x128xf32>
    %629 = arith.cmpf oge, %599, %628 : vector<2x128xf32>
    %cst_270 = arith.constant 0.000000e+00 : f32
    %630 = vector.broadcast %cst_270 : f32 to vector<2x128xf32>
    %631 = arith.subf %630, %627 : vector<2x128xf32>
    %632 = arith.select %629, %627, %631 : vector<2x128xi1>, vector<2x128xf32>
    %cst_271 = arith.constant 1.000000e+00 : f32
    %633 = vector.broadcast %cst_271 : f32 to vector<2x128xf32>
    %634 = arith.addf %633, %632 : vector<2x128xf32>
    %635 = arith.mulf %597, %634 : vector<2x128xf32>
    %c0_272 = arith.constant 0 : index
    %c0_273 = arith.constant 0 : index
    %636 = vector.load %arg31[%c0_272, %c0_273] : memref<128x32xf32, #tpu.memory_space<vmem>>, vector<128x32xf32>
    %cst_274 = arith.constant dense<0.000000e+00> : vector<2x32xf32>
    %637 = tpu.matmul %635, %636, %cst_274 {dimension_numbers = #tpu.dot_dimension_numbers<[1], [0], [0], [1], [0, 0, 1, 1], [], []>} : vector<2x128xf32>, vector<128x32xf32>, vector<2x32xf32> -> vector<2x32xf32>
    %c0_275 = arith.constant 0 : index
    %c0_276 = arith.constant 0 : index
    %638 = vector.load %arg32[%c0_275, %c0_276] : memref<1x32xf32, #tpu.memory_space<vmem>>, vector<1x32xf32>
    %639 = vector.broadcast %638 : vector<1x32xf32> to vector<2x32xf32>
    %640 = arith.addf %637, %639 : vector<2x32xf32>
    %c0_277 = arith.constant 0 : index
    %c0_278 = arith.constant 0 : index
    %641 = vector.load %arg33[%c0_277, %c0_278] : memref<1x32xf32, #tpu.memory_space<vmem>>, vector<1x32xf32>
    %c0_279 = arith.constant 0 : index
    %c0_280 = arith.constant 0 : index
    %642 = vector.load %arg34[%c0_279, %c0_280] : memref<1x32xf32, #tpu.memory_space<vmem>>, vector<1x32xf32>
    %cst_281 = arith.constant dense<0.000000e+00> : vector<2xf32>
    %643 = vector.multi_reduction <add>, %640, %cst_281 [1] : vector<2x32xf32> to vector<2xf32>
    %644 = vector.shape_cast %643 : vector<2xf32> to vector<2x1xf32>
    %cst_282 = arith.constant 3.200000e+01 : f32
    %645 = vector.broadcast %cst_282 : f32 to vector<2x1xf32>
    %646 = arith.divf %644, %645 : vector<2x1xf32>
    %647 = vector.broadcast %646 : vector<2x1xf32> to vector<2x32xf32>
    %648 = arith.subf %640, %647 : vector<2x32xf32>
    %649 = arith.mulf %648, %648 : vector<2x32xf32>
    %cst_283 = arith.constant dense<0.000000e+00> : vector<2xf32>
    %650 = vector.multi_reduction <add>, %649, %cst_283 [1] : vector<2x32xf32> to vector<2xf32>
    %651 = vector.shape_cast %650 : vector<2xf32> to vector<2x1xf32>
    %cst_284 = arith.constant 3.200000e+01 : f32
    %652 = vector.broadcast %cst_284 : f32 to vector<2x1xf32>
    %653 = arith.divf %651, %652 : vector<2x1xf32>
    %654 = vector.broadcast %646 : vector<2x1xf32> to vector<2x32xf32>
    %655 = arith.subf %640, %654 : vector<2x32xf32>
    %cst_285 = arith.constant 9.99999974E-6 : f32
    %656 = vector.broadcast %cst_285 : f32 to vector<2x1xf32>
    %657 = arith.addf %653, %656 : vector<2x1xf32>
    %658 = math.rsqrt %657 : vector<2x1xf32>
    %659 = vector.broadcast %658 : vector<2x1xf32> to vector<2x32xf32>
    %660 = arith.mulf %655, %659 : vector<2x32xf32>
    %661 = vector.broadcast %641 : vector<1x32xf32> to vector<2x32xf32>
    %662 = arith.mulf %660, %661 : vector<2x32xf32>
    %663 = vector.broadcast %642 : vector<1x32xf32> to vector<2x32xf32>
    %664 = arith.addf %662, %663 : vector<2x32xf32>
    %cst_286 = arith.constant 5.000000e-01 : f32
    %665 = vector.broadcast %cst_286 : f32 to vector<2x32xf32>
    %666 = arith.mulf %665, %664 : vector<2x32xf32>
    %cst_287 = arith.constant 0.707106769 : f32
    %667 = vector.broadcast %cst_287 : f32 to vector<2x32xf32>
    %668 = arith.mulf %664, %667 : vector<2x32xf32>
    %669 = math.absf %668 : vector<2x32xf32>
    %cst_288 = arith.constant 0.327591091 : f32
    %670 = vector.broadcast %cst_288 : f32 to vector<2x32xf32>
    %671 = arith.mulf %670, %669 : vector<2x32xf32>
    %cst_289 = arith.constant 1.000000e+00 : f32
    %672 = vector.broadcast %cst_289 : f32 to vector<2x32xf32>
    %673 = arith.addf %672, %671 : vector<2x32xf32>
    %cst_290 = arith.constant 1.000000e+00 : f32
    %674 = vector.broadcast %cst_290 : f32 to vector<2x32xf32>
    %675 = arith.divf %674, %673 : vector<2x32xf32>
    %cst_291 = arith.constant 1.06140542 : f32
    %676 = vector.broadcast %cst_291 : f32 to vector<2x32xf32>
    %677 = arith.mulf %676, %675 : vector<2x32xf32>
    %cst_292 = arith.constant -1.45315206 : f32
    %678 = vector.broadcast %cst_292 : f32 to vector<2x32xf32>
    %679 = arith.addf %677, %678 : vector<2x32xf32>
    %680 = arith.mulf %679, %675 : vector<2x32xf32>
    %cst_293 = arith.constant 1.42141378 : f32
    %681 = vector.broadcast %cst_293 : f32 to vector<2x32xf32>
    %682 = arith.addf %680, %681 : vector<2x32xf32>
    %683 = arith.mulf %682, %675 : vector<2x32xf32>
    %cst_294 = arith.constant -0.284496725 : f32
    %684 = vector.broadcast %cst_294 : f32 to vector<2x32xf32>
    %685 = arith.addf %683, %684 : vector<2x32xf32>
    %686 = arith.mulf %685, %675 : vector<2x32xf32>
    %cst_295 = arith.constant 0.254829586 : f32
    %687 = vector.broadcast %cst_295 : f32 to vector<2x32xf32>
    %688 = arith.addf %686, %687 : vector<2x32xf32>
    %689 = arith.mulf %688, %675 : vector<2x32xf32>
    %cst_296 = arith.constant 0.000000e+00 : f32
    %690 = vector.broadcast %cst_296 : f32 to vector<2x32xf32>
    %691 = arith.subf %690, %669 : vector<2x32xf32>
    %692 = arith.mulf %691, %669 : vector<2x32xf32>
    %693 = math.exp %692 : vector<2x32xf32>
    %694 = arith.mulf %689, %693 : vector<2x32xf32>
    %cst_297 = arith.constant 1.000000e+00 : f32
    %695 = vector.broadcast %cst_297 : f32 to vector<2x32xf32>
    %696 = arith.subf %695, %694 : vector<2x32xf32>
    %cst_298 = arith.constant 0.000000e+00 : f32
    %697 = vector.broadcast %cst_298 : f32 to vector<2x32xf32>
    %698 = arith.cmpf oge, %668, %697 : vector<2x32xf32>
    %cst_299 = arith.constant 0.000000e+00 : f32
    %699 = vector.broadcast %cst_299 : f32 to vector<2x32xf32>
    %700 = arith.subf %699, %696 : vector<2x32xf32>
    %701 = arith.select %698, %696, %700 : vector<2x32xi1>, vector<2x32xf32>
    %cst_300 = arith.constant 1.000000e+00 : f32
    %702 = vector.broadcast %cst_300 : f32 to vector<2x32xf32>
    %703 = arith.addf %702, %701 : vector<2x32xf32>
    %704 = arith.mulf %666, %703 : vector<2x32xf32>
    %c0_301 = arith.constant 0 : index
    %c0_302 = arith.constant 0 : index
    %705 = vector.load %arg35[%c0_301, %c0_302] : memref<32x128xf32, #tpu.memory_space<vmem>>, vector<32x128xf32>
    %cst_303 = arith.constant dense<0.000000e+00> : vector<2x128xf32>
    %706 = tpu.matmul %704, %705, %cst_303 {dimension_numbers = #tpu.dot_dimension_numbers<[1], [0], [0], [1], [0, 0, 1, 1], [], []>} : vector<2x32xf32>, vector<32x128xf32>, vector<2x128xf32> -> vector<2x128xf32>
    %c0_304 = arith.constant 0 : index
    %c0_305 = arith.constant 0 : index
    %707 = vector.load %arg36[%c0_304, %c0_305] : memref<1x128xf32, #tpu.memory_space<vmem>>, vector<1x128xf32>
    %708 = vector.broadcast %707 : vector<1x128xf32> to vector<2x128xf32>
    %709 = arith.addf %706, %708 : vector<2x128xf32>
    %c0_306 = arith.constant 0 : index
    %c0_307 = arith.constant 0 : index
    %710 = vector.load %arg37[%c0_306, %c0_307] : memref<2x128xf32, #tpu.memory_space<vmem>>, vector<2x128xf32>
    tpu.vector_store %arg37[%c0_306, %c0_307], %709 {strides = array<i32>} : memref<2x128xf32, #tpu.memory_space<vmem>>, vector<2x128xf32>,
    return
  }
}

</mosaic_0001>

<bundles_post_ra>
// kernel: simplenet_forward.1
= control target key start
LH: loop header
LB: loop body
LE: loop exit
PB: predicated region body
PF: predicated region fallthrough
CT: control target
= control target key end

     0   :  { %s16233_s6 = smov 1   ;;  %s16234_s10 = smov 2   ;;  %s17528_s0 = inlined_call_operand.smem [shape: u32[38], index: -1, kind: input, shape index: {}] }
   0x1   :  { %s16319_s5 = sld [smem:[%s17528_s0]]   ;;  %s16235_s14 = smov 3  }
   0x2   :  { %s16324_s9 = sld [smem:[%s17528_s0 + %s16233_s6]]   ;;  %s16236_s18 = smov 4  }
   0x3   :  { %s16329_s13 = sld [smem:[%s17528_s0 + %s16234_s10]]   ;;  %s16237_s22 = smov 5  }
   0x4   :  { %s16334_s17 = sld [smem:[%s17528_s0 + %s16235_s14]]   ;;  %s16238_s26 = smov 6  }
   0x5   :  { %s16339_s21 = sld [smem:[%s17528_s0 + %s16236_s18]]   ;;  %s16239_s30 = smov 7  }
   0x6   :  { %s16344_s25 = sld [smem:[%s17528_s0 + %s16237_s22]]   ;;  %s16240_s4 = smov 8  }
   0x7   :  { %17534 = sst [smem:[#allocation71_spill]] %s16319_s5  ;;  %s16241_s10 = smov 9  }
   0x8   :  { %17535 = sst [smem:[#allocation72_spill]] %s16324_s9  ;;  %s16242_s15 = smov 10  }
   0x9   :  { %17536 = sst [smem:[#allocation73_spill]] %s16329_s13  ;;  %s16243_s20 = smov 11  }
   0xa   :  { %17537 = sst [smem:[#allocation74_spill]] %s16334_s17  ;;  %s16245_s1 = smov 13  }
   0xb   :  { %17538 = sst [smem:[#allocation75_spill]] %s16339_s21  ;;  %s16246_s7 = smov 14  }
   0xc   :  { %s16349_s29 = sld [smem:[%s17528_s0 + %s16238_s26]]   ;;  %s16244_s26 = smov 12  }
   0xd   :  { %s16354_s3 = sld [smem:[%s17528_s0 + %s16239_s30]]   ;;  %s16248_s22 = smov 16  }
   0xe   :  { %s16359_s8 = sld [smem:[%s17528_s0 + %s16240_s4]]   ;;  %s16249_s28 = smov 17  }
   0xf   :  { %s16364_s14 = sld [smem:[%s17528_s0 + %s16241_s10]]  }
  0x10   :  { %s16369_s19 = sld [smem:[%s17528_s0 + %s16242_s15]]   ;;  %s16247_s15 = smov 15  }
  0x11   :  { %s16374_s24 = sld [smem:[%s17528_s0 + %s16243_s20]]  }
  0x12   :  { %17539 = sst [smem:[#allocation76_spill]] %s16349_s29 }
  0x13   :  { %s16379_s30 = sld [smem:[%s17528_s0 + %s16244_s26]]  }
  0x14   :  { %17540 = sst [smem:[#allocation77_spill]] %s16359_s8 }
  0x15   :  { %s16384_s6 = sld [smem:[%s17528_s0 + %s16245_s1]]  }
  0x16   :  { %17541 = sst [smem:[#allocation78_spill]] %s16369_s19 }
  0x17   :  { %s16389_s12 = sld [smem:[%s17528_s0 + %s16246_s7]]   ;;  %s16250_s7 = smov 18  }
  0x18   :  { %s16394_s20 = sld [smem:[%s17528_s0 + %s16247_s15]]   ;;  %s16251_s15 = smov 19  }
  0x19   :  { %17542 = sst [smem:[#allocation79_spill]] %s16379_s30 }
  0x1a   :  { %s16399_s27 = sld [smem:[%s17528_s0 + %s16248_s22]]   ;;  %s16252_s22 = smov 20  }
  0x1b   :  { %s16404_s4 = sld [smem:[%s17528_s0 + %s16249_s28]]   ;;  %s16253_s28 = smov 21  }
  0x1c   :  { %s16409_s17 = sld [smem:[%s17528_s0 + %s16250_s7]]   ;;  %s16254_s7 = smov 22  }
  0x1d   :  { %17543 = sst [smem:[#allocation80_spill]] %s16389_s12 }
  0x1e   :  { %s16414_s13 = sld [smem:[%s17528_s0 + %s16251_s15]]   ;;  %s16255_s15 = smov 23  }
  0x1f   :  { %s16419_s9 = sld [smem:[%s17528_s0 + %s16252_s22]]   ;;  %s16256_s22 = smov 24  }
  0x20   :  { %17544 = sst [smem:[#allocation81_spill]] %s16399_s27 }
  0x21   :  { %s16424_s5 = sld [smem:[%s17528_s0 + %s16253_s28]]   ;;  %s16257_s28 = smov 25  }
  0x22   :  { %17545 = sst [smem:[#allocation82_spill]] %s16409_s17 }
  0x23   :  { %s16429_s17 = sld [smem:[%s17528_s0 + %s16254_s7]]   ;;  %s16258_s7 = smov 26  }
  0x24   :  { %s16434_s27 = sld [smem:[%s17528_s0 + %s16255_s15]]   ;;  %s16259_s15 = smov 27  }
  0x25   :  { %17546 = sst [smem:[#allocation83_spill]] %s16419_s9 }
  0x26   :  { %s16439_s9 = sld [smem:[%s17528_s0 + %s16256_s22]]   ;;  %s16260_s22 = smov 28  }
  0x27   :  { %s16444_s12 = sld [smem:[%s17528_s0 + %s16257_s28]]   ;;  %s16261_s28 = smov 29  }
  0x28   :  { %s16454_s30 = sld [smem:[%s17528_s0 + %s16259_s15]]   ;;  %s16263_s15 = smov 31  }
  0x29   :  { %17547 = sst [smem:[#allocation84_spill]] %s16429_s17 }
  0x2a   :  { %s16449_s17 = sld [smem:[%s17528_s0 + %s16258_s7]]   ;;  %s16262_s7 = smov 30  }
  0x2b   :  { %s16464_s19 = sld [smem:[%s17528_s0 + %s16261_s28]]   ;;  %s16265_s28 = smov 33  }
  0x2c   :  { %17548 = sst [smem:[#allocation85_spill]] %s16439_s9 }
  0x2d   :  { %s16459_s9 = sld [smem:[%s17528_s0 + %s16260_s22]]   ;;  %s16264_s22 = smov 32  }
  0x2e   :  { %s16474_s8 = sld [smem:[%s17528_s0 + %s16263_s15]]   ;;  %s16267_s15 = smov 35  }
  0x2f   :  { %s16484_s29 = sld [smem:[%s17528_s0 + %s16265_s28]]   ;;  %s16269_s28 = smov 37  }
  0x30   :  { %17549 = sst [smem:[#allocation86_spill]] %s16449_s17 }
  0x31   :  { %s16469_s17 = sld [smem:[%s17528_s0 + %s16262_s7]]   ;;  %s16266_s7 = smov 34  }
  0x33   :  { %17550 = sst [smem:[#allocation87_spill]] %s16459_s9 }
  0x34   :  { %17552 = sst [smem:[#allocation89_spill]] %s16474_s8 }
  0x35   :  { %s16479_s9 = sld [smem:[%s17528_s0 + %s16264_s22]]   ;;  %s16268_s22 = smov 36  }
  0x36   :  { %17553 = sst [smem:[#allocation90_spill]] %s16484_s29 }
  0x37   :  { %17551 = sst [smem:[#allocation88_spill]] %s16469_s17 }
  0x38   :  { %s16489_s17 = sld [smem:[%s17528_s0 + %s16266_s7]]  }
  0x39   :  { %s16494_s8 = sld [smem:[%s17528_s0 + %s16267_s15]]  }
  0x3a   :  { %s16499_s21 = sld [smem:[%s17528_s0 + %s16268_s22]]  }
  0x3b   :  { %s16504_s29 = sld [smem:[%s17528_s0 + %s16269_s28]]  }
  0x3c   :  { %80 = vsyncpa [#allocation3], 0 }
  0x3d   :  { %81 = vsyncpa [#allocation6], 0 }
  0x3e   :  { %82 = vsyncpa [#allocation9], 0 }
  0x3f   :  { %83 = vsyncpa [#allocation12], 0 }
  0x40   :  { %84 = vsyncpa [#allocation15], 0 }
  0x41   :  { %85 = vsyncpa [#allocation18], 0 }
  0x42   :  { %86 = vsyncpa [#allocation21], 0 }
  0x43   :  { %87 = vsyncpa [#allocation24], 0 }
  0x44   :  { %88 = vsyncpa [#allocation27], 0 }
  0x45   :  { %89 = vsyncpa [#allocation30], 0 }
  0x46   :  { %90 = vsyncpa [#allocation33], 0 }
  0x47   :  { %91 = vsyncpa [#allocation36], 0 }
  0x48   :  { %92 = vsyncpa [#allocation39], 0 }
  0x49   :  { %93 = vsyncpa [#allocation42], 0 }
  0x4a   :  { %94 = vsyncpa [#allocation45], 0 }
  0x4b   :  { %95 = vsyncpa [#allocation48], 0 }
  0x4c   :  { %96 = vsyncpa [#allocation51], 0 }
  0x4d   :  { %97 = vsyncpa [#allocation4], 0  ;;  %s16270_s0 = smov [#allocation5]   ;;  %s16271_s10 = smov [#allocation8]  }
  0x4e   :  { %s124_s7 = sshll.u32 %s16270_s0, 4  ;;  %s144_s11 = sshll.u32 %s16271_s10, 4  ;;  %s125_s7 = int_to_ptr.vmem [resolvable:$true] %s124_s7  ;;  %s145_s11 = int_to_ptr.vmem [resolvable:$true] %s144_s11 }
  0x4f   :  { %s15545_s15 = scalar_lea.vmem %s125_s7, 16  ;;  %s15549_s16 = scalar_lea.vmem %s125_s7, 32 }
  0x50   :  { %p15546_p0 = scmp.ne.s32.totalorder %s125_s7, %s15545_s15  ;;  %p15550_p1 = scmp.lt.s32.totalorder %s125_s7, %s125_s7 }
  0x51   :  { %p15551_p2 = scmp.lt.s32.totalorder %s15549_s16, %s15545_s15 }
  0x53   :  { %p15552_p3 = por %p15551_p2, %p15550_p1 }
  0x55   :  { %p15553_p4 = pnand %p15552_p3, %p15546_p0 }
  0x57   :  { %15556 = shalt.err (!%p15553_p4)
}
  0x58   :  { %127 = dma.hbm_to_vmem [thread:$0]  %s16344_s25, 16, %s125_s7, [#allocation6]  }
  0x59   :  { %s15565_s18 = scalar_lea.vmem %s145_s11, 16  ;;  %s15569_s22 = scalar_lea.vmem %s145_s11, 32 }
  0x5a   :  { %p15566_p5 = scmp.ne.s32.totalorder %s145_s11, %s15565_s18  ;;  %p15570_p6 = scmp.lt.s32.totalorder %s145_s11, %s145_s11 }
  0x5b   :  { %p15571_p7 = scmp.lt.s32.totalorder %s15569_s22, %s15565_s18 }
  0x5d   :  { %p15572_p8 = por %p15571_p7, %p15570_p6 }
  0x5f   :  { %p15573_p9 = pnand %p15572_p8, %p15566_p5 }
  0x61   :  { %15576 = shalt.err (!%p15573_p9)
}
  0x62   :  { %147 = dma.hbm_to_vmem [thread:$0]  %s16354_s3, 16, %s145_s11, [#allocation9]  }
  0x63   :  { %s16272_s23 = smov [#allocation11]   ;;  %s16273_s28 = smov [#allocation14]  }
  0x64   :  { %s164_s26 = sshll.u32 %s16272_s23, 4  ;;  %s184_s1 = sshll.u32 %s16273_s28, 4  ;;  %s165_s26 = int_to_ptr.vmem [resolvable:$true] %s164_s26  ;;  %s185_s1 = int_to_ptr.vmem [resolvable:$true] %s184_s1 }
  0x65   :  { %s15585_s2 = scalar_lea.vmem %s165_s26, 16  ;;  %s15589_s0 = scalar_lea.vmem %s165_s26, 32 }
  0x66   :  { %p15586_p10 = scmp.ne.s32.totalorder %s165_s26, %s15585_s2  ;;  %p15590_p11 = scmp.lt.s32.totalorder %s165_s26, %s165_s26 }
  0x67   :  { %p15591_p12 = scmp.lt.s32.totalorder %s15589_s0, %s15585_s2 }
  0x69   :  { %p15592_p13 = por %p15591_p12, %p15590_p11 }
  0x6b   :  { %p15593_p0 = pnand %p15592_p13, %p15586_p10 }
  0x6d   :  { %15596 = shalt.err (!%p15593_p0)
}
  0x6e   :  { %167 = dma.hbm_to_vmem [thread:$0]  %s16364_s14, 16, %s165_s26, [#allocation12]  }
  0x6f   :  { %s15605_s25 = scalar_lea.vmem %s185_s1, 16  ;;  %s15609_s7 = scalar_lea.vmem %s185_s1, 32 }
  0x70   :  { %p15606_p1 = scmp.ne.s32.totalorder %s185_s1, %s15605_s25  ;;  %p15610_p2 = scmp.lt.s32.totalorder %s185_s1, %s185_s1 }
  0x71   :  { %p15611_p3 = scmp.lt.s32.totalorder %s15609_s7, %s15605_s25 }
  0x73   :  { %p15612_p4 = por %p15611_p3, %p15610_p2 }
  0x75   :  { %p15613_p5 = pnand %p15612_p4, %p15606_p1 }
  0x77   :  { %15616 = shalt.err (!%p15613_p5)
}
  0x78   :  { %187 = dma.hbm_to_vmem [thread:$0]  %s16374_s24, 16, %s185_s1, [#allocation15]  }
  0x79   :  { %s16274_s3 = smov [#allocation17]   ;;  %s16275_s11 = smov [#allocation20]  }
  0x7a   :  { %s203_s10 = sshll.u32 %s16274_s3, 4  ;;  %s225_s15 = sshll.u32 %s16275_s11, 4  ;;  %s204_s10 = int_to_ptr.vmem [resolvable:$true] %s203_s10  ;;  %s226_s15 = int_to_ptr.vmem [resolvable:$true] %s225_s15 }
  0x7b   :  { %s15625_s16 = scalar_lea.vmem %s204_s10, 256  ;;  %p15630_p7 = scmp.lt.s32.totalorder %s204_s10, %s204_s10 }
  0x7c   :  { %p15626_p6 = scmp.ne.s32.totalorder %s204_s10, %s15625_s16  ;;  %p15631_p8 = scmp.lt.s32.totalorder %s15625_s16, %s15625_s16 }
  0x7e   :  { %p15632_p9 = por %p15631_p8, %p15630_p7 }
  0x80   :  { %p15633_p10 = pnand %p15632_p9, %p15626_p6 }
  0x82   :  { %15636 = shalt.err (!%p15633_p10)
}
  0x83   :  { %s16276_s14 = smov 128   ;;  %s16277_s18 = smov 8  }
  0x84   :  { %209 = dma.hbm_to_vmem [thread:$0]  %s16384_s6, 256, %s204_s10, [#allocation18], %s16276_s14, %s16276_s14, %s16277_s18  }
  0x85   :  { %s15645_s24 = scalar_lea.vmem %s226_s15, 256  ;;  %p15650_p12 = scmp.lt.s32.totalorder %s226_s15, %s226_s15 }
  0x86   :  { %p15646_p11 = scmp.ne.s32.totalorder %s226_s15, %s15645_s24  ;;  %p15651_p13 = scmp.lt.s32.totalorder %s15645_s24, %s15645_s24 }
  0x88   :  { %p15652_p0 = por %p15651_p13, %p15650_p12 }
  0x8a   :  { %p15653_p1 = pnand %p15652_p0, %p15646_p11 }
  0x8c   :  { %15656 = shalt.err (!%p15653_p1)
}
  0x8d   :  { %231 = dma.hbm_to_vmem [thread:$0]  %s16394_s20, 256, %s226_s15, [#allocation21], %s16276_s14, %s16276_s14, %s16277_s18  }
  0x8e   :  { %s16278_s22 = smov [#allocation23]   ;;  %s16279_s26 = smov [#allocation26]  }
  0x8f   :  { %s248_s23 = sshll.u32 %s16278_s22, 4  ;;  %s267_s28 = sshll.u32 %s16279_s26, 4  ;;  %s249_s23 = int_to_ptr.vmem [resolvable:$true] %s248_s23  ;;  %s268_s28 = int_to_ptr.vmem [resolvable:$true] %s267_s28 }
  0x90   :  { %s15665_s1 = scalar_lea.vmem %s249_s23, 16  ;;  %s15669_s6 = scalar_lea.vmem %s249_s23, 32 }
  0x91   :  { %p15666_p2 = scmp.ne.s32.totalorder %s249_s23, %s15665_s1  ;;  %p15670_p3 = scmp.lt.s32.totalorder %s249_s23, %s249_s23 }
  0x92   :  { %p15671_p4 = scmp.lt.s32.totalorder %s15669_s6, %s15665_s1 }
  0x94   :  { %p15672_p5 = por %p15671_p4, %p15670_p3 }
  0x96   :  { %p15673_p6 = pnand %p15672_p5, %p15666_p2 }
  0x98   :  { %15676 = shalt.err (!%p15673_p6)
}
  0x99   :  { %251 = dma.hbm_to_vmem [thread:$0]  %s16404_s4, 16, %s249_s23, [#allocation24]  }
  0x9a   :  { %s15685_s2 = scalar_lea.vmem %s268_s28, 1024  ;;  %p15690_p8 = scmp.lt.s32.totalorder %s268_s28, %s268_s28 }
  0x9b   :  { %p15686_p7 = scmp.ne.s32.totalorder %s268_s28, %s15685_s2  ;;  %p15691_p9 = scmp.lt.s32.totalorder %s15685_s2, %s15685_s2 }
  0x9d   :  { %p15692_p10 = por %p15691_p9, %p15690_p8 }
  0x9f   :  { %p15693_p11 = pnand %p15692_p10, %p15686_p7 }
  0xa1   :  { %15696 = shalt.err (!%p15693_p11)
}
  0xa2   :  { %273 = dma.hbm_to_vmem [thread:$0]  %s16414_s13, 1024, %s268_s28, [#allocation27], %s16276_s14, %s16276_s14, %s16277_s18  }
  0xa3   :  { %s16280_s20 = smov [#allocation29]   ;;  %s16281_s25 = smov [#allocation32]  }
  0xa4   :  { %s290_s0 = sshll.u32 %s16280_s20, 4  ;;  %s312_s7 = sshll.u32 %s16281_s25, 4  ;;  %s291_s0 = int_to_ptr.vmem [resolvable:$true] %s290_s0  ;;  %s313_s7 = int_to_ptr.vmem [resolvable:$true] %s312_s7 }
  0xa5   :  { %s15705_s3 = scalar_lea.vmem %s291_s0, 16  ;;  %s15709_s4 = scalar_lea.vmem %s291_s0, 32 }
  0xa6   :  { %p15706_p12 = scmp.ne.s32.totalorder %s291_s0, %s15705_s3  ;;  %p15710_p13 = scmp.lt.s32.totalorder %s291_s0, %s291_s0 }
  0xa7   :  { %p15711_p0 = scmp.lt.s32.totalorder %s15709_s4, %s15705_s3 }
  0xa9   :  { %p15712_p1 = por %p15711_p0, %p15710_p13 }
  0xab   :  { %p15713_p2 = pnand %p15712_p1, %p15706_p12 }
  0xad   :  { %15716 = shalt.err (!%p15713_p2)
}
  0xae   :  { %293 = dma.hbm_to_vmem [thread:$0]  %s16424_s5, 16, %s291_s0, [#allocation30]  }
  0xaf   :  { %s15725_s10 = scalar_lea.vmem %s313_s7, 32  ;;  %p15730_p4 = scmp.lt.s32.totalorder %s313_s7, %s313_s7 }
  0xb0   :  { %p15726_p3 = scmp.ne.s32.totalorder %s313_s7, %s15725_s10  ;;  %p15731_p5 = scmp.lt.s32.totalorder %s15725_s10, %s15725_s10 }
  0xb2   :  { %p15732_p6 = por %p15731_p5, %p15730_p4 }
  0xb4   :  { %p15733_p7 = pnand %p15732_p6, %p15726_p3 }
  0xb6   :  { %15736 = shalt.err (!%p15733_p7)
}
  0xb7   :  { %315 = dma.hbm_to_vmem [thread:$0]  %s16434_s27, 32, %s313_s7, [#allocation33]  }
  0xb8   :  { %s16282_s13 = smov [#allocation35]  }
  0xb9   :  { %s331_s11 = sshll.u32 %s16282_s13, 4  ;;  %s332_s11 = int_to_ptr.vmem [resolvable:$true] %s331_s11 }
  0xba   :  { %s15745_s15 = scalar_lea.vmem %s332_s11, 16384  ;;  %p15750_p9 = scmp.lt.s32.totalorder %s332_s11, %s332_s11 }
  0xbb   :  { %p15746_p8 = scmp.ne.s32.totalorder %s332_s11, %s15745_s15  ;;  %p15751_p10 = scmp.lt.s32.totalorder %s15745_s15, %s15745_s15 }
  0xbd   :  { %p15752_p11 = por %p15751_p10, %p15750_p9 }
  0xbf   :  { %p15753_p12 = pnand %p15752_p11, %p15746_p8 }
  0xc1   :  { %15756 = shalt.err (!%p15753_p12)
}
  0xc2   :  { %s16283_s5 = smov 512   ;;  %s16284_s16 = smov 32  }
  0xc3   :  { %337 = dma.hbm_to_vmem [thread:$0]  %s16444_s12, 16384, %s332_s11, [#allocation36], %s16283_s5, %s16283_s5, %s16284_s16  }
  0xc4   :  { %s16285_s24 = smov [#allocation38]   ;;  %s16286_s23 = smov [#allocation41]  }
  0xc5   :  { %s355_s22 = sshll.u32 %s16285_s24, 4  ;;  %s378_s26 = sshll.u32 %s16286_s23, 4  ;;  %s356_s22 = int_to_ptr.vmem [resolvable:$true] %s355_s22  ;;  %s379_s26 = int_to_ptr.vmem [resolvable:$true] %s378_s26 }
  0xc6   :  { %s15765_s27 = scalar_lea.vmem %s356_s22, 8192  ;;  %p15770_p0 = scmp.lt.s32.totalorder %s356_s22, %s356_s22 }
  0xc7   :  { %p15766_p13 = scmp.ne.s32.totalorder %s356_s22, %s15765_s27  ;;  %p15771_p1 = scmp.lt.s32.totalorder %s15765_s27, %s15765_s27 }
  0xc9   :  { %p15772_p2 = por %p15771_p1, %p15770_p0 }
  0xcb   :  { %p15773_p3 = pnand %p15772_p2, %p15766_p13 }
  0xcd   :  { %15776 = shalt.err (!%p15773_p3)
}
  0xce   :  { %361 = dma.hbm_to_vmem [thread:$0]  %s16454_s30, 8192, %s356_s22, [#allocation39], %s16276_s14, %s16276_s14, %s16277_s18  }
  0xcf   :  { %s15785_s28 = scalar_lea.vmem %s379_s26, 16  ;;  %s15789_s12 = scalar_lea.vmem %s379_s26, 32 }
  0xd0   :  { %p15786_p4 = scmp.ne.s32.totalorder %s379_s26, %s15785_s28  ;;  %p15790_p5 = scmp.lt.s32.totalorder %s379_s26, %s379_s26 }
  0xd1   :  { %p15791_p6 = scmp.lt.s32.totalorder %s15789_s12, %s15785_s28 }
  0xd3   :  { %p15792_p7 = por %p15791_p6, %p15790_p5 }
  0xd5   :  { %p15793_p8 = pnand %p15792_p7, %p15786_p4 }
  0xd7   :  { %15796 = shalt.err (!%p15793_p8)
}
  0xd8   :  { %381 = dma.hbm_to_vmem [thread:$0]  %s16464_s19, 16, %s379_s26, [#allocation42]  }
  0xd9   :  { %s16287_s1 = smov [#allocation44]   ;;  %s16288_s2 = smov [#allocation47]  }
  0xda   :  { %s400_s6 = sshll.u32 %s16287_s1, 4  ;;  %s420_s20 = sshll.u32 %s16288_s2, 4  ;;  %s401_s6 = int_to_ptr.vmem [resolvable:$true] %s400_s6  ;;  %s421_s20 = int_to_ptr.vmem [resolvable:$true] %s420_s20 }
  0xdb   :  { %s15805_s0 = scalar_lea.vmem %s401_s6, 16  ;;  %s15809_s25 = scalar_lea.vmem %s401_s6, 32 }
  0xdc   :  { %p15806_p9 = scmp.ne.s32.totalorder %s401_s6, %s15805_s0  ;;  %p15810_p10 = scmp.lt.s32.totalorder %s401_s6, %s401_s6 }
  0xdd   :  { %p15811_p11 = scmp.lt.s32.totalorder %s15809_s25, %s15805_s0 }
  0xdf   :  { %p15812_p12 = por %p15811_p11, %p15810_p10 }
  0xe1   :  { %p15813_p13 = pnand %p15812_p12, %p15806_p9 }
  0xe3   :  { %15816 = shalt.err (!%p15813_p13)
}
  0xe4   :  { %403 = dma.hbm_to_vmem [thread:$0]  %s16479_s9, 16, %s401_s6, [#allocation45]  }
  0xe5   :  { %s15825_s30 = scalar_lea.vmem %s421_s20, 16  ;;  %s15829_s7 = scalar_lea.vmem %s421_s20, 32 }
  0xe6   :  { %p15826_p0 = scmp.ne.s32.totalorder %s421_s20, %s15825_s30  ;;  %p15830_p1 = scmp.lt.s32.totalorder %s421_s20, %s421_s20 }
  0xe7   :  { %p15831_p2 = scmp.lt.s32.totalorder %s15829_s7, %s15825_s30 }
  0xe9   :  { %p15832_p3 = por %p15831_p2, %p15830_p1 }
  0xeb   :  { %p15833_p4 = pnand %p15832_p3, %p15826_p0 }
  0xed   :  { %15836 = shalt.err (!%p15833_p4)
}
  0xee   :  { %423 = dma.hbm_to_vmem [thread:$0]  %s16489_s17, 16, %s421_s20, [#allocation48]  }
  0xef   :  { %s16289_s19 = smov [#allocation2]   ;;  %s16290_s4 = smov [#allocation7]  }
  0xf0   :  { %s111_s3 = sshll.u32 %s16289_s19, 4  ;;  %s134_s10 = sshll.u32 %s16290_s4, 4  ;;  %s112_s3 = int_to_ptr.vmem [resolvable:$true] %s111_s3  ;;  %s135_s10 = int_to_ptr.vmem [resolvable:$true] %s134_s10 }
  0xf1   :  { %s15845_s13 = scalar_lea.vmem %s112_s3, 256  ;;  %p15850_p6 = scmp.lt.s32.totalorder %s112_s3, %s112_s3 }
  0xf2   :  { %p15846_p5 = scmp.ne.s32.totalorder %s112_s3, %s15845_s13  ;;  %p15851_p7 = scmp.lt.s32.totalorder %s15845_s13, %s15845_s13 }
  0xf4   :  { %p15852_p8 = por %p15851_p7, %p15850_p6 }
  0xf6   :  { %p15853_p9 = pnand %p15852_p8, %p15846_p5 }
  0xf8   :  { %15856 = shalt.err (!%p15853_p9)
}
  0xf9   :  { %s17554_s9 = sld [smem:[#allocation75_spill]]  ;;  %s15865_s11 = scalar_lea.vmem %s135_s10, 16 }
  0xfa   :  { %p15866_p10 = scmp.ne.s32.totalorder %s135_s10, %s15865_s11  ;;  %s15869_s17 = scalar_lea.vmem %s135_s10, 32 }
  0xfb   :  { %p15870_p11 = scmp.lt.s32.totalorder %s135_s10, %s135_s10  ;;  %p15871_p12 = scmp.lt.s32.totalorder %s15869_s17, %s15865_s11 }
  0xfd   :  { %p15872_p13 = por %p15871_p12, %p15870_p11 }
  0xff   :  { %117 = dma.hbm_to_vmem [thread:$0]  %s17554_s9, 256, %s112_s3, [#allocation3], %s16276_s14, %s16276_s14, %s16277_s18  }
 0x100   :  { %p15873_p0 = pnand %p15872_p13, %p15866_p10 }
 0x102   :  { %15876 = shalt.err (!%p15873_p0)
}
 0x103   :  { %s17555_s15 = sld [smem:[#allocation76_spill]]  ;;  %s16291_s5 = smov [#allocation10]  }
 0x104   :  { %s154_s16 = sshll.u32 %s16291_s5, 4  ;;  %s16292_s24 = smov [#allocation13]   ;;  %s155_s16 = int_to_ptr.vmem [resolvable:$true] %s154_s16 }
 0x105   :  { %s174_s22 = sshll.u32 %s16292_s24, 4  ;;  %s15885_s23 = scalar_lea.vmem %s155_s16, 16  ;;  %s175_s22 = int_to_ptr.vmem [resolvable:$true] %s174_s22 }
 0x106   :  { %p15886_p1 = scmp.ne.s32.totalorder %s155_s16, %s15885_s23  ;;  %s15889_s26 = scalar_lea.vmem %s155_s16, 32 }
 0x107   :  { %p15890_p2 = scmp.lt.s32.totalorder %s155_s16, %s155_s16  ;;  %p15891_p3 = scmp.lt.s32.totalorder %s15889_s26, %s15885_s23 }
 0x109   :  { %137 = dma.hbm_to_vmem [thread:$0]  %s17555_s15, 16, %s135_s10, [#allocation6]  }
 0x10a   :  { %p15892_p4 = por %p15891_p3, %p15890_p2 }
 0x10c   :  { %p15893_p5 = pnand %p15892_p4, %p15886_p1 }
 0x10e   :  { %15896 = shalt.err (!%p15893_p5)
}
 0x10f   :  { %s17556_s27 = sld [smem:[#allocation77_spill]]  ;;  %s15905_s28 = scalar_lea.vmem %s175_s22, 16 }
 0x110   :  { %p15906_p6 = scmp.ne.s32.totalorder %s175_s22, %s15905_s28  ;;  %s15909_s12 = scalar_lea.vmem %s175_s22, 32 }
 0x111   :  { %p15910_p7 = scmp.lt.s32.totalorder %s175_s22, %s175_s22  ;;  %p15911_p8 = scmp.lt.s32.totalorder %s15909_s12, %s15905_s28 }
 0x113   :  { %p15912_p9 = por %p15911_p8, %p15910_p7 }
 0x115   :  { %157 = dma.hbm_to_vmem [thread:$0]  %s17556_s27, 16, %s155_s16, [#allocation9]  }
 0x116   :  { %p15913_p10 = pnand %p15912_p9, %p15906_p6 }
 0x118   :  { %15916 = shalt.err (!%p15913_p10)
}
 0x119   :  { %s17557_s1 = sld [smem:[#allocation78_spill]]  ;;  %s16293_s6 = smov [#allocation16]  }
 0x11a   :  { %s194_s2 = sshll.u32 %s16293_s6, 4  ;;  %s16294_s20 = smov [#allocation19]   ;;  %s195_s2 = int_to_ptr.vmem [resolvable:$true] %s194_s2 }
 0x11b   :  { %s216_s0 = sshll.u32 %s16294_s20, 4  ;;  %s15925_s25 = scalar_lea.vmem %s195_s2, 16  ;;  %s217_s0 = int_to_ptr.vmem [resolvable:$true] %s216_s0 }
 0x11c   :  { %p15926_p11 = scmp.ne.s32.totalorder %s195_s2, %s15925_s25  ;;  %s15929_s30 = scalar_lea.vmem %s195_s2, 32 }
 0x11d   :  { %p15930_p12 = scmp.lt.s32.totalorder %s195_s2, %s195_s2  ;;  %p15931_p13 = scmp.lt.s32.totalorder %s15929_s30, %s15925_s25 }
 0x11f   :  { %177 = dma.hbm_to_vmem [thread:$0]  %s17557_s1, 16, %s175_s22, [#allocation12]  }
 0x120   :  { %p15932_p0 = por %p15931_p13, %p15930_p12 }
 0x122   :  { %p15933_p1 = pnand %p15932_p0, %p15926_p11 }
 0x124   :  { %15936 = shalt.err (!%p15933_p1)
}
 0x125   :  { %s17558_s7 = sld [smem:[#allocation79_spill]]  ;;  %s15945_s19 = scalar_lea.vmem %s217_s0, 128 }
 0x126   :  { %p15946_p2 = scmp.ne.s32.totalorder %s217_s0, %s15945_s19  ;;  %p15950_p3 = scmp.lt.s32.totalorder %s217_s0, %s217_s0 }
 0x127   :  { %p15951_p4 = scmp.lt.s32.totalorder %s15945_s19, %s15945_s19 }
 0x129   :  { %p15952_p5 = por %p15951_p4, %p15950_p3 }
 0x12b   :  { %197 = dma.hbm_to_vmem [thread:$0]  %s17558_s7, 16, %s195_s2, [#allocation15]  }
 0x12c   :  { %p15953_p6 = pnand %p15952_p5, %p15946_p2 }
 0x12e   :  { %15956 = shalt.err (!%p15953_p6)
}
 0x12f   :  { %s17559_s3 = sld [smem:[#allocation80_spill]]  ;;  %s16295_s4 = smov [#allocation22]  }
 0x130   :  { %s238_s10 = sshll.u32 %s16295_s4, 4  ;;  %s16296_s13 = smov [#allocation25]   ;;  %s239_s10 = int_to_ptr.vmem [resolvable:$true] %s238_s10 }
 0x131   :  { %s258_s9 = sshll.u32 %s16296_s13, 4  ;;  %s15965_s11 = scalar_lea.vmem %s239_s10, 128  ;;  %s259_s9 = int_to_ptr.vmem [resolvable:$true] %s258_s9 }
 0x132   :  { %p15966_p7 = scmp.ne.s32.totalorder %s239_s10, %s15965_s11  ;;  %p15970_p8 = scmp.lt.s32.totalorder %s239_s10, %s239_s10 }
 0x133   :  { %p15971_p9 = scmp.lt.s32.totalorder %s15965_s11, %s15965_s11 }
 0x135   :  { %219 = dma.hbm_to_vmem [thread:$0]  %s17559_s3, 128, %s217_s0, [#allocation18]  }
 0x136   :  { %p15972_p10 = por %p15971_p9, %p15970_p8 }
 0x138   :  { %p15973_p11 = pnand %p15972_p10, %p15966_p7 }
 0x13a   :  { %15976 = shalt.err (!%p15973_p11)
}
 0x13b   :  { %s17560_s17 = sld [smem:[#allocation81_spill]]  ;;  %s15985_s15 = scalar_lea.vmem %s259_s9, 16 }
 0x13c   :  { %p15986_p12 = scmp.ne.s32.totalorder %s259_s9, %s15985_s15  ;;  %s15989_s5 = scalar_lea.vmem %s259_s9, 32 }
 0x13d   :  { %p15990_p13 = scmp.lt.s32.totalorder %s259_s9, %s259_s9  ;;  %p15991_p0 = scmp.lt.s32.totalorder %s15989_s5, %s15985_s15 }
 0x13f   :  { %p15992_p1 = por %p15991_p0, %p15990_p13 }
 0x141   :  { %241 = dma.hbm_to_vmem [thread:$0]  %s17560_s17, 128, %s239_s10, [#allocation21]  }
 0x142   :  { %p15993_p2 = pnand %p15992_p1, %p15986_p12 }
 0x144   :  { %15996 = shalt.err (!%p15993_p2)
}
 0x145   :  { %s17561_s16 = sld [smem:[#allocation82_spill]]  ;;  %s16297_s24 = smov [#allocation28]  }
 0x146   :  { %s280_s22 = sshll.u32 %s16297_s24, 4  ;;  %s16298_s23 = smov [#allocation31]   ;;  %s281_s22 = int_to_ptr.vmem [resolvable:$true] %s280_s22 }
 0x147   :  { %s299_s26 = sshll.u32 %s16298_s23, 4  ;;  %s16005_s27 = scalar_lea.vmem %s281_s22, 16  ;;  %s300_s26 = int_to_ptr.vmem [resolvable:$true] %s299_s26 }
 0x148   :  { %p16006_p3 = scmp.ne.s32.totalorder %s281_s22, %s16005_s27  ;;  %s16009_s28 = scalar_lea.vmem %s281_s22, 32 }
 0x149   :  { %p16010_p4 = scmp.lt.s32.totalorder %s281_s22, %s281_s22  ;;  %p16011_p5 = scmp.lt.s32.totalorder %s16009_s28, %s16005_s27 }
 0x14b   :  { %261 = dma.hbm_to_vmem [thread:$0]  %s17561_s16, 16, %s259_s9, [#allocation24]  }
 0x14c   :  { %p16012_p6 = por %p16011_p5, %p16010_p4 }
 0x14e   :  { %p16013_p7 = pnand %p16012_p6, %p16006_p3 }
 0x150   :  { %16016 = shalt.err (!%p16013_p7)
}
 0x151   :  { %s17562_s12 = sld [smem:[#allocation83_spill]]  ;;  %s16025_s1 = scalar_lea.vmem %s300_s26, 4096 }
 0x152   :  { %p16026_p8 = scmp.ne.s32.totalorder %s300_s26, %s16025_s1  ;;  %p16030_p9 = scmp.lt.s32.totalorder %s300_s26, %s300_s26 }
 0x153   :  { %p16031_p10 = scmp.lt.s32.totalorder %s16025_s1, %s16025_s1 }
 0x155   :  { %p16032_p11 = por %p16031_p10, %p16030_p9 }
 0x157   :  { %283 = dma.hbm_to_vmem [thread:$0]  %s17562_s12, 16, %s281_s22, [#allocation27]  }
 0x158   :  { %p16033_p12 = pnand %p16032_p11, %p16026_p8 }
 0x15a   :  { %16036 = shalt.err (!%p16033_p12)
}
 0x15b   :  { %s16299_s6 = smov 256   ;;  %s17563_s2 = sld [smem:[#allocation84_spill]] }
 0x15c   :  { %s16300_s20 = smov 16   ;;  %s16301_s0 = smov [#allocation34]  }
 0x15d   :  { %s322_s25 = sshll.u32 %s16301_s0, 4  ;;  %s16302_s30 = smov [#allocation37]   ;;  %s323_s25 = int_to_ptr.vmem [resolvable:$true] %s322_s25 }
 0x15e   :  { %s343_s7 = sshll.u32 %s16302_s30, 4  ;;  %s16045_s19 = scalar_lea.vmem %s323_s25, 32  ;;  %s344_s7 = int_to_ptr.vmem [resolvable:$true] %s343_s7 }
 0x15f   :  { %p16046_p13 = scmp.ne.s32.totalorder %s323_s25, %s16045_s19  ;;  %p16050_p0 = scmp.lt.s32.totalorder %s323_s25, %s323_s25 }
 0x160   :  { %p16051_p1 = scmp.lt.s32.totalorder %s16045_s19, %s16045_s19 }
 0x161   :  { %305 = dma.hbm_to_vmem [thread:$0]  %s17563_s2, 4096, %s300_s26, [#allocation30], %s16299_s6, %s16299_s6, %s16300_s20  }
 0x162   :  { %p16052_p2 = por %p16051_p1, %p16050_p0 }
 0x164   :  { %p16053_p3 = pnand %p16052_p2, %p16046_p13 }
 0x166   :  { %16056 = shalt.err (!%p16053_p3)
}
 0x167   :  { %s17564_s3 = sld [smem:[#allocation85_spill]]  ;;  %s16065_s4 = scalar_lea.vmem %s344_s7, 147456 }
 0x168   :  { %p16066_p4 = scmp.ne.s32.totalorder %s344_s7, %s16065_s4  ;;  %p16070_p5 = scmp.lt.s32.totalorder %s344_s7, %s344_s7 }
 0x169   :  { %p16071_p6 = scmp.lt.s32.totalorder %s16065_s4, %s16065_s4 }
 0x16b   :  { %p16072_p7 = por %p16071_p6, %p16070_p5 }
 0x16d   :  { %325 = dma.hbm_to_vmem [thread:$0]  %s17564_s3, 32, %s323_s25, [#allocation33]  }
 0x16e   :  { %p16073_p8 = pnand %p16072_p7, %p16066_p4 }
 0x170   :  { %16076 = shalt.err (!%p16073_p8)
}
 0x171   :  { %s17565_s10 = sld [smem:[#allocation86_spill]]  ;;  %s16303_s13 = smov [#allocation40]  }
 0x172   :  { %s368_s9 = sshll.u32 %s16303_s13, 4  ;;  %s16304_s11 = smov [#allocation43]   ;;  %s369_s9 = int_to_ptr.vmem [resolvable:$true] %s368_s9 }
 0x173   :  { %s388_s17 = sshll.u32 %s16304_s11, 4  ;;  %s16085_s15 = scalar_lea.vmem %s369_s9, 16  ;;  %s389_s17 = int_to_ptr.vmem [resolvable:$true] %s388_s17 }
 0x174   :  { %p16086_p9 = scmp.ne.s32.totalorder %s369_s9, %s16085_s15  ;;  %s16089_s5 = scalar_lea.vmem %s369_s9, 32 }
 0x175   :  { %p16090_p10 = scmp.lt.s32.totalorder %s369_s9, %s369_s9  ;;  %p16091_p11 = scmp.lt.s32.totalorder %s16089_s5, %s16085_s15 }
 0x177   :  { %349 = dma.hbm_to_vmem [thread:$0]  %s17565_s10, 147456, %s344_s7, [#allocation36], %s16299_s6, %s16299_s6, %s16300_s20  }
 0x178   :  { %p16092_p12 = por %p16091_p11, %p16090_p10 }
 0x17a   :  { %p16093_p13 = pnand %p16092_p12, %p16086_p9 }
 0x17c   :  { %16096 = shalt.err (!%p16093_p13)
}
 0x17d   :  { %s17566_s16 = sld [smem:[#allocation87_spill]]  ;;  %s16105_s24 = scalar_lea.vmem %s389_s17, 16 }
 0x17e   :  { %p16106_p0 = scmp.ne.s32.totalorder %s389_s17, %s16105_s24  ;;  %s16109_s22 = scalar_lea.vmem %s389_s17, 32 }
 0x17f   :  { %p16110_p1 = scmp.lt.s32.totalorder %s389_s17, %s389_s17  ;;  %p16111_p2 = scmp.lt.s32.totalorder %s16109_s22, %s16105_s24 }
 0x181   :  { %p16112_p3 = por %p16111_p2, %p16110_p1 }
 0x183   :  { %371 = dma.hbm_to_vmem [thread:$0]  %s17566_s16, 16, %s369_s9, [#allocation39]  }
 0x184   :  { %p16113_p4 = pnand %p16112_p3, %p16106_p0 }
 0x186   :  { %16116 = shalt.err (!%p16113_p4)
}
 0x187   :  { %s17567_s23 = sld [smem:[#allocation88_spill]]  ;;  %s16305_s26 = smov [#allocation46]  }
 0x188   :  { %s410_s27 = sshll.u32 %s16305_s26, 4  ;;  %s16306_s28 = smov [#allocation49]   ;;  %s411_s27 = int_to_ptr.vmem [resolvable:$true] %s410_s27 }
 0x189   :  { %s429_s12 = sshll.u32 %s16306_s28, 4  ;;  %s16125_s1 = scalar_lea.vmem %s411_s27, 16  ;;  %s430_s12 = int_to_ptr.vmem [resolvable:$true] %s429_s12 }
 0x18a   :  { %p16126_p5 = scmp.ne.s32.totalorder %s411_s27, %s16125_s1  ;;  %s16129_s6 = scalar_lea.vmem %s411_s27, 32 }
 0x18b   :  { %p16130_p6 = scmp.lt.s32.totalorder %s411_s27, %s411_s27  ;;  %p16131_p7 = scmp.lt.s32.totalorder %s16129_s6, %s16125_s1 }
 0x18d   :  { %391 = dma.hbm_to_vmem [thread:$0]  %s17567_s23, 16, %s389_s17, [#allocation42]  }
 0x18e   :  { %p16132_p8 = por %p16131_p7, %p16130_p6 }
 0x190   :  { %p16133_p9 = pnand %p16132_p8, %p16126_p5 }
 0x192   :  { %16136 = shalt.err (!%p16133_p9)
}
 0x193   :  { %s17568_s2 = sld [smem:[#allocation90_spill]]  ;;  %s16145_s20 = scalar_lea.vmem %s430_s12, 512 }
 0x194   :  { %p16146_p10 = scmp.ne.s32.totalorder %s430_s12, %s16145_s20  ;;  %p16150_p11 = scmp.lt.s32.totalorder %s430_s12, %s430_s12 }
 0x195   :  { %p16151_p12 = scmp.lt.s32.totalorder %s16145_s20, %s16145_s20 }
 0x197   :  { %p16152_p13 = por %p16151_p12, %p16150_p11 }
 0x199   :  { %413 = dma.hbm_to_vmem [thread:$0]  %s17568_s2, 16, %s411_s27, [#allocation45]  }
 0x19a   :  { %p16153_p0 = pnand %p16152_p13, %p16146_p10 }
 0x19c   :  { %16156 = shalt.err (!%p16153_p0)
}
 0x19d   :  { %435 = dma.hbm_to_vmem [thread:$0]  %s16494_s8, 512, %s430_s12, [#allocation48], %s16276_s14, %s16276_s14, %s16277_s18  }
 0x19e   :  { %s16307_s0 = smov [#allocation50]  }
 0x19f   :  { %s442_s25 = sshll.u32 %s16307_s0, 4  ;;  %s443_s25 = int_to_ptr.vmem [resolvable:$true] %s442_s25 }
 0x1a0   :  { %s16165_s30 = scalar_lea.vmem %s443_s25, 16  ;;  %s16169_s7 = scalar_lea.vmem %s443_s25, 32 }
 0x1a1   :  { %p16166_p1 = scmp.ne.s32.totalorder %s443_s25, %s16165_s30  ;;  %p16170_p2 = scmp.lt.s32.totalorder %s443_s25, %s443_s25 }
 0x1a2   :  { %p16171_p3 = scmp.lt.s32.totalorder %s16169_s7, %s16165_s30 }
 0x1a4   :  { %p16172_p4 = por %p16171_p3, %p16170_p2 }
 0x1a6   :  { %p16173_p5 = pnand %p16172_p4, %p16166_p1 }
 0x1a8   :  { %16176 = shalt.err (!%p16173_p5)
}
 0x1a9   :  { %445 = dma.hbm_to_vmem [thread:$0]  %s16499_s21, 16, %s443_s25, [#allocation51]  }
 0x1aa   :  { %16197 = dma.done.wait [#allocation3], 256  }
 0x1ab   :  { %16198 = vsyncadd [#allocation3], 4294967040 }
 0x1ac   :  { %16199 = dma.done.wait [#allocation6], 32  }
 0x1ad   :  { %16200 = vsyncadd [#allocation6], 4294967264 }
 0x1ae   :  { %16201 = dma.done.wait [#allocation9], 32  }
 0x1af   :  { %16202 = vsyncadd [#allocation9], 4294967264 }
 0x1b0   :  { %16203 = dma.done.wait [#allocation12], 32  }
 0x1b1   :  { %16204 = vsyncadd [#allocation12], 4294967264 }
 0x1b2   :  { %16205 = dma.done.wait [#allocation15], 32  }
 0x1b3   :  { %16206 = vsyncadd [#allocation15], 4294967264 }
 0x1b4   :  { %16207 = dma.done.wait [#allocation18], 384  }
 0x1b5   :  { %16208 = vsyncadd [#allocation18], 4294966912 }
 0x1b6   :  { %16209 = dma.done.wait [#allocation21], 384  }
 0x1b7   :  { %16210 = vsyncadd [#allocation21], 4294966912 }
 0x1b8   :  { %16211 = dma.done.wait [#allocation24], 32  }
 0x1b9   :  { %16212 = vsyncadd [#allocation24], 4294967264 }
 0x1ba   :  { %16213 = dma.done.wait [#allocation27], 1040  }
 0x1bb   :  { %16214 = vsyncadd [#allocation27], 4294966256 }
 0x1bc   :  { %16215 = dma.done.wait [#allocation30], 4112  }
 0x1bd   :  { %16216 = vsyncadd [#allocation30], 4294963184 }
 0x1be   :  { %16217 = dma.done.wait [#allocation33], 64  }
 0x1bf   :  { %16218 = vsyncadd [#allocation33], 4294967232 }
 0x1c0   :  { %16219 = dma.done.wait [#allocation36], 163840  }
 0x1c1   :  { %16220 = vsyncadd [#allocation36], 4294803456 }
 0x1c2   :  { %16221 = dma.done.wait [#allocation39], 8208  }
 0x1c3   :  { %16222 = vsyncadd [#allocation39], 4294959088 }
 0x1c4   :  { %16223 = dma.done.wait [#allocation42], 32  }
 0x1c5   :  { %16224 = vsyncadd [#allocation42], 4294967264 }
 0x1c6   :  { %16225 = dma.done.wait [#allocation45], 32  }
 0x1c7   :  { %16226 = vsyncadd [#allocation45], 4294967264 }
 0x1c8   :  { %16227 = dma.done.wait [#allocation48], 528  }
 0x1c9   :  { %16228 = vsyncadd [#allocation48], 4294966768 }
 0x1ca   :  { %16229 = dma.done.wait [#allocation51], 16  }
 0x1cb   :  { %16230 = vsyncadd [#allocation51], 4294967280  ;;  %s17569_s21 = sld [smem:[#allocation71_spill]]  ;;  %v16308_v0 = vmov 0.0   ;;  %vm16309_vm0 = vmmov 0   ;;  %v543_v1 = vld [vmem:[#allocation2 + $0x8] sm:$0xff] }
 0x1cc   :  { %13410 = vmatprep.subr.mxu0 %v16308_v0  ;;  %13555 = vmatprep.subr.mxu1 %v16308_v0  ;;  %s17570_s8 = sld [smem:[#allocation72_spill]]  ;;  %v542_v2 = vld [vmem:[#allocation2] sm:$0xff]  ;;  %vm547_vm1 = vcmask 130048   ;;  %vm874_vm2 = vcmask 48128   ;;  %vm878_vm3 = vcmask 41984   ;;  %vm1020_vm5 = vcmask 1045504  }
 0x1cd   :  { %13414 = vmatprep.mubr.msk.f32.mxu0 %vm16309_vm0, %v16308_v0  ;;  %13420 = vmatprep.mubr.msk.f32.mxu1 %vm16309_vm0, %v16308_v0  ;;  %s17571_s14 = sld [smem:[#allocation73_spill]]  ;;  %v12092_v59 = vld [vmem:[#allocation8] ss:$0 sm:$0xff]  ;;  %v12093_v62 = vld [vmem:[#allocation10] ss:$0 sm:$0xff]  ;;  %vm734_vm8 = vcmask 123904  }
 0x1ce   :  { %13411 = vmatpush3.msra.mxu0 %v543_v1  ;;  %13557 = vmatpush3.msra.mxu1 %v543_v1  ;;  %s17572_s18 = sld [smem:[#allocation74_spill]]  ;;  %s16310_s3 = smov [#allocation52]  }
 0x1cf   :  { %13412 = vmatprep.subr.mxu0 %v16308_v0  ;;  %13556 = vmatprep.subr.mxu1 %v16308_v0  ;;  %s17573_s19 = sld [smem:[#allocation89_spill]]  ;;  %s12022_s4 = sshll.u32 %s16310_s3, 4  ;;  %s12023_s4 = int_to_ptr.vmem [resolvable:$true] %s12022_s4 }
 0x1d0   :  { %13413 = vmatpush3.msra.mxu0 %v542_v2  ;;  %13558 = vmatpush3.msra.mxu1 %v542_v2  ;;  %s16177_s10 = scalar_lea.vmem %s12023_s4, 32  ;;  %p16182_p7 = scmp.lt.s32.totalorder %s12023_s4, %s12023_s4 }
 0x1d1   :  { %v544_v3 = vld [vmem:[%s17569_s21] sm:$0xff]  ;;  %v546_v4 = vld [vmem:[%s17569_s21 + $0x10] sm:$0x3]  ;;  %v545_v5 = vld [vmem:[%s17569_s21 + $0x8] sm:$0xff]  ;;  %13423 = vmatprep.subr.mxu1 %v16308_v0  ;;  %13436 = vmatprep.subr.mxu0 %v16308_v0  ;;  %p16178_p6 = scmp.ne.s32.totalorder %s12023_s4, %s16177_s10  ;;  %p16183_p8 = scmp.lt.s32.totalorder %s16177_s10, %s16177_s10 }
 0x1d2   :  { %13415 = vmatmul.mubr.msk.f32.vlgmr.msra.gmra.mxu0 %vm547_vm1, %v544_v3  ;;  %13421 = vmatmul.mubr.msk.f32.vlgmr.msra.gmra.mxu1 %vm547_vm1, %v546_v4  ;;  %v637_v6 = vld [vmem:[%s17570_s8] sm:$0xff]  ;;  %v638_v7 = vld [vmem:[%s17570_s8 + $0x8] sm:$0xff]  ;;  %v639_v8 = vld [vmem:[%s17570_s8 + $0x10] sm:$0x3] }
 0x1d3   :  { %13417 = vmatprep.mubr.msk.f32.mxu0 %vm16309_vm0, %v16308_v0  ;;  %13424 = vmatpush3.msra.mxu1 %v543_v1  ;;  %v869_v9 = vld [vmem:[%s17571_s14] sm:$0xff]  ;;  %v870_v10 = vld [vmem:[%s17571_s14 + $0x8] sm:$0xff]  ;;  %v871_v13 = vld [vmem:[%s17571_s14 + $0x10] sm:$0x3]  ;;  %p16184_p9 = por %p16183_p8, %p16182_p7 }
 0x1d4   :  { %13427 = vmatprep.mubr.msk.f32.mxu1 %vm16309_vm0, %v16308_v0  ;;  %13425 = vmatprep.subr.mxu1 %v16308_v0  ;;  %v875_v11 = vsel %vm874_vm2, %v869_v9, 0.0  ;;  %v876_v12 = vsel %vm874_vm2, %v870_v10, 0.0  ;;  %v879_v15 = vsel %vm878_vm3, %v871_v13, 0.0  ;;  %v1423_v32 = vld [vmem:[%s17572_s18] sm:$0xff]  ;;  %v1424_v33 = vld [vmem:[%s17572_s18 + $0x8] sm:$0xff] }
 0x1d5   :  { %13426 = vmatpush3.msra.mxu1 %v542_v2  ;;  %v877_v14 = vadd.f32 %v876_v12, %v875_v11  ;;  %v1428_v35 = vsel %vm874_vm2, %v1423_v32, 0.0  ;;  %v1429_v36 = vsel %vm874_vm2, %v1424_v33, 0.0  ;;  %v1425_v38 = vld [vmem:[%s17572_s18 + $0x10] sm:$0x3]  ;;  %p16185_p10 = pnand %p16184_p9, %p16178_p6 }
 0x1d6   :  { %13418 = vmatmul.mubr.msk.f32.gmra.mxu0 %vm547_vm1, %v545_v5  ;;  %13428 = vmatmul.mubr.msk.f32.vlgmr.msra.gmra.mxu1 %vm547_vm1, %v637_v6  ;;  %v1430_v40 = vadd.f32 %v1429_v36, %v1428_v35  ;;  %v1431_v42 = vsel %vm878_vm3, %v1425_v38, 0.0 }
 0x1d7   :  { %13447 = vmatprep.subr.mxu1 %v16308_v0  ;;  %13430 = vmatprep.mubr.msk.f32.mxu1 %vm16309_vm0, %v16308_v0  ;;  %v880_v16 = vadd.f32 %v879_v15, %v877_v14 }
 0x1d8   :  { %13438 = vmatprep.mubr.msk.f32.mxu0 %vm16309_vm0, %v16308_v0  ;;  %v1432_v44 = vadd.f32 %v1431_v42, %v1430_v40 }
 0x1d9   :  { %v881_v17 = vrot.slane %v880_v16, 4 }
 0x1da   :  { %13431 = vmatmul.mubr.msk.f32.gmra.mxu1 %vm547_vm1, %v638_v7  ;;  %v1433_v47 = vrot.slane %v1432_v44, 4 }
 0x1db   :  { %13433 = vmatprep.mubr.msk.f32.mxu1 %vm16309_vm0, %v16308_v0  ;;  %v882_v18 = vadd.f32 %v881_v17, %v880_v16 }
 0x1dc   :  { %v1434_v50 = vadd.f32 %v1433_v47, %v1432_v44 }
 0x1dd   :  { %v883_v19 = vrot.slane %v882_v18, 2 }
 0x1de   :  { %13434 = vmatmul.mubr.msk.f32.gmra.mxu1 %vm547_vm1, %v639_v8  ;;  %v1435_v53 = vrot.slane %v1434_v50, 2 }
 0x1df   :  { %13451 = vmatprep.mubr.msk.f32.mxu1 %vm16309_vm0, %v16308_v0  ;;  %v884_v20 = vadd.f32 %v883_v19, %v882_v18 }
 0x1e0   :  { %v1436_v54 = vadd.f32 %v1435_v53, %v1434_v50 }
 0x1e1   :  { %v885_v21 = vrot.slane %v884_v20, 1 }
 0x1e2   :  { %v1437_v55 = vrot.slane %v1436_v54, 1 }
 0x1e3   :  { %v886_v22 = vadd.f32 %v885_v21, %v884_v20 }
 0x1e4   :  { %v1438_v56 = vadd.f32 %v1437_v55, %v1436_v54 }
 0x1e5   :  { %v887_v23 = vmul.f32 0.055555556, %v886_v22 }
 0x1e6   :  { %v1439_v60 = vmul.f32 0.055555556, %v1438_v56 }
 0x1e7   :  { %v888_v24 = vsub.f32 %v869_v9, %v887_v23  ;;  %v889_v25 = vsub.f32 %v870_v10, %v887_v23  ;;  %v890_v26 = vsub.f32 %v871_v13, %v887_v23 }
 0x1e8   :  { %v16609_v2 = vsub.f32 %v1423_v32, %v1439_v60  ;;  %v16614_v5 = vsub.f32 %v1424_v33, %v1439_v60  ;;  %v16619_v9 = vsub.f32 %v1425_v38, %v1439_v60 }
 0x1e9   :  { %v891_v27 = vmul.f32 %v888_v24, %v888_v24  ;;  %v892_v28 = vmul.f32 %v889_v25, %v889_v25  ;;  %v893_v29 = vmul.f32 %v890_v26, %v890_v26 }
 0x1ea   :  { %v1443_v10 = vmul.f32 %v16609_v2, %v16609_v2  ;;  %v1444_v14 = vmul.f32 %v16614_v5, %v16614_v5  ;;  %v1445_v18 = vmul.f32 %v16619_v9, %v16619_v9 }
 0x1eb   :  { %v894_v30 = vsel %vm874_vm2, %v891_v27, 0.0  ;;  %v895_v31 = vsel %vm874_vm2, %v892_v28, 0.0  ;;  %v897_v37 = vsel %vm878_vm3, %v893_v29, 0.0 }
 0x1ec   :  { %v896_v34 = vadd.f32 %v895_v31, %v894_v30  ;;  %v1446_v19 = vsel %vm874_vm2, %v1443_v10, 0.0  ;;  %v1447_v22 = vsel %vm874_vm2, %v1444_v14, 0.0  ;;  %v1449_v27 = vsel %vm878_vm3, %v1445_v18, 0.0 }
 0x1ee   :  { %v898_v39 = vadd.f32 %v897_v37, %v896_v34 }
 0x1f0   :  { %v899_v41 = vrot.slane %v898_v39, 4 }
 0x1f2   :  { %v900_v43 = vadd.f32 %v899_v41, %v898_v39 }
 0x1f4   :  { %v901_v45 = vrot.slane %v900_v43, 2 }
 0x1f6   :  { %v902_v46 = vadd.f32 %v901_v45, %v900_v43 }
 0x1f8   :  { %v903_v48 = vrot.slane %v902_v46, 1 }
 0x1fa   :  { %v904_v49 = vadd.f32 %v903_v48, %v902_v46 }
 0x1fc   :  { %v905_v51 = vmul.f32 0.055555556, %v904_v49 }
 0x1fe   :  { %v906_v52 = vadd.f32 1e-05, %v905_v51 }
 0x200   :  { %15365 = vrsqrt.f32 %v906_v52 }
 0x20d   :  { %v15366_v57 = vpop.eup %15365 }
 0x20e   :  { %v908_v58 = vmul.f32 %v15366_v57, %v888_v24  ;;  %v909_v1 = vmul.f32 %v15366_v57, %v889_v25  ;;  %v910_v8 = vmul.f32 %v15366_v57, %v890_v26  ;;  %v1448_v25 = vadd.f32 %v1447_v22, %v1446_v19 }
 0x210   :  { %v917_v61 = vmul.f32 %v12092_v59, %v908_v58  ;;  %v918_v4 = vmul.f32 %v12092_v59, %v909_v1  ;;  %v919_v13 = vmul.f32 %v12092_v59, %v910_v8  ;;  %v1450_v29 = vadd.f32 %v1449_v27, %v1448_v25 }
 0x212   :  { %v16607_v63 = vadd.f32 %v12093_v62, %v917_v61  ;;  %v16617_v7 = vadd.f32 %v12093_v62, %v918_v4  ;;  %v16629_v17 = vadd.f32 %v12093_v62, %v919_v13  ;;  %v1451_v30 = vrot.slane %v1450_v29, 4 }
 0x214   :  { %v16612_v3 = vmul.f32 0.70710677, %v16607_v63  ;;  %v16624_v12 = vmul.f32 0.70710677, %v16617_v7  ;;  %v16635_v21 = vmul.f32 0.70710677, %v16629_v17  ;;  %v1452_v35 = vadd.f32 %v1451_v30, %v1450_v29 }
 0x215   :  { %v929_v30 = vmul.f32 0.5, %v16607_v63 }
 0x216   :  { %v935_v6 = vand.u32 2147483647, %v16612_v3  ;;  %v936_v16 = vand.u32 2147483647, %v16624_v12  ;;  %v937_v24 = vand.u32 2147483647, %v16635_v21 }
 0x217   :  { %v1453_v43 = vrot.slane %v1452_v35, 2  ;;  %vm995_vm4 = vcmp.ge.f32.partialorder %v16612_v3, 0.0  ;;  %vm996_vm6 = vcmp.ge.f32.partialorder %v16624_v12, 0.0  ;;  %v930_v3 = vmul.f32 0.5, %v16617_v7 }
 0x218   :  { %v938_v11 = vmul.f32 0.3275911, %v935_v6  ;;  %v939_v20 = vmul.f32 0.3275911, %v936_v16  ;;  %v940_v26 = vmul.f32 0.3275911, %v937_v24 }
 0x219   :  { %v977_v31 = vsub.f32 0.0, %v935_v6  ;;  %v978_v38 = vsub.f32 0.0, %v936_v16  ;;  %v979_v48 = vsub.f32 0.0, %v937_v24  ;;  %v1454_v53 = vadd.f32 %v1453_v43, %v1452_v35  ;;  %v1010_v35 = vld [vmem:[#allocation19] sm:$0x3f] }
 0x21a   :  { %v941_v15 = vadd.f32 1.0, %v938_v11  ;;  %v942_v23 = vadd.f32 1.0, %v939_v20  ;;  %v943_v28 = vadd.f32 1.0, %v940_v26  ;;  %13437 = vmatpush3.msk.msra.mxu0 %vm1020_vm5, %v1010_v35  ;;  %vm997_vm7 = vcmp.ge.f32.partialorder %v16635_v21, 0.0  ;;  %v1329_v21 = vld [vmem:[#allocation20] sm:$0xff] }
 0x21b   :  { %v980_v34 = vmul.f32 %v977_v31, %v935_v6  ;;  %v981_v42 = vmul.f32 %v978_v38, %v936_v16  ;;  %v982_v52 = vmul.f32 %v979_v48, %v937_v24  ;;  %v1455_v61 = vrot.slane %v1454_v53, 1  ;;  %13460 = vmatprep.subr.mxu0 %v16308_v0 }
 0x21c   :  { %15367 = vrcp.f32 %v941_v15  ;;  %v931_v43 = vmul.f32 0.5, %v16629_v17 }
 0x21d   :  { %15369 = vrcp.f32 %v942_v23  ;;  %v983_v37 = vmul.f32 1.442695, %v980_v34  ;;  %v985_v46 = vmul.f32 1.442695, %v981_v42  ;;  %v987_v57 = vmul.f32 1.442695, %v982_v52 }
 0x21e   :  { %15371 = vrcp.f32 %v943_v28  ;;  %v1456_v13 = vadd.f32 %v1455_v61, %v1454_v53  ;;  %v867_v42 = vld [vmem:[#allocation17] sm:$0xff]  ;;  %v12107_v61 = vld [vmem:[#allocation16] ss:$0 sm:$0xff] }
 0x21f   :  { %15373 = vpow2.f32 %v983_v37 }
 0x220   :  { %15375 = vpow2.f32 %v985_v46  ;;  %v1457_v23 = vmul.f32 0.055555556, %v1456_v13  ;;  %v1330_v46 = vld [vmem:[#allocation20 + $0x8] sm:$0xff] }
 0x221   :  { %15377 = vpow2.f32 %v987_v57 }
 0x229   :  { %v15368_v32 = vpop.eup %15367 }
 0x22a   :  { %v950_v33 = vmul.f32 1.0614054, %v15368_v32  ;;  %v15370_v39 = vpop.eup %15369 }
 0x22b   :  { %v951_v41 = vmul.f32 1.0614054, %v15370_v39  ;;  %v15372_v47 = vpop.eup %15371 }
 0x22c   :  { %v953_v36 = vadd.f32 -1.4531521, %v950_v33  ;;  %v952_v51 = vmul.f32 1.0614054, %v15372_v47  ;;  %v15374_v11 = vpop.eup %15373 }
 0x22d   :  { %v954_v45 = vadd.f32 -1.4531521, %v951_v41  ;;  %v15376_v22 = vpop.eup %15375 }
 0x22e   :  { %v956_v40 = vmul.f32 %v15368_v32, %v953_v36  ;;  %v955_v56 = vadd.f32 -1.4531521, %v952_v51  ;;  %v15378_v33 = vpop.eup %15377  ;;  %v12106_v51 = vld [vmem:[#allocation14] ss:$0 sm:$0xff] }
 0x22f   :  { %v957_v50 = vmul.f32 %v15370_v39, %v954_v45 }
 0x230   :  { %v959_v44 = vadd.f32 1.4214138, %v956_v40  ;;  %v958_v60 = vmul.f32 %v15372_v47, %v955_v56  ;;  %v868_v40 = vld [vmem:[#allocation17 + $0x8] sm:$0xff] }
 0x231   :  { %v960_v55 = vadd.f32 1.4214138, %v957_v50  ;;  %13448 = vmatpush3.msra.mxu1 %v868_v40 }
 0x232   :  { %v962_v49 = vmul.f32 %v15368_v32, %v959_v44  ;;  %v961_v4 = vadd.f32 1.4214138, %v958_v60  ;;  %13449 = vmatprep.subr.mxu1 %v16308_v0 }
 0x233   :  { %v963_v59 = vmul.f32 %v15370_v39, %v960_v55  ;;  %13450 = vmatpush3.msra.mxu1 %v867_v42 }
 0x234   :  { %v965_v54 = vadd.f32 -0.28449672, %v962_v49  ;;  %v964_v10 = vmul.f32 %v15372_v47, %v961_v4  ;;  %13473 = vmatprep.subr.mxu1 %v16308_v0 }
 0x235   :  { %v966_v1 = vadd.f32 -0.28449672, %v963_v59 }
 0x236   :  { %v968_v58 = vmul.f32 %v15368_v32, %v965_v54  ;;  %v967_v16 = vadd.f32 -0.28449672, %v964_v10 }
 0x237   :  { %v969_v8 = vmul.f32 %v15370_v39, %v966_v1 }
 0x238   :  { %v971_v62 = vadd.f32 0.2548296, %v968_v58  ;;  %v970_v20 = vmul.f32 %v15372_v47, %v967_v16 }
 0x239   :  { %v972_v15 = vadd.f32 0.2548296, %v969_v8 }
 0x23a   :  { %v974_v6 = vmul.f32 %v15368_v32, %v971_v62  ;;  %v973_v26 = vadd.f32 0.2548296, %v970_v20  ;;  %v1458_v32 = vadd.f32 1e-05, %v1457_v23 }
 0x23b   :  { %v975_v19 = vmul.f32 %v15370_v39, %v972_v15 }
 0x23c   :  { %v989_v14 = vmul.f32 %v15374_v11, %v974_v6  ;;  %v976_v29 = vmul.f32 %v15372_v47, %v973_v26  ;;  %15379 = vrsqrt.f32 %v1458_v32 }
 0x23d   :  { %v990_v25 = vmul.f32 %v15376_v22, %v975_v19 }
 0x23e   :  { %v992_v18 = vsub.f32 1.0, %v989_v14  ;;  %v991_v37 = vmul.f32 %v15378_v33, %v976_v29 }
 0x23f   :  { %v993_v28 = vsub.f32 1.0, %v990_v25 }
 0x240   :  { %v998_v24 = vsub.f32 0.0, %v992_v18  ;;  %v994_v39 = vsub.f32 1.0, %v991_v37 }
 0x241   :  { %v999_v34 = vsub.f32 0.0, %v993_v28 }
 0x242   :  { %v1001_v27 = vsel %vm995_vm4, %v992_v18, %v998_v24  ;;  %v1000_v12 = vsub.f32 0.0, %v994_v39 }
 0x243   :  { %v1004_v31 = vadd.f32 1.0, %v1001_v27  ;;  %v1002_v38 = vsel %vm996_vm6, %v993_v28, %v999_v34 }
 0x244   :  { %v1005_v63 = vadd.f32 1.0, %v1002_v38  ;;  %v1003_v7 = vsel %vm997_vm7, %v994_v39, %v1000_v12 }
 0x245   :  { %v1007_v36 = vmul.f32 %v1004_v31, %v929_v30  ;;  %v1006_v44 = vadd.f32 1.0, %v1003_v7 }
 0x246   :  { %v1008_v41 = vmul.f32 %v1005_v63, %v930_v3 }
 0x247   :  { %13439 = vmatmul.mubr.msk.f32.vlgmr.msra.gmra.mxu0 %vm874_vm2, %v1007_v36  ;;  %v1009_v45 = vmul.f32 %v1006_v44, %v931_v43 }
 0x248   :  { %13441 = vmatprep.mubr.msk.f32.mxu0 %vm16309_vm0, %v16308_v0  ;;  %13461 = vmatpush3.msra.mxu0 %v1330_v46 }
 0x249   :  { %13462 = vmatprep.subr.mxu0 %v16308_v0  ;;  %v15380_v48 = vpop.eup %15379 }
 0x24a   :  { %13463 = vmatpush3.msra.mxu0 %v1329_v21  ;;  %v1460_v53 = vmul.f32 %v15380_v48, %v16609_v2  ;;  %v1461_v6 = vmul.f32 %v15380_v48, %v16614_v5  ;;  %v1462_v13 = vmul.f32 %v15380_v48, %v16619_v9 }
 0x24b   :  { %13442 = vmatmul.mubr.msk.f32.gmra.mxu0 %vm874_vm2, %v1008_v41  ;;  %13484 = vmatprep.subr.mxu0 %v16308_v0 }
 0x24c   :  { %13444 = vmatprep.mubr.msk.f32.mxu0 %vm16309_vm0, %v16308_v0  ;;  %v1469_v1 = vmul.f32 %v12106_v51, %v1460_v53  ;;  %v1470_v19 = vmul.f32 %v12106_v51, %v1461_v6  ;;  %v1471_v5 = vmul.f32 %v12106_v51, %v1462_v13 }
 0x24e   :  { %v16669_v15 = vadd.f32 %v12107_v61, %v1469_v1  ;;  %v16675_v28 = vadd.f32 %v12107_v61, %v1470_v19  ;;  %v16677_v30 = vadd.f32 %v12107_v61, %v1471_v5 }
 0x24f   :  { %13445 = vmatmul.mubr.msk.f32.gmra.mxu0 %vm874_vm2, %v1009_v45 }
 0x250   :  { %13464 = vmatprep.mubr.msk.f32.mxu0 %vm16309_vm0, %v16308_v0  ;;  %v16673_v26 = vmul.f32 0.70710677, %v16669_v15  ;;  %v16683_v34 = vmul.f32 0.70710677, %v16675_v28  ;;  %v16686_v37 = vmul.f32 0.70710677, %v16677_v30 }
 0x252   :  { %v16680_v32 = vand.u32 2147483647, %v16673_v26  ;;  %v16702_v43 = vand.u32 2147483647, %v16683_v34  ;;  %v16705_v44 = vand.u32 2147483647, %v16686_v37 }
 0x253   :  { %vm1547_vm9 = vcmp.ge.f32.partialorder %v16673_v26, 0.0  ;;  %vm1548_vm13 = vcmp.ge.f32.partialorder %v16683_v34, 0.0  ;;  %vm1549_vm15 = vcmp.ge.f32.partialorder %v16686_v37, 0.0 }
 0x254   :  { %v1490_v40 = vmul.f32 0.3275911, %v16680_v32 }
 0x292   :  { %v623_v17 = vpop.f32.mrf.mxu0  ;;  %v633_v47 = vpop.f32.mrf.mxu1 }
 0x293   :  { %v731_v54 = vsel %vm547_vm1, %v623_v17, 0.0  ;;  %v735_v59 = vsel %vm734_vm8, %v633_v47, 0.0 }
 0x294   :  { %v13416_v49 = vpop.f32.mrf.mxu0  ;;  %v13422_v50 = vpop.f32.mrf.mxu1 }
 0x295   :  { %v1491_v49 = vmul.f32 0.3275911, %v16702_v43 }
 0x296   :  { %v628_v52 = vpop.f32.mrf.mxu0  ;;  %v715_v56 = vpop.f32.mrf.mxu1 }
 0x297   :  { %v732_v55 = vsel %vm547_vm1, %v628_v52, 0.0  ;;  %v1195_v10 = vsel %vm547_vm1, %v715_v56, 0.0  ;;  %v1494_v1 = vadd.f32 1.0, %v1491_v49 }
 0x298   :  { %v733_v57 = vadd.f32 %v732_v55, %v731_v54  ;;  %v13419_v58 = vpop.f32.mrf.mxu0  ;;  %v13429_v60 = vpop.f32.mrf.mxu1  ;;  %v1492_v54 = vmul.f32 0.3275911, %v16705_v44 }
 0x29a   :  { %v736_v62 = vadd.f32 %v735_v59, %v733_v57  ;;  %v720_v4 = vpop.f32.mrf.mxu1 }
 0x29b   :  { %v1196_v2 = vsel %vm547_vm1, %v720_v4, 0.0 }
 0x29c   :  { %v737_v8 = vrot.slane %v736_v62, 4  ;;  %v13432_v11 = vpop.f32.mrf.mxu1  ;;  %v1197_v16 = vadd.f32 %v1196_v2, %v1195_v10 }
 0x29e   :  { %v738_v14 = vadd.f32 %v737_v8, %v736_v62  ;;  %v725_v18 = vpop.f32.mrf.mxu1  ;;  %v1495_v8 = vadd.f32 1.0, %v1492_v54 }
 0x29f   :  { %v1198_v22 = vsel %vm734_vm8, %v725_v18, 0.0 }
 0x2a0   :  { %v739_v20 = vrot.slane %v738_v14, 2  ;;  %v1199_v23 = vadd.f32 %v1198_v22, %v1197_v16  ;;  %v13435_v24 = vpop.f32.mrf.mxu1 }
 0x2a2   :  { %v740_v25 = vadd.f32 %v739_v20, %v738_v14  ;;  %v1200_v27 = vrot.slane %v1199_v23, 4 }
 0x2a4   :  { %v741_v9 = vrot.slane %v740_v25, 1  ;;  %v1201_v29 = vadd.f32 %v1200_v27, %v1199_v23 }
 0x2a6   :  { %v742_v31 = vadd.f32 %v741_v9, %v740_v25  ;;  %v1202_v33 = vrot.slane %v1201_v29, 2 }
 0x2a8   :  { %v744_v35 = vmul.f32 0.055555556, %v742_v31  ;;  %v1203_v36 = vadd.f32 %v1202_v33, %v1201_v29 }
 0x2aa   :  { %v16688_v38 = vsub.f32 %v623_v17, %v744_v35  ;;  %v16690_v3 = vsub.f32 %v628_v52, %v744_v35  ;;  %v16692_v63 = vsub.f32 %v633_v47, %v744_v35  ;;  %v1204_v39 = vrot.slane %v1203_v36, 1 }
 0x2ab   :  { %v1493_v47 = vadd.f32 1.0, %v1490_v40 }
 0x2ac   :  { %v748_v41 = vmul.f32 %v16688_v38, %v16688_v38  ;;  %v749_v12 = vmul.f32 %v16690_v3, %v16690_v3  ;;  %v750_v42 = vmul.f32 %v16692_v63, %v16692_v63  ;;  %v1205_v7 = vadd.f32 %v1204_v39, %v1203_v36 }
 0x2ad   :  { %15381 = vrcp.f32 %v1493_v47  ;;  %v1529_v39 = vsub.f32 0.0, %v16680_v32 }
 0x2ae   :  { %v751_v45 = vsel %vm547_vm1, %v748_v41, 0.0  ;;  %v752_v46 = vsel %vm547_vm1, %v749_v12, 0.0  ;;  %v1206_v17 = vmul.f32 0.055555556, %v1205_v7  ;;  %v754_v48 = vsel %vm734_vm8, %v750_v42, 0.0 }
 0x2af   :  { %v753_v21 = vadd.f32 %v752_v46, %v751_v45  ;;  %15383 = vrcp.f32 %v1494_v1  ;;  %v12090_v41 = vld [vmem:[#allocation5] ss:$0 sm:$0xff]  ;;  %v12091_v45 = vld [vmem:[#allocation7] ss:$0 sm:$0xff]  ;;  %v1532_v46 = vmul.f32 %v1529_v39, %v16680_v32 }
 0x2b0   :  { %v16711_v51 = vsub.f32 %v715_v56, %v1206_v17  ;;  %v16713_v52 = vsub.f32 %v720_v4, %v1206_v17  ;;  %v16715_v53 = vsub.f32 %v725_v18, %v1206_v17  ;;  %15385 = vrcp.f32 %v1495_v8 }
 0x2b1   :  { %v755_v50 = vadd.f32 %v754_v48, %v753_v21  ;;  %v1530_v21 = vsub.f32 0.0, %v16702_v43 }
 0x2b2   :  { %v1210_v57 = vmul.f32 %v16711_v51, %v16711_v51  ;;  %v1211_v58 = vmul.f32 %v16713_v52, %v16713_v52  ;;  %v1212_v59 = vmul.f32 %v16715_v53, %v16715_v53 }
 0x2b3   :  { %v756_v55 = vrot.slane %v755_v50, 4 }
 0x2b4   :  { %v1213_v56 = vsel %vm547_vm1, %v1210_v57, 0.0  ;;  %v1214_v61 = vsel %vm547_vm1, %v1211_v58, 0.0  ;;  %v1216_v6 = vsel %vm734_vm8, %v1212_v59, 0.0  ;;  %v1533_v59 = vmul.f32 %v1530_v21, %v16702_v43 }
 0x2b5   :  { %v757_v60 = vadd.f32 %v756_v55, %v755_v50  ;;  %v1215_v62 = vadd.f32 %v1214_v61, %v1213_v56  ;;  %v12101_v56 = vld [vmem:[#allocation11] ss:$0 sm:$0xff]  ;;  %vm1896_vm8 = vcmask 1041408  }
 0x2b7   :  { %v758_v4 = vrot.slane %v757_v60, 2  ;;  %v1217_v10 = vadd.f32 %v1216_v6, %v1215_v62  ;;  %v12102_v6 = vld [vmem:[#allocation13] ss:$0 sm:$0xff] }
 0x2b9   :  { %v759_v2 = vadd.f32 %v758_v4, %v757_v60  ;;  %v1218_v11 = vrot.slane %v1217_v10, 4 }
 0x2ba   :  { %v16727_v23 = vpop.eup %15381 }
 0x2bb   :  { %v760_v13 = vrot.slane %v759_v2, 1  ;;  %v1219_v14 = vadd.f32 %v1218_v11, %v1217_v10  ;;  %v1502_v25 = vmul.f32 1.0614054, %v16727_v23  ;;  %v1531_v11 = vsub.f32 0.0, %v16705_v44 }
 0x2bc   :  { %v16730_v9 = vpop.eup %15383 }
 0x2bd   :  { %v761_v16 = vadd.f32 %v760_v13, %v759_v2  ;;  %v1220_v18 = vrot.slane %v1219_v14, 2  ;;  %v16732_v29 = vpop.eup %15385  ;;  %v1505_v33 = vadd.f32 -1.4531521, %v1502_v25  ;;  %v1503_v35 = vmul.f32 1.0614054, %v16730_v9 }
 0x2be   :  { %v1504_v36 = vmul.f32 1.0614054, %v16732_v29  ;;  %v1537_v2 = vmul.f32 1.442695, %v1533_v59 }
 0x2bf   :  { %v762_v19 = vmul.f32 0.055555556, %v761_v16  ;;  %v1221_v20 = vadd.f32 %v1220_v18, %v1219_v14  ;;  %v1508_v40 = vmul.f32 %v16727_v23, %v1505_v33  ;;  %v1506_v12 = vadd.f32 -1.4531521, %v1503_v35 }
 0x2c0   :  { %v1507_v42 = vadd.f32 -1.4531521, %v1504_v36  ;;  %v1534_v36 = vmul.f32 %v1531_v11, %v16705_v44 }
 0x2c1   :  { %v763_v22 = vadd.f32 1e-05, %v762_v19  ;;  %v1222_v24 = vrot.slane %v1221_v20, 1  ;;  %v1511_v49 = vadd.f32 1.4214138, %v1508_v40  ;;  %v1509_v50 = vmul.f32 %v16730_v9, %v1506_v12 }
 0x2c2   :  { %v1510_v58 = vmul.f32 %v16732_v29, %v1507_v42  ;;  %v16784_v21 = vmul.f32 1.442695, %v1534_v36 }
 0x2c3   :  { %15387 = vrsqrt.f32 %v763_v22  ;;  %v1223_v5 = vadd.f32 %v1222_v24, %v1221_v20 }
 0x2c4   :  { %v1513_v43 = vadd.f32 1.4214138, %v1510_v58 }
 0x2c5   :  { %v1224_v27 = vmul.f32 0.055555556, %v1223_v5 }
 0x2c7   :  { %v1225_v31 = vadd.f32 1e-05, %v1224_v27 }
 0x2c9   :  { %15389 = vrsqrt.f32 %v1225_v31 }
 0x2d0   :  { %v15388_v7 = vpop.eup %15387 }
 0x2d1   :  { %v765_v17 = vmul.f32 %v15388_v7, %v16688_v38  ;;  %v766_v47 = vmul.f32 %v15388_v7, %v16690_v3  ;;  %v767_v48 = vmul.f32 %v15388_v7, %v16692_v63  ;;  %v1514_v38 = vmul.f32 %v16727_v23, %v1511_v49 }
 0x2d2   :  { %v1535_v3 = vmul.f32 1.442695, %v1532_v46  ;;  %v1512_v63 = vadd.f32 1.4214138, %v1509_v50 }
 0x2d3   :  { %v774_v54 = vmul.f32 %v12090_v41, %v765_v17  ;;  %v775_v55 = vmul.f32 %v12090_v41, %v766_v47  ;;  %v776_v57 = vmul.f32 %v12090_v41, %v767_v48  ;;  %v1517_v16 = vadd.f32 -0.28449672, %v1514_v38 }
 0x2d4   :  { %v1515_v22 = vmul.f32 %v16730_v9, %v1512_v63 }
 0x2d5   :  { %v16746_v60 = vadd.f32 %v12091_v45, %v774_v54  ;;  %v16748_v32 = vadd.f32 %v12091_v45, %v775_v55  ;;  %v16751_v61 = vadd.f32 %v12091_v45, %v776_v57  ;;  %v1520_v48 = vmul.f32 %v16727_v23, %v1517_v16 }
 0x2d6   :  { %v15390_v62 = vpop.eup %15389  ;;  %v1518_v41 = vadd.f32 -0.28449672, %v1515_v22 }
 0x2d7   :  { %v16754_v1 = vmul.f32 0.70710677, %v16746_v60  ;;  %v16757_v4 = vmul.f32 0.70710677, %v16748_v32  ;;  %v1227_v8 = vmul.f32 %v15390_v62, %v16711_v51  ;;  %v1229_v10 = vmul.f32 %v15390_v62, %v16715_v53 }
 0x2d8   :  { %v16765_v20 = vmul.f32 0.70710677, %v16751_v61  ;;  %v1228_v51 = vmul.f32 %v15390_v62, %v16713_v52  ;;  %v1516_v53 = vmul.f32 %v16732_v29, %v1513_v43  ;;  %v1521_v54 = vmul.f32 %v16730_v9, %v1518_v41 }
 0x2d9   :  { %v792_v13 = vand.u32 2147483647, %v16754_v1  ;;  %v793_v14 = vand.u32 2147483647, %v16757_v4  ;;  %v1236_v18 = vmul.f32 %v12101_v56, %v1227_v8  ;;  %v1238_v19 = vmul.f32 %v12101_v56, %v1229_v10 }
 0x2da   :  { %v794_v31 = vand.u32 2147483647, %v16765_v20  ;;  %v1237_v52 = vmul.f32 %v12101_v56, %v1228_v51  ;;  %v1519_v42 = vadd.f32 -0.28449672, %v1516_v53  ;;  %v1523_v63 = vadd.f32 0.2548296, %v1520_v48 }
 0x2db   :  { %v795_v24 = vmul.f32 0.3275911, %v792_v13  ;;  %v796_v5 = vmul.f32 0.3275911, %v793_v14  ;;  %v16770_v25 = vadd.f32 %v12102_v6, %v1236_v18  ;;  %v16772_v27 = vadd.f32 %v12102_v6, %v1238_v19 }
 0x2dc   :  { %v797_v12 = vmul.f32 0.3275911, %v794_v31  ;;  %v834_v44 = vsub.f32 0.0, %v792_v13  ;;  %v835_v49 = vsub.f32 0.0, %v793_v14  ;;  %v16787_v50 = vadd.f32 %v12102_v6, %v1237_v52 }
 0x2dd   :  { %v798_v33 = vadd.f32 1.0, %v795_v24  ;;  %v799_v35 = vadd.f32 1.0, %v796_v5  ;;  %v16777_v39 = vmul.f32 0.70710677, %v16770_v25  ;;  %v16780_v40 = vmul.f32 0.70710677, %v16772_v27 }
 0x2de   :  { %v800_v46 = vadd.f32 1.0, %v797_v12  ;;  %v836_v58 = vsub.f32 0.0, %v794_v31  ;;  %v1522_v59 = vmul.f32 %v16732_v29, %v1519_v42  ;;  %v16792_v38 = vmul.f32 0.70710677, %v16787_v50 }
 0x2df   :  { %15391 = vrcp.f32 %v798_v33  ;;  %v1254_v7 = vand.u32 2147483647, %v16777_v39  ;;  %v1256_v45 = vand.u32 2147483647, %v16780_v40  ;;  %v838_v62 = vmul.f32 %v835_v49, %v793_v14 }
 0x2e0   :  { %15393 = vrcp.f32 %v799_v35  ;;  %v1255_v43 = vand.u32 2147483647, %v16792_v38  ;;  %v1524_v6 = vadd.f32 0.2548296, %v1521_v54  ;;  %v839_v8 = vmul.f32 %v836_v58, %v794_v31 }
 0x2e1   :  { %15395 = vpow2.f32 %v1535_v3  ;;  %v1257_v17 = vmul.f32 0.3275911, %v1254_v7  ;;  %v1259_v47 = vmul.f32 0.3275911, %v1256_v45  ;;  %v1296_v56 = vsub.f32 0.0, %v1254_v7 }
 0x2e2   :  { %15397 = vrcp.f32 %v800_v46  ;;  %v837_v3 = vmul.f32 %v834_v44, %v792_v13  ;;  %v16795_v10 = vadd.f32 0.2548296, %v1522_v59  ;;  %v1258_v16 = vmul.f32 0.3275911, %v1255_v43 }
 0x2e3   :  { %v1260_v55 = vadd.f32 1.0, %v1257_v17  ;;  %v1262_v57 = vadd.f32 1.0, %v1259_v47  ;;  %v1299_v11 = vmul.f32 %v1296_v56, %v1254_v7  ;;  %v1298_v19 = vsub.f32 0.0, %v1256_v45 }
 0x2e4   :  { %v840_v18 = vmul.f32 1.442695, %v837_v3  ;;  %v842_v22 = vmul.f32 1.442695, %v838_v62  ;;  %v1261_v24 = vadd.f32 1.0, %v1258_v16  ;;  %v1297_v7 = vsub.f32 0.0, %v1255_v43 }
 0x2e5   :  { %15399 = vrcp.f32 %v1260_v55  ;;  %v844_v51 = vmul.f32 1.442695, %v839_v8  ;;  %v1302_v14 = vmul.f32 1.442695, %v1299_v11  ;;  %v1301_v35 = vmul.f32 %v1298_v19, %v1256_v45 }
 0x2e6   :  { %15401 = vrcp.f32 %v1262_v57  ;;  %v1527_v55 = vmul.f32 %v16730_v9, %v1524_v6  ;;  %v1300_v56 = vmul.f32 %v1297_v7, %v1255_v43  ;;  %vm852_vm10 = vcmp.ge.f32.partialorder %v16754_v1, 0.0 }
 0x2e7   :  { %15403 = vpow2.f32 %v1537_v2  ;;  %v1526_v2 = vmul.f32 %v16727_v23, %v1523_v63  ;;  %v1306_v46 = vmul.f32 1.442695, %v1301_v35  ;;  %vm853_vm11 = vcmp.ge.f32.partialorder %v16757_v4, 0.0 }
 0x2e8   :  { %15405 = vrcp.f32 %v1261_v24  ;;  %v1304_v24 = vmul.f32 1.442695, %v1300_v56  ;;  %vm854_vm12 = vcmp.ge.f32.partialorder %v16765_v20, 0.0  ;;  %vm1314_vm14 = vcmp.ge.f32.partialorder %v16777_v39, 0.0 }
 0x2e9   :  { %15407 = vpow2.f32 %v840_v18  ;;  %v1248_v26 = vmul.f32 0.5, %v16770_v25  ;;  %v788_v39 = vmul.f32 0.5, %v16751_v61  ;;  %vm1316_vm3 = vcmp.ge.f32.partialorder %v16780_v40, 0.0 }
 0x2ea   :  { %15409 = vpow2.f32 %v842_v22  ;;  %vm1315_vm4 = vcmp.ge.f32.partialorder %v16792_v38, 0.0  ;;  %v1483_v40 = vmul.f32 0.5, %v16677_v30  ;;  %v1250_v38 = vmul.f32 0.5, %v16772_v27 }
 0x2eb   :  { %15411 = vpow2.f32 %v844_v51 }
 0x2ec   :  { %v15392_v5 = vpop.eup %15391  ;;  %15413 = vpow2.f32 %v16784_v21 }
 0x2ed   :  { %v16797_v13 = vpop.eup %15393  ;;  %v807_v53 = vmul.f32 1.0614054, %v15392_v5  ;;  %15415 = vpow2.f32 %v1302_v14 }
 0x2ee   :  { %v15396_v33 = vpop.eup %15395  ;;  %v808_v31 = vmul.f32 1.0614054, %v16797_v13  ;;  %15417 = vpow2.f32 %v1306_v46 }
 0x2ef   :  { %v810_v36 = vadd.f32 -1.4531521, %v807_v53  ;;  %v16801_v41 = vpop.eup %15397  ;;  %v16805_v17 = vmul.f32 %v15396_v33, %v1526_v2  ;;  %15419 = vpow2.f32 %v1304_v24 }
 0x2f0   :  { %v811_v52 = vadd.f32 -1.4531521, %v808_v31  ;;  %v809_v42 = vmul.f32 1.0614054, %v16801_v41 }
 0x2f1   :  { %v813_v12 = vmul.f32 %v15392_v5, %v810_v36  ;;  %v1544_v8 = vsub.f32 1.0, %v16805_v17 }
 0x2f2   :  { %v814_v44 = vmul.f32 %v16797_v13, %v811_v52  ;;  %v16807_v45 = vpop.eup %15399  ;;  %v812_v48 = vadd.f32 -1.4531521, %v809_v42 }
 0x2f3   :  { %v816_v47 = vadd.f32 1.4214138, %v813_v12  ;;  %v16809_v23 = vpop.eup %15401  ;;  %v1269_v49 = vmul.f32 1.0614054, %v16807_v45  ;;  %v16828_v21 = vsub.f32 0.0, %v1544_v8 }
 0x2f4   :  { %v817_v54 = vadd.f32 1.4214138, %v814_v44  ;;  %v15404_v57 = vpop.eup %15403  ;;  %v815_v59 = vmul.f32 %v16801_v41, %v812_v48  ;;  %v1271_v3 = vmul.f32 1.0614054, %v16809_v23  ;;  %v786_v48 = vmul.f32 0.5, %v16746_v60 }
 0x2f5   :  { %v819_v58 = vmul.f32 %v15392_v5, %v816_v47  ;;  %v1272_v63 = vadd.f32 -1.4531521, %v1269_v49  ;;  %v16819_v6 = vmul.f32 %v15404_v57, %v1527_v55  ;;  %v16823_v53 = vpop.eup %15405  ;;  %v1553_v20 = vsel %vm1547_vm9, %v1544_v8, %v16828_v21 }
 0x2f6   :  { %v820_v62 = vmul.f32 %v16797_v13, %v817_v54  ;;  %v818_v16 = vadd.f32 1.4214138, %v815_v59  ;;  %v1274_v18 = vadd.f32 -1.4531521, %v1271_v3  ;;  %v1270_v2 = vmul.f32 1.0614054, %v16823_v53  ;;  %v15408_v47 = vpop.eup %15407 }
 0x2f7   :  { %v822_v11 = vadd.f32 -0.28449672, %v819_v58  ;;  %v1275_v19 = vmul.f32 %v16807_v45, %v1272_v63  ;;  %v1545_v46 = vsub.f32 1.0, %v16819_v6  ;;  %v15410_v57 = vpop.eup %15409 }
 0x2f8   :  { %v823_v9 = vadd.f32 -0.28449672, %v820_v62  ;;  %v821_v43 = vmul.f32 %v16801_v41, %v818_v16  ;;  %v1277_v51 = vmul.f32 %v16809_v23, %v1274_v18  ;;  %v1273_v44 = vadd.f32 -1.4531521, %v1270_v2  ;;  %v15412_v60 = vpop.eup %15411 }
 0x2f9   :  { %v825_v22 = vmul.f32 %v15392_v5, %v822_v11  ;;  %v1278_v33 = vadd.f32 1.4214138, %v1275_v19 }
 0x2fa   :  { %v826_v35 = vmul.f32 %v16797_v13, %v823_v9  ;;  %v824_v31 = vadd.f32 -0.28449672, %v821_v43  ;;  %v1280_v12 = vadd.f32 1.4214138, %v1277_v51  ;;  %v1276_v56 = vmul.f32 %v16823_v53, %v1273_v44  ;;  %v15414_v51 = vpop.eup %15413 }
 0x2fb   :  { %v828_v14 = vadd.f32 0.2548296, %v825_v22  ;;  %v1281_v36 = vmul.f32 %v16807_v45, %v1278_v33  ;;  %v1528_v9 = vmul.f32 %v16732_v29, %v16795_v10  ;;  %v1562_v29 = vld [vmem:[#allocation22] sm:$0x3f] }
 0x2fc   :  { %v829_v52 = vadd.f32 0.2548296, %v826_v35  ;;  %v827_v7 = vmul.f32 %v16801_v41, %v824_v31  ;;  %v1283_v55 = vmul.f32 %v16809_v23, %v1280_v12  ;;  %v1279_v11 = vadd.f32 1.4214138, %v1276_v56 }
 0x2fd   :  { %v831_v42 = vmul.f32 %v15392_v5, %v828_v14  ;;  %v1284_v49 = vadd.f32 -0.28449672, %v1281_v36  ;;  %v1543_v44 = vmul.f32 %v15414_v51, %v1528_v9  ;;  %v1249_v9 = vmul.f32 0.5, %v16787_v50 }
 0x2fe   :  { %v832_v54 = vmul.f32 %v16797_v13, %v829_v52  ;;  %v830_v59 = vadd.f32 0.2548296, %v827_v7  ;;  %v1286_v63 = vadd.f32 -0.28449672, %v1283_v55  ;;  %v1282_v24 = vmul.f32 %v16823_v53, %v1279_v11 }
 0x2ff   :  { %v846_v58 = vmul.f32 %v15408_v47, %v831_v42  ;;  %v1287_v5 = vmul.f32 %v16807_v45, %v1284_v49 }
 0x300   :  { %v847_v3 = vmul.f32 %v15410_v57, %v832_v54  ;;  %v833_v13 = vmul.f32 %v16801_v41, %v830_v59  ;;  %v1289_v19 = vmul.f32 %v16809_v23, %v1286_v63  ;;  %v15416_v41 = vpop.eup %15415  ;;  %v1285_v36 = vadd.f32 -0.28449672, %v1282_v24 }
 0x301   :  { %v849_v62 = vsub.f32 1.0, %v846_v58  ;;  %v1290_v16 = vadd.f32 0.2548296, %v1287_v5  ;;  %v15418_v42 = vpop.eup %15417 }
 0x302   :  { %v850_v18 = vsub.f32 1.0, %v847_v3  ;;  %v848_v43 = vmul.f32 %v15412_v60, %v833_v13  ;;  %v1292_v14 = vadd.f32 0.2548296, %v1289_v19  ;;  %v15420_v5 = vpop.eup %15419  ;;  %v1481_v60 = vmul.f32 0.5, %v16669_v15 }
 0x303   :  { %v855_v22 = vsub.f32 0.0, %v849_v62  ;;  %v1293_v33 = vmul.f32 %v16807_v45, %v1290_v16  ;;  %v1288_v45 = vmul.f32 %v16823_v53, %v1285_v36  ;;  %v1482_v15 = vmul.f32 0.5, %v16675_v28  ;;  %v1803_v36 = vld [vmem:[#allocation26 + $0x38] sm:$0xff] }
 0x304   :  { %v856_v35 = vsub.f32 0.0, %v850_v18  ;;  %v851_v2 = vsub.f32 1.0, %v848_v43  ;;  %v1295_v4 = vmul.f32 %v16809_v23, %v1292_v14  ;;  %v787_v23 = vmul.f32 0.5, %v16748_v32 }
 0x305   :  { %v858_v31 = vsel %vm852_vm10, %v849_v62, %v855_v22  ;;  %v1308_v12 = vmul.f32 %v15416_v41, %v1293_v33  ;;  %v1291_v57 = vadd.f32 0.2548296, %v1288_v45  ;;  %v1546_v32 = vsub.f32 1.0, %v1543_v44 }
 0x306   :  { %v861_v52 = vadd.f32 1.0, %v858_v31  ;;  %v859_v10 = vsel %vm853_vm11, %v850_v18, %v856_v35  ;;  %v857_v7 = vsub.f32 0.0, %v851_v2  ;;  %v1310_v1 = vmul.f32 %v15418_v42, %v1295_v4  ;;  %v1800_v42 = vld [vmem:[#allocation26 + $0x20] sm:$0xff] }
 0x307   :  { %v1311_v49 = vsub.f32 1.0, %v1308_v12  ;;  %v862_v54 = vadd.f32 1.0, %v859_v10  ;;  %v1294_v59 = vmul.f32 %v16823_v53, %v1291_v57  ;;  %v1556_v62 = vadd.f32 1.0, %v1553_v20  ;;  %v1090_v27 = vpop.f32.mrf.mxu0  ;;  %v1802_v12 = vld [vmem:[#allocation26 + $0x30] sm:$0xff]  ;;  %v1801_v10 = vld [vmem:[#allocation26 + $0x28] sm:$0xff]  ;;  %v1796_v57 = vld [vmem:[#allocation26] sm:$0xff] }
 0x308   :  { %v864_v47 = vmul.f32 %v861_v52, %v786_v48  ;;  %v860_v55 = vsel %vm854_vm12, %v851_v2, %v857_v7  ;;  %v1551_v48 = vsub.f32 0.0, %v1545_v46  ;;  %v1313_v56 = vsub.f32 1.0, %v1310_v1  ;;  %v1799_v7 = vld [vmem:[#allocation26 + $0x18] sm:$0xff]  ;;  %v1797_v1 = vld [vmem:[#allocation26 + $0x8] sm:$0xff] }
 0x309   :  { %v1317_v58 = vsub.f32 0.0, %v1311_v49  ;;  %v865_v17 = vmul.f32 %v862_v54, %v787_v23  ;;  %v863_v63 = vadd.f32 1.0, %v860_v55  ;;  %v1309_v21 = vmul.f32 %v15420_v5, %v1294_v59  ;;  %v13440_v33 = vpop.f32.mrf.mxu0 }
 0x30a   :  { %13452 = vmatmul.mubr.msk.f32.vlgmr.msra.gmra.mxu1 %vm547_vm1, %v864_v47  ;;  %v1554_v53 = vsel %vm1548_vm13, %v1545_v46, %v1551_v48  ;;  %v1319_v25 = vsub.f32 0.0, %v1313_v56  ;;  %v1552_v16 = vsub.f32 0.0, %v1546_v32  ;;  %v1559_v34 = vmul.f32 %v1556_v62, %v1481_v60  ;;  %v1798_v47 = vld [vmem:[#allocation26 + $0x10] sm:$0xff] }
 0x30b   :  { %13474 = vmatpush3.msk.msra.mxu1 %vm1020_vm5, %v1562_v29  ;;  %13454 = vmatprep.mubr.msk.f32.mxu1 %vm16309_vm0, %v16308_v0  ;;  %v1320_v3 = vsel %vm1314_vm14, %v1311_v49, %v1317_v58  ;;  %v1312_v11 = vsub.f32 1.0, %v1309_v21  ;;  %v866_v18 = vmul.f32 %v863_v63, %v788_v39  ;;  %v1557_v6 = vadd.f32 1.0, %v1554_v53  ;;  %v1095_v35 = vpop.f32.mrf.mxu0 }
 0x30c   :  { %v1323_v8 = vadd.f32 1.0, %v1320_v3  ;;  %v1322_v37 = vsel %vm1316_vm3, %v1313_v56, %v1319_v25  ;;  %v1555_v19 = vsel %vm1549_vm15, %v1546_v32, %v1552_v16 }
 0x30d   :  { %v1318_v61 = vsub.f32 0.0, %v1312_v11  ;;  %v1325_v43 = vadd.f32 1.0, %v1322_v37  ;;  %v1560_v24 = vmul.f32 %v1557_v6, %v1482_v15  ;;  %v1558_v51 = vadd.f32 1.0, %v1555_v19  ;;  %v13443_v14 = vpop.f32.mrf.mxu0 }
 0x30e   :  { %13455 = vmatmul.mubr.msk.f32.gmra.mxu1 %vm547_vm1, %v865_v17  ;;  %v1326_v13 = vmul.f32 %v1323_v8, %v1248_v26 }
 0x30f   :  { %13457 = vmatprep.mubr.msk.f32.mxu1 %vm16309_vm0, %v16308_v0  ;;  %v1321_v46 = vsel %vm1315_vm4, %v1312_v11, %v1318_v61  ;;  %v1328_v50 = vmul.f32 %v1325_v43, %v1250_v38  ;;  %v1561_v30 = vmul.f32 %v1558_v51, %v1483_v40  ;;  %v1100_v41 = vpop.f32.mrf.mxu0 }
 0x310   :  { %13465 = vmatmul.mubr.msk.f32.vlgmr.msra.gmra.mxu0 %vm547_vm1, %v1326_v13  ;;  %v1324_v28 = vadd.f32 1.0, %v1321_v46 }
 0x311   :  { %13467 = vmatprep.mubr.msk.f32.mxu0 %vm16309_vm0, %v16308_v0  ;;  %v13446_v31 = vpop.f32.mrf.mxu0  ;;  %13485 = vmatpush3.msra.mxu0 %v1803_v36 }
 0x312   :  { %13458 = vmatmul.mubr.msk.f32.gmra.mxu1 %vm547_vm1, %v866_v18  ;;  %v1327_v22 = vmul.f32 %v1324_v28, %v1249_v9  ;;  %13486 = vmatprep.subr.mxu0 %v16308_v0 }
 0x313   :  { %13475 = vmatprep.mubr.msk.f32.mxu1 %vm16309_vm0, %v16308_v0  ;;  %13487 = vmatpush3.msra.mxu0 %v1802_v12 }
 0x314   :  { %13468 = vmatmul.mubr.msk.f32.gmra.mxu0 %vm547_vm1, %v1327_v22  ;;  %13488 = vmatprep.subr.mxu0 %v16308_v0 }
 0x315   :  { %13470 = vmatprep.mubr.msk.f32.mxu0 %vm16309_vm0, %v16308_v0  ;;  %13489 = vmatpush3.msra.mxu0 %v1801_v10 }
 0x316   :  { %13476 = vmatmul.mubr.msk.f32.vlgmr.msra.gmra.mxu1 %vm874_vm2, %v1559_v34  ;;  %13490 = vmatprep.subr.mxu0 %v16308_v0 }
 0x317   :  { %13478 = vmatprep.mubr.msk.f32.mxu1 %vm16309_vm0, %v16308_v0  ;;  %13491 = vmatpush3.msra.mxu0 %v1800_v42 }
 0x318   :  { %13471 = vmatmul.mubr.msk.f32.gmra.mxu0 %vm547_vm1, %v1328_v50  ;;  %13492 = vmatprep.subr.mxu0 %v16308_v0  ;;  %vm1660_vm1 = vcmask 523264  }
 0x319   :  { %13500 = vmatprep.mubr.msk.f32.mxu0 %vm16309_vm0, %v16308_v0  ;;  %13493 = vmatpush3.msra.mxu0 %v1799_v7  ;;  %v12113_v7 = vld [vmem:[#allocation25] ss:$0 sm:$0xff] }
 0x31a   :  { %13479 = vmatmul.mubr.msk.f32.gmra.mxu1 %vm874_vm2, %v1560_v24  ;;  %13494 = vmatprep.subr.mxu0 %v16308_v0 }
 0x31b   :  { %13481 = vmatprep.mubr.msk.f32.mxu1 %vm16309_vm0, %v16308_v0  ;;  %13495 = vmatpush3.msra.mxu0 %v1798_v47 }
 0x31c   :  { %13496 = vmatprep.subr.mxu0 %v16308_v0 }
 0x31d   :  { %13497 = vmatpush3.msra.mxu0 %v1797_v1 }
 0x31e   :  { %13482 = vmatmul.mubr.msk.f32.gmra.mxu1 %vm874_vm2, %v1561_v30  ;;  %13498 = vmatprep.subr.mxu0 %v16308_v0  ;;  %vm1664_vm2 = vcmask 517120  }
 0x31f   :  { %2122 = vmatprep.mubr.f32.mxu1 %v16308_v0  ;;  %13499 = vmatpush3.msra.mxu0 %v1796_v57 }
 0x3ca   :  { %v1179_v2 = vpop.f32.mrf.mxu1 }
 0x3cb   :  { %v1180_v58 = vadd.f32 %v1179_v2, %v1090_v27 }
 0x3cc   :  { %v13453_v52 = vpop.f32.mrf.mxu1 }
 0x3ce   :  { %v1184_v29 = vpop.f32.mrf.mxu1 }
 0x3cf   :  { %v1185_v23 = vadd.f32 %v1184_v29, %v1095_v35  ;;  %v12112_v29 = vld [vmem:[#allocation23] ss:$0 sm:$0xff] }
 0x3d0   :  { %v13456_v4 = vpop.f32.mrf.mxu1  ;;  %v1406_v45 = vpop.f32.mrf.mxu0 }
 0x3d1   :  { %v1420_v59 = vadd.f32 %v1406_v45, %v1180_v58 }
 0x3d2   :  { %v1189_v44 = vpop.f32.mrf.mxu1  ;;  %v13466_v49 = vpop.f32.mrf.mxu0 }
 0x3d3   :  { %v1190_v3 = vadd.f32 %v1189_v44, %v1100_v41 }
 0x3d4   :  { %v13459_v54 = vpop.f32.mrf.mxu1  ;;  %v1411_v20 = vpop.f32.mrf.mxu0 }
 0x3d5   :  { %v1421_v56 = vadd.f32 %v1411_v20, %v1185_v23 }
 0x3d6   :  { %v1641_v55 = vpop.f32.mrf.mxu1  ;;  %v13469_v32 = vpop.f32.mrf.mxu0 }
 0x3d7   :  { %v1655_v17 = vadd.f32 %v1641_v55, %v1420_v59 }
 0x3d8   :  { %v13477_v48 = vpop.f32.mrf.mxu1  ;;  %v1416_v26 = vpop.f32.mrf.mxu0 }
 0x3d9   :  { %v1422_v21 = vadd.f32 %v1416_v26, %v1190_v3  ;;  %v1661_v53 = vsel %vm1660_vm1, %v1655_v17, 0.0 }
 0x3da   :  { %v1646_v5 = vpop.f32.mrf.mxu1  ;;  %v13472_v60 = vpop.f32.mrf.mxu0 }
 0x3db   :  { %v1656_v63 = vadd.f32 %v1646_v5, %v1421_v56 }
 0x3dc   :  { %v13480_v8 = vpop.f32.mrf.mxu1 }
 0x3dd   :  { %v1662_v39 = vsel %vm1660_vm1, %v1656_v63, 0.0 }
 0x3de   :  { %v1651_v62 = vpop.f32.mrf.mxu1  ;;  %v1663_v11 = vadd.f32 %v1662_v39, %v1661_v53 }
 0x3df   :  { %v1657_v13 = vadd.f32 %v1651_v62, %v1422_v21 }
 0x3e0   :  { %v13483_v25 = vpop.f32.mrf.mxu1 }
 0x3e1   :  { %v1665_v16 = vsel %vm1664_vm2, %v1657_v13, 0.0 }
 0x3e2   :  { %v1666_v18 = vadd.f32 %v1665_v16, %v1663_v11 }
 0x3e4   :  { %v1667_v61 = vrot.slane %v1666_v18, 4 }
 0x3e6   :  { %v1668_v15 = vadd.f32 %v1667_v61, %v1666_v18 }
 0x3e8   :  { %v1669_v34 = vrot.slane %v1668_v15, 2 }
 0x3ea   :  { %v1670_v6 = vadd.f32 %v1669_v34, %v1668_v15 }
 0x3ec   :  { %v1671_v46 = vrot.slane %v1670_v6, 1 }
 0x3ee   :  { %v1672_v37 = vadd.f32 %v1671_v46, %v1670_v6 }
 0x3f0   :  { %v1673_v19 = vmul.f32 0.055555556, %v1672_v37 }
 0x3f2   :  { %v1674_v9 = vsub.f32 %v1655_v17, %v1673_v19  ;;  %v1675_v28 = vsub.f32 %v1656_v63, %v1673_v19  ;;  %v1676_v40 = vsub.f32 %v1657_v13, %v1673_v19 }
 0x3f4   :  { %v1677_v22 = vmul.f32 %v1674_v9, %v1674_v9  ;;  %v1678_v43 = vmul.f32 %v1675_v28, %v1675_v28  ;;  %v1679_v24 = vmul.f32 %v1676_v40, %v1676_v40 }
 0x3f6   :  { %v1680_v51 = vsel %vm1660_vm1, %v1677_v22, 0.0  ;;  %v1681_v38 = vsel %vm1660_vm1, %v1678_v43, 0.0  ;;  %v1683_v30 = vsel %vm1664_vm2, %v1679_v24, 0.0 }
 0x3f7   :  { %v1682_v50 = vadd.f32 %v1681_v38, %v1680_v51 }
 0x3f9   :  { %v1684_v27 = vadd.f32 %v1683_v30, %v1682_v50 }
 0x3fb   :  { %v1685_v33 = vrot.slane %v1684_v27, 4 }
 0x3fd   :  { %v1686_v35 = vadd.f32 %v1685_v33, %v1684_v27 }
 0x3ff   :  { %v1687_v14 = vrot.slane %v1686_v35, 2 }
 0x401   :  { %v1688_v41 = vadd.f32 %v1687_v14, %v1686_v35 }
 0x403   :  { %v1689_v31 = vrot.slane %v1688_v41, 1 }
 0x405   :  { %v1690_v2 = vadd.f32 %v1689_v31, %v1688_v41 }
 0x407   :  { %v1691_v36 = vmul.f32 0.055555556, %v1690_v2 }
 0x409   :  { %v1692_v52 = vadd.f32 1e-05, %v1691_v36 }
 0x40b   :  { %15421 = vrsqrt.f32 %v1692_v52 }
 0x418   :  { %v15422_v12 = vpop.eup %15421 }
 0x419   :  { %v1694_v10 = vmul.f32 %v15422_v12, %v1674_v9  ;;  %v1695_v4 = vmul.f32 %v15422_v12, %v1675_v28  ;;  %v1696_v42 = vmul.f32 %v15422_v12, %v1676_v40 }
 0x41b   :  { %v1703_v45 = vmul.f32 %v12112_v29, %v1694_v10  ;;  %v1704_v44 = vmul.f32 %v12112_v29, %v1695_v4  ;;  %v1705_v47 = vmul.f32 %v12112_v29, %v1696_v42 }
 0x41d   :  { %v16918_v49 = vadd.f32 %v12113_v7, %v1703_v45  ;;  %v16920_v54 = vadd.f32 %v12113_v7, %v1705_v47  ;;  %v16922_v1 = vadd.f32 %v12113_v7, %v1704_v44 }
 0x41f   :  { %v16925_v55 = vmul.f32 0.70710677, %v16918_v49  ;;  %v16928_v57 = vmul.f32 0.70710677, %v16920_v54  ;;  %v16931_v58 = vmul.f32 0.70710677, %v16922_v1 }
 0x421   :  { %v1721_v23 = vand.u32 2147483647, %v16925_v55  ;;  %v1723_v20 = vand.u32 2147483647, %v16928_v57  ;;  %v1722_v48 = vand.u32 2147483647, %v16931_v58 }
 0x422   :  { %vm1781_vm5 = vcmp.ge.f32.partialorder %v16925_v55, 0.0  ;;  %vm1782_vm6 = vcmp.ge.f32.partialorder %v16931_v58, 0.0  ;;  %vm1783_vm7 = vcmp.ge.f32.partialorder %v16928_v57, 0.0  ;;  %v2057_v58 = vld [vmem:[#allocation31 + $0xf8] sm:$0xff] }
 0x423   :  { %v1724_v59 = vmul.f32 0.3275911, %v1721_v23  ;;  %v1726_v56 = vmul.f32 0.3275911, %v1723_v20  ;;  %v1725_v32 = vmul.f32 0.3275911, %v1722_v48  ;;  %2058 = vmatprep.subr.mxu1 %v2057_v58 }
 0x424   :  { %v1763_v63 = vsub.f32 0.0, %v1721_v23  ;;  %v1765_v26 = vsub.f32 0.0, %v1723_v20  ;;  %v1764_v21 = vsub.f32 0.0, %v1722_v48 }
 0x425   :  { %v1727_v5 = vadd.f32 1.0, %v1724_v59  ;;  %v1729_v3 = vadd.f32 1.0, %v1726_v56  ;;  %v1728_v17 = vadd.f32 1.0, %v1725_v32  ;;  %v1715_v59 = vmul.f32 0.5, %v16918_v49 }
 0x426   :  { %v1766_v8 = vmul.f32 %v1763_v63, %v1721_v23  ;;  %v1768_v39 = vmul.f32 %v1765_v26, %v1723_v20  ;;  %v1767_v11 = vmul.f32 %v1764_v21, %v1722_v48  ;;  %v1716_v63 = vmul.f32 0.5, %v16922_v1  ;;  %v2056_v21 = vld [vmem:[#allocation31 + $0xf0] sm:$0xff]  ;;  %v2054_v1 = vld [vmem:[#allocation31 + $0xe0] sm:$0xff] }
 0x427   :  { %15423 = vrcp.f32 %v1727_v5  ;;  %v1717_v49 = vmul.f32 0.5, %v16920_v54  ;;  %2059 = vmatpush1.msra.mxu1 %v2056_v21  ;;  %v2049_v54 = vld [vmem:[#allocation31 + $0xb8] sm:$0xff] }
 0x428   :  { %15425 = vrcp.f32 %v1729_v3  ;;  %v1769_v13 = vmul.f32 1.442695, %v1766_v8  ;;  %v1773_v25 = vmul.f32 1.442695, %v1768_v39  ;;  %v1771_v46 = vmul.f32 1.442695, %v1767_v11 }
 0x429   :  { %15427 = vrcp.f32 %v1728_v17  ;;  %v2055_v39 = vld [vmem:[#allocation31 + $0xe8] sm:$0xff]  ;;  %v2048_v11 = vld [vmem:[#allocation31 + $0xb0] sm:$0xff] }
 0x42a   :  { %15429 = vpow2.f32 %v1769_v13  ;;  %2060 = vmatprep.subr.mxu1 %v2055_v39  ;;  %v2050_v13 = vld [vmem:[#allocation31 + $0xc0] sm:$0xff] }
 0x42b   :  { %15431 = vpow2.f32 %v1773_v25  ;;  %2061 = vmatpush1.msra.mxu1 %v2054_v1  ;;  %v2047_v25 = vld [vmem:[#allocation31 + $0xa8] sm:$0xff]  ;;  %v12117_v1 = vld [vmem:[#allocation28] ss:$0 sm:$0xff] }
 0x42c   :  { %15433 = vpow2.f32 %v1771_v46  ;;  %v2040_v46 = vld [vmem:[#allocation31 + $0x70] sm:$0xff] }
 0x434   :  { %v15424_v60 = vpop.eup %15423 }
 0x435   :  { %v15426_v62 = vpop.eup %15425  ;;  %v1736_v53 = vmul.f32 1.0614054, %v15424_v60 }
 0x436   :  { %v1738_v16 = vmul.f32 1.0614054, %v15426_v62  ;;  %v15428_v61 = vpop.eup %15427 }
 0x437   :  { %v1739_v18 = vadd.f32 -1.4531521, %v1736_v53  ;;  %v1737_v6 = vmul.f32 1.0614054, %v15428_v61  ;;  %v15430_v2 = vpop.eup %15429  ;;  %v2051_v53 = vld [vmem:[#allocation31 + $0xc8] sm:$0xff] }
 0x438   :  { %v1741_v15 = vadd.f32 -1.4531521, %v1738_v16  ;;  %v15432_v52 = vpop.eup %15431  ;;  %v2046_v16 = vld [vmem:[#allocation31 + $0xa0] sm:$0xff] }
 0x439   :  { %v1742_v34 = vmul.f32 %v15424_v60, %v1739_v18  ;;  %v1740_v9 = vadd.f32 -1.4531521, %v1737_v6  ;;  %v15434_v7 = vpop.eup %15433  ;;  %v2045_v18 = vld [vmem:[#allocation31 + $0x98] sm:$0xff] }
 0x43a   :  { %v1744_v37 = vmul.f32 %v15426_v62, %v1741_v15  ;;  %v2043_v15 = vld [vmem:[#allocation31 + $0x88] sm:$0xff]  ;;  %v2041_v6 = vld [vmem:[#allocation31 + $0x78] sm:$0xff] }
 0x43b   :  { %v1745_v19 = vadd.f32 1.4214138, %v1742_v34  ;;  %v1743_v22 = vmul.f32 %v15428_v61, %v1740_v9  ;;  %v2042_v34 = vld [vmem:[#allocation31 + $0x80] sm:$0xff]  ;;  %v2037_v9 = vld [vmem:[#allocation31 + $0x58] sm:$0xff] }
 0x43c   :  { %v1747_v28 = vadd.f32 1.4214138, %v1744_v37  ;;  %v2039_v37 = vld [vmem:[#allocation31 + $0x68] sm:$0xff] }
 0x43d   :  { %v1748_v40 = vmul.f32 %v15424_v60, %v1745_v19  ;;  %v1746_v51 = vadd.f32 1.4214138, %v1743_v22  ;;  %v2038_v19 = vld [vmem:[#allocation31 + $0x60] sm:$0xff] }
 0x43e   :  { %v1750_v43 = vmul.f32 %v15426_v62, %v1747_v28  ;;  %v2036_v28 = vld [vmem:[#allocation31 + $0x50] sm:$0xff]  ;;  %v2034_v22 = vld [vmem:[#allocation31 + $0x40] sm:$0xff] }
 0x43f   :  { %v1751_v24 = vadd.f32 -0.28449672, %v1748_v40  ;;  %v1749_v30 = vmul.f32 %v15428_v61, %v1746_v51  ;;  %v2035_v40 = vld [vmem:[#allocation31 + $0x48] sm:$0xff] }
 0x440   :  { %v1753_v38 = vadd.f32 -0.28449672, %v1750_v43  ;;  %v2033_v43 = vld [vmem:[#allocation31 + $0x38] sm:$0xff]  ;;  %v2031_v51 = vld [vmem:[#allocation31 + $0x28] sm:$0xff] }
 0x441   :  { %v1754_v50 = vmul.f32 %v15424_v60, %v1751_v24  ;;  %v1752_v35 = vadd.f32 -0.28449672, %v1749_v30  ;;  %v2032_v24 = vld [vmem:[#allocation31 + $0x30] sm:$0xff] }
 0x442   :  { %v1756_v27 = vmul.f32 %v15426_v62, %v1753_v38  ;;  %v2030_v38 = vld [vmem:[#allocation31 + $0x20] sm:$0xff]  ;;  %v2028_v30 = vld [vmem:[#allocation31 + $0x10] sm:$0xff] }
 0x443   :  { %v1757_v33 = vadd.f32 0.2548296, %v1754_v50  ;;  %v1755_v31 = vmul.f32 %v15428_v61, %v1752_v35  ;;  %v2029_v50 = vld [vmem:[#allocation31 + $0x18] sm:$0xff] }
 0x444   :  { %v1759_v14 = vadd.f32 0.2548296, %v1756_v27  ;;  %v2027_v27 = vld [vmem:[#allocation31 + $0x8] sm:$0xff] }
 0x445   :  { %v1760_v41 = vmul.f32 %v15424_v60, %v1757_v33  ;;  %v1758_v29 = vadd.f32 0.2548296, %v1755_v31  ;;  %v2053_v60 = vld [vmem:[#allocation31 + $0xd8] sm:$0xff]  ;;  %v2026_v33 = vld [vmem:[#allocation31] sm:$0xff] }
 0x446   :  { %v1762_v36 = vmul.f32 %v15426_v62, %v1759_v14  ;;  %v2052_v62 = vld [vmem:[#allocation31 + $0xd0] sm:$0xff]  ;;  %2062 = vmatprep.subr.mxu1 %v2053_v60 }
 0x447   :  { %v1775_v12 = vmul.f32 %v15430_v2, %v1760_v41  ;;  %v1761_v42 = vmul.f32 %v15428_v61, %v1758_v29  ;;  %2063 = vmatpush1.msra.mxu1 %v2052_v62  ;;  %v2044_v61 = vld [vmem:[#allocation31 + $0x90] sm:$0xff] }
 0x448   :  { %v1777_v10 = vmul.f32 %v15432_v52, %v1762_v36  ;;  %2064 = vmatprep.subr.mxu1 %v2051_v53 }
 0x449   :  { %v1778_v4 = vsub.f32 1.0, %v1775_v12  ;;  %v1776_v47 = vmul.f32 %v15434_v7, %v1761_v42  ;;  %2065 = vmatpush1.msra.mxu1 %v2050_v13  ;;  %v12118_v13 = vld [vmem:[#allocation29] ss:$0 sm:$0xff] }
 0x44a   :  { %v1780_v45 = vsub.f32 1.0, %v1777_v10  ;;  %2066 = vmatprep.subr.mxu1 %v2049_v54 }
 0x44b   :  { %v1784_v44 = vsub.f32 0.0, %v1778_v4  ;;  %v1779_v20 = vsub.f32 1.0, %v1776_v47  ;;  %2067 = vmatpush1.msra.mxu1 %v2048_v11 }
 0x44c   :  { %v1786_v48 = vsub.f32 0.0, %v1780_v45  ;;  %2068 = vmatprep.subr.mxu1 %v2047_v25 }
 0x44d   :  { %v1787_v23 = vsel %vm1781_vm5, %v1778_v4, %v1784_v44  ;;  %v1785_v32 = vsub.f32 0.0, %v1779_v20  ;;  %2069 = vmatpush1.msra.mxu1 %v2046_v16 }
 0x44e   :  { %v1790_v56 = vadd.f32 1.0, %v1787_v23  ;;  %v1789_v17 = vsel %vm1783_vm7, %v1780_v45, %v1786_v48  ;;  %2070 = vmatprep.subr.mxu1 %v2045_v18 }
 0x44f   :  { %v1788_v3 = vsel %vm1782_vm6, %v1779_v20, %v1785_v32  ;;  %v1792_v8 = vadd.f32 1.0, %v1789_v17  ;;  %2071 = vmatpush1.msra.mxu1 %v2044_v61 }
 0x450   :  { %v1793_v5 = vmul.f32 %v1790_v56, %v1715_v59  ;;  %v1791_v26 = vadd.f32 1.0, %v1788_v3  ;;  %2072 = vmatprep.subr.mxu1 %v2043_v15 }
 0x451   :  { %v1795_v57 = vmul.f32 %v1792_v8, %v1717_v49  ;;  %2073 = vmatpush1.msra.mxu1 %v2042_v34 }
 0x452   :  { %13501 = vmatmul.mubr.msk.f32.vlgmr.msra.gmra.mxu0 %vm1660_vm1, %v1793_v5  ;;  %v1794_v55 = vmul.f32 %v1791_v26, %v1716_v63  ;;  %2074 = vmatprep.subr.mxu1 %v2041_v6 }
 0x453   :  { %13503 = vmatprep.mubr.msk.f32.mxu0 %vm16309_vm0, %v16308_v0  ;;  %2075 = vmatpush1.msra.mxu1 %v2040_v46 }
 0x454   :  { %2076 = vmatprep.subr.mxu1 %v2039_v37 }
 0x455   :  { %2077 = vmatpush1.msra.mxu1 %v2038_v19 }
 0x456   :  { %13504 = vmatmul.mubr.msk.f32.gmra.mxu0 %vm1660_vm1, %v1794_v55  ;;  %2078 = vmatprep.subr.mxu1 %v2037_v9 }
 0x457   :  { %13506 = vmatprep.mubr.msk.f32.mxu0 %vm16309_vm0, %v16308_v0  ;;  %2079 = vmatpush1.msra.mxu1 %v2036_v28 }
 0x458   :  { %2080 = vmatprep.subr.mxu1 %v2035_v40 }
 0x459   :  { %2081 = vmatpush1.msra.mxu1 %v2034_v22 }
 0x45a   :  { %13507 = vmatmul.mubr.msk.f32.gmra.mxu0 %vm1660_vm1, %v1795_v57  ;;  %2082 = vmatprep.subr.mxu1 %v2033_v43 }
 0x45b   :  { %2083 = vmatpush1.msra.mxu1 %v2032_v24 }
 0x45c   :  { %2084 = vmatprep.subr.mxu1 %v2031_v51 }
 0x45d   :  { %2085 = vmatpush1.msra.mxu1 %v2030_v38 }
 0x45e   :  { %2086 = vmatprep.subr.mxu1 %v2029_v50 }
 0x45f   :  { %2087 = vmatpush1.msra.mxu1 %v2028_v30 }
 0x460   :  { %2088 = vmatprep.subr.mxu1 %v2027_v27 }
 0x461   :  { %2089 = vmatpush1.msra.mxu1 %v2026_v33 }
 0x512   :  { %v1879_v35 = vpop.f32.mrf.mxu0 }
 0x514   :  { %v13502_v14 = vpop.f32.mrf.mxu0 }
 0x516   :  { %v1884_v41 = vpop.f32.mrf.mxu0 }
 0x517   :  { %v1895_v2 = vadd.f32 %v1884_v41, %v1879_v35 }
 0x518   :  { %v13505_v31 = vpop.f32.mrf.mxu0 }
 0x51a   :  { %v1889_v36 = vpop.f32.mrf.mxu0 }
 0x51b   :  { %v1897_v52 = vsel %vm1896_vm8, %v1889_v36, 0.0 }
 0x51c   :  { %v1898_v12 = vadd.f32 %v1897_v52, %v1895_v2  ;;  %v13508_v29 = vpop.f32.mrf.mxu0 }
 0x51e   :  { %v1899_v10 = vrot.slane %v1898_v12, 4 }
 0x520   :  { %v1900_v4 = vadd.f32 %v1899_v10, %v1898_v12 }
 0x522   :  { %v1901_v42 = vrot.slane %v1900_v4, 2 }
 0x524   :  { %v1902_v7 = vadd.f32 %v1901_v42, %v1900_v4 }
 0x526   :  { %v1903_v45 = vrot.slane %v1902_v7, 1 }
 0x528   :  { %v1904_v44 = vadd.f32 %v1903_v45, %v1902_v7 }
 0x52a   :  { %v1905_v47 = vmul.f32 0.055555556, %v1904_v44 }
 0x52c   :  { %v1906_v23 = vsub.f32 %v1879_v35, %v1905_v47  ;;  %v1907_v20 = vsub.f32 %v1884_v41, %v1905_v47  ;;  %v1908_v48 = vsub.f32 %v1889_v36, %v1905_v47 }
 0x52e   :  { %v1909_v59 = vmul.f32 %v1906_v23, %v1906_v23  ;;  %v1910_v56 = vmul.f32 %v1907_v20, %v1907_v20  ;;  %v1911_v32 = vmul.f32 %v1908_v48, %v1908_v48 }
 0x530   :  { %v1912_v5 = vadd.f32 %v1910_v56, %v1909_v59  ;;  %v1913_v3 = vsel %vm1896_vm8, %v1911_v32, 0.0 }
 0x532   :  { %v1914_v17 = vadd.f32 %v1913_v3, %v1912_v5 }
 0x534   :  { %v1915_v63 = vrot.slane %v1914_v17, 4 }
 0x536   :  { %v1916_v26 = vadd.f32 %v1915_v63, %v1914_v17 }
 0x538   :  { %v1917_v55 = vrot.slane %v1916_v26, 2 }
 0x53a   :  { %v1918_v8 = vadd.f32 %v1917_v55, %v1916_v26 }
 0x53c   :  { %v1919_v49 = vrot.slane %v1918_v8, 1 }
 0x53e   :  { %v1920_v57 = vadd.f32 %v1919_v49, %v1918_v8 }
 0x540   :  { %v1921_v58 = vmul.f32 0.055555556, %v1920_v57 }
 0x542   :  { %v1922_v21 = vadd.f32 1e-05, %v1921_v58 }
 0x544   :  { %15435 = vrsqrt.f32 %v1922_v21 }
 0x551   :  { %v15436_v39 = vpop.eup %15435 }
 0x552   :  { %v1924_v60 = vmul.f32 %v15436_v39, %v1906_v23  ;;  %v1926_v62 = vmul.f32 %v15436_v39, %v1908_v48  ;;  %v1925_v53 = vmul.f32 %v15436_v39, %v1907_v20 }
 0x554   :  { %v1933_v54 = vmul.f32 %v12117_v1, %v1924_v60  ;;  %v1935_v11 = vmul.f32 %v12117_v1, %v1926_v62  ;;  %v1934_v25 = vmul.f32 %v12117_v1, %v1925_v53 }
 0x556   :  { %v16951_v16 = vadd.f32 %v12118_v13, %v1933_v54  ;;  %v16953_v18 = vadd.f32 %v12118_v13, %v1935_v11  ;;  %v16955_v61 = vadd.f32 %v12118_v13, %v1934_v25 }
 0x558   :  { %v16958_v15 = vmul.f32 0.70710677, %v16951_v16  ;;  %v16961_v34 = vmul.f32 0.70710677, %v16953_v18  ;;  %v16964_v6 = vmul.f32 0.70710677, %v16955_v61 }
 0x55a   :  { %v1951_v46 = vand.u32 2147483647, %v16958_v15  ;;  %v1953_v37 = vand.u32 2147483647, %v16961_v34  ;;  %v1952_v19 = vand.u32 2147483647, %v16964_v6 }
 0x55b   :  { %vm2011_vm9 = vcmp.ge.f32.partialorder %v16958_v15, 0.0  ;;  %vm2012_vm10 = vcmp.ge.f32.partialorder %v16964_v6, 0.0  ;;  %vm2013_vm11 = vcmp.ge.f32.partialorder %v16961_v34, 0.0  ;;  %v2462_v6 = vld [vmem:[#allocation35 + $0x1e8] sm:$0xff]  ;;  %v2461_v34 = vld [vmem:[#allocation35 + $0x1e0] sm:$0xff] }
 0x55c   :  { %v1954_v9 = vmul.f32 0.3275911, %v1951_v46  ;;  %v1956_v28 = vmul.f32 0.3275911, %v1953_v37  ;;  %v1955_v40 = vmul.f32 0.3275911, %v1952_v19  ;;  %2529 = vmatprep.subr.mxu0 %v2462_v6 }
 0x55d   :  { %v1993_v51 = vsub.f32 0.0, %v1951_v46  ;;  %v1995_v38 = vsub.f32 0.0, %v1953_v37  ;;  %v1994_v30 = vsub.f32 0.0, %v1952_v19  ;;  %2530 = vmatpush1.msra.mxu0 %v2461_v34  ;;  %v2403_v6 = vld [vmem:[#allocation35 + $0x10] sm:$0xff]  ;;  %v2528_v34 = vld [vmem:[#allocation35 + $0x3f8] sm:$0xff] }
 0x55e   :  { %v1957_v22 = vadd.f32 1.0, %v1954_v9  ;;  %v1959_v43 = vadd.f32 1.0, %v1956_v28  ;;  %v1958_v24 = vadd.f32 1.0, %v1955_v40  ;;  %v1945_v9 = vmul.f32 0.5, %v16951_v16 }
 0x55f   :  { %v1996_v50 = vmul.f32 %v1993_v51, %v1951_v46  ;;  %v1998_v27 = vmul.f32 %v1995_v38, %v1953_v37  ;;  %v1997_v31 = vmul.f32 %v1994_v30, %v1952_v19  ;;  %v1946_v51 = vmul.f32 0.5, %v16955_v61  ;;  %v2458_v61 = vld [vmem:[#allocation35 + $0x1c8] sm:$0xff] }
 0x560   :  { %15437 = vrcp.f32 %v1957_v22  ;;  %v1947_v16 = vmul.f32 0.5, %v16953_v18  ;;  %2531 = vmatprep.subr.mxu0 %v2458_v61  ;;  %v2454_v18 = vld [vmem:[#allocation35 + $0x1a8] sm:$0xff]  ;;  %v2527_v61 = vld [vmem:[#allocation35 + $0x3f0] sm:$0xff] }
 0x561   :  { %15439 = vrcp.f32 %v1959_v43  ;;  %v1999_v14 = vmul.f32 1.442695, %v1996_v50  ;;  %v2003_v2 = vmul.f32 1.442695, %v1998_v27  ;;  %v2001_v42 = vmul.f32 1.442695, %v1997_v31 }
 0x562   :  { %15441 = vrcp.f32 %v1958_v24  ;;  %v2464_v27 = vld [vmem:[#allocation35 + $0x1f8] sm:$0xff] }
 0x563   :  { %15443 = vpow2.f32 %v1999_v14  ;;  %2612 = vmatprep.subr.mxu1 %v2464_v27  ;;  %v2457_v14 = vld [vmem:[#allocation35 + $0x1c0] sm:$0xff]  ;;  %v2456_v31 = vld [vmem:[#allocation35 + $0x1b8] sm:$0xff]  ;;  %v2526_v27 = vld [vmem:[#allocation35 + $0x3e8] sm:$0xff] }
 0x564   :  { %15445 = vpow2.f32 %v2003_v2  ;;  %2532 = vmatpush1.msra.mxu0 %v2457_v14  ;;  %v2453_v2 = vld [vmem:[#allocation35 + $0x1a0] sm:$0xff]  ;;  %v2524_v14 = vld [vmem:[#allocation35 + $0x3d8] sm:$0xff] }
 0x565   :  { %15447 = vpow2.f32 %v2001_v42  ;;  %2533 = vmatprep.subr.mxu0 %v2454_v18  ;;  %v2448_v42 = vld [vmem:[#allocation35 + $0x178] sm:$0xff]  ;;  %v2523_v18 = vld [vmem:[#allocation35 + $0x3d0] sm:$0xff] }
 0x566   :  { %2534 = vmatpush1.msra.mxu0 %v2453_v2  ;;  %v2520_v2 = vld [vmem:[#allocation35 + $0x3b8] sm:$0xff] }
 0x56d   :  { %v15438_v33 = vpop.eup %15437 }
 0x56e   :  { %v15440_v35 = vpop.eup %15439  ;;  %v1966_v41 = vmul.f32 1.0614054, %v15438_v33 }
 0x56f   :  { %v1968_v36 = vmul.f32 1.0614054, %v15440_v35  ;;  %v15442_v12 = vpop.eup %15441 }
 0x570   :  { %v1969_v52 = vadd.f32 -1.4531521, %v1966_v41  ;;  %v1967_v4 = vmul.f32 1.0614054, %v15442_v12  ;;  %v15444_v57 = vpop.eup %15443  ;;  %v2459_v41 = vld [vmem:[#allocation35 + $0x1d0] sm:$0xff] }
 0x571   :  { %v1971_v29 = vadd.f32 -1.4531521, %v1968_v36  ;;  %v15446_v21 = vpop.eup %15445  ;;  %v2455_v36 = vld [vmem:[#allocation35 + $0x1b0] sm:$0xff] }
 0x572   :  { %v1972_v10 = vmul.f32 %v15438_v33, %v1969_v52  ;;  %v1970_v44 = vadd.f32 -1.4531521, %v1967_v4  ;;  %v15448_v13 = vpop.eup %15447  ;;  %v2450_v52 = vld [vmem:[#allocation35 + $0x188] sm:$0xff] }
 0x573   :  { %v1974_v7 = vmul.f32 %v15440_v35, %v1971_v29  ;;  %2535 = vmatprep.subr.mxu0 %v2450_v52  ;;  %v2449_v29 = vld [vmem:[#allocation35 + $0x180] sm:$0xff]  ;;  %v2446_v4 = vld [vmem:[#allocation35 + $0x168] sm:$0xff]  ;;  %v2519_v52 = vld [vmem:[#allocation35 + $0x3b0] sm:$0xff] }
 0x574   :  { %v1975_v45 = vadd.f32 1.4214138, %v1972_v10  ;;  %v1973_v20 = vmul.f32 %v15442_v12, %v1970_v44  ;;  %v2451_v10 = vld [vmem:[#allocation35 + $0x190] sm:$0xff]  ;;  %2536 = vmatpush1.msra.mxu0 %v2449_v29  ;;  %v2442_v44 = vld [vmem:[#allocation35 + $0x148] sm:$0xff]  ;;  %v2516_v29 = vld [vmem:[#allocation35 + $0x398] sm:$0xff] }
 0x575   :  { %v1977_v47 = vadd.f32 1.4214138, %v1974_v7  ;;  %2537 = vmatprep.subr.mxu0 %v2446_v4  ;;  %v2445_v7 = vld [vmem:[#allocation35 + $0x160] sm:$0xff]  ;;  %v2515_v4 = vld [vmem:[#allocation35 + $0x390] sm:$0xff] }
 0x576   :  { %v1978_v23 = vmul.f32 %v15438_v33, %v1975_v45  ;;  %v1976_v56 = vadd.f32 1.4214138, %v1973_v20  ;;  %v2447_v45 = vld [vmem:[#allocation35 + $0x170] sm:$0xff]  ;;  %2538 = vmatpush1.msra.mxu0 %v2445_v7  ;;  %v2512_v7 = vld [vmem:[#allocation35 + $0x378] sm:$0xff] }
 0x577   :  { %v1980_v48 = vmul.f32 %v15440_v35, %v1977_v47  ;;  %v2444_v47 = vld [vmem:[#allocation35 + $0x158] sm:$0xff]  ;;  %2539 = vmatprep.subr.mxu0 %v2442_v44  ;;  %v2443_v20 = vld [vmem:[#allocation35 + $0x150] sm:$0xff] }
 0x578   :  { %v1981_v59 = vadd.f32 -0.28449672, %v1978_v23  ;;  %v1979_v3 = vmul.f32 %v15442_v12, %v1976_v56  ;;  %v2441_v23 = vld [vmem:[#allocation35 + $0x140] sm:$0xff]  ;;  %v2511_v44 = vld [vmem:[#allocation35 + $0x370] sm:$0xff] }
 0x579   :  { %v1983_v32 = vadd.f32 -0.28449672, %v1980_v48  ;;  %2540 = vmatpush1.msra.mxu0 %v2441_v23  ;;  %v2438_v48 = vld [vmem:[#allocation35 + $0x128] sm:$0xff]  ;;  %v2437_v56 = vld [vmem:[#allocation35 + $0x120] sm:$0xff]  ;;  %v2508_v23 = vld [vmem:[#allocation35 + $0x358] sm:$0xff] }
 0x57a   :  { %v1984_v5 = vmul.f32 %v15438_v33, %v1981_v59  ;;  %v1982_v26 = vadd.f32 -0.28449672, %v1979_v3  ;;  %v2440_v59 = vld [vmem:[#allocation35 + $0x138] sm:$0xff]  ;;  %2541 = vmatprep.subr.mxu0 %v2438_v48  ;;  %v2507_v48 = vld [vmem:[#allocation35 + $0x350] sm:$0xff] }
 0x57b   :  { %v1986_v17 = vmul.f32 %v15440_v35, %v1983_v32  ;;  %v2439_v32 = vld [vmem:[#allocation35 + $0x130] sm:$0xff]  ;;  %2542 = vmatpush1.msra.mxu0 %v2437_v56  ;;  %v2436_v3 = vld [vmem:[#allocation35 + $0x118] sm:$0xff] }
 0x57c   :  { %v1987_v63 = vadd.f32 0.2548296, %v1984_v5  ;;  %v1985_v49 = vmul.f32 %v15442_v12, %v1982_v26  ;;  %v2434_v5 = vld [vmem:[#allocation35 + $0x108] sm:$0xff]  ;;  %v2504_v56 = vld [vmem:[#allocation35 + $0x338] sm:$0xff] }
 0x57d   :  { %v1989_v55 = vadd.f32 0.2548296, %v1986_v17  ;;  %2543 = vmatprep.subr.mxu0 %v2434_v5  ;;  %v2433_v17 = vld [vmem:[#allocation35 + $0x100] sm:$0xff]  ;;  %v2430_v26 = vld [vmem:[#allocation35 + $0xe8] sm:$0xff]  ;;  %v2503_v5 = vld [vmem:[#allocation35 + $0x330] sm:$0xff] }
 0x57e   :  { %v1990_v8 = vmul.f32 %v15438_v33, %v1987_v63  ;;  %v1988_v1 = vadd.f32 0.2548296, %v1985_v49  ;;  %v2463_v33 = vld [vmem:[#allocation35 + $0x1f0] sm:$0xff]  ;;  %2544 = vmatpush1.msra.mxu0 %v2433_v17  ;;  %v2500_v17 = vld [vmem:[#allocation35 + $0x318] sm:$0xff] }
 0x57f   :  { %v1992_v58 = vmul.f32 %v15440_v35, %v1989_v55  ;;  %v2460_v35 = vld [vmem:[#allocation35 + $0x1d8] sm:$0xff]  ;;  %v2435_v63 = vld [vmem:[#allocation35 + $0x110] sm:$0xff]  ;;  %2545 = vmatprep.subr.mxu0 %v2430_v26 }
 0x580   :  { %v2005_v39 = vmul.f32 %v15444_v57, %v1990_v8  ;;  %v1991_v53 = vmul.f32 %v15442_v12, %v1988_v1  ;;  %v2452_v12 = vld [vmem:[#allocation35 + $0x198] sm:$0xff]  ;;  %v2429_v8 = vld [vmem:[#allocation35 + $0xe0] sm:$0xff]  ;;  %v2431_v49 = vld [vmem:[#allocation35 + $0xf0] sm:$0xff] }
 0x581   :  { %v2007_v60 = vmul.f32 %v15446_v21, %v1992_v58  ;;  %v2432_v55 = vld [vmem:[#allocation35 + $0xf8] sm:$0xff]  ;;  %v2426_v57 = vld [vmem:[#allocation35 + $0xc8] sm:$0xff]  ;;  %2546 = vmatpush1.msra.mxu0 %v2429_v8  ;;  %v2425_v21 = vld [vmem:[#allocation35 + $0xc0] sm:$0xff] }
 0x582   :  { %v2008_v62 = vsub.f32 1.0, %v2005_v39  ;;  %v2006_v25 = vmul.f32 %v15448_v13, %v1991_v53  ;;  %v2428_v58 = vld [vmem:[#allocation35 + $0xd8] sm:$0xff]  ;;  %v2427_v39 = vld [vmem:[#allocation35 + $0xd0] sm:$0xff]  ;;  %v2422_v1 = vld [vmem:[#allocation35 + $0xa8] sm:$0xff]  ;;  %2547 = vmatprep.subr.mxu0 %v2426_v57 }
 0x583   :  { %v2010_v54 = vsub.f32 1.0, %v2007_v60  ;;  %v2424_v60 = vld [vmem:[#allocation35 + $0xb8] sm:$0xff]  ;;  %v2423_v53 = vld [vmem:[#allocation35 + $0xb0] sm:$0xff]  ;;  %2548 = vmatpush1.msra.mxu0 %v2425_v21  ;;  %v2418_v13 = vld [vmem:[#allocation35 + $0x88] sm:$0xff] }
 0x584   :  { %v2014_v11 = vsub.f32 0.0, %v2008_v62  ;;  %v2009_v37 = vsub.f32 1.0, %v2006_v25  ;;  %2549 = vmatprep.subr.mxu0 %v2422_v1  ;;  %v2419_v25 = vld [vmem:[#allocation35 + $0x90] sm:$0xff]  ;;  %v2496_v8 = vld [vmem:[#allocation35 + $0x2f8] sm:$0xff] }
 0x585   :  { %v2016_v19 = vsub.f32 0.0, %v2010_v54  ;;  %v2499_v26 = vld [vmem:[#allocation35 + $0x310] sm:$0xff]  ;;  %v2492_v21 = vld [vmem:[#allocation35 + $0x2d8] sm:$0xff] }
 0x586   :  { %v2017_v46 = vsel %vm2011_vm9, %v2008_v62, %v2014_v11  ;;  %v2015_v40 = vsub.f32 0.0, %v2009_v37  ;;  %v2421_v62 = vld [vmem:[#allocation35 + $0xa0] sm:$0xff]  ;;  %v2495_v57 = vld [vmem:[#allocation35 + $0x2f0] sm:$0xff] }
 0x587   :  { %v2020_v28 = vadd.f32 1.0, %v2017_v46  ;;  %v2019_v24 = vsel %vm2013_vm11, %v2010_v54, %v2016_v19  ;;  %v2420_v54 = vld [vmem:[#allocation35 + $0x98] sm:$0xff]  ;;  %v2417_v11 = vld [vmem:[#allocation35 + $0x80] sm:$0xff]  ;;  %2550 = vmatpush1.msra.mxu0 %v2421_v62  ;;  %v2414_v46 = vld [vmem:[#allocation35 + $0x68] sm:$0xff] }
 0x588   :  { %v2018_v43 = vsel %vm2012_vm10, %v2009_v37, %v2015_v40  ;;  %v2022_v50 = vadd.f32 1.0, %v2019_v24  ;;  %v2416_v37 = vld [vmem:[#allocation35 + $0x78] sm:$0xff]  ;;  %2551 = vmatprep.subr.mxu0 %v2418_v13  ;;  %v2413_v19 = vld [vmem:[#allocation35 + $0x60] sm:$0xff]  ;;  %v2406_v24 = vld [vmem:[#allocation35 + $0x28] sm:$0xff] }
 0x589   :  { %v2023_v22 = vmul.f32 %v2020_v28, %v1945_v9  ;;  %v2021_v38 = vadd.f32 1.0, %v2018_v43  ;;  %v2415_v9 = vld [vmem:[#allocation35 + $0x70] sm:$0xff]  ;;  %2552 = vmatpush1.msra.mxu0 %v2417_v11  ;;  %v2410_v28 = vld [vmem:[#allocation35 + $0x48] sm:$0xff]  ;;  %v2412_v40 = vld [vmem:[#allocation35 + $0x58] sm:$0xff] }
 0x58a   :  { %v2025_v30 = vmul.f32 %v2022_v50, %v1947_v16  ;;  %2553 = vmatprep.subr.mxu0 %v2414_v46  ;;  %v2411_v43 = vld [vmem:[#allocation35 + $0x50] sm:$0xff]  ;;  %v2402_v50 = vld [vmem:[#allocation35 + $0x8] sm:$0xff]  ;;  %v2404_v16 = vld [vmem:[#allocation35 + $0x18] sm:$0xff] }
 0x58b   :  { %2123 = vmatmul.mubr.f32.vlgmr.msra.gmra.mxu1 %v2023_v22  ;;  %v2024_v15 = vmul.f32 %v2021_v38, %v1946_v51  ;;  %v2409_v22 = vld [vmem:[#allocation35 + $0x40] sm:$0xff]  ;;  %2554 = vmatpush1.msra.mxu0 %v2413_v19  ;;  %v2408_v51 = vld [vmem:[#allocation35 + $0x38] sm:$0xff]  ;;  %v2491_v1 = vld [vmem:[#allocation35 + $0x2d0] sm:$0xff] }
 0x58c   :  { %2128 = vmatprep.mubr.f32.mxu1 %v16308_v0  ;;  %2613 = vmatpush1.msra.mxu1 %v2463_v33  ;;  %v2405_v38 = vld [vmem:[#allocation35 + $0x20] sm:$0xff]  ;;  %v2488_v62 = vld [vmem:[#allocation35 + $0x2b8] sm:$0xff]  ;;  %v2487_v13 = vld [vmem:[#allocation35 + $0x2b0] sm:$0xff] }
 0x58d   :  { %2614 = vmatprep.subr.mxu1 %v2460_v35  ;;  %2555 = vmatprep.subr.mxu0 %v2410_v28  ;;  %v2525_v33 = vld [vmem:[#allocation35 + $0x3e0] sm:$0xff]  ;;  %v2522_v35 = vld [vmem:[#allocation35 + $0x3c8] sm:$0xff]  ;;  %v2484_v11 = vld [vmem:[#allocation35 + $0x298] sm:$0xff] }
 0x58e   :  { %2615 = vmatpush1.msra.mxu1 %v2459_v41  ;;  %2556 = vmatpush1.msra.mxu0 %v2409_v22  ;;  %v2521_v41 = vld [vmem:[#allocation35 + $0x3c0] sm:$0xff]  ;;  %v2483_v46 = vld [vmem:[#allocation35 + $0x290] sm:$0xff]  ;;  %v2480_v19 = vld [vmem:[#allocation35 + $0x278] sm:$0xff] }
 0x58f   :  { %2129 = vmatmul.mubr.f32.gmra.mxu1 %v2024_v15  ;;  %2616 = vmatprep.subr.mxu1 %v2456_v31  ;;  %v2407_v15 = vld [vmem:[#allocation35 + $0x30] sm:$0xff]  ;;  %v2518_v31 = vld [vmem:[#allocation35 + $0x3a8] sm:$0xff]  ;;  %v2476_v22 = vld [vmem:[#allocation35 + $0x258] sm:$0xff] }
 0x590   :  { %2134 = vmatprep.mubr.f32.mxu1 %v16308_v0  ;;  %2617 = vmatpush1.msra.mxu1 %v2455_v36  ;;  %v2517_v36 = vld [vmem:[#allocation35 + $0x3a0] sm:$0xff]  ;;  %v2479_v28 = vld [vmem:[#allocation35 + $0x270] sm:$0xff] }
 0x591   :  { %2618 = vmatprep.subr.mxu1 %v2452_v12  ;;  %2557 = vmatprep.subr.mxu0 %v2406_v24  ;;  %v2514_v12 = vld [vmem:[#allocation35 + $0x388] sm:$0xff]  ;;  %v2475_v24 = vld [vmem:[#allocation35 + $0x250] sm:$0xff] }
 0x592   :  { %2619 = vmatpush1.msra.mxu1 %v2451_v10  ;;  %2558 = vmatpush1.msra.mxu0 %v2405_v38  ;;  %v2513_v10 = vld [vmem:[#allocation35 + $0x380] sm:$0xff]  ;;  %v2472_v38 = vld [vmem:[#allocation35 + $0x238] sm:$0xff] }
 0x593   :  { %2135 = vmatmul.mubr.f32.gmra.mxu1 %v2025_v30  ;;  %2620 = vmatprep.subr.mxu1 %v2448_v42  ;;  %v2401_v30 = vld [vmem:[#allocation35] sm:$0xff]  ;;  %v2510_v42 = vld [vmem:[#allocation35 + $0x368] sm:$0xff] }
 0x594   :  { %2621 = vmatpush1.msra.mxu1 %v2447_v45  ;;  %2559 = vmatprep.subr.mxu0 %v2402_v50  ;;  %v2509_v45 = vld [vmem:[#allocation35 + $0x360] sm:$0xff]  ;;  %v2471_v50 = vld [vmem:[#allocation35 + $0x230] sm:$0xff] }
 0x595   :  { %2622 = vmatprep.subr.mxu1 %v2444_v47  ;;  %2560 = vmatpush1.msra.mxu0 %v2401_v30  ;;  %v2506_v47 = vld [vmem:[#allocation35 + $0x348] sm:$0xff]  ;;  %v2468_v30 = vld [vmem:[#allocation35 + $0x218] sm:$0xff] }
 0x596   :  { %2623 = vmatpush1.msra.mxu1 %v2443_v20  ;;  %2561 = vmatprep.subr.mxu0 %v2526_v27  ;;  %v2505_v20 = vld [vmem:[#allocation35 + $0x340] sm:$0xff] }
 0x597   :  { %2624 = vmatprep.subr.mxu1 %v2440_v59  ;;  %2562 = vmatpush2.msra.mxu0 %v2525_v33  ;;  %v2502_v59 = vld [vmem:[#allocation35 + $0x328] sm:$0xff]  ;;  %v2465_v27 = vld [vmem:[#allocation35 + $0x200] sm:$0xff] }
 0x598   :  { %2625 = vmatpush1.msra.mxu1 %v2439_v32  ;;  %2563 = vmatprep.subr.mxu0 %v2522_v35  ;;  %v2501_v32 = vld [vmem:[#allocation35 + $0x320] sm:$0xff] }
 0x599   :  { %2626 = vmatprep.subr.mxu1 %v2436_v3  ;;  %2564 = vmatpush2.msra.mxu0 %v2521_v41  ;;  %v2498_v3 = vld [vmem:[#allocation35 + $0x308] sm:$0xff] }
 0x59a   :  { %2627 = vmatpush1.msra.mxu1 %v2435_v63  ;;  %2565 = vmatprep.subr.mxu0 %v2518_v31  ;;  %v2497_v63 = vld [vmem:[#allocation35 + $0x300] sm:$0xff] }
 0x59b   :  { %2628 = vmatprep.subr.mxu1 %v2432_v55  ;;  %2566 = vmatpush2.msra.mxu0 %v2517_v36  ;;  %v2494_v55 = vld [vmem:[#allocation35 + $0x2e8] sm:$0xff] }
 0x59c   :  { %2629 = vmatpush1.msra.mxu1 %v2431_v49  ;;  %2567 = vmatprep.subr.mxu0 %v2514_v12  ;;  %v2493_v49 = vld [vmem:[#allocation35 + $0x2e0] sm:$0xff] }
 0x59d   :  { %2630 = vmatprep.subr.mxu1 %v2428_v58  ;;  %2568 = vmatpush2.msra.mxu0 %v2513_v10  ;;  %v2490_v58 = vld [vmem:[#allocation35 + $0x2c8] sm:$0xff] }
 0x59e   :  { %2631 = vmatpush1.msra.mxu1 %v2427_v39  ;;  %2569 = vmatprep.subr.mxu0 %v2510_v42  ;;  %v2489_v39 = vld [vmem:[#allocation35 + $0x2c0] sm:$0xff] }
 0x59f   :  { %2632 = vmatprep.subr.mxu1 %v2424_v60  ;;  %2570 = vmatpush2.msra.mxu0 %v2509_v45  ;;  %v2486_v60 = vld [vmem:[#allocation35 + $0x2a8] sm:$0xff] }
 0x5a0   :  { %2633 = vmatpush1.msra.mxu1 %v2423_v53  ;;  %2571 = vmatprep.subr.mxu0 %v2506_v47  ;;  %v2485_v53 = vld [vmem:[#allocation35 + $0x2a0] sm:$0xff] }
 0x5a1   :  { %2634 = vmatprep.subr.mxu1 %v2420_v54  ;;  %2572 = vmatpush2.msra.mxu0 %v2505_v20  ;;  %v2482_v54 = vld [vmem:[#allocation35 + $0x288] sm:$0xff] }
 0x5a2   :  { %2635 = vmatpush1.msra.mxu1 %v2419_v25  ;;  %2573 = vmatprep.subr.mxu0 %v2502_v59  ;;  %v2481_v25 = vld [vmem:[#allocation35 + $0x280] sm:$0xff] }
 0x5a3   :  { %2636 = vmatprep.subr.mxu1 %v2416_v37  ;;  %2574 = vmatpush2.msra.mxu0 %v2501_v32  ;;  %v2478_v37 = vld [vmem:[#allocation35 + $0x268] sm:$0xff] }
 0x5a4   :  { %2637 = vmatpush1.msra.mxu1 %v2415_v9  ;;  %2575 = vmatprep.subr.mxu0 %v2498_v3  ;;  %v2477_v9 = vld [vmem:[#allocation35 + $0x260] sm:$0xff] }
 0x5a5   :  { %2638 = vmatprep.subr.mxu1 %v2412_v40  ;;  %2576 = vmatpush2.msra.mxu0 %v2497_v63  ;;  %v2474_v40 = vld [vmem:[#allocation35 + $0x248] sm:$0xff] }
 0x5a6   :  { %2639 = vmatpush1.msra.mxu1 %v2411_v43  ;;  %2577 = vmatprep.subr.mxu0 %v2494_v55  ;;  %v2473_v43 = vld [vmem:[#allocation35 + $0x240] sm:$0xff] }
 0x5a7   :  { %2640 = vmatprep.subr.mxu1 %v2408_v51  ;;  %2578 = vmatpush2.msra.mxu0 %v2493_v49  ;;  %v2470_v51 = vld [vmem:[#allocation35 + $0x228] sm:$0xff] }
 0x5a8   :  { %2641 = vmatpush1.msra.mxu1 %v2407_v15  ;;  %2579 = vmatprep.subr.mxu0 %v2490_v58  ;;  %v2469_v15 = vld [vmem:[#allocation35 + $0x220] sm:$0xff] }
 0x5a9   :  { %2642 = vmatprep.subr.mxu1 %v2404_v16  ;;  %2580 = vmatpush2.msra.mxu0 %v2489_v39  ;;  %v2466_v16 = vld [vmem:[#allocation35 + $0x208] sm:$0xff] }
 0x5aa   :  { %2643 = vmatpush1.msra.mxu1 %v2403_v6  ;;  %2581 = vmatprep.subr.mxu0 %v2486_v60 }
 0x5ab   :  { %2644 = vmatprep.subr.mxu1 %v2528_v34  ;;  %2582 = vmatpush2.msra.mxu0 %v2485_v53  ;;  %v2467_v34 = vld [vmem:[#allocation35 + $0x210] sm:$0xff] }
 0x5ac   :  { %2645 = vmatpush2.msra.mxu1 %v2527_v61  ;;  %2583 = vmatprep.subr.mxu0 %v2482_v54 }
 0x5ad   :  { %2646 = vmatprep.subr.mxu1 %v2524_v14  ;;  %2584 = vmatpush2.msra.mxu0 %v2481_v25 }
 0x5ae   :  { %2647 = vmatpush2.msra.mxu1 %v2523_v18  ;;  %2585 = vmatprep.subr.mxu0 %v2478_v37  ;;  %v13639_v18 = vld [vmem:[#allocation37 + $0x4e4] ss:$16 sps:$4 sm:$0xff]  }
 0x5af   :  { %2648 = vmatprep.subr.mxu1 %v2520_v2  ;;  %2586 = vmatpush2.msra.mxu0 %v2477_v9  ;;  %v13642_v2 = vld [vmem:[#allocation37 + $0x6e4] ss:$16 sps:$4 sm:$0xff]  }
 0x5b0   :  { %2649 = vmatpush2.msra.mxu1 %v2519_v52  ;;  %2587 = vmatprep.subr.mxu0 %v2474_v40 }
 0x5b1   :  { %2650 = vmatprep.subr.mxu1 %v2516_v29  ;;  %2588 = vmatpush2.msra.mxu0 %v2473_v43 }
 0x5b2   :  { %2651 = vmatpush2.msra.mxu1 %v2515_v4  ;;  %2589 = vmatprep.subr.mxu0 %v2470_v51 }
 0x5b3   :  { %2652 = vmatprep.subr.mxu1 %v2512_v7  ;;  %2590 = vmatpush2.msra.mxu0 %v2469_v15 }
 0x5b4   :  { %2653 = vmatpush2.msra.mxu1 %v2511_v44  ;;  %2591 = vmatprep.subr.mxu0 %v2466_v16 }
 0x5b5   :  { %2654 = vmatprep.subr.mxu1 %v2508_v23  ;;  %2592 = vmatpush2.msra.mxu0 %v2465_v27 }
 0x5b6   :  { %2655 = vmatpush2.msra.mxu1 %v2507_v48  ;;  %3932 = vmatprep.subr.bf16.mxu0 %v13639_v18 }
 0x5b7   :  { %2656 = vmatprep.subr.mxu1 %v2504_v56 }
 0x5b8   :  { %2657 = vmatpush2.msra.mxu1 %v2503_v5 }
 0x5b9   :  { %2658 = vmatprep.subr.mxu1 %v2500_v17 }
 0x5ba   :  { %2659 = vmatpush2.msra.mxu1 %v2499_v26 }
 0x5bb   :  { %2660 = vmatprep.subr.mxu1 %v2496_v8 }
 0x5bc   :  { %2661 = vmatpush2.msra.mxu1 %v2495_v57 }
 0x5bd   :  { %2662 = vmatprep.subr.mxu1 %v2492_v21 }
 0x5be   :  { %2663 = vmatpush2.msra.mxu1 %v2491_v1 }
 0x5bf   :  { %2664 = vmatprep.subr.mxu1 %v2488_v62 }
 0x5c0   :  { %2665 = vmatpush2.msra.mxu1 %v2487_v13 }
 0x5c1   :  { %2666 = vmatprep.subr.mxu1 %v2484_v11 }
 0x5c2   :  { %2667 = vmatpush2.msra.mxu1 %v2483_v46 }
 0x5c3   :  { %2668 = vmatprep.subr.mxu1 %v2480_v19 }
 0x5c4   :  { %2669 = vmatpush2.msra.mxu1 %v2479_v28 }
 0x5c5   :  { %2670 = vmatprep.subr.mxu1 %v2476_v22 }
 0x5c6   :  { %2671 = vmatpush2.msra.mxu1 %v2475_v24 }
 0x5c7   :  { %2672 = vmatprep.subr.mxu1 %v2472_v38 }
 0x5c8   :  { %2673 = vmatpush2.msra.mxu1 %v2471_v50 }
 0x5c9   :  { %2674 = vmatprep.subr.mxu1 %v2468_v30 }
 0x5ca   :  { %2675 = vmatpush2.msra.mxu1 %v2467_v34 }
 0x5cb   :  { %3973 = vmatprep.subr.bf16.mxu1 %v13642_v2 }
 0x64b   :  { %v2124_v6 = vpop.f32.mrf.mxu1 }
 0x64d   :  { %v2126_v33 = vpop.f32.mrf.mxu1 }
 0x64f   :  { %v2130_v61 = vpop.f32.mrf.mxu1 }
 0x650   :  { %v2143_v14 = vadd.f32 %v2130_v61, %v2124_v6 }
 0x651   :  { %v2132_v35 = vpop.f32.mrf.mxu1 }
 0x652   :  { %v2152_v36 = vadd.f32 %v2132_v35, %v2126_v33 }
 0x653   :  { %v2136_v41 = vpop.f32.mrf.mxu1 }
 0x654   :  { %v2144_v31 = vsel %vm1896_vm8, %v2136_v41, 0.0 }
 0x655   :  { %v2145_v52 = vadd.f32 %v2144_v31, %v2143_v14  ;;  %v2138_v12 = vpop.f32.mrf.mxu1 }
 0x656   :  { %v2153_v29 = vsel %vm1896_vm8, %v2138_v12, 0.0 }
 0x657   :  { %v2146_v10 = vrot.slane %v2145_v52, 4  ;;  %v2154_v4 = vadd.f32 %v2153_v29, %v2152_v36 }
 0x659   :  { %v2147_v42 = vadd.f32 %v2146_v10, %v2145_v52  ;;  %v2155_v7 = vrot.slane %v2154_v4, 4 }
 0x65b   :  { %v2148_v45 = vrot.slane %v2147_v42, 2  ;;  %v2156_v44 = vadd.f32 %v2155_v7, %v2154_v4 }
 0x65d   :  { %v2149_v47 = vadd.f32 %v2148_v45, %v2147_v42  ;;  %v2157_v23 = vrot.slane %v2156_v44, 2 }
 0x65f   :  { %v2150_v20 = vrot.slane %v2149_v47, 1  ;;  %v2158_v48 = vadd.f32 %v2157_v23, %v2156_v44 }
 0x661   :  { %v2151_v59 = vadd.f32 %v2150_v20, %v2149_v47  ;;  %v2159_v56 = vrot.slane %v2158_v48, 1 }
 0x663   :  { %v2161_v32 = vmul.f32 0.055555556, %v2151_v59  ;;  %v2160_v5 = vadd.f32 %v2159_v56, %v2158_v48 }
 0x665   :  { %v2163_v3 = vsub.f32 %v2124_v6, %v2161_v32  ;;  %v2165_v17 = vsub.f32 %v2130_v61, %v2161_v32  ;;  %v2167_v63 = vsub.f32 %v2136_v41, %v2161_v32  ;;  %v2162_v26 = vmul.f32 0.055555556, %v2160_v5  ;;  %v2141_v61 = vld [vmem:[#allocation32] sm:$0x3] }
 0x666   :  { %v2206_v6 = vlaneseq }
 0x667   :  { %v2169_v55 = vmul.f32 %v2163_v3, %v2163_v3  ;;  %v2171_v8 = vmul.f32 %v2165_v17, %v2165_v17  ;;  %v2173_v49 = vmul.f32 %v2167_v63, %v2167_v63  ;;  %v2164_v57 = vsub.f32 %v2126_v33, %v2162_v26 }
 0x668   :  { %v2166_v58 = vsub.f32 %v2132_v35, %v2162_v26  ;;  %v2168_v21 = vsub.f32 %v2138_v12, %v2162_v26  ;;  %v2207_v34 = vshrl.u32 %v2206_v6, 7  ;;  %v2142_v35 = vld [vmem:[#allocation34] sm:$0x3] }
 0x669   :  { %v2175_v39 = vadd.f32 %v2171_v8, %v2169_v55  ;;  %v2176_v1 = vsel %vm1896_vm8, %v2173_v49, 0.0  ;;  %v2170_v60 = vmul.f32 %v2164_v57, %v2164_v57 }
 0x66a   :  { %v2172_v62 = vmul.f32 %v2166_v58, %v2166_v58  ;;  %v2174_v53 = vmul.f32 %v2168_v21, %v2168_v21  ;;  %v2208_v33 = vsub.s32 0, %v2207_v34  ;;  %v2212_v14 = vsub.s32 1, %v2207_v34 }
 0x66b   :  { %v2177_v13 = vadd.f32 %v2176_v1, %v2175_v39 }
 0x66c   :  { %v2184_v54 = vadd.f32 %v2172_v62, %v2170_v60  ;;  %v2185_v11 = vsel %vm1896_vm8, %v2174_v53, 0.0  ;;  %v2209_v41 = vrot.slane %v2141_v61, %v2208_v33  ;;  %v2226_v36 = vrot.slane %v2142_v35, %v2208_v33 }
 0x66d   :  { %v2178_v25 = vrot.slane %v2177_v13, 4  ;;  %v2213_v12 = vrot.slane %v2141_v61, %v2212_v14  ;;  %v2230_v7 = vrot.slane %v2142_v35, %v2212_v14 }
 0x66e   :  { %v2186_v46 = vadd.f32 %v2185_v11, %v2184_v54 }
 0x66f   :  { %v2179_v37 = vadd.f32 %v2178_v25, %v2177_v13 }
 0x670   :  { %v2187_v19 = vrot.slane %v2186_v46, 4 }
 0x671   :  { %v2180_v9 = vrot.slane %v2179_v37, 2 }
 0x672   :  { %v2188_v28 = vadd.f32 %v2187_v19, %v2186_v46 }
 0x673   :  { %v2181_v40 = vadd.f32 %v2180_v9, %v2179_v37 }
 0x674   :  { %v2189_v22 = vrot.slane %v2188_v28, 2 }
 0x675   :  { %v2182_v43 = vrot.slane %v2181_v40, 1 }
 0x676   :  { %v2190_v24 = vadd.f32 %v2189_v22, %v2188_v28 }
 0x677   :  { %v2183_v51 = vadd.f32 %v2182_v43, %v2181_v40 }
 0x678   :  { %v2191_v38 = vrot.slane %v2190_v24, 1 }
 0x679   :  { %v2193_v15 = vmul.f32 0.055555556, %v2183_v51 }
 0x67a   :  { %v2192_v50 = vadd.f32 %v2191_v38, %v2190_v24 }
 0x67b   :  { %v2195_v16 = vadd.f32 1e-05, %v2193_v15 }
 0x67c   :  { %v2194_v30 = vmul.f32 0.055555556, %v2192_v50 }
 0x67d   :  { %15449 = vrsqrt.f32 %v2195_v16 }
 0x67e   :  { %v2196_v27 = vadd.f32 1e-05, %v2194_v30 }
 0x680   :  { %15451 = vrsqrt.f32 %v2196_v27 }
 0x68a   :  { %v15450_v18 = vpop.eup %15449 }
 0x68b   :  { %v2199_v31 = vmul.f32 %v15450_v18, %v2163_v3  ;;  %v2203_v2 = vmul.f32 %v15450_v18, %v2167_v63  ;;  %v2201_v52 = vmul.f32 %v15450_v18, %v2165_v17 }
 0x68d   :  { %v15452_v29 = vpop.eup %15451  ;;  %v2216_v10 = vmul.f32 %v2209_v41, %v2199_v31  ;;  %v2220_v4 = vmul.f32 %v2209_v41, %v2203_v2  ;;  %v2218_v20 = vmul.f32 %v2209_v41, %v2201_v52 }
 0x68e   :  { %v2204_v42 = vmul.f32 %v15452_v29, %v2168_v21  ;;  %v2200_v45 = vmul.f32 %v15452_v29, %v2164_v57  ;;  %v2202_v44 = vmul.f32 %v15452_v29, %v2166_v58 }
 0x68f   :  { %v16981_v47 = vadd.f32 %v2226_v36, %v2220_v4  ;;  %v16983_v23 = vadd.f32 %v2226_v36, %v2216_v10  ;;  %v16996_v26 = vadd.f32 %v2226_v36, %v2218_v20 }
 0x690   :  { %v2221_v48 = vmul.f32 %v2213_v12, %v2204_v42  ;;  %v2217_v59 = vmul.f32 %v2213_v12, %v2200_v45  ;;  %v2219_v5 = vmul.f32 %v2213_v12, %v2202_v44 }
 0x691   :  { %v16986_v56 = vmul.f32 0.70710677, %v16981_v47  ;;  %v16989_v32 = vmul.f32 0.70710677, %v16983_v23  ;;  %v17010_v60 = vmul.f32 0.70710677, %v16996_v26 }
 0x692   :  { %v16991_v3 = vadd.f32 %v2230_v7, %v2221_v48  ;;  %v16993_v17 = vadd.f32 %v2230_v7, %v2217_v59  ;;  %v17005_v58 = vadd.f32 %v2230_v7, %v2219_v5 }
 0x693   :  { %v2255_v63 = vand.u32 2147483647, %v16986_v56  ;;  %v2251_v49 = vand.u32 2147483647, %v16989_v32  ;;  %v2253_v37 = vand.u32 2147483647, %v17010_v60 }
 0x694   :  { %v16999_v55 = vmul.f32 0.70710677, %v16991_v3  ;;  %v17002_v8 = vmul.f32 0.70710677, %v16993_v17  ;;  %v17013_v54 = vmul.f32 0.70710677, %v17005_v58 }
 0x695   :  { %v2261_v57 = vmul.f32 0.3275911, %v2255_v63  ;;  %v2257_v13 = vmul.f32 0.3275911, %v2251_v49  ;;  %v2259_v28 = vmul.f32 0.3275911, %v2253_v37 }
 0x696   :  { %v2256_v21 = vand.u32 2147483647, %v16999_v55  ;;  %v2252_v39 = vand.u32 2147483647, %v17002_v8  ;;  %v2254_v46 = vand.u32 2147483647, %v17013_v54 }
 0x697   :  { %v2267_v1 = vadd.f32 1.0, %v2261_v57  ;;  %v2263_v19 = vadd.f32 1.0, %v2257_v13  ;;  %v2265_v22 = vadd.f32 1.0, %v2259_v28  ;;  %v2339_v43 = vsub.f32 0.0, %v2255_v63 }
 0x698   :  { %v2262_v62 = vmul.f32 0.3275911, %v2256_v21  ;;  %v2258_v53 = vmul.f32 0.3275911, %v2252_v39  ;;  %v2260_v9 = vmul.f32 0.3275911, %v2254_v46 }
 0x699   :  { %15453 = vrcp.f32 %v2267_v1  ;;  %v2340_v24 = vsub.f32 0.0, %v2256_v21  ;;  %v2336_v51 = vsub.f32 0.0, %v2252_v39  ;;  %v2335_v38 = vsub.f32 0.0, %v2251_v49 }
 0x69a   :  { %v2268_v11 = vadd.f32 1.0, %v2262_v62  ;;  %v2264_v25 = vadd.f32 1.0, %v2258_v53  ;;  %v2266_v40 = vadd.f32 1.0, %v2260_v9  ;;  %v2345_v15 = vmul.f32 %v2339_v43, %v2255_v63 }
 0x69b   :  { %v2346_v16 = vmul.f32 %v2340_v24, %v2256_v21  ;;  %v2342_v30 = vmul.f32 %v2336_v51, %v2252_v39  ;;  %v2338_v6 = vsub.f32 0.0, %v2254_v46  ;;  %v2341_v34 = vmul.f32 %v2335_v38, %v2251_v49 }
 0x69c   :  { %15455 = vrcp.f32 %v2268_v11  ;;  %v2355_v61 = vmul.f32 1.442695, %v2345_v15  ;;  %v2337_v35 = vsub.f32 0.0, %v2253_v37  ;;  %vm2372_vm12 = vcmp.ge.f32.partialorder %v17002_v8, 0.0 }
 0x69d   :  { %15457 = vrcp.f32 %v2264_v25  ;;  %v2357_v18 = vmul.f32 1.442695, %v2346_v16  ;;  %v2349_v36 = vmul.f32 1.442695, %v2342_v30  ;;  %v2344_v52 = vmul.f32 %v2338_v6, %v2254_v46 }
 0x69e   :  { %15459 = vrcp.f32 %v2263_v19  ;;  %v2347_v29 = vmul.f32 1.442695, %v2341_v34  ;;  %v2343_v7 = vmul.f32 %v2337_v35, %v2253_v37  ;;  %vm2371_vm13 = vcmp.ge.f32.partialorder %v16989_v32, 0.0  ;;  %v13637_v32 = vld [vmem:[#allocation37 + $0x4e0] ss:$16 sps:$4 sm:$0xff]  }
 0x69f   :  { %15461 = vrcp.f32 %v2266_v40  ;;  %v2353_v5 = vmul.f32 1.442695, %v2344_v52  ;;  %vm2376_vm14 = vcmp.ge.f32.partialorder %v16999_v55, 0.0  ;;  %vm2374_vm15 = vcmp.ge.f32.partialorder %v17013_v54, 0.0  ;;  %v13648_v54 = vld [vmem:[#allocation37 + $0x6c4] ss:$16 sps:$4 sm:$0xff]  }
 0x6a0   :  { %15463 = vrcp.f32 %v2265_v22  ;;  %v2351_v62 = vmul.f32 1.442695, %v2343_v7  ;;  %vm2373_vm3 = vcmp.ge.f32.partialorder %v17010_v60, 0.0  ;;  %vm2375_vm4 = vcmp.ge.f32.partialorder %v16986_v56, 0.0  ;;  %v13643_v56 = vld [vmem:[#allocation37 + $0x4c0] ss:$16 sps:$4 sm:$0xff]  }
 0x6a1   :  { %15465 = vpow2.f32 %v2355_v61 }
 0x6a2   :  { %15467 = vpow2.f32 %v2357_v18 }
 0x6a3   :  { %15469 = vpow2.f32 %v2349_v36 }
 0x6a4   :  { %15471 = vpow2.f32 %v2347_v29 }
 0x6a5   :  { %15473 = vpow2.f32 %v2353_v5 }
 0x6a6   :  { %v17017_v50 = vpop.eup %15453  ;;  %15475 = vpow2.f32 %v2351_v62 }
 0x6a7   :  { %v2285_v27 = vmul.f32 1.0614054, %v17017_v50 }
 0x6a9   :  { %v17020_v33 = vpop.eup %15455  ;;  %v2291_v14 = vadd.f32 -1.4531521, %v2285_v27 }
 0x6aa   :  { %v15458_v41 = vpop.eup %15457  ;;  %v2286_v31 = vmul.f32 1.0614054, %v17020_v33 }
 0x6ab   :  { %v2282_v2 = vmul.f32 1.0614054, %v15458_v41  ;;  %v2297_v12 = vmul.f32 %v17017_v50, %v2291_v14  ;;  %v15460_v4 = vpop.eup %15459 }
 0x6ac   :  { %v2292_v10 = vadd.f32 -1.4531521, %v2286_v31  ;;  %v2281_v44 = vmul.f32 1.0614054, %v15460_v4  ;;  %v15462_v48 = vpop.eup %15461 }
 0x6ad   :  { %v2288_v42 = vadd.f32 -1.4531521, %v2282_v2  ;;  %v2303_v45 = vadd.f32 1.4214138, %v2297_v12  ;;  %v2284_v57 = vmul.f32 1.0614054, %v15462_v48  ;;  %v15464_v39 = vpop.eup %15463 }
 0x6ae   :  { %v2298_v20 = vmul.f32 %v17020_v33, %v2292_v10  ;;  %v2287_v49 = vadd.f32 -1.4531521, %v2281_v44  ;;  %v2283_v25 = vmul.f32 1.0614054, %v15464_v39  ;;  %v15466_v18 = vpop.eup %15465 }
 0x6af   :  { %v2294_v59 = vmul.f32 %v15458_v41, %v2288_v42  ;;  %v2309_v63 = vmul.f32 %v17017_v50, %v2303_v45  ;;  %v2290_v11 = vadd.f32 -1.4531521, %v2284_v57  ;;  %v15468_v12 = vpop.eup %15467 }
 0x6b0   :  { %v2304_v21 = vadd.f32 1.4214138, %v2298_v20  ;;  %v2293_v13 = vmul.f32 %v15460_v4, %v2287_v49  ;;  %v2289_v40 = vadd.f32 -1.4531521, %v2283_v25  ;;  %v15470_v10 = vpop.eup %15469 }
 0x6b1   :  { %v2300_v1 = vadd.f32 1.4214138, %v2294_v59  ;;  %v2315_v53 = vadd.f32 -0.28449672, %v2309_v63  ;;  %v2296_v28 = vmul.f32 %v15462_v48, %v2290_v11  ;;  %v15472_v5 = vpop.eup %15471 }
 0x6b2   :  { %v2310_v46 = vmul.f32 %v17020_v33, %v2304_v21  ;;  %v2299_v9 = vadd.f32 1.4214138, %v2293_v13  ;;  %v2295_v15 = vmul.f32 %v15464_v39, %v2289_v40 }
 0x6b3   :  { %v2306_v37 = vmul.f32 %v15458_v41, %v2300_v1  ;;  %v2321_v19 = vmul.f32 %v17017_v50, %v2315_v53  ;;  %v2302_v38 = vadd.f32 1.4214138, %v2296_v28  ;;  %v15474_v1 = vpop.eup %15473 }
 0x6b4   :  { %v2316_v22 = vadd.f32 -0.28449672, %v2310_v46  ;;  %v2305_v51 = vmul.f32 %v15460_v4, %v2299_v9  ;;  %v2301_v34 = vadd.f32 1.4214138, %v2295_v15  ;;  %v2239_v15 = vmul.f32 0.5, %v16983_v23 }
 0x6b5   :  { %v2312_v43 = vadd.f32 -0.28449672, %v2306_v37  ;;  %v2327_v24 = vadd.f32 0.2548296, %v2321_v19  ;;  %v2308_v27 = vmul.f32 %v15462_v48, %v2302_v38  ;;  %v2240_v19 = vmul.f32 0.5, %v16993_v17 }
 0x6b6   :  { %v2322_v16 = vmul.f32 %v17020_v33, %v2316_v22  ;;  %v2311_v6 = vadd.f32 -0.28449672, %v2305_v51  ;;  %v2307_v36 = vmul.f32 %v15464_v39, %v2301_v34 }
 0x6b7   :  { %v2318_v30 = vmul.f32 %v15458_v41, %v2312_v43  ;;  %v2333_v14 = vmul.f32 %v17017_v50, %v2327_v24  ;;  %v2314_v2 = vadd.f32 -0.28449672, %v2308_v27  ;;  %v13640_v27 = vld [vmem:[#allocation37 + $0x6e0] ss:$16 sps:$4 sm:$0xff]  }
 0x6b8   :  { %v2328_v61 = vadd.f32 0.2548296, %v2322_v16  ;;  %v2317_v31 = vmul.f32 %v15460_v4, %v2311_v6  ;;  %v2313_v45 = vadd.f32 -0.28449672, %v2307_v36  ;;  %v2242_v16 = vmul.f32 0.5, %v17005_v58 }
 0x6b9   :  { %v2324_v35 = vadd.f32 0.2548296, %v2318_v30  ;;  %v2320_v7 = vmul.f32 %v15462_v48, %v2314_v2  ;;  %v2363_v59 = vmul.f32 %v15466_v18, %v2333_v14  ;;  %v13645_v14 = vld [vmem:[#allocation37 + $0x4c4] ss:$16 sps:$4 sm:$0xff]   ;;  %v2241_v58 = vmul.f32 0.5, %v16996_v26 }
 0x6ba   :  { %v2334_v52 = vmul.f32 %v17020_v33, %v2328_v61  ;;  %v2323_v42 = vadd.f32 0.2548296, %v2317_v31  ;;  %v2319_v57 = vmul.f32 %v15464_v39, %v2313_v45  ;;  %v2244_v2 = vmul.f32 0.5, %v16991_v3  ;;  %v13651_v3 = vld [vmem:[#allocation37 + $0x4a4] ss:$16 sps:$4 sm:$0xff]  }
 0x6bb   :  { %v2330_v29 = vmul.f32 %v15458_v41, %v2324_v35  ;;  %v2326_v49 = vadd.f32 0.2548296, %v2320_v7  ;;  %v2369_v11 = vsub.f32 1.0, %v2363_v59  ;;  %v15476_v41 = vpop.eup %15475  ;;  %v13652_v7 = vld [vmem:[#allocation37 + $0x6a0] ss:$16 sps:$4 sm:$0xff]  }
 0x6bc   :  { %v2364_v44 = vmul.f32 %v15468_v12, %v2334_v52  ;;  %v2329_v63 = vmul.f32 %v15460_v4, %v2323_v42  ;;  %v2325_v13 = vadd.f32 0.2548296, %v2319_v57  ;;  %v13646_v52 = vld [vmem:[#allocation37 + $0x6c0] ss:$16 sps:$4 sm:$0xff]   ;;  %v13657_v45 = vld [vmem:[#allocation37 + $0x484] ss:$16 sps:$4 sm:$0xff]  }
 0x6bd   :  { %v2360_v20 = vmul.f32 %v15470_v10, %v2330_v29  ;;  %v2332_v53 = vmul.f32 %v15462_v48, %v2326_v49  ;;  %v2381_v48 = vsub.f32 0.0, %v2369_v11  ;;  %v2243_v29 = vmul.f32 0.5, %v16981_v47  ;;  %v13654_v10 = vld [vmem:[#allocation37 + $0x6a4] ss:$16 sps:$4 sm:$0xff]   ;;  %v13649_v42 = vld [vmem:[#allocation37 + $0x4a0] ss:$16 sps:$4 sm:$0xff]  }
 0x6be   :  { %v2370_v21 = vsub.f32 1.0, %v2364_v44  ;;  %v2359_v62 = vmul.f32 %v15472_v5, %v2329_v63  ;;  %v2331_v37 = vmul.f32 %v15464_v39, %v2325_v13  ;;  %v13660_v44 = vld [vmem:[#allocation37 + $0x684] ss:$16 sps:$4 sm:$0xff]   ;;  %v13658_v59 = vld [vmem:[#allocation37 + $0x680] ss:$16 sps:$4 sm:$0xff]  }
 0x6bf   :  { %v2366_v50 = vsub.f32 1.0, %v2360_v20  ;;  %v2362_v46 = vmul.f32 %v15474_v1, %v2332_v53  ;;  %v2387_v35 = vsel %vm2375_vm4, %v2369_v11, %v2381_v48  ;;  %v13655_v20 = vld [vmem:[#allocation37 + $0x480] ss:$16 sps:$4 sm:$0xff]   ;;  %v13663_v47 = vld [vmem:[#allocation37 + $0x464] ss:$16 sps:$4 sm:$0xff]   ;;  %vm11941_vm4 = vcmask 261120  }
 0x6c0   :  { %v2365_v25 = vsub.f32 1.0, %v2359_v62  ;;  %v2382_v4 = vsub.f32 0.0, %v2370_v21  ;;  %v2361_v43 = vmul.f32 %v15476_v41, %v2331_v37  ;;  %v2393_v36 = vadd.f32 1.0, %v2387_v35  ;;  %v13666_v5 = vld [vmem:[#allocation37 + $0x664] ss:$16 sps:$4 sm:$0xff]  }
 0x6c1   :  { %v2378_v33 = vsub.f32 0.0, %v2366_v50  ;;  %v2368_v22 = vsub.f32 1.0, %v2362_v46  ;;  %v13661_v63 = vld [vmem:[#allocation37 + $0x460] ss:$16 sps:$4 sm:$0xff]   ;;  %v13669_v57 = vld [vmem:[#allocation37 + $0x444] ss:$16 sps:$4 sm:$0xff]  }
 0x6c2   :  { %v2377_v40 = vsub.f32 0.0, %v2365_v25  ;;  %v2367_v8 = vsub.f32 1.0, %v2361_v43  ;;  %v2388_v17 = vsel %vm2376_vm14, %v2370_v21, %v2382_v4  ;;  %v2399_v26 = vmul.f32 %v2393_v36, %v2243_v29  ;;  %v13664_v49 = vld [vmem:[#allocation37 + $0x660] ss:$16 sps:$4 sm:$0xff]   ;;  %v13675_v62 = vld [vmem:[#allocation37 + $0x424] ss:$16 sps:$4 sm:$0xff]  }
 0x6c3   :  { %v2384_v9 = vsel %vm2372_vm12, %v2366_v50, %v2378_v33  ;;  %v2380_v38 = vsub.f32 0.0, %v2368_v22  ;;  %v2394_v23 = vadd.f32 1.0, %v2388_v17  ;;  %v13672_v50 = vld [vmem:[#allocation37 + $0x644] ss:$16 sps:$4 sm:$0xff]   ;;  %v13667_v21 = vld [vmem:[#allocation37 + $0x440] ss:$16 sps:$4 sm:$0xff]  }
 0x6c4   :  { %v2390_v28 = vadd.f32 1.0, %v2384_v9  ;;  %v2383_v51 = vsel %vm2371_vm13, %v2365_v25, %v2377_v40  ;;  %v2379_v6 = vsub.f32 0.0, %v2367_v8  ;;  %v13670_v1 = vld [vmem:[#allocation37 + $0x640] ss:$16 sps:$4 sm:$0xff]   ;;  %v13678_v53 = vld [vmem:[#allocation37 + $0x624] ss:$16 sps:$4 sm:$0xff]  }
 0x6c5   :  { %v2389_v39 = vadd.f32 1.0, %v2383_v51  ;;  %v2386_v30 = vsel %vm2374_vm15, %v2368_v22, %v2380_v38  ;;  %v2400_v12 = vmul.f32 %v2394_v23, %v2244_v2  ;;  %v13673_v13 = vld [vmem:[#allocation37 + $0x420] ss:$16 sps:$4 sm:$0xff]   ;;  %v13681_v11 = vld [vmem:[#allocation37 + $0x404] ss:$16 sps:$4 sm:$0xff]  }
 0x6c6   :  { %v2396_v24 = vmul.f32 %v2390_v28, %v2240_v19  ;;  %v2392_v34 = vadd.f32 1.0, %v2386_v30  ;;  %v2385_v61 = vsel %vm2373_vm3, %v2367_v8, %v2379_v6  ;;  %v13676_v33 = vld [vmem:[#allocation37 + $0x620] ss:$16 sps:$4 sm:$0xff]   ;;  %v13684_v41 = vld [vmem:[#allocation37 + $0x604] ss:$16 sps:$4 sm:$0xff]  }
 0x6c7   :  { %v2395_v55 = vmul.f32 %v2389_v39, %v2239_v15  ;;  %v2391_v31 = vadd.f32 1.0, %v2385_v61  ;;  %v13679_v25 = vld [vmem:[#allocation37 + $0x400] ss:$16 sps:$4 sm:$0xff]   ;;  %v13687_v37 = vld [vmem:[#allocation37 + $0x5e4] ss:$16 sps:$4 sm:$0xff]  }
 0x6c8   :  { %2593 = vmatprep.mubr.f32.mxu0 %v2396_v24  ;;  %2676 = vmatprep.mubr.f32.mxu1 %v2396_v24  ;;  %v2398_v18 = vmul.f32 %v2392_v34, %v2242_v16  ;;  %v13682_v46 = vld [vmem:[#allocation37 + $0x600] ss:$16 sps:$4 sm:$0xff]   ;;  %v13690_v19 = vld [vmem:[#allocation37 + $0x7e4] ss:$16 sps:$4 sm:$0xff]   ;;  %v13738_v36 = vld [vmem:[#allocation37 + $0x6ec] ss:$16 sps:$4 sm:$0xff]  }
 0x6c9   :  { %2594 = vmatmul.mubr.f32.vlgmr.msra.gmra.mxu0 %v2395_v55  ;;  %2677 = vmatmul.mubr.f32.vlgmr.msra.gmra.mxu1 %v2395_v55  ;;  %v2397_v60 = vmul.f32 %v2391_v31, %v2241_v58  ;;  %v13685_v9 = vld [vmem:[#allocation37 + $0x5e0] ss:$16 sps:$4 sm:$0xff]   ;;  %v13693_v28 = vld [vmem:[#allocation37 + $0x5c4] ss:$16 sps:$4 sm:$0xff]  }
 0x6ca   :  { %3933 = vmatpush1.bf16.msra.mxu0 %v13637_v32  ;;  %3974 = vmatpush1.bf16.msra.mxu1 %v13640_v27  ;;  %v13688_v4 = vld [vmem:[#allocation37 + $0x7e0] ss:$16 sps:$4 sm:$0xff]   ;;  %v13696_v40 = vld [vmem:[#allocation37 + $0x7c4] ss:$16 sps:$4 sm:$0xff]  }
 0x6cb   :  { %2599 = vmatprep.mubr.f32.mxu0 %v2398_v18  ;;  %2682 = vmatprep.mubr.f32.mxu1 %v2398_v18  ;;  %v13691_v22 = vld [vmem:[#allocation37 + $0x5c0] ss:$16 sps:$4 sm:$0xff]   ;;  %v13699_v48 = vld [vmem:[#allocation37 + $0x5a4] ss:$16 sps:$4 sm:$0xff]  }
 0x6cc   :  { %3934 = vmatprep.subr.bf16.mxu0 %v13645_v14  ;;  %3975 = vmatprep.subr.bf16.mxu1 %v13648_v54  ;;  %v13694_v43 = vld [vmem:[#allocation37 + $0x7c0] ss:$16 sps:$4 sm:$0xff]   ;;  %v13702_v24 = vld [vmem:[#allocation37 + $0x7a4] ss:$16 sps:$4 sm:$0xff]  }
 0x6cd   :  { %2600 = vmatmul.mubr.f32.gmra.mxu0 %v2397_v60  ;;  %2683 = vmatmul.mubr.f32.gmra.mxu1 %v2397_v60  ;;  %v13697_v51 = vld [vmem:[#allocation37 + $0x5a0] ss:$16 sps:$4 sm:$0xff]   ;;  %v13705_v8 = vld [vmem:[#allocation37 + $0x584] ss:$16 sps:$4 sm:$0xff]   ;;  %v13735_v60 = vld [vmem:[#allocation37 + $0x4ec] ss:$16 sps:$4 sm:$0xff]  }
 0x6ce   :  { %2605 = vmatprep.mubr.f32.mxu0 %v2400_v12  ;;  %2688 = vmatprep.mubr.f32.mxu1 %v2400_v12  ;;  %v13700_v38 = vld [vmem:[#allocation37 + $0x7a0] ss:$16 sps:$4 sm:$0xff]   ;;  %v13708_v15 = vld [vmem:[#allocation37 + $0x784] ss:$16 sps:$4 sm:$0xff]  }
 0x6cf   :  { %3935 = vmatpush1.bf16.msra.mxu0 %v13643_v56  ;;  %3976 = vmatpush1.bf16.msra.mxu1 %v13646_v52  ;;  %v13703_v39 = vld [vmem:[#allocation37 + $0x580] ss:$16 sps:$4 sm:$0xff]   ;;  %v13711_v16 = vld [vmem:[#allocation37 + $0x564] ss:$16 sps:$4 sm:$0xff]  }
 0x6d0   :  { %3936 = vmatprep.subr.bf16.mxu0 %v13651_v3  ;;  %3977 = vmatprep.subr.bf16.mxu1 %v13654_v10  ;;  %v13706_v17 = vld [vmem:[#allocation37 + $0x780] ss:$16 sps:$4 sm:$0xff]   ;;  %v13714_v30 = vld [vmem:[#allocation37 + $0x764] ss:$16 sps:$4 sm:$0xff]  }
 0x6d1   :  { %2606 = vmatmul.mubr.f32.gmra.mxu0 %v2399_v26  ;;  %2689 = vmatmul.mubr.f32.gmra.mxu1 %v2399_v26  ;;  %v13709_v6 = vld [vmem:[#allocation37 + $0x560] ss:$16 sps:$4 sm:$0xff]   ;;  %v13717_v27 = vld [vmem:[#allocation37 + $0x544] ss:$16 sps:$4 sm:$0xff]  }
 0x6d2   :  { %v13712_v32 = vld [vmem:[#allocation37 + $0x760] ss:$16 sps:$4 sm:$0xff]   ;;  %v13720_v55 = vld [vmem:[#allocation37 + $0x744] ss:$16 sps:$4 sm:$0xff]  }
 0x6d3   :  { %3937 = vmatpush1.bf16.msra.mxu0 %v13649_v42  ;;  %3978 = vmatpush1.bf16.msra.mxu1 %v13652_v7  ;;  %v13715_v34 = vld [vmem:[#allocation37 + $0x540] ss:$16 sps:$4 sm:$0xff]   ;;  %v13723_v23 = vld [vmem:[#allocation37 + $0x524] ss:$16 sps:$4 sm:$0xff]  }
 0x6d4   :  { %3938 = vmatprep.subr.bf16.mxu0 %v13657_v45  ;;  %3979 = vmatprep.subr.bf16.mxu1 %v13660_v44  ;;  %v13718_v61 = vld [vmem:[#allocation37 + $0x740] ss:$16 sps:$4 sm:$0xff]   ;;  %v13726_v35 = vld [vmem:[#allocation37 + $0x724] ss:$16 sps:$4 sm:$0xff]  }
 0x6d5   :  { %v13721_v14 = vld [vmem:[#allocation37 + $0x520] ss:$16 sps:$4 sm:$0xff]   ;;  %v13729_v18 = vld [vmem:[#allocation37 + $0x504] ss:$16 sps:$4 sm:$0xff]  }
 0x6d6   :  { %v13724_v54 = vld [vmem:[#allocation37 + $0x720] ss:$16 sps:$4 sm:$0xff]   ;;  %v13732_v58 = vld [vmem:[#allocation37 + $0x704] ss:$16 sps:$4 sm:$0xff]  }
 0x6d7   :  { %3939 = vmatpush1.bf16.msra.mxu0 %v13655_v20  ;;  %3980 = vmatpush1.bf16.msra.mxu1 %v13658_v59  ;;  %v13727_v31 = vld [vmem:[#allocation37 + $0x500] ss:$16 sps:$4 sm:$0xff]  }
 0x6d8   :  { %3940 = vmatprep.subr.bf16.mxu0 %v13663_v47  ;;  %3981 = vmatprep.subr.bf16.mxu1 %v13666_v5  ;;  %v13730_v2 = vld [vmem:[#allocation37 + $0x700] ss:$16 sps:$4 sm:$0xff]  }
 0x6db   :  { %3941 = vmatpush1.bf16.msra.mxu0 %v13661_v63  ;;  %3982 = vmatpush1.bf16.msra.mxu1 %v13664_v49 }
 0x6dc   :  { %3942 = vmatprep.subr.bf16.mxu0 %v13669_v57  ;;  %3983 = vmatprep.subr.bf16.mxu1 %v13672_v50 }
 0x6df   :  { %3943 = vmatpush1.bf16.msra.mxu0 %v13667_v21  ;;  %3984 = vmatpush1.bf16.msra.mxu1 %v13670_v1 }
 0x6e0   :  { %3944 = vmatprep.subr.bf16.mxu0 %v13675_v62  ;;  %3985 = vmatprep.subr.bf16.mxu1 %v13678_v53 }
 0x6e3   :  { %3945 = vmatpush1.bf16.msra.mxu0 %v13673_v13  ;;  %3986 = vmatpush1.bf16.msra.mxu1 %v13676_v33 }
 0x6e4   :  { %3946 = vmatprep.subr.bf16.mxu0 %v13681_v11  ;;  %3987 = vmatprep.subr.bf16.mxu1 %v13684_v41 }
 0x6e7   :  { %3947 = vmatpush1.bf16.msra.mxu0 %v13679_v25  ;;  %3988 = vmatpush1.bf16.msra.mxu1 %v13682_v46 }
 0x6e8   :  { %3948 = vmatprep.subr.bf16.mxu0 %v13687_v37  ;;  %3989 = vmatprep.subr.bf16.mxu1 %v13690_v19 }
 0x6eb   :  { %3949 = vmatpush2.bf16.msra.mxu0 %v13685_v9  ;;  %3990 = vmatpush2.bf16.msra.mxu1 %v13688_v4 }
 0x6ec   :  { %3950 = vmatprep.subr.bf16.mxu0 %v13693_v28  ;;  %3991 = vmatprep.subr.bf16.mxu1 %v13696_v40 }
 0x6ef   :  { %3951 = vmatpush2.bf16.msra.mxu0 %v13691_v22  ;;  %3992 = vmatpush2.bf16.msra.mxu1 %v13694_v43 }
 0x6f0   :  { %3952 = vmatprep.subr.bf16.mxu0 %v13699_v48  ;;  %3993 = vmatprep.subr.bf16.mxu1 %v13702_v24 }
 0x6f3   :  { %3953 = vmatpush2.bf16.msra.mxu0 %v13697_v51  ;;  %3994 = vmatpush2.bf16.msra.mxu1 %v13700_v38 }
 0x6f4   :  { %3954 = vmatprep.subr.bf16.mxu0 %v13705_v8  ;;  %3995 = vmatprep.subr.bf16.mxu1 %v13708_v15 }
 0x6f7   :  { %3955 = vmatpush2.bf16.msra.mxu0 %v13703_v39  ;;  %3996 = vmatpush2.bf16.msra.mxu1 %v13706_v17 }
 0x6f8   :  { %3956 = vmatprep.subr.bf16.mxu0 %v13711_v16  ;;  %3997 = vmatprep.subr.bf16.mxu1 %v13714_v30 }
 0x6fb   :  { %3957 = vmatpush2.bf16.msra.mxu0 %v13709_v6  ;;  %3998 = vmatpush2.bf16.msra.mxu1 %v13712_v32 }
 0x6fc   :  { %3958 = vmatprep.subr.bf16.mxu0 %v13717_v27  ;;  %3999 = vmatprep.subr.bf16.mxu1 %v13720_v55 }
 0x6ff   :  { %3959 = vmatpush2.bf16.msra.mxu0 %v13715_v34  ;;  %4000 = vmatpush2.bf16.msra.mxu1 %v13718_v61 }
 0x700   :  { %3960 = vmatprep.subr.bf16.mxu0 %v13723_v23  ;;  %4001 = vmatprep.subr.bf16.mxu1 %v13726_v35 }
 0x703   :  { %3961 = vmatpush2.bf16.msra.mxu0 %v13721_v14  ;;  %4002 = vmatpush2.bf16.msra.mxu1 %v13724_v54 }
 0x704   :  { %3962 = vmatprep.subr.bf16.mxu0 %v13729_v18  ;;  %4003 = vmatprep.subr.bf16.mxu1 %v13732_v58 }
 0x707   :  { %3963 = vmatpush2.bf16.msra.mxu0 %v13727_v31  ;;  %4004 = vmatpush2.bf16.msra.mxu1 %v13730_v2 }
 0x708   :  { %4014 = vmatprep.subr.bf16.mxu0 %v13735_v60  ;;  %4055 = vmatprep.subr.bf16.mxu1 %v13738_v36 }
 0x789   :  { %v17043_v56 = vpop.f32.mrf.mxu0  ;;  %v17045_v52 = vpop.f32.mrf.mxu1 }
 0x78a   :  { %v17048_v12 = vmul.f32 0.70710677, %v17043_v56  ;;  %v17051_v29 = vmul.f32 0.70710677, %v17045_v52 }
 0x78b   :  { %v17053_v26 = vpop.f32.mrf.mxu0  ;;  %v17055_v3 = vpop.f32.mrf.mxu1 }
 0x78c   :  { %v2719_v10 = vand.u32 2147483647, %v17048_v12  ;;  %v2721_v42 = vand.u32 2147483647, %v17051_v29  ;;  %v17060_v7 = vmul.f32 0.70710677, %v17053_v26 }
 0x78d   :  { %v17063_v45 = vmul.f32 0.70710677, %v17055_v3  ;;  %vm2959_vm5 = vcmp.ge.f32.partialorder %v17048_v12, 0.0  ;;  %vm2961_vm6 = vcmp.ge.f32.partialorder %v17051_v29, 0.0 }
 0x78e   :  { %v2731_v44 = vmul.f32 0.3275911, %v2719_v10  ;;  %v2733_v20 = vmul.f32 0.3275911, %v2721_v42  ;;  %v2720_v59 = vand.u32 2147483647, %v17060_v7 }
 0x78f   :  { %v2722_v47 = vand.u32 2147483647, %v17063_v45  ;;  %v2887_v1 = vsub.f32 0.0, %v2719_v10  ;;  %v2889_v62 = vsub.f32 0.0, %v2721_v42  ;;  %vm2960_vm1 = vcmp.ge.f32.partialorder %v17060_v7, 0.0 }
 0x790   :  { %v2743_v5 = vadd.f32 1.0, %v2731_v44  ;;  %v2745_v63 = vadd.f32 1.0, %v2733_v20  ;;  %v2732_v49 = vmul.f32 0.3275911, %v2720_v59  ;;  %v2888_v13 = vsub.f32 0.0, %v2720_v59 }
 0x791   :  { %v2734_v57 = vmul.f32 0.3275911, %v2722_v47  ;;  %v2899_v53 = vmul.f32 %v2887_v1, %v2719_v10  ;;  %v2901_v33 = vmul.f32 %v2889_v62, %v2721_v42  ;;  %v2890_v11 = vsub.f32 0.0, %v2722_v47 }
 0x792   :  { %15477 = vrcp.f32 %v2743_v5  ;;  %v2744_v50 = vadd.f32 1.0, %v2732_v49  ;;  %v2900_v19 = vmul.f32 %v2888_v13, %v2720_v59  ;;  %vm2962_vm2 = vcmp.ge.f32.partialorder %v17063_v45, 0.0 }
 0x793   :  { %15479 = vrcp.f32 %v2745_v63  ;;  %v2746_v21 = vadd.f32 1.0, %v2734_v57  ;;  %v2911_v37 = vmul.f32 1.442695, %v2899_v53  ;;  %v2915_v4 = vmul.f32 1.442695, %v2901_v33 }
 0x794   :  { %15481 = vrcp.f32 %v2744_v50  ;;  %v2902_v28 = vmul.f32 %v2890_v11, %v2722_v47  ;;  %v2913_v51 = vmul.f32 1.442695, %v2900_v19  ;;  %v2697_v45 = vmul.f32 0.5, %v17045_v52 }
 0x795   :  { %15483 = vrcp.f32 %v2746_v21 }
 0x796   :  { %15485 = vpow2.f32 %v2911_v37  ;;  %v2917_v15 = vmul.f32 1.442695, %v2902_v28 }
 0x797   :  { %15487 = vpow2.f32 %v2915_v4 }
 0x798   :  { %15489 = vpow2.f32 %v2913_v51  ;;  %v2696_v51 = vmul.f32 0.5, %v17053_v26 }
 0x799   :  { %15491 = vpow2.f32 %v2917_v15  ;;  %v2698_v15 = vmul.f32 0.5, %v17055_v3 }
 0x79f   :  { %v15478_v41 = vpop.eup %15477 }
 0x7a0   :  { %v15480_v25 = vpop.eup %15479  ;;  %v2779_v46 = vmul.f32 1.0614054, %v15478_v41 }
 0x7a1   :  { %v2781_v9 = vmul.f32 1.0614054, %v15480_v25  ;;  %v15482_v22 = vpop.eup %15481 }
 0x7a2   :  { %v2791_v40 = vadd.f32 -1.4531521, %v2779_v46  ;;  %v2780_v24 = vmul.f32 1.0614054, %v15482_v22  ;;  %v15484_v38 = vpop.eup %15483 }
 0x7a3   :  { %v2793_v43 = vadd.f32 -1.4531521, %v2781_v9  ;;  %v2782_v16 = vmul.f32 1.0614054, %v15484_v38  ;;  %v15486_v20 = vpop.eup %15485 }
 0x7a4   :  { %v2803_v48 = vmul.f32 %v15478_v41, %v2791_v40  ;;  %v2792_v17 = vadd.f32 -1.4531521, %v2780_v24  ;;  %v15488_v47 = vpop.eup %15487 }
 0x7a5   :  { %v2805_v8 = vmul.f32 %v15480_v25, %v2793_v43  ;;  %v2794_v27 = vadd.f32 -1.4531521, %v2782_v16  ;;  %v15490_v1 = vpop.eup %15489 }
 0x7a6   :  { %v2815_v39 = vadd.f32 1.4214138, %v2803_v48  ;;  %v2804_v32 = vmul.f32 %v15482_v22, %v2792_v17  ;;  %v15492_v13 = vpop.eup %15491 }
 0x7a7   :  { %v2817_v30 = vadd.f32 1.4214138, %v2805_v8  ;;  %v2806_v23 = vmul.f32 %v15484_v38, %v2794_v27  ;;  %v13733_v27 = vld [vmem:[#allocation37 + $0x4e8] ss:$16 sps:$4 sm:$0xff]  }
 0x7a8   :  { %v2827_v6 = vmul.f32 %v15478_v41, %v2815_v39  ;;  %v2816_v61 = vadd.f32 1.4214138, %v2804_v32  ;;  %v2695_v39 = vmul.f32 0.5, %v17043_v56  ;;  %v13736_v56 = vld [vmem:[#allocation37 + $0x6e8] ss:$16 sps:$4 sm:$0xff]  }
 0x7a9   :  { %v2829_v55 = vmul.f32 %v15480_v25, %v2817_v30  ;;  %v2818_v18 = vadd.f32 1.4214138, %v2806_v23  ;;  %v13739_v23 = vld [vmem:[#allocation37 + $0x4c8] ss:$16 sps:$4 sm:$0xff]  }
 0x7aa   :  { %v2839_v34 = vadd.f32 -0.28449672, %v2827_v6  ;;  %v2828_v54 = vmul.f32 %v15482_v22, %v2816_v61  ;;  %v13744_v61 = vld [vmem:[#allocation37 + $0x6cc] ss:$16 sps:$4 sm:$0xff]  }
 0x7ab   :  { %v2841_v35 = vadd.f32 -0.28449672, %v2829_v55  ;;  %v2830_v60 = vmul.f32 %v15484_v38, %v2818_v18  ;;  %v13745_v18 = vld [vmem:[#allocation37 + $0x4a8] ss:$16 sps:$4 sm:$0xff]  }
 0x7ac   :  { %v2851_v14 = vmul.f32 %v15478_v41, %v2839_v34  ;;  %v2840_v2 = vadd.f32 -0.28449672, %v2828_v54  ;;  %v13741_v34 = vld [vmem:[#allocation37 + $0x4cc] ss:$16 sps:$4 sm:$0xff]  }
 0x7ad   :  { %v2853_v58 = vmul.f32 %v15480_v25, %v2841_v35  ;;  %v2842_v44 = vadd.f32 -0.28449672, %v2830_v60  ;;  %v13742_v35 = vld [vmem:[#allocation37 + $0x6c8] ss:$16 sps:$4 sm:$0xff]   ;;  %v13750_v54 = vld [vmem:[#allocation37 + $0x6ac] ss:$16 sps:$4 sm:$0xff]  }
 0x7ae   :  { %v2863_v31 = vadd.f32 0.2548296, %v2851_v14  ;;  %v2852_v42 = vmul.f32 %v15482_v22, %v2840_v2  ;;  %v13747_v14 = vld [vmem:[#allocation37 + $0x4ac] ss:$16 sps:$4 sm:$0xff]   ;;  %v13751_v60 = vld [vmem:[#allocation37 + $0x488] ss:$16 sps:$4 sm:$0xff]  }
 0x7af   :  { %v2865_v36 = vadd.f32 0.2548296, %v2853_v58  ;;  %v2854_v63 = vmul.f32 %v15484_v38, %v2842_v44  ;;  %v13748_v58 = vld [vmem:[#allocation37 + $0x6a8] ss:$16 sps:$4 sm:$0xff]   ;;  %v13756_v2 = vld [vmem:[#allocation37 + $0x68c] ss:$16 sps:$4 sm:$0xff]  }
 0x7b0   :  { %v2875_v10 = vmul.f32 %v15478_v41, %v2863_v31  ;;  %v2864_v5 = vadd.f32 0.2548296, %v2852_v42  ;;  %v13753_v31 = vld [vmem:[#allocation37 + $0x48c] ss:$16 sps:$4 sm:$0xff]   ;;  %v13757_v44 = vld [vmem:[#allocation37 + $0x468] ss:$16 sps:$4 sm:$0xff]  }
 0x7b1   :  { %v2877_v59 = vmul.f32 %v15480_v25, %v2865_v36  ;;  %v2866_v21 = vadd.f32 0.2548296, %v2854_v63  ;;  %v13754_v36 = vld [vmem:[#allocation37 + $0x688] ss:$16 sps:$4 sm:$0xff]   ;;  %v13762_v42 = vld [vmem:[#allocation37 + $0x66c] ss:$16 sps:$4 sm:$0xff]  }
 0x7b2   :  { %v2935_v49 = vmul.f32 %v15486_v20, %v2875_v10  ;;  %v2876_v50 = vmul.f32 %v15482_v22, %v2864_v5  ;;  %v13759_v10 = vld [vmem:[#allocation37 + $0x46c] ss:$16 sps:$4 sm:$0xff]   ;;  %v13760_v20 = vld [vmem:[#allocation37 + $0x668] ss:$16 sps:$4 sm:$0xff]  }
 0x7b3   :  { %v2937_v57 = vmul.f32 %v15488_v47, %v2877_v59  ;;  %v2878_v53 = vmul.f32 %v15484_v38, %v2866_v21  ;;  %v13765_v59 = vld [vmem:[#allocation37 + $0x44c] ss:$16 sps:$4 sm:$0xff]   ;;  %v13763_v5 = vld [vmem:[#allocation37 + $0x448] ss:$16 sps:$4 sm:$0xff]  }
 0x7b4   :  { %v2936_v62 = vmul.f32 %v15490_v1, %v2876_v50  ;;  %v2947_v33 = vsub.f32 1.0, %v2935_v49  ;;  %v13768_v47 = vld [vmem:[#allocation37 + $0x64c] ss:$16 sps:$4 sm:$0xff]   ;;  %v13766_v63 = vld [vmem:[#allocation37 + $0x648] ss:$16 sps:$4 sm:$0xff]  }
 0x7b5   :  { %v2949_v11 = vsub.f32 1.0, %v2937_v57  ;;  %v2938_v37 = vmul.f32 %v15492_v13, %v2878_v53  ;;  %v13771_v49 = vld [vmem:[#allocation37 + $0x42c] ss:$16 sps:$4 sm:$0xff]   ;;  %v13769_v50 = vld [vmem:[#allocation37 + $0x428] ss:$16 sps:$4 sm:$0xff]  }
 0x7b6   :  { %v2948_v46 = vsub.f32 1.0, %v2936_v62  ;;  %v2971_v9 = vsub.f32 0.0, %v2947_v33  ;;  %v13774_v57 = vld [vmem:[#allocation37 + $0x62c] ss:$16 sps:$4 sm:$0xff]   ;;  %v13772_v21 = vld [vmem:[#allocation37 + $0x628] ss:$16 sps:$4 sm:$0xff]  }
 0x7b7   :  { %v2950_v19 = vsub.f32 1.0, %v2938_v37  ;;  %v2973_v4 = vsub.f32 0.0, %v2949_v11  ;;  %v13777_v1 = vld [vmem:[#allocation37 + $0x40c] ss:$16 sps:$4 sm:$0xff]   ;;  %v13775_v53 = vld [vmem:[#allocation37 + $0x408] ss:$16 sps:$4 sm:$0xff]  }
 0x7b8   :  { %v2972_v41 = vsub.f32 0.0, %v2948_v46  ;;  %v2983_v22 = vsel %vm2959_vm5, %v2947_v33, %v2971_v9  ;;  %v13780_v62 = vld [vmem:[#allocation37 + $0x60c] ss:$16 sps:$4 sm:$0xff]   ;;  %v13778_v13 = vld [vmem:[#allocation37 + $0x608] ss:$16 sps:$4 sm:$0xff]  }
 0x7b9   :  { %v2974_v28 = vsub.f32 0.0, %v2950_v19  ;;  %v2985_v43 = vsel %vm2961_vm6, %v2949_v11, %v2973_v4  ;;  %v2995_v38 = vadd.f32 1.0, %v2983_v22  ;;  %v13783_v33 = vld [vmem:[#allocation37 + $0x5ec] ss:$16 sps:$4 sm:$0xff]   ;;  %v13784_v37 = vld [vmem:[#allocation37 + $0x7e8] ss:$16 sps:$4 sm:$0xff]  }
 0x7ba   :  { %v2984_v25 = vsel %vm2960_vm1, %v2948_v46, %v2972_v41  ;;  %v2997_v8 = vadd.f32 1.0, %v2985_v43  ;;  %v13786_v11 = vld [vmem:[#allocation37 + $0x7ec] ss:$16 sps:$4 sm:$0xff]   ;;  %v13781_v46 = vld [vmem:[#allocation37 + $0x5e8] ss:$16 sps:$4 sm:$0xff]  }
 0x7bb   :  { %v2986_v40 = vsel %vm2962_vm2, %v2950_v19, %v2974_v28  ;;  %v2996_v48 = vadd.f32 1.0, %v2984_v25  ;;  %v3007_v12 = vmul.f32 %v2995_v38, %v2695_v39  ;;  %v13789_v41 = vld [vmem:[#allocation37 + $0x5cc] ss:$16 sps:$4 sm:$0xff]   ;;  %v13787_v9 = vld [vmem:[#allocation37 + $0x5c8] ss:$16 sps:$4 sm:$0xff]  }
 0x7bc   :  { %v2998_v24 = vadd.f32 1.0, %v2986_v40  ;;  %v3009_v16 = vmul.f32 %v2997_v8, %v2697_v45  ;;  %v13792_v19 = vld [vmem:[#allocation37 + $0x7cc] ss:$16 sps:$4 sm:$0xff]   ;;  %v13790_v4 = vld [vmem:[#allocation37 + $0x7c8] ss:$16 sps:$4 sm:$0xff]  }
 0x7bd   :  { %v3008_v7 = vmul.f32 %v2996_v48, %v2696_v51  ;;  %v17079_v6 = vpack.c.bf16 %v3007_v12, %v3007_v12  ;;  %v13795_v25 = vld [vmem:[#allocation37 + $0x5ac] ss:$16 sps:$4 sm:$0xff]   ;;  %v13793_v40 = vld [vmem:[#allocation37 + $0x5a8] ss:$16 sps:$4 sm:$0xff]  }
 0x7be   :  { %v3010_v17 = vmul.f32 %v2998_v24, %v2698_v15  ;;  %v17081_v32 = vpack.c.bf16 %v3009_v16, %v3009_v16  ;;  %v13798_v28 = vld [vmem:[#allocation37 + $0x7ac] ss:$16 sps:$4 sm:$0xff]   ;;  %v13796_v22 = vld [vmem:[#allocation37 + $0x7a8] ss:$16 sps:$4 sm:$0xff]  }
 0x7bf   :  { %v17075_v29 = vpack.c.bf16 %v3008_v7, %v3008_v7  ;;  %v3284_v52 = vrot.slane %v17079_v6, 1  ;;  %v13801_v43 = vld [vmem:[#allocation37 + $0x58c] ss:$16 sps:$4 sm:$0xff]   ;;  %v13799_v24 = vld [vmem:[#allocation37 + $0x588] ss:$16 sps:$4 sm:$0xff]  }
 0x7c0   :  { %v17077_v30 = vpack.c.bf16 %v3010_v17, %v3010_v17  ;;  %v3286_v55 = vrot.slane %v17081_v32, 1  ;;  %v13804_v48 = vld [vmem:[#allocation37 + $0x78c] ss:$16 sps:$4 sm:$0xff]   ;;  %v13802_v51 = vld [vmem:[#allocation37 + $0x788] ss:$16 sps:$4 sm:$0xff]  }
 0x7c1   :  { %v3285_v26 = vrot.slane %v17075_v29, 1  ;;  %v13807_v38 = vld [vmem:[#allocation37 + $0x56c] ss:$16 sps:$4 sm:$0xff]   ;;  %v13805_v15 = vld [vmem:[#allocation37 + $0x568] ss:$16 sps:$4 sm:$0xff]  }
 0x7c2   :  { %v3287_v3 = vrot.slane %v17077_v30, 1  ;;  %v13810_v8 = vld [vmem:[#allocation37 + $0x76c] ss:$16 sps:$4 sm:$0xff]   ;;  %v13808_v7 = vld [vmem:[#allocation37 + $0x768] ss:$16 sps:$4 sm:$0xff]  }
 0x7c3   :  { %3964 = vmatprep.mubr.bf16.mxu0 %v3285_v26  ;;  %v13813_v39 = vld [vmem:[#allocation37 + $0x54c] ss:$16 sps:$4 sm:$0xff]   ;;  %v13811_v17 = vld [vmem:[#allocation37 + $0x548] ss:$16 sps:$4 sm:$0xff]  }
 0x7c4   :  { %4005 = vmatprep.mubr.bf16.mxu1 %v3287_v3  ;;  %3965 = vmatmul.mubr.bf16.vlgmr.msra.gmra.mxu0 %v3284_v52  ;;  %v13816_v45 = vld [vmem:[#allocation37 + $0x74c] ss:$16 sps:$4 sm:$0xff]   ;;  %v13814_v12 = vld [vmem:[#allocation37 + $0x748] ss:$16 sps:$4 sm:$0xff]  }
 0x7c5   :  { %4006 = vmatmul.mubr.bf16.vlgmr.msra.gmra.mxu1 %v3286_v55  ;;  %4015 = vmatpush1.bf16.msra.mxu0 %v13733_v27  ;;  %v13819_v16 = vld [vmem:[#allocation37 + $0x52c] ss:$16 sps:$4 sm:$0xff]   ;;  %v13820_v27 = vld [vmem:[#allocation37 + $0x728] ss:$16 sps:$4 sm:$0xff]  }
 0x7c6   :  { %4056 = vmatpush1.bf16.msra.mxu1 %v13736_v56  ;;  %4046 = vmatprep.mubr.bf16.mxu0 %v3285_v26  ;;  %v13822_v26 = vld [vmem:[#allocation37 + $0x72c] ss:$16 sps:$4 sm:$0xff]  }
 0x7c7   :  { %4087 = vmatprep.mubr.bf16.mxu1 %v3287_v3  ;;  %4016 = vmatprep.subr.bf16.mxu0 %v13741_v34  ;;  %v13817_v3 = vld [vmem:[#allocation37 + $0x528] ss:$16 sps:$4 sm:$0xff]   ;;  %v13825_v56 = vld [vmem:[#allocation37 + $0x50c] ss:$16 sps:$4 sm:$0xff]  }
 0x7c8   :  { %4057 = vmatprep.subr.bf16.mxu1 %v13744_v61  ;;  %v13828_v34 = vld [vmem:[#allocation37 + $0x70c] ss:$16 sps:$4 sm:$0xff]   ;;  %v13823_v61 = vld [vmem:[#allocation37 + $0x508] ss:$16 sps:$4 sm:$0xff]  }
 0x7c9   :  { %4017 = vmatpush1.bf16.msra.mxu0 %v13739_v23  ;;  %v13826_v23 = vld [vmem:[#allocation37 + $0x708] ss:$16 sps:$4 sm:$0xff]  }
 0x7ca   :  { %4058 = vmatpush1.bf16.msra.mxu1 %v13742_v35  ;;  %4018 = vmatprep.subr.bf16.mxu0 %v13747_v14  ;;  %v13831_v35 = vld [vmem:[#allocation37 + $0xe4] ss:$16 sps:$4 sm:$0xff]  }
 0x7cb   :  { %4059 = vmatprep.subr.bf16.mxu1 %v13750_v54  ;;  %v13834_v14 = vld [vmem:[#allocation37 + $0x2e4] ss:$16 sps:$4 sm:$0xff]   ;;  %v13829_v54 = vld [vmem:[#allocation37 + $0xe0] ss:$16 sps:$4 sm:$0xff]  }
 0x7cd   :  { %4019 = vmatpush1.bf16.msra.mxu0 %v13745_v18  ;;  %v13832_v18 = vld [vmem:[#allocation37 + $0x2e0] ss:$16 sps:$4 sm:$0xff]  }
 0x7ce   :  { %4060 = vmatpush1.bf16.msra.mxu1 %v13748_v58  ;;  %4020 = vmatprep.subr.bf16.mxu0 %v13753_v31  ;;  %v13837_v58 = vld [vmem:[#allocation37 + $0xc4] ss:$16 sps:$4 sm:$0xff]  }
 0x7cf   :  { %4061 = vmatprep.subr.bf16.mxu1 %v13756_v2  ;;  %v13840_v31 = vld [vmem:[#allocation37 + $0x2c4] ss:$16 sps:$4 sm:$0xff]   ;;  %v13835_v2 = vld [vmem:[#allocation37 + $0xc0] ss:$16 sps:$4 sm:$0xff]  }
 0x7d1   :  { %4021 = vmatpush1.bf16.msra.mxu0 %v13751_v60  ;;  %v13838_v60 = vld [vmem:[#allocation37 + $0x2c0] ss:$16 sps:$4 sm:$0xff]  }
 0x7d2   :  { %4062 = vmatpush1.bf16.msra.mxu1 %v13754_v36  ;;  %4022 = vmatprep.subr.bf16.mxu0 %v13759_v10  ;;  %v13843_v36 = vld [vmem:[#allocation37 + $0xa4] ss:$16 sps:$4 sm:$0xff]  }
 0x7d3   :  { %4063 = vmatprep.subr.bf16.mxu1 %v13762_v42  ;;  %v13846_v10 = vld [vmem:[#allocation37 + $0x2a4] ss:$16 sps:$4 sm:$0xff]   ;;  %v13841_v42 = vld [vmem:[#allocation37 + $0xa0] ss:$16 sps:$4 sm:$0xff]  }
 0x7d5   :  { %4023 = vmatpush1.bf16.msra.mxu0 %v13757_v44  ;;  %v13849_v44 = vld [vmem:[#allocation37 + $0x84] ss:$16 sps:$4 sm:$0xff]  }
 0x7d6   :  { %4064 = vmatpush1.bf16.msra.mxu1 %v13760_v20  ;;  %4024 = vmatprep.subr.bf16.mxu0 %v13765_v59  ;;  %v13847_v20 = vld [vmem:[#allocation37 + $0x80] ss:$16 sps:$4 sm:$0xff]  }
 0x7d7   :  { %4065 = vmatprep.subr.bf16.mxu1 %v13768_v47  ;;  %v13850_v59 = vld [vmem:[#allocation37 + $0x280] ss:$16 sps:$4 sm:$0xff]   ;;  %v13855_v47 = vld [vmem:[#allocation37 + $0x64] ss:$16 sps:$4 sm:$0xff]  }
 0x7d9   :  { %4025 = vmatpush1.bf16.msra.mxu0 %v13763_v5  ;;  %v13858_v5 = vld [vmem:[#allocation37 + $0x264] ss:$16 sps:$4 sm:$0xff]  }
 0x7da   :  { %4066 = vmatpush1.bf16.msra.mxu1 %v13766_v63  ;;  %4026 = vmatprep.subr.bf16.mxu0 %v13771_v49  ;;  %v13853_v63 = vld [vmem:[#allocation37 + $0x60] ss:$16 sps:$4 sm:$0xff]  }
 0x7db   :  { %4067 = vmatprep.subr.bf16.mxu1 %v13774_v57  ;;  %v13856_v49 = vld [vmem:[#allocation37 + $0x260] ss:$16 sps:$4 sm:$0xff]   ;;  %v13861_v57 = vld [vmem:[#allocation37 + $0x44] ss:$16 sps:$4 sm:$0xff]  }
 0x7dd   :  { %4027 = vmatpush1.bf16.msra.mxu0 %v13769_v50  ;;  %v13864_v50 = vld [vmem:[#allocation37 + $0x244] ss:$16 sps:$4 sm:$0xff]  }
 0x7de   :  { %4068 = vmatpush1.bf16.msra.mxu1 %v13772_v21  ;;  %4028 = vmatprep.subr.bf16.mxu0 %v13777_v1  ;;  %v13859_v21 = vld [vmem:[#allocation37 + $0x40] ss:$16 sps:$4 sm:$0xff]  }
 0x7df   :  { %4069 = vmatprep.subr.bf16.mxu1 %v13780_v62  ;;  %v13862_v1 = vld [vmem:[#allocation37 + $0x240] ss:$16 sps:$4 sm:$0xff]   ;;  %v13867_v62 = vld [vmem:[#allocation37 + $0x24] ss:$16 sps:$4 sm:$0xff]  }
 0x7e1   :  { %4029 = vmatpush1.bf16.msra.mxu0 %v13775_v53  ;;  %v13870_v53 = vld [vmem:[#allocation37 + $0x224] ss:$16 sps:$4 sm:$0xff]  }
 0x7e2   :  { %4070 = vmatpush1.bf16.msra.mxu1 %v13778_v13  ;;  %4030 = vmatprep.subr.bf16.mxu0 %v13783_v33  ;;  %v13865_v13 = vld [vmem:[#allocation37 + $0x20] ss:$16 sps:$4 sm:$0xff]  }
 0x7e3   :  { %4071 = vmatprep.subr.bf16.mxu1 %v13786_v11  ;;  %v13868_v33 = vld [vmem:[#allocation37 + $0x220] ss:$16 sps:$4 sm:$0xff]   ;;  %v13873_v11 = vld [vmem:[#allocation37 + $0x4] ss:$16 sps:$4 sm:$0xff]  }
 0x7e5   :  { %4031 = vmatpush2.bf16.msra.mxu0 %v13781_v46  ;;  %v13876_v46 = vld [vmem:[#allocation37 + $0x204] ss:$16 sps:$4 sm:$0xff]  }
 0x7e6   :  { %4072 = vmatpush2.bf16.msra.mxu1 %v13784_v37  ;;  %4032 = vmatprep.subr.bf16.mxu0 %v13789_v41  ;;  %v13871_v37 = vld [vmem:[#allocation37] ss:$16 sps:$4 sm:$0xff]  }
 0x7e7   :  { %4073 = vmatprep.subr.bf16.mxu1 %v13792_v19  ;;  %v13874_v41 = vld [vmem:[#allocation37 + $0x200] ss:$16 sps:$4 sm:$0xff]   ;;  %v13879_v19 = vld [vmem:[#allocation37 + $0x1e4] ss:$16 sps:$4 sm:$0xff]  }
 0x7e9   :  { %4033 = vmatpush2.bf16.msra.mxu0 %v13787_v9  ;;  %v13882_v9 = vld [vmem:[#allocation37 + $0x3e4] ss:$16 sps:$4 sm:$0xff]  }
 0x7ea   :  { %4074 = vmatpush2.bf16.msra.mxu1 %v13790_v4  ;;  %4034 = vmatprep.subr.bf16.mxu0 %v13795_v25  ;;  %v13877_v4 = vld [vmem:[#allocation37 + $0x1e0] ss:$16 sps:$4 sm:$0xff]  }
 0x7eb   :  { %4075 = vmatprep.subr.bf16.mxu1 %v13798_v28  ;;  %v13880_v25 = vld [vmem:[#allocation37 + $0x3e0] ss:$16 sps:$4 sm:$0xff]   ;;  %v13885_v28 = vld [vmem:[#allocation37 + $0x1c4] ss:$16 sps:$4 sm:$0xff]  }
 0x7ed   :  { %4035 = vmatpush2.bf16.msra.mxu0 %v13793_v40  ;;  %v13888_v40 = vld [vmem:[#allocation37 + $0x3c4] ss:$16 sps:$4 sm:$0xff]  }
 0x7ee   :  { %4076 = vmatpush2.bf16.msra.mxu1 %v13796_v22  ;;  %4036 = vmatprep.subr.bf16.mxu0 %v13801_v43  ;;  %v13883_v22 = vld [vmem:[#allocation37 + $0x1c0] ss:$16 sps:$4 sm:$0xff]  }
 0x7ef   :  { %4077 = vmatprep.subr.bf16.mxu1 %v13804_v48  ;;  %v13886_v43 = vld [vmem:[#allocation37 + $0x3c0] ss:$16 sps:$4 sm:$0xff]   ;;  %v13891_v48 = vld [vmem:[#allocation37 + $0x1a4] ss:$16 sps:$4 sm:$0xff]  }
 0x7f1   :  { %4037 = vmatpush2.bf16.msra.mxu0 %v13799_v24  ;;  %v13894_v24 = vld [vmem:[#allocation37 + $0x3a4] ss:$16 sps:$4 sm:$0xff]  }
 0x7f2   :  { %4078 = vmatpush2.bf16.msra.mxu1 %v13802_v51  ;;  %4038 = vmatprep.subr.bf16.mxu0 %v13807_v38  ;;  %v13889_v51 = vld [vmem:[#allocation37 + $0x1a0] ss:$16 sps:$4 sm:$0xff]  }
 0x7f3   :  { %4079 = vmatprep.subr.bf16.mxu1 %v13810_v8  ;;  %v13892_v38 = vld [vmem:[#allocation37 + $0x3a0] ss:$16 sps:$4 sm:$0xff]   ;;  %v13897_v8 = vld [vmem:[#allocation37 + $0x184] ss:$16 sps:$4 sm:$0xff]  }
 0x7f5   :  { %4039 = vmatpush2.bf16.msra.mxu0 %v13805_v15  ;;  %v13900_v15 = vld [vmem:[#allocation37 + $0x384] ss:$16 sps:$4 sm:$0xff]  }
 0x7f6   :  { %4080 = vmatpush2.bf16.msra.mxu1 %v13808_v7  ;;  %4040 = vmatprep.subr.bf16.mxu0 %v13813_v39  ;;  %v13895_v7 = vld [vmem:[#allocation37 + $0x180] ss:$16 sps:$4 sm:$0xff]  }
 0x7f7   :  { %4081 = vmatprep.subr.bf16.mxu1 %v13816_v45  ;;  %v13898_v39 = vld [vmem:[#allocation37 + $0x380] ss:$16 sps:$4 sm:$0xff]   ;;  %v13903_v45 = vld [vmem:[#allocation37 + $0x164] ss:$16 sps:$4 sm:$0xff]  }
 0x7f9   :  { %4041 = vmatpush2.bf16.msra.mxu0 %v13811_v17  ;;  %v13906_v17 = vld [vmem:[#allocation37 + $0x364] ss:$16 sps:$4 sm:$0xff]  }
 0x7fa   :  { %4082 = vmatpush2.bf16.msra.mxu1 %v13814_v12  ;;  %4042 = vmatprep.subr.bf16.mxu0 %v13819_v16  ;;  %v13901_v12 = vld [vmem:[#allocation37 + $0x160] ss:$16 sps:$4 sm:$0xff]  }
 0x7fb   :  { %4083 = vmatprep.subr.bf16.mxu1 %v13822_v26  ;;  %v13904_v16 = vld [vmem:[#allocation37 + $0x360] ss:$16 sps:$4 sm:$0xff]   ;;  %v13909_v26 = vld [vmem:[#allocation37 + $0x144] ss:$16 sps:$4 sm:$0xff]  }
 0x7fd   :  { %4043 = vmatpush2.bf16.msra.mxu0 %v13817_v3  ;;  %v13912_v3 = vld [vmem:[#allocation37 + $0x344] ss:$16 sps:$4 sm:$0xff]  }
 0x7fe   :  { %4084 = vmatpush2.bf16.msra.mxu1 %v13820_v27  ;;  %4044 = vmatprep.subr.bf16.mxu0 %v13825_v56  ;;  %v13907_v27 = vld [vmem:[#allocation37 + $0x140] ss:$16 sps:$4 sm:$0xff]  }
 0x7ff   :  { %4085 = vmatprep.subr.bf16.mxu1 %v13828_v34  ;;  %v13910_v56 = vld [vmem:[#allocation37 + $0x340] ss:$16 sps:$4 sm:$0xff]   ;;  %v13915_v34 = vld [vmem:[#allocation37 + $0x124] ss:$16 sps:$4 sm:$0xff]  }
 0x801   :  { %4045 = vmatpush2.bf16.msra.mxu0 %v13823_v61  ;;  %v13918_v61 = vld [vmem:[#allocation37 + $0x324] ss:$16 sps:$4 sm:$0xff]  }
 0x802   :  { %4086 = vmatpush2.bf16.msra.mxu1 %v13826_v23  ;;  %4736 = vmatprep.subr.bf16.mxu0 %v13831_v35  ;;  %v13913_v23 = vld [vmem:[#allocation37 + $0x120] ss:$16 sps:$4 sm:$0xff]  }
 0x803   :  { %4777 = vmatprep.subr.bf16.mxu1 %v13834_v14  ;;  %v13916_v35 = vld [vmem:[#allocation37 + $0x320] ss:$16 sps:$4 sm:$0xff]   ;;  %v13921_v14 = vld [vmem:[#allocation37 + $0x104] ss:$16 sps:$4 sm:$0xff]  }
 0x804   :  { %4047 = vmatmul.mubr.bf16.vlgmr.msra.gmra.mxu0 %v3284_v52  ;;  %v13844_v52 = vld [vmem:[#allocation37 + $0x2a0] ss:$16 sps:$4 sm:$0xff]  }
 0x805   :  { %4088 = vmatmul.mubr.bf16.vlgmr.msra.gmra.mxu1 %v3286_v55  ;;  %4737 = vmatpush1.bf16.msra.mxu0 %v13829_v54  ;;  %v13852_v55 = vld [vmem:[#allocation37 + $0x284] ss:$16 sps:$4 sm:$0xff]  }
 0x806   :  { %4768 = vmatprep.mubr.bf16.mxu0 %v17075_v29  ;;  %4778 = vmatpush1.bf16.msra.mxu1 %v13832_v18  ;;  %v13924_v54 = vld [vmem:[#allocation37 + $0x304] ss:$16 sps:$4 sm:$0xff]   ;;  %v13919_v18 = vld [vmem:[#allocation37 + $0x100] ss:$16 sps:$4 sm:$0xff]  }
 0x807   :  { %4809 = vmatprep.mubr.bf16.mxu1 %v17077_v30  ;;  %4738 = vmatprep.subr.bf16.mxu0 %v13837_v58  ;;  %v13922_v58 = vld [vmem:[#allocation37 + $0x300] ss:$16 sps:$4 sm:$0xff]  }
 0x808   :  { %4779 = vmatprep.subr.bf16.mxu1 %v13840_v31  ;;  %v13927_v31 = vld [vmem:[#allocation37 + $0xec] ss:$16 sps:$4 sm:$0xff]  }
 0x809   :  { %4739 = vmatpush1.bf16.msra.mxu0 %v13835_v2  ;;  %v13930_v2 = vld [vmem:[#allocation37 + $0x2ec] ss:$16 sps:$4 sm:$0xff]  }
 0x80a   :  { %4780 = vmatpush1.bf16.msra.mxu1 %v13838_v60  ;;  %4740 = vmatprep.subr.bf16.mxu0 %v13843_v36  ;;  %v13925_v60 = vld [vmem:[#allocation37 + $0xe8] ss:$16 sps:$4 sm:$0xff]  }
 0x80b   :  { %4781 = vmatprep.subr.bf16.mxu1 %v13846_v10  ;;  %v13928_v36 = vld [vmem:[#allocation37 + $0x2e8] ss:$16 sps:$4 sm:$0xff]   ;;  %v13933_v10 = vld [vmem:[#allocation37 + $0xcc] ss:$16 sps:$4 sm:$0xff]  }
 0x80d   :  { %4741 = vmatpush1.bf16.msra.mxu0 %v13841_v42  ;;  %v13936_v42 = vld [vmem:[#allocation37 + $0x2cc] ss:$16 sps:$4 sm:$0xff]  }
 0x80e   :  { %4782 = vmatpush1.bf16.msra.mxu1 %v13844_v52  ;;  %4742 = vmatprep.subr.bf16.mxu0 %v13849_v44  ;;  %v13931_v52 = vld [vmem:[#allocation37 + $0xc8] ss:$16 sps:$4 sm:$0xff]  }
 0x80f   :  { %4783 = vmatprep.subr.bf16.mxu1 %v13852_v55  ;;  %v13934_v44 = vld [vmem:[#allocation37 + $0x2c8] ss:$16 sps:$4 sm:$0xff]   ;;  %v13939_v55 = vld [vmem:[#allocation37 + $0xac] ss:$16 sps:$4 sm:$0xff]  }
 0x811   :  { %4743 = vmatpush1.bf16.msra.mxu0 %v13847_v20  ;;  %v13942_v20 = vld [vmem:[#allocation37 + $0x2ac] ss:$16 sps:$4 sm:$0xff]  }
 0x812   :  { %4784 = vmatpush1.bf16.msra.mxu1 %v13850_v59  ;;  %4744 = vmatprep.subr.bf16.mxu0 %v13855_v47  ;;  %v13937_v59 = vld [vmem:[#allocation37 + $0xa8] ss:$16 sps:$4 sm:$0xff]  }
 0x813   :  { %4785 = vmatprep.subr.bf16.mxu1 %v13858_v5  ;;  %v13940_v47 = vld [vmem:[#allocation37 + $0x2a8] ss:$16 sps:$4 sm:$0xff]   ;;  %v13945_v5 = vld [vmem:[#allocation37 + $0x8c] ss:$16 sps:$4 sm:$0xff]  }
 0x815   :  { %4745 = vmatpush1.bf16.msra.mxu0 %v13853_v63  ;;  %v13948_v63 = vld [vmem:[#allocation37 + $0x28c] ss:$16 sps:$4 sm:$0xff]  }
 0x816   :  { %4786 = vmatpush1.bf16.msra.mxu1 %v13856_v49  ;;  %4746 = vmatprep.subr.bf16.mxu0 %v13861_v57  ;;  %v13943_v49 = vld [vmem:[#allocation37 + $0x88] ss:$16 sps:$4 sm:$0xff]  }
 0x817   :  { %4787 = vmatprep.subr.bf16.mxu1 %v13864_v50  ;;  %v13946_v57 = vld [vmem:[#allocation37 + $0x288] ss:$16 sps:$4 sm:$0xff]   ;;  %v13951_v50 = vld [vmem:[#allocation37 + $0x6c] ss:$16 sps:$4 sm:$0xff]  }
 0x819   :  { %4747 = vmatpush1.bf16.msra.mxu0 %v13859_v21  ;;  %v13954_v21 = vld [vmem:[#allocation37 + $0x26c] ss:$16 sps:$4 sm:$0xff]  }
 0x81a   :  { %4788 = vmatpush1.bf16.msra.mxu1 %v13862_v1  ;;  %4748 = vmatprep.subr.bf16.mxu0 %v13867_v62  ;;  %v13949_v1 = vld [vmem:[#allocation37 + $0x68] ss:$16 sps:$4 sm:$0xff]  }
 0x81b   :  { %4789 = vmatprep.subr.bf16.mxu1 %v13870_v53  ;;  %v13952_v62 = vld [vmem:[#allocation37 + $0x268] ss:$16 sps:$4 sm:$0xff]   ;;  %v13957_v53 = vld [vmem:[#allocation37 + $0x4c] ss:$16 sps:$4 sm:$0xff]  }
 0x81d   :  { %4749 = vmatpush1.bf16.msra.mxu0 %v13865_v13  ;;  %v13960_v13 = vld [vmem:[#allocation37 + $0x24c] ss:$16 sps:$4 sm:$0xff]  }
 0x81e   :  { %4790 = vmatpush1.bf16.msra.mxu1 %v13868_v33  ;;  %4750 = vmatprep.subr.bf16.mxu0 %v13873_v11  ;;  %v13955_v33 = vld [vmem:[#allocation37 + $0x48] ss:$16 sps:$4 sm:$0xff]  }
 0x81f   :  { %4791 = vmatprep.subr.bf16.mxu1 %v13876_v46  ;;  %v13958_v11 = vld [vmem:[#allocation37 + $0x248] ss:$16 sps:$4 sm:$0xff]   ;;  %v13963_v46 = vld [vmem:[#allocation37 + $0x2c] ss:$16 sps:$4 sm:$0xff]  }
 0x821   :  { %4751 = vmatpush1.bf16.msra.mxu0 %v13871_v37  ;;  %v13966_v37 = vld [vmem:[#allocation37 + $0x22c] ss:$16 sps:$4 sm:$0xff]  }
 0x822   :  { %4792 = vmatpush1.bf16.msra.mxu1 %v13874_v41  ;;  %4752 = vmatprep.subr.bf16.mxu0 %v13879_v19  ;;  %v13961_v41 = vld [vmem:[#allocation37 + $0x28] ss:$16 sps:$4 sm:$0xff]  }
 0x823   :  { %4793 = vmatprep.subr.bf16.mxu1 %v13882_v9  ;;  %v13964_v19 = vld [vmem:[#allocation37 + $0x228] ss:$16 sps:$4 sm:$0xff]   ;;  %v13969_v9 = vld [vmem:[#allocation37 + $0xc] ss:$16 sps:$4 sm:$0xff]  }
 0x825   :  { %4753 = vmatpush2.bf16.msra.mxu0 %v13877_v4  ;;  %v13972_v4 = vld [vmem:[#allocation37 + $0x20c] ss:$16 sps:$4 sm:$0xff]  }
 0x826   :  { %4794 = vmatpush2.bf16.msra.mxu1 %v13880_v25  ;;  %4754 = vmatprep.subr.bf16.mxu0 %v13885_v28  ;;  %v13967_v25 = vld [vmem:[#allocation37 + $0x8] ss:$16 sps:$4 sm:$0xff]  }
 0x827   :  { %4795 = vmatprep.subr.bf16.mxu1 %v13888_v40  ;;  %v13970_v28 = vld [vmem:[#allocation37 + $0x208] ss:$16 sps:$4 sm:$0xff]   ;;  %v13975_v40 = vld [vmem:[#allocation37 + $0x1ec] ss:$16 sps:$4 sm:$0xff]  }
 0x829   :  { %4755 = vmatpush2.bf16.msra.mxu0 %v13883_v22  ;;  %v13978_v22 = vld [vmem:[#allocation37 + $0x3ec] ss:$16 sps:$4 sm:$0xff]  }
 0x82a   :  { %4796 = vmatpush2.bf16.msra.mxu1 %v13886_v43  ;;  %4756 = vmatprep.subr.bf16.mxu0 %v13891_v48  ;;  %v13973_v43 = vld [vmem:[#allocation37 + $0x1e8] ss:$16 sps:$4 sm:$0xff]  }
 0x82b   :  { %4797 = vmatprep.subr.bf16.mxu1 %v13894_v24  ;;  %v13976_v48 = vld [vmem:[#allocation37 + $0x3e8] ss:$16 sps:$4 sm:$0xff]   ;;  %v13981_v24 = vld [vmem:[#allocation37 + $0x1cc] ss:$16 sps:$4 sm:$0xff]  }
 0x82d   :  { %4757 = vmatpush2.bf16.msra.mxu0 %v13889_v51  ;;  %v13984_v51 = vld [vmem:[#allocation37 + $0x3cc] ss:$16 sps:$4 sm:$0xff]  }
 0x82e   :  { %4798 = vmatpush2.bf16.msra.mxu1 %v13892_v38  ;;  %4758 = vmatprep.subr.bf16.mxu0 %v13897_v8  ;;  %v13979_v38 = vld [vmem:[#allocation37 + $0x1c8] ss:$16 sps:$4 sm:$0xff]  }
 0x82f   :  { %4799 = vmatprep.subr.bf16.mxu1 %v13900_v15  ;;  %v13982_v8 = vld [vmem:[#allocation37 + $0x3c8] ss:$16 sps:$4 sm:$0xff]   ;;  %v13987_v15 = vld [vmem:[#allocation37 + $0x1ac] ss:$16 sps:$4 sm:$0xff]  }
 0x831   :  { %4759 = vmatpush2.bf16.msra.mxu0 %v13895_v7  ;;  %v13990_v7 = vld [vmem:[#allocation37 + $0x3ac] ss:$16 sps:$4 sm:$0xff]  }
 0x832   :  { %4800 = vmatpush2.bf16.msra.mxu1 %v13898_v39  ;;  %4760 = vmatprep.subr.bf16.mxu0 %v13903_v45  ;;  %v13985_v39 = vld [vmem:[#allocation37 + $0x1a8] ss:$16 sps:$4 sm:$0xff]  }
 0x833   :  { %4801 = vmatprep.subr.bf16.mxu1 %v13906_v17  ;;  %v13988_v45 = vld [vmem:[#allocation37 + $0x3a8] ss:$16 sps:$4 sm:$0xff]   ;;  %v13993_v17 = vld [vmem:[#allocation37 + $0x18c] ss:$16 sps:$4 sm:$0xff]  }
 0x835   :  { %4761 = vmatpush2.bf16.msra.mxu0 %v13901_v12  ;;  %v13996_v12 = vld [vmem:[#allocation37 + $0x38c] ss:$16 sps:$4 sm:$0xff]  }
 0x836   :  { %4802 = vmatpush2.bf16.msra.mxu1 %v13904_v16  ;;  %4762 = vmatprep.subr.bf16.mxu0 %v13909_v26  ;;  %v13991_v16 = vld [vmem:[#allocation37 + $0x188] ss:$16 sps:$4 sm:$0xff]  }
 0x837   :  { %4803 = vmatprep.subr.bf16.mxu1 %v13912_v3  ;;  %v13994_v26 = vld [vmem:[#allocation37 + $0x388] ss:$16 sps:$4 sm:$0xff]   ;;  %v13999_v3 = vld [vmem:[#allocation37 + $0x16c] ss:$16 sps:$4 sm:$0xff]  }
 0x839   :  { %4763 = vmatpush2.bf16.msra.mxu0 %v13907_v27  ;;  %v14002_v27 = vld [vmem:[#allocation37 + $0x36c] ss:$16 sps:$4 sm:$0xff]  }
 0x83a   :  { %4804 = vmatpush2.bf16.msra.mxu1 %v13910_v56  ;;  %4764 = vmatprep.subr.bf16.mxu0 %v13915_v34  ;;  %v13997_v56 = vld [vmem:[#allocation37 + $0x168] ss:$16 sps:$4 sm:$0xff]  }
 0x83b   :  { %4805 = vmatprep.subr.bf16.mxu1 %v13918_v61  ;;  %v14000_v34 = vld [vmem:[#allocation37 + $0x368] ss:$16 sps:$4 sm:$0xff]   ;;  %v14005_v61 = vld [vmem:[#allocation37 + $0x14c] ss:$16 sps:$4 sm:$0xff]  }
 0x83d   :  { %4765 = vmatpush2.bf16.msra.mxu0 %v13913_v23  ;;  %v14008_v23 = vld [vmem:[#allocation37 + $0x34c] ss:$16 sps:$4 sm:$0xff]  }
 0x83e   :  { %4806 = vmatpush2.bf16.msra.mxu1 %v13916_v35  ;;  %4766 = vmatprep.subr.bf16.mxu0 %v13921_v14  ;;  %v14003_v35 = vld [vmem:[#allocation37 + $0x148] ss:$16 sps:$4 sm:$0xff]   ;;  %v17101_v14 = vpop.f32.mrf.mxu0 }
 0x83f   :  { %4807 = vmatprep.subr.bf16.mxu1 %v13924_v54  ;;  %v17103_v54 = vpop.f32.mrf.mxu1 }
 0x841   :  { %4767 = vmatpush2.bf16.msra.mxu0 %v13919_v18  ;;  %v14006_v18 = vld [vmem:[#allocation37 + $0x348] ss:$16 sps:$4 sm:$0xff]  }
 0x842   :  { %4808 = vmatpush2.bf16.msra.mxu1 %v13922_v58  ;;  %4818 = vmatprep.subr.bf16.mxu0 %v13927_v31  ;;  %v14011_v58 = vld [vmem:[#allocation37 + $0x12c] ss:$16 sps:$4 sm:$0xff]  }
 0x843   :  { %4859 = vmatprep.subr.bf16.mxu1 %v13930_v2  ;;  %v14014_v31 = vld [vmem:[#allocation37 + $0x32c] ss:$16 sps:$4 sm:$0xff]   ;;  %v14009_v2 = vld [vmem:[#allocation37 + $0x128] ss:$16 sps:$4 sm:$0xff]  }
 0x844   :  { %4769 = vmatmul.mubr.bf16.vlgmr.msra.gmra.mxu0 %v17079_v6 }
 0x845   :  { %4810 = vmatmul.mubr.bf16.vlgmr.msra.gmra.mxu1 %v17081_v32  ;;  %4819 = vmatpush1.bf16.msra.mxu0 %v13925_v60  ;;  %v17105_v60 = vpop.f32.mrf.mxu0 }
 0x846   :  { %4850 = vmatprep.mubr.bf16.mxu0 %v17075_v29  ;;  %4860 = vmatpush1.bf16.msra.mxu1 %v13928_v36  ;;  %v17107_v36 = vpop.f32.mrf.mxu1 }
 0x847   :  { %4891 = vmatprep.mubr.bf16.mxu1 %v17077_v30  ;;  %4820 = vmatprep.subr.bf16.mxu0 %v13933_v10  ;;  %v14012_v10 = vld [vmem:[#allocation37 + $0x328] ss:$16 sps:$4 sm:$0xff]  }
 0x848   :  { %4861 = vmatprep.subr.bf16.mxu1 %v13936_v42  ;;  %v14017_v42 = vld [vmem:[#allocation37 + $0x10c] ss:$16 sps:$4 sm:$0xff]  }
 0x849   :  { %4821 = vmatpush1.bf16.msra.mxu0 %v13931_v52  ;;  %v14020_v52 = vld [vmem:[#allocation37 + $0x30c] ss:$16 sps:$4 sm:$0xff]  }
 0x84a   :  { %4862 = vmatpush1.bf16.msra.mxu1 %v13934_v44  ;;  %4822 = vmatprep.subr.bf16.mxu0 %v13939_v55  ;;  %v14015_v44 = vld [vmem:[#allocation37 + $0x108] ss:$16 sps:$4 sm:$0xff]   ;;  %v17109_v55 = vpop.f32.mrf.mxu0 }
 0x84b   :  { %4863 = vmatprep.subr.bf16.mxu1 %v13942_v20  ;;  %v17111_v20 = vpop.f32.mrf.mxu1 }
 0x84d   :  { %4823 = vmatpush1.bf16.msra.mxu0 %v13937_v59  ;;  %v14018_v59 = vld [vmem:[#allocation37 + $0x308] ss:$16 sps:$4 sm:$0xff]  }
 0x84e   :  { %4864 = vmatpush1.bf16.msra.mxu1 %v13940_v47  ;;  %4824 = vmatprep.subr.bf16.mxu0 %v13945_v5  ;;  %v14023_v47 = vld [vmem:[#allocation37 + $0x8e4] ss:$16 sps:$4 sm:$0xff]  }
 0x84f   :  { %4865 = vmatprep.subr.bf16.mxu1 %v13948_v63  ;;  %v14026_v5 = vld [vmem:[#allocation37 + $0xae4] ss:$16 sps:$4 sm:$0xff]   ;;  %v14021_v63 = vld [vmem:[#allocation37 + $0x8e0] ss:$16 sps:$4 sm:$0xff]  }
 0x851   :  { %4825 = vmatpush1.bf16.msra.mxu0 %v13943_v49  ;;  %v17113_v49 = vpop.f32.mrf.mxu0 }
 0x852   :  { %4866 = vmatpush1.bf16.msra.mxu1 %v13946_v57  ;;  %4826 = vmatprep.subr.bf16.mxu0 %v13951_v50  ;;  %v17115_v57 = vpop.f32.mrf.mxu1  ;;  %v14024_v50 = vld [vmem:[#allocation37 + $0xae0] ss:$16 sps:$4 sm:$0xff]  }
 0x853   :  { %4867 = vmatprep.subr.bf16.mxu1 %v13954_v21  ;;  %v14029_v21 = vld [vmem:[#allocation37 + $0x8c4] ss:$16 sps:$4 sm:$0xff]  }
 0x855   :  { %4827 = vmatpush1.bf16.msra.mxu0 %v13949_v1 }
 0x856   :  { %4868 = vmatpush1.bf16.msra.mxu1 %v13952_v62  ;;  %4828 = vmatprep.subr.bf16.mxu0 %v13957_v53  ;;  %v5030_v53 = vrot.slane %v17075_v29, 2 }
 0x857   :  { %4869 = vmatprep.subr.bf16.mxu1 %v13960_v13  ;;  %v14032_v13 = vld [vmem:[#allocation37 + $0xac4] ss:$16 sps:$4 sm:$0xff]  }
 0x859   :  { %4829 = vmatpush1.bf16.msra.mxu0 %v13955_v33 }
 0x85a   :  { %4870 = vmatpush1.bf16.msra.mxu1 %v13958_v11  ;;  %4830 = vmatprep.subr.bf16.mxu0 %v13963_v46  ;;  %v5032_v11 = vrot.slane %v17077_v30, 2  ;;  %v14027_v46 = vld [vmem:[#allocation37 + $0x8c0] ss:$16 sps:$4 sm:$0xff]  }
 0x85b   :  { %4871 = vmatprep.subr.bf16.mxu1 %v13966_v37 }
 0x85d   :  { %4831 = vmatpush1.bf16.msra.mxu0 %v13961_v41 }
 0x85e   :  { %4872 = vmatpush1.bf16.msra.mxu1 %v13964_v19  ;;  %4832 = vmatprep.subr.bf16.mxu0 %v13969_v9  ;;  %v14030_v19 = vld [vmem:[#allocation37 + $0xac0] ss:$16 sps:$4 sm:$0xff]   ;;  %v14035_v9 = vld [vmem:[#allocation37 + $0x8a4] ss:$16 sps:$4 sm:$0xff]  }
 0x85f   :  { %4873 = vmatprep.subr.bf16.mxu1 %v13972_v4 }
 0x861   :  { %4833 = vmatpush1.bf16.msra.mxu0 %v13967_v25  ;;  %v14038_v25 = vld [vmem:[#allocation37 + $0xaa4] ss:$16 sps:$4 sm:$0xff]  }
 0x862   :  { %4874 = vmatpush1.bf16.msra.mxu1 %v13970_v28  ;;  %4834 = vmatprep.subr.bf16.mxu0 %v13975_v40 }
 0x863   :  { %4875 = vmatprep.subr.bf16.mxu1 %v13978_v22  ;;  %v14033_v22 = vld [vmem:[#allocation37 + $0x8a0] ss:$16 sps:$4 sm:$0xff]  }
 0x865   :  { %4835 = vmatpush2.bf16.msra.mxu0 %v13973_v43 }
 0x866   :  { %4876 = vmatpush2.bf16.msra.mxu1 %v13976_v48  ;;  %4836 = vmatprep.subr.bf16.mxu0 %v13981_v24  ;;  %v14036_v24 = vld [vmem:[#allocation37 + $0xaa0] ss:$16 sps:$4 sm:$0xff]  }
 0x867   :  { %4877 = vmatprep.subr.bf16.mxu1 %v13984_v51  ;;  %v14041_v51 = vld [vmem:[#allocation37 + $0x884] ss:$16 sps:$4 sm:$0xff]  }
 0x869   :  { %4837 = vmatpush2.bf16.msra.mxu0 %v13979_v38  ;;  %v14044_v38 = vld [vmem:[#allocation37 + $0xa84] ss:$16 sps:$4 sm:$0xff]  }
 0x86a   :  { %4878 = vmatpush2.bf16.msra.mxu1 %v13982_v8  ;;  %4838 = vmatprep.subr.bf16.mxu0 %v13987_v15  ;;  %v14039_v8 = vld [vmem:[#allocation37 + $0x880] ss:$16 sps:$4 sm:$0xff]  }
 0x86b   :  { %4879 = vmatprep.subr.bf16.mxu1 %v13990_v7  ;;  %v14042_v15 = vld [vmem:[#allocation37 + $0xa80] ss:$16 sps:$4 sm:$0xff]   ;;  %v14047_v7 = vld [vmem:[#allocation37 + $0x864] ss:$16 sps:$4 sm:$0xff]  }
 0x86d   :  { %4839 = vmatpush2.bf16.msra.mxu0 %v13985_v39  ;;  %v14050_v39 = vld [vmem:[#allocation37 + $0xa64] ss:$16 sps:$4 sm:$0xff]  }
 0x86e   :  { %4880 = vmatpush2.bf16.msra.mxu1 %v13988_v45  ;;  %4840 = vmatprep.subr.bf16.mxu0 %v13993_v17  ;;  %v14045_v45 = vld [vmem:[#allocation37 + $0x860] ss:$16 sps:$4 sm:$0xff]  }
 0x86f   :  { %4881 = vmatprep.subr.bf16.mxu1 %v13996_v12  ;;  %v14048_v17 = vld [vmem:[#allocation37 + $0xa60] ss:$16 sps:$4 sm:$0xff]   ;;  %v14053_v12 = vld [vmem:[#allocation37 + $0x844] ss:$16 sps:$4 sm:$0xff]  }
 0x871   :  { %4841 = vmatpush2.bf16.msra.mxu0 %v13991_v16  ;;  %v14056_v16 = vld [vmem:[#allocation37 + $0xa44] ss:$16 sps:$4 sm:$0xff]  }
 0x872   :  { %4882 = vmatpush2.bf16.msra.mxu1 %v13994_v26  ;;  %4842 = vmatprep.subr.bf16.mxu0 %v13999_v3  ;;  %v14051_v26 = vld [vmem:[#allocation37 + $0x840] ss:$16 sps:$4 sm:$0xff]  }
 0x873   :  { %4883 = vmatprep.subr.bf16.mxu1 %v14002_v27  ;;  %v14054_v3 = vld [vmem:[#allocation37 + $0xa40] ss:$16 sps:$4 sm:$0xff]   ;;  %v14059_v27 = vld [vmem:[#allocation37 + $0x824] ss:$16 sps:$4 sm:$0xff]  }
 0x875   :  { %4843 = vmatpush2.bf16.msra.mxu0 %v13997_v56  ;;  %v14062_v56 = vld [vmem:[#allocation37 + $0xa24] ss:$16 sps:$4 sm:$0xff]  }
 0x876   :  { %4884 = vmatpush2.bf16.msra.mxu1 %v14000_v34  ;;  %4844 = vmatprep.subr.bf16.mxu0 %v14005_v61  ;;  %v14057_v34 = vld [vmem:[#allocation37 + $0x820] ss:$16 sps:$4 sm:$0xff]  }
 0x877   :  { %4885 = vmatprep.subr.bf16.mxu1 %v14008_v23  ;;  %v14060_v61 = vld [vmem:[#allocation37 + $0xa20] ss:$16 sps:$4 sm:$0xff]   ;;  %v14065_v23 = vld [vmem:[#allocation37 + $0x804] ss:$16 sps:$4 sm:$0xff]  }
 0x879   :  { %4845 = vmatpush2.bf16.msra.mxu0 %v14003_v35  ;;  %v14068_v35 = vld [vmem:[#allocation37 + $0xa04] ss:$16 sps:$4 sm:$0xff]  }
 0x87a   :  { %4886 = vmatpush2.bf16.msra.mxu1 %v14006_v18  ;;  %4846 = vmatprep.subr.bf16.mxu0 %v14011_v58  ;;  %v14063_v18 = vld [vmem:[#allocation37 + $0x800] ss:$16 sps:$4 sm:$0xff]  }
 0x87b   :  { %4887 = vmatprep.subr.bf16.mxu1 %v14014_v31  ;;  %v14066_v58 = vld [vmem:[#allocation37 + $0xa00] ss:$16 sps:$4 sm:$0xff]   ;;  %v14071_v31 = vld [vmem:[#allocation37 + $0x9e4] ss:$16 sps:$4 sm:$0xff]  }
 0x87d   :  { %4847 = vmatpush2.bf16.msra.mxu0 %v14009_v2  ;;  %v14074_v2 = vld [vmem:[#allocation37 + $0xbe4] ss:$16 sps:$4 sm:$0xff]  }
 0x87e   :  { %4888 = vmatpush2.bf16.msra.mxu1 %v14012_v10  ;;  %4848 = vmatprep.subr.bf16.mxu0 %v14017_v42  ;;  %v14069_v10 = vld [vmem:[#allocation37 + $0x9e0] ss:$16 sps:$4 sm:$0xff]  }
 0x87f   :  { %4889 = vmatprep.subr.bf16.mxu1 %v14020_v52  ;;  %v14072_v42 = vld [vmem:[#allocation37 + $0xbe0] ss:$16 sps:$4 sm:$0xff]   ;;  %v14077_v52 = vld [vmem:[#allocation37 + $0x9c4] ss:$16 sps:$4 sm:$0xff]  }
 0x881   :  { %4849 = vmatpush2.bf16.msra.mxu0 %v14015_v44  ;;  %v14080_v44 = vld [vmem:[#allocation37 + $0xbc4] ss:$16 sps:$4 sm:$0xff]  }
 0x882   :  { %4890 = vmatpush2.bf16.msra.mxu1 %v14018_v59  ;;  %5677 = vmatprep.subr.bf16.mxu0 %v14023_v47  ;;  %v14075_v59 = vld [vmem:[#allocation37 + $0x9c0] ss:$16 sps:$4 sm:$0xff]  }
 0x883   :  { %5718 = vmatprep.subr.bf16.mxu1 %v14026_v5  ;;  %v14078_v47 = vld [vmem:[#allocation37 + $0xbc0] ss:$16 sps:$4 sm:$0xff]   ;;  %v14083_v5 = vld [vmem:[#allocation37 + $0x9a4] ss:$16 sps:$4 sm:$0xff]  }
 0x884   :  { %4851 = vmatmul.mubr.bf16.vlgmr.msra.gmra.mxu0 %v17079_v6  ;;  %v3966_v1 = vpop.f32.mrf.mxu0 }
 0x885   :  { %v4007_v62 = vpop.f32.mrf.mxu1  ;;  %4892 = vmatmul.mubr.bf16.vlgmr.msra.gmra.mxu1 %v17081_v32  ;;  %5678 = vmatpush1.bf16.msra.mxu0 %v14021_v63  ;;  %v14086_v63 = vld [vmem:[#allocation37 + $0xba4] ss:$16 sps:$4 sm:$0xff]  }
 0x886   :  { %v17120_v33 = vadd.f32 %v4007_v62, %v3966_v1  ;;  %5709 = vmatprep.mubr.bf16.mxu0 %v5030_v53  ;;  %5719 = vmatpush1.bf16.msra.mxu1 %v14024_v50  ;;  %v3968_v37 = vpop.f32.mrf.mxu0  ;;  %v14081_v50 = vld [vmem:[#allocation37 + $0x9a0] ss:$16 sps:$4 sm:$0xff]   ;;  %v14089_v1 = vld [vmem:[#allocation37 + $0x984] ss:$16 sps:$4 sm:$0xff]  }
 0x887   :  { %v4009_v41 = vpop.f32.mrf.mxu1  ;;  %5750 = vmatprep.mubr.bf16.mxu1 %v5032_v11  ;;  %5679 = vmatprep.subr.bf16.mxu0 %v14029_v21  ;;  %v14084_v21 = vld [vmem:[#allocation37 + $0xba0] ss:$16 sps:$4 sm:$0xff]   ;;  %v14092_v62 = vld [vmem:[#allocation37 + $0xb84] ss:$16 sps:$4 sm:$0xff]  }
 0x888   :  { %v17127_v4 = vadd.f32 %v4009_v41, %v3968_v37  ;;  %5720 = vmatprep.subr.bf16.mxu1 %v14032_v13  ;;  %v3970_v28 = vpop.f32.mrf.mxu0  ;;  %v14087_v13 = vld [vmem:[#allocation37 + $0x980] ss:$16 sps:$4 sm:$0xff]   ;;  %v14095_v37 = vld [vmem:[#allocation37 + $0x964] ss:$16 sps:$4 sm:$0xff]  }
 0x889   :  { %v4011_v40 = vpop.f32.mrf.mxu1  ;;  %5680 = vmatpush1.bf16.msra.mxu0 %v14027_v46  ;;  %v14090_v46 = vld [vmem:[#allocation37 + $0xb80] ss:$16 sps:$4 sm:$0xff]   ;;  %v14098_v41 = vld [vmem:[#allocation37 + $0xb64] ss:$16 sps:$4 sm:$0xff]  }
 0x88a   :  { %5721 = vmatpush1.bf16.msra.mxu1 %v14030_v19  ;;  %v3971_v43 = vpop.f32.mrf.mxu0  ;;  %5681 = vmatprep.subr.bf16.mxu0 %v14035_v9  ;;  %v14093_v19 = vld [vmem:[#allocation37 + $0x960] ss:$16 sps:$4 sm:$0xff]   ;;  %v14104_v28 = vld [vmem:[#allocation37 + $0xb44] ss:$16 sps:$4 sm:$0xff]  }
 0x88b   :  { %v4012_v48 = vpop.f32.mrf.mxu1  ;;  %5722 = vmatprep.subr.bf16.mxu1 %v14038_v25  ;;  %v14096_v9 = vld [vmem:[#allocation37 + $0xb60] ss:$16 sps:$4 sm:$0xff]   ;;  %v14101_v25 = vld [vmem:[#allocation37 + $0x944] ss:$16 sps:$4 sm:$0xff]  }
 0x88c   :  { %v14099_v40 = vld [vmem:[#allocation37 + $0x940] ss:$16 sps:$4 sm:$0xff]   ;;  %v14107_v43 = vld [vmem:[#allocation37 + $0x924] ss:$16 sps:$4 sm:$0xff]  }
 0x88d   :  { %5682 = vmatpush1.bf16.msra.mxu0 %v14033_v22  ;;  %v14102_v22 = vld [vmem:[#allocation37 + $0xb40] ss:$16 sps:$4 sm:$0xff]   ;;  %v14110_v48 = vld [vmem:[#allocation37 + $0xb24] ss:$16 sps:$4 sm:$0xff]  }
 0x88e   :  { %5723 = vmatpush1.bf16.msra.mxu1 %v14036_v24  ;;  %5683 = vmatprep.subr.bf16.mxu0 %v14041_v51  ;;  %v14105_v24 = vld [vmem:[#allocation37 + $0x920] ss:$16 sps:$4 sm:$0xff]  }
 0x88f   :  { %5724 = vmatprep.subr.bf16.mxu1 %v14044_v38  ;;  %v14108_v51 = vld [vmem:[#allocation37 + $0xb20] ss:$16 sps:$4 sm:$0xff]   ;;  %v14113_v38 = vld [vmem:[#allocation37 + $0x904] ss:$16 sps:$4 sm:$0xff]  }
 0x891   :  { %5684 = vmatpush1.bf16.msra.mxu0 %v14039_v8  ;;  %v14116_v8 = vld [vmem:[#allocation37 + $0xb04] ss:$16 sps:$4 sm:$0xff]  }
 0x892   :  { %5725 = vmatpush1.bf16.msra.mxu1 %v14042_v15  ;;  %5685 = vmatprep.subr.bf16.mxu0 %v14047_v7  ;;  %v14111_v15 = vld [vmem:[#allocation37 + $0x900] ss:$16 sps:$4 sm:$0xff]  }
 0x893   :  { %5726 = vmatprep.subr.bf16.mxu1 %v14050_v39  ;;  %v14114_v7 = vld [vmem:[#allocation37 + $0xb00] ss:$16 sps:$4 sm:$0xff]   ;;  %v14119_v39 = vld [vmem:[#allocation37 + $0x8ec] ss:$16 sps:$4 sm:$0xff]  }
 0x895   :  { %5686 = vmatpush1.bf16.msra.mxu0 %v14045_v45  ;;  %v14122_v45 = vld [vmem:[#allocation37 + $0xaec] ss:$16 sps:$4 sm:$0xff]  }
 0x896   :  { %5727 = vmatpush1.bf16.msra.mxu1 %v14048_v17  ;;  %5687 = vmatprep.subr.bf16.mxu0 %v14053_v12  ;;  %v14117_v17 = vld [vmem:[#allocation37 + $0x8e8] ss:$16 sps:$4 sm:$0xff]   ;;  %v5029_v12 = vrot.slane %v17079_v6, 2 }
 0x897   :  { %5728 = vmatprep.subr.bf16.mxu1 %v14056_v16  ;;  %v14120_v16 = vld [vmem:[#allocation37 + $0xae8] ss:$16 sps:$4 sm:$0xff]  }
 0x899   :  { %5688 = vmatpush1.bf16.msra.mxu0 %v14051_v26  ;;  %v5031_v26 = vrot.slane %v17081_v32, 2 }
 0x89a   :  { %5729 = vmatpush1.bf16.msra.mxu1 %v14054_v3  ;;  %5689 = vmatprep.subr.bf16.mxu0 %v14059_v27  ;;  %v14125_v3 = vld [vmem:[#allocation37 + $0x8cc] ss:$16 sps:$4 sm:$0xff]  }
 0x89b   :  { %5730 = vmatprep.subr.bf16.mxu1 %v14062_v56 }
 0x89d   :  { %5690 = vmatpush1.bf16.msra.mxu0 %v14057_v34  ;;  %v14128_v34 = vld [vmem:[#allocation37 + $0xacc] ss:$16 sps:$4 sm:$0xff]  }
 0x89e   :  { %5731 = vmatpush1.bf16.msra.mxu1 %v14060_v61  ;;  %5691 = vmatprep.subr.bf16.mxu0 %v14065_v23  ;;  %v14123_v23 = vld [vmem:[#allocation37 + $0x8c8] ss:$16 sps:$4 sm:$0xff]  }
 0x89f   :  { %5732 = vmatprep.subr.bf16.mxu1 %v14068_v35 }
 0x8a1   :  { %5692 = vmatpush1.bf16.msra.mxu0 %v14063_v18 }
 0x8a2   :  { %5733 = vmatpush1.bf16.msra.mxu1 %v14066_v58  ;;  %5693 = vmatprep.subr.bf16.mxu0 %v14071_v31  ;;  %v14126_v58 = vld [vmem:[#allocation37 + $0xac8] ss:$16 sps:$4 sm:$0xff]   ;;  %v14131_v31 = vld [vmem:[#allocation37 + $0x8ac] ss:$16 sps:$4 sm:$0xff]  }
 0x8a3   :  { %5734 = vmatprep.subr.bf16.mxu1 %v14074_v2 }
 0x8a5   :  { %5694 = vmatpush2.bf16.msra.mxu0 %v14069_v10  ;;  %v14134_v10 = vld [vmem:[#allocation37 + $0xaac] ss:$16 sps:$4 sm:$0xff]  }
 0x8a6   :  { %5735 = vmatpush2.bf16.msra.mxu1 %v14072_v42  ;;  %5695 = vmatprep.subr.bf16.mxu0 %v14077_v52 }
 0x8a7   :  { %5736 = vmatprep.subr.bf16.mxu1 %v14080_v44  ;;  %v14129_v44 = vld [vmem:[#allocation37 + $0x8a8] ss:$16 sps:$4 sm:$0xff]  }
 0x8a9   :  { %5696 = vmatpush2.bf16.msra.mxu0 %v14075_v59 }
 0x8aa   :  { %5737 = vmatpush2.bf16.msra.mxu1 %v14078_v47  ;;  %5697 = vmatprep.subr.bf16.mxu0 %v14083_v5  ;;  %v14132_v47 = vld [vmem:[#allocation37 + $0xaa8] ss:$16 sps:$4 sm:$0xff]   ;;  %v14137_v5 = vld [vmem:[#allocation37 + $0x88c] ss:$16 sps:$4 sm:$0xff]  }
 0x8ab   :  { %5738 = vmatprep.subr.bf16.mxu1 %v14086_v63  ;;  %v14140_v63 = vld [vmem:[#allocation37 + $0xa8c] ss:$16 sps:$4 sm:$0xff]  }
 0x8ad   :  { %5698 = vmatpush2.bf16.msra.mxu0 %v14081_v50  ;;  %v14135_v50 = vld [vmem:[#allocation37 + $0x888] ss:$16 sps:$4 sm:$0xff]  }
 0x8ae   :  { %5739 = vmatpush2.bf16.msra.mxu1 %v14084_v21  ;;  %5699 = vmatprep.subr.bf16.mxu0 %v14089_v1  ;;  %v14143_v21 = vld [vmem:[#allocation37 + $0x86c] ss:$16 sps:$4 sm:$0xff]  }
 0x8af   :  { %5740 = vmatprep.subr.bf16.mxu1 %v14092_v62  ;;  %v14146_v1 = vld [vmem:[#allocation37 + $0xa6c] ss:$16 sps:$4 sm:$0xff]   ;;  %v14141_v62 = vld [vmem:[#allocation37 + $0x868] ss:$16 sps:$4 sm:$0xff]  }
 0x8b1   :  { %5700 = vmatpush2.bf16.msra.mxu0 %v14087_v13  ;;  %v14144_v13 = vld [vmem:[#allocation37 + $0xa68] ss:$16 sps:$4 sm:$0xff]  }
 0x8b2   :  { %5741 = vmatpush2.bf16.msra.mxu1 %v14090_v46  ;;  %5701 = vmatprep.subr.bf16.mxu0 %v14095_v37  ;;  %v14149_v46 = vld [vmem:[#allocation37 + $0x84c] ss:$16 sps:$4 sm:$0xff]  }
 0x8b3   :  { %5742 = vmatprep.subr.bf16.mxu1 %v14098_v41  ;;  %v14152_v37 = vld [vmem:[#allocation37 + $0xa4c] ss:$16 sps:$4 sm:$0xff]   ;;  %v14147_v41 = vld [vmem:[#allocation37 + $0x848] ss:$16 sps:$4 sm:$0xff]  }
 0x8b5   :  { %5702 = vmatpush2.bf16.msra.mxu0 %v14093_v19  ;;  %v14150_v19 = vld [vmem:[#allocation37 + $0xa48] ss:$16 sps:$4 sm:$0xff]  }
 0x8b6   :  { %5743 = vmatpush2.bf16.msra.mxu1 %v14096_v9  ;;  %5703 = vmatprep.subr.bf16.mxu0 %v14101_v25  ;;  %v14155_v9 = vld [vmem:[#allocation37 + $0x82c] ss:$16 sps:$4 sm:$0xff]  }
 0x8b7   :  { %5744 = vmatprep.subr.bf16.mxu1 %v14104_v28  ;;  %v14158_v25 = vld [vmem:[#allocation37 + $0xa2c] ss:$16 sps:$4 sm:$0xff]   ;;  %v14153_v28 = vld [vmem:[#allocation37 + $0x828] ss:$16 sps:$4 sm:$0xff]  }
 0x8b9   :  { %5704 = vmatpush2.bf16.msra.mxu0 %v14099_v40  ;;  %v14156_v40 = vld [vmem:[#allocation37 + $0xa28] ss:$16 sps:$4 sm:$0xff]  }
 0x8ba   :  { %5745 = vmatpush2.bf16.msra.mxu1 %v14102_v22  ;;  %5705 = vmatprep.subr.bf16.mxu0 %v14107_v43  ;;  %v14161_v22 = vld [vmem:[#allocation37 + $0x80c] ss:$16 sps:$4 sm:$0xff]  }
 0x8bb   :  { %5746 = vmatprep.subr.bf16.mxu1 %v14110_v48  ;;  %v14164_v43 = vld [vmem:[#allocation37 + $0xa0c] ss:$16 sps:$4 sm:$0xff]   ;;  %v14159_v48 = vld [vmem:[#allocation37 + $0x808] ss:$16 sps:$4 sm:$0xff]  }
 0x8bd   :  { %5706 = vmatpush2.bf16.msra.mxu0 %v14105_v24  ;;  %v14162_v24 = vld [vmem:[#allocation37 + $0xa08] ss:$16 sps:$4 sm:$0xff]  }
 0x8be   :  { %5747 = vmatpush2.bf16.msra.mxu1 %v14108_v51  ;;  %5707 = vmatprep.subr.bf16.mxu0 %v14113_v38  ;;  %v14167_v51 = vld [vmem:[#allocation37 + $0x9ec] ss:$16 sps:$4 sm:$0xff]  }
 0x8bf   :  { %5748 = vmatprep.subr.bf16.mxu1 %v14116_v8  ;;  %v14170_v38 = vld [vmem:[#allocation37 + $0xbec] ss:$16 sps:$4 sm:$0xff]   ;;  %v14165_v8 = vld [vmem:[#allocation37 + $0x9e8] ss:$16 sps:$4 sm:$0xff]  }
 0x8c1   :  { %5708 = vmatpush2.bf16.msra.mxu0 %v14111_v15  ;;  %v14168_v15 = vld [vmem:[#allocation37 + $0xbe8] ss:$16 sps:$4 sm:$0xff]  }
 0x8c2   :  { %5749 = vmatpush2.bf16.msra.mxu1 %v14114_v7  ;;  %5759 = vmatprep.subr.bf16.mxu0 %v14119_v39  ;;  %v14173_v7 = vld [vmem:[#allocation37 + $0x9cc] ss:$16 sps:$4 sm:$0xff]  }
 0x8c3   :  { %5800 = vmatprep.subr.bf16.mxu1 %v14122_v45  ;;  %v14176_v39 = vld [vmem:[#allocation37 + $0xbcc] ss:$16 sps:$4 sm:$0xff]   ;;  %v14171_v45 = vld [vmem:[#allocation37 + $0x9c8] ss:$16 sps:$4 sm:$0xff]  }
 0x8c4   :  { %v4048_v27 = vpop.f32.mrf.mxu0  ;;  %5710 = vmatmul.mubr.bf16.vlgmr.msra.gmra.mxu0 %v5029_v12 }
 0x8c5   :  { %v4089_v56 = vpop.f32.mrf.mxu1  ;;  %5751 = vmatmul.mubr.bf16.vlgmr.msra.gmra.mxu1 %v5031_v26  ;;  %5760 = vmatpush1.bf16.msra.mxu0 %v14117_v17  ;;  %v14174_v17 = vld [vmem:[#allocation37 + $0xbc8] ss:$16 sps:$4 sm:$0xff]  }
 0x8c6   :  { %v17133_v61 = vadd.f32 %v4089_v56, %v4048_v27  ;;  %5791 = vmatprep.mubr.bf16.mxu0 %v5030_v53  ;;  %5801 = vmatpush1.bf16.msra.mxu1 %v14120_v16  ;;  %v4050_v35 = vpop.f32.mrf.mxu0  ;;  %v14179_v16 = vld [vmem:[#allocation37 + $0x9ac] ss:$16 sps:$4 sm:$0xff]   ;;  %v14177_v27 = vld [vmem:[#allocation37 + $0x9a8] ss:$16 sps:$4 sm:$0xff]  }
 0x8c7   :  { %v4091_v18 = vpop.f32.mrf.mxu1  ;;  %5832 = vmatprep.mubr.bf16.mxu1 %v5032_v11  ;;  %5761 = vmatprep.subr.bf16.mxu0 %v14125_v3  ;;  %v14138_v11 = vld [vmem:[#allocation37 + $0xa88] ss:$16 sps:$4 sm:$0xff]   ;;  %v14182_v3 = vld [vmem:[#allocation37 + $0xbac] ss:$16 sps:$4 sm:$0xff]  }
 0x8c8   :  { %v17141_v2 = vadd.f32 %v4091_v18, %v4050_v35  ;;  %v4052_v42 = vpop.f32.mrf.mxu0  ;;  %5802 = vmatprep.subr.bf16.mxu1 %v14128_v34  ;;  %v14180_v56 = vld [vmem:[#allocation37 + $0xba8] ss:$16 sps:$4 sm:$0xff]   ;;  %v14185_v34 = vld [vmem:[#allocation37 + $0x98c] ss:$16 sps:$4 sm:$0xff]  }
 0x8c9   :  { %v4093_v52 = vpop.f32.mrf.mxu1  ;;  %5762 = vmatpush1.bf16.msra.mxu0 %v14123_v23  ;;  %v14188_v23 = vld [vmem:[#allocation37 + $0xb8c] ss:$16 sps:$4 sm:$0xff]   ;;  %v14183_v35 = vld [vmem:[#allocation37 + $0x988] ss:$16 sps:$4 sm:$0xff]  }
 0x8ca   :  { %5803 = vmatpush1.bf16.msra.mxu1 %v14126_v58  ;;  %v4053_v59 = vpop.f32.mrf.mxu0  ;;  %5763 = vmatprep.subr.bf16.mxu0 %v14131_v31  ;;  %v14186_v18 = vld [vmem:[#allocation37 + $0xb88] ss:$16 sps:$4 sm:$0xff]   ;;  %v14191_v58 = vld [vmem:[#allocation37 + $0x96c] ss:$16 sps:$4 sm:$0xff]  }
 0x8cb   :  { %v4094_v53 = vpop.f32.mrf.mxu1  ;;  %5804 = vmatprep.subr.bf16.mxu1 %v14134_v10  ;;  %v14194_v31 = vld [vmem:[#allocation37 + $0xb6c] ss:$16 sps:$4 sm:$0xff]   ;;  %v14189_v10 = vld [vmem:[#allocation37 + $0x968] ss:$16 sps:$4 sm:$0xff]  }
 0x8cc   :  { %v14192_v42 = vld [vmem:[#allocation37 + $0xb68] ss:$16 sps:$4 sm:$0xff]   ;;  %v14197_v52 = vld [vmem:[#allocation37 + $0x94c] ss:$16 sps:$4 sm:$0xff]  }
 0x8cd   :  { %5764 = vmatpush1.bf16.msra.mxu0 %v14129_v44  ;;  %v14200_v44 = vld [vmem:[#allocation37 + $0xb4c] ss:$16 sps:$4 sm:$0xff]   ;;  %v14195_v59 = vld [vmem:[#allocation37 + $0x948] ss:$16 sps:$4 sm:$0xff]  }
 0x8ce   :  { %5805 = vmatpush1.bf16.msra.mxu1 %v14132_v47  ;;  %5765 = vmatprep.subr.bf16.mxu0 %v14137_v5  ;;  %v14198_v53 = vld [vmem:[#allocation37 + $0xb48] ss:$16 sps:$4 sm:$0xff]   ;;  %v14203_v47 = vld [vmem:[#allocation37 + $0x92c] ss:$16 sps:$4 sm:$0xff]  }
 0x8cf   :  { %5806 = vmatprep.subr.bf16.mxu1 %v14140_v63  ;;  %v14206_v5 = vld [vmem:[#allocation37 + $0xb2c] ss:$16 sps:$4 sm:$0xff]   ;;  %v14201_v63 = vld [vmem:[#allocation37 + $0x928] ss:$16 sps:$4 sm:$0xff]  }
 0x8d1   :  { %5766 = vmatpush1.bf16.msra.mxu0 %v14135_v50  ;;  %v14204_v50 = vld [vmem:[#allocation37 + $0xb28] ss:$16 sps:$4 sm:$0xff]  }
 0x8d2   :  { %5807 = vmatpush1.bf16.msra.mxu1 %v14138_v11  ;;  %5767 = vmatprep.subr.bf16.mxu0 %v14143_v21  ;;  %v14209_v11 = vld [vmem:[#allocation37 + $0x90c] ss:$16 sps:$4 sm:$0xff]  }
 0x8d3   :  { %5808 = vmatprep.subr.bf16.mxu1 %v14146_v1  ;;  %v14212_v21 = vld [vmem:[#allocation37 + $0xb0c] ss:$16 sps:$4 sm:$0xff]   ;;  %v14207_v1 = vld [vmem:[#allocation37 + $0x908] ss:$16 sps:$4 sm:$0xff]  }
 0x8d5   :  { %5768 = vmatpush1.bf16.msra.mxu0 %v14141_v62  ;;  %v14210_v62 = vld [vmem:[#allocation37 + $0xb08] ss:$16 sps:$4 sm:$0xff]  }
 0x8d6   :  { %5809 = vmatpush1.bf16.msra.mxu1 %v14144_v13  ;;  %5769 = vmatprep.subr.bf16.mxu0 %v14149_v46  ;;  %v14215_v13 = vld [vmem:[#allocation37 + $0xce4] ss:$16 sps:$4 sm:$0xff]  }
 0x8d7   :  { %5810 = vmatprep.subr.bf16.mxu1 %v14152_v37  ;;  %v14218_v46 = vld [vmem:[#allocation37 + $0xee4] ss:$16 sps:$4 sm:$0xff]   ;;  %v14213_v37 = vld [vmem:[#allocation37 + $0xce0] ss:$16 sps:$4 sm:$0xff]  }
 0x8d9   :  { %5770 = vmatpush1.bf16.msra.mxu0 %v14147_v41  ;;  %v14216_v41 = vld [vmem:[#allocation37 + $0xee0] ss:$16 sps:$4 sm:$0xff]  }
 0x8da   :  { %5811 = vmatpush1.bf16.msra.mxu1 %v14150_v19  ;;  %5771 = vmatprep.subr.bf16.mxu0 %v14155_v9  ;;  %v14221_v19 = vld [vmem:[#allocation37 + $0xcc4] ss:$16 sps:$4 sm:$0xff]  }
 0x8db   :  { %5812 = vmatprep.subr.bf16.mxu1 %v14158_v25  ;;  %v5975_v25 = vrot.slane %v17075_v29, 3 }
 0x8dd   :  { %5772 = vmatpush1.bf16.msra.mxu0 %v14153_v28  ;;  %v14224_v28 = vld [vmem:[#allocation37 + $0xec4] ss:$16 sps:$4 sm:$0xff]  }
 0x8de   :  { %5813 = vmatpush1.bf16.msra.mxu1 %v14156_v40  ;;  %5773 = vmatprep.subr.bf16.mxu0 %v14161_v22 }
 0x8df   :  { %5814 = vmatprep.subr.bf16.mxu1 %v14164_v43  ;;  %v5977_v43 = vrot.slane %v17077_v30, 3  ;;  %v14324_v30 = vld [vmem:[#allocation37 + $0xea8] ss:$16 sps:$4 sm:$0xff]  }
 0x8e1   :  { %5774 = vmatpush1.bf16.msra.mxu0 %v14159_v48  ;;  %v14219_v48 = vld [vmem:[#allocation37 + $0xcc0] ss:$16 sps:$4 sm:$0xff]  }
 0x8e2   :  { %5815 = vmatpush1.bf16.msra.mxu1 %v14162_v24  ;;  %5775 = vmatprep.subr.bf16.mxu0 %v14167_v51  ;;  %v14222_v51 = vld [vmem:[#allocation37 + $0xec0] ss:$16 sps:$4 sm:$0xff]  }
 0x8e3   :  { %5816 = vmatprep.subr.bf16.mxu1 %v14170_v38 }
 0x8e5   :  { %5776 = vmatpush2.bf16.msra.mxu0 %v14165_v8 }
 0x8e6   :  { %5817 = vmatpush2.bf16.msra.mxu1 %v14168_v15  ;;  %5777 = vmatprep.subr.bf16.mxu0 %v14173_v7 }
 0x8e7   :  { %5818 = vmatprep.subr.bf16.mxu1 %v14176_v39 }
 0x8e9   :  { %5778 = vmatpush2.bf16.msra.mxu0 %v14171_v45  ;;  %v14225_v45 = vld [vmem:[#allocation37 + $0xca0] ss:$16 sps:$4 sm:$0xff]  }
 0x8ea   :  { %5819 = vmatpush2.bf16.msra.mxu1 %v14174_v17  ;;  %5779 = vmatprep.subr.bf16.mxu0 %v14179_v16  ;;  %v14228_v16 = vld [vmem:[#allocation37 + $0xea0] ss:$16 sps:$4 sm:$0xff]  }
 0x8eb   :  { %5820 = vmatprep.subr.bf16.mxu1 %v14182_v3  ;;  %v14233_v3 = vld [vmem:[#allocation37 + $0xc84] ss:$16 sps:$4 sm:$0xff]  }
 0x8ed   :  { %5780 = vmatpush2.bf16.msra.mxu0 %v14177_v27 }
 0x8ee   :  { %5821 = vmatpush2.bf16.msra.mxu1 %v14180_v56  ;;  %5781 = vmatprep.subr.bf16.mxu0 %v14185_v34  ;;  %v14236_v56 = vld [vmem:[#allocation37 + $0xe84] ss:$16 sps:$4 sm:$0xff]   ;;  %v14234_v34 = vld [vmem:[#allocation37 + $0xe80] ss:$16 sps:$4 sm:$0xff]  }
 0x8ef   :  { %5822 = vmatprep.subr.bf16.mxu1 %v14188_v23  ;;  %v14239_v23 = vld [vmem:[#allocation37 + $0xc64] ss:$16 sps:$4 sm:$0xff]  }
 0x8f1   :  { %5782 = vmatpush2.bf16.msra.mxu0 %v14183_v35  ;;  %v14242_v35 = vld [vmem:[#allocation37 + $0xe64] ss:$16 sps:$4 sm:$0xff]  }
 0x8f2   :  { %5823 = vmatpush2.bf16.msra.mxu1 %v14186_v18  ;;  %5783 = vmatprep.subr.bf16.mxu0 %v14191_v58  ;;  %v14237_v18 = vld [vmem:[#allocation37 + $0xc60] ss:$16 sps:$4 sm:$0xff]  }
 0x8f3   :  { %5824 = vmatprep.subr.bf16.mxu1 %v14194_v31  ;;  %v14240_v58 = vld [vmem:[#allocation37 + $0xe60] ss:$16 sps:$4 sm:$0xff]   ;;  %v14245_v31 = vld [vmem:[#allocation37 + $0xc44] ss:$16 sps:$4 sm:$0xff]  }
 0x8f5   :  { %5784 = vmatpush2.bf16.msra.mxu0 %v14189_v10  ;;  %v14248_v10 = vld [vmem:[#allocation37 + $0xe44] ss:$16 sps:$4 sm:$0xff]  }
 0x8f6   :  { %5825 = vmatpush2.bf16.msra.mxu1 %v14192_v42  ;;  %5785 = vmatprep.subr.bf16.mxu0 %v14197_v52  ;;  %v14243_v42 = vld [vmem:[#allocation37 + $0xc40] ss:$16 sps:$4 sm:$0xff]  }
 0x8f7   :  { %5826 = vmatprep.subr.bf16.mxu1 %v14200_v44  ;;  %v14246_v52 = vld [vmem:[#allocation37 + $0xe40] ss:$16 sps:$4 sm:$0xff]   ;;  %v14251_v44 = vld [vmem:[#allocation37 + $0xc24] ss:$16 sps:$4 sm:$0xff]  }
 0x8f9   :  { %5786 = vmatpush2.bf16.msra.mxu0 %v14195_v59  ;;  %v14254_v59 = vld [vmem:[#allocation37 + $0xe24] ss:$16 sps:$4 sm:$0xff]  }
 0x8fa   :  { %5827 = vmatpush2.bf16.msra.mxu1 %v14198_v53  ;;  %5787 = vmatprep.subr.bf16.mxu0 %v14203_v47  ;;  %v14249_v53 = vld [vmem:[#allocation37 + $0xc20] ss:$16 sps:$4 sm:$0xff]  }
 0x8fb   :  { %5828 = vmatprep.subr.bf16.mxu1 %v14206_v5  ;;  %v14252_v47 = vld [vmem:[#allocation37 + $0xe20] ss:$16 sps:$4 sm:$0xff]   ;;  %v14257_v5 = vld [vmem:[#allocation37 + $0xc04] ss:$16 sps:$4 sm:$0xff]  }
 0x8fd   :  { %5788 = vmatpush2.bf16.msra.mxu0 %v14201_v63  ;;  %v14260_v63 = vld [vmem:[#allocation37 + $0xe04] ss:$16 sps:$4 sm:$0xff]  }
 0x8fe   :  { %5829 = vmatpush2.bf16.msra.mxu1 %v14204_v50  ;;  %5789 = vmatprep.subr.bf16.mxu0 %v14209_v11  ;;  %v14255_v50 = vld [vmem:[#allocation37 + $0xc00] ss:$16 sps:$4 sm:$0xff]  }
 0x8ff   :  { %5830 = vmatprep.subr.bf16.mxu1 %v14212_v21  ;;  %v14258_v11 = vld [vmem:[#allocation37 + $0xe00] ss:$16 sps:$4 sm:$0xff]   ;;  %v14263_v21 = vld [vmem:[#allocation37 + $0xde4] ss:$16 sps:$4 sm:$0xff]  }
 0x901   :  { %5790 = vmatpush2.bf16.msra.mxu0 %v14207_v1  ;;  %v14266_v1 = vld [vmem:[#allocation37 + $0xfe4] ss:$16 sps:$4 sm:$0xff]  }
 0x902   :  { %5831 = vmatpush2.bf16.msra.mxu1 %v14210_v62  ;;  %6622 = vmatprep.subr.bf16.mxu0 %v14215_v13  ;;  %v14261_v62 = vld [vmem:[#allocation37 + $0xde0] ss:$16 sps:$4 sm:$0xff]  }
 0x903   :  { %6663 = vmatprep.subr.bf16.mxu1 %v14218_v46  ;;  %v14264_v13 = vld [vmem:[#allocation37 + $0xfe0] ss:$16 sps:$4 sm:$0xff]   ;;  %v14269_v46 = vld [vmem:[#allocation37 + $0xdc4] ss:$16 sps:$4 sm:$0xff]  }
 0x904   :  { %v4770_v9 = vpop.f32.mrf.mxu0  ;;  %5792 = vmatmul.mubr.bf16.vlgmr.msra.gmra.mxu0 %v5029_v12  ;;  %v14227_v12 = vld [vmem:[#allocation37 + $0xca4] ss:$16 sps:$4 sm:$0xff]  }
 0x905   :  { %v4771_v40 = vadd.f32 %v4770_v9, %v17120_v33  ;;  %v4811_v22 = vpop.f32.mrf.mxu1  ;;  %5833 = vmatmul.mubr.bf16.vlgmr.msra.gmra.mxu1 %v5031_v26  ;;  %6623 = vmatpush1.bf16.msra.mxu0 %v14213_v37  ;;  %v14230_v26 = vld [vmem:[#allocation37 + $0xea4] ss:$16 sps:$4 sm:$0xff]  }
 0x906   :  { %6654 = vmatprep.mubr.bf16.mxu0 %v5975_v25  ;;  %6664 = vmatpush1.bf16.msra.mxu1 %v14216_v41  ;;  %v4772_v24 = vpop.f32.mrf.mxu0  ;;  %v14272_v37 = vld [vmem:[#allocation37 + $0xfc4] ss:$16 sps:$4 sm:$0xff]   ;;  %v14267_v41 = vld [vmem:[#allocation37 + $0xdc0] ss:$16 sps:$4 sm:$0xff]  }
 0x907   :  { %v17152_v38 = vadd.f32 %v4811_v22, %v4771_v40  ;;  %6695 = vmatprep.mubr.bf16.mxu1 %v5977_v43  ;;  %v4773_v33 = vadd.f32 %v4772_v24, %v17127_v4  ;;  %v4813_v8 = vpop.f32.mrf.mxu1  ;;  %6624 = vmatprep.subr.bf16.mxu0 %v14221_v19  ;;  %v14231_v4 = vld [vmem:[#allocation37 + $0xc80] ss:$16 sps:$4 sm:$0xff]   ;;  %v14275_v9 = vld [vmem:[#allocation37 + $0xda4] ss:$16 sps:$4 sm:$0xff]   ;;  %v17160_v40 = vmul.f32 0.70710677, %v17105_v60 }
 0x908   :  { %v4774_v15 = vpop.f32.mrf.mxu0  ;;  %6665 = vmatprep.subr.bf16.mxu1 %v14224_v28  ;;  %v14270_v19 = vld [vmem:[#allocation37 + $0xfc0] ss:$16 sps:$4 sm:$0xff]   ;;  %v14278_v28 = vld [vmem:[#allocation37 + $0xfa4] ss:$16 sps:$4 sm:$0xff]  }
 0x909   :  { %v17157_v7 = vadd.f32 %v4813_v8, %v4773_v33  ;;  %v4815_v39 = vpop.f32.mrf.mxu1  ;;  %6625 = vmatpush1.bf16.msra.mxu0 %v14219_v48  ;;  %v14273_v22 = vld [vmem:[#allocation37 + $0xda0] ss:$16 sps:$4 sm:$0xff]   ;;  %v17163_v48 = vmul.f32 0.70710677, %v17107_v36  ;;  %v17166_v33 = vand.u32 2147483647, %v17160_v40 }
 0x90a   :  { %6666 = vmatpush1.bf16.msra.mxu1 %v14222_v51  ;;  %v4775_v17 = vpop.f32.mrf.mxu0  ;;  %6626 = vmatprep.subr.bf16.mxu0 %v14227_v12  ;;  %v14276_v24 = vld [vmem:[#allocation37 + $0xfa0] ss:$16 sps:$4 sm:$0xff]   ;;  %v14281_v51 = vld [vmem:[#allocation37 + $0xd84] ss:$16 sps:$4 sm:$0xff]   ;;  %vm2964_vm7 = vcmp.ge.f32.partialorder %v17160_v40, 0.0 }
 0x90b   :  { %v4816_v27 = vpop.f32.mrf.mxu1  ;;  %6667 = vmatprep.subr.bf16.mxu1 %v14230_v26  ;;  %v14284_v12 = vld [vmem:[#allocation37 + $0xf84] ss:$16 sps:$4 sm:$0xff]   ;;  %v14279_v8 = vld [vmem:[#allocation37 + $0xd80] ss:$16 sps:$4 sm:$0xff]   ;;  %v17169_v26 = vand.u32 2147483647, %v17163_v48 }
 0x90c   :  { %v14282_v15 = vld [vmem:[#allocation37 + $0xf80] ss:$16 sps:$4 sm:$0xff]   ;;  %v14287_v39 = vld [vmem:[#allocation37 + $0xd64] ss:$16 sps:$4 sm:$0xff]   ;;  %v2736_v17 = vmul.f32 0.3275911, %v17166_v33 }
 0x90d   :  { %6627 = vmatpush1.bf16.msra.mxu0 %v14225_v45  ;;  %v14290_v45 = vld [vmem:[#allocation37 + $0xf64] ss:$16 sps:$4 sm:$0xff]   ;;  %v14288_v27 = vld [vmem:[#allocation37 + $0xf60] ss:$16 sps:$4 sm:$0xff]   ;;  %vm2966_vm9 = vcmp.ge.f32.partialorder %v17163_v48, 0.0  ;;  %v2702_v48 = vmul.f32 0.5, %v17107_v36 }
 0x90e   :  { %6668 = vmatpush1.bf16.msra.mxu1 %v14228_v16  ;;  %6628 = vmatprep.subr.bf16.mxu0 %v14233_v3  ;;  %v14285_v16 = vld [vmem:[#allocation37 + $0xd60] ss:$16 sps:$4 sm:$0xff]   ;;  %v2738_v3 = vmul.f32 0.3275911, %v17169_v26  ;;  %v14402_v40 = vld [vmem:[#allocation37 + $0xf08] ss:$16 sps:$4 sm:$0xff]  }
 0x90f   :  { %6669 = vmatprep.subr.bf16.mxu1 %v14236_v56  ;;  %v14293_v56 = vld [vmem:[#allocation37 + $0xd44] ss:$16 sps:$4 sm:$0xff]  }
 0x910   :  { %v14416_v36 = vld [vmem:[#allocation37 + $0x12c4] ss:$16 sps:$4 sm:$0xff]  }
 0x911   :  { %6629 = vmatpush1.bf16.msra.mxu0 %v14231_v4  ;;  %v14296_v4 = vld [vmem:[#allocation37 + $0xf44] ss:$16 sps:$4 sm:$0xff]  }
 0x912   :  { %6670 = vmatpush1.bf16.msra.mxu1 %v14234_v34  ;;  %6630 = vmatprep.subr.bf16.mxu0 %v14239_v23  ;;  %v2748_v34 = vadd.f32 1.0, %v2736_v17  ;;  %v14291_v23 = vld [vmem:[#allocation37 + $0xd40] ss:$16 sps:$4 sm:$0xff]  }
 0x913   :  { %6671 = vmatprep.subr.bf16.mxu1 %v14242_v35  ;;  %v2750_v35 = vadd.f32 1.0, %v2738_v3  ;;  %v14332_v3 = vld [vmem:[#allocation37 + $0xe8c] ss:$16 sps:$4 sm:$0xff]  }
 0x914   :  { %15493 = vrcp.f32 %v2748_v34  ;;  %v14330_v34 = vld [vmem:[#allocation37 + $0xe88] ss:$16 sps:$4 sm:$0xff]  }
 0x915   :  { %6631 = vmatpush1.bf16.msra.mxu0 %v14237_v18  ;;  %v14294_v18 = vld [vmem:[#allocation37 + $0xf40] ss:$16 sps:$4 sm:$0xff]   ;;  %15495 = vrcp.f32 %v2750_v35  ;;  %v14338_v35 = vld [vmem:[#allocation37 + $0xe6c] ss:$16 sps:$4 sm:$0xff]  }
 0x916   :  { %6672 = vmatpush1.bf16.msra.mxu1 %v14240_v58  ;;  %6632 = vmatprep.subr.bf16.mxu0 %v14245_v31  ;;  %v14299_v58 = vld [vmem:[#allocation37 + $0xd24] ss:$16 sps:$4 sm:$0xff]  }
 0x917   :  { %6673 = vmatprep.subr.bf16.mxu1 %v14248_v10  ;;  %v14302_v31 = vld [vmem:[#allocation37 + $0xf24] ss:$16 sps:$4 sm:$0xff]   ;;  %v14297_v10 = vld [vmem:[#allocation37 + $0xd20] ss:$16 sps:$4 sm:$0xff]  }
 0x919   :  { %6633 = vmatpush1.bf16.msra.mxu0 %v14243_v42  ;;  %v14300_v42 = vld [vmem:[#allocation37 + $0xf20] ss:$16 sps:$4 sm:$0xff]  }
 0x91a   :  { %6674 = vmatpush1.bf16.msra.mxu1 %v14246_v52  ;;  %6634 = vmatprep.subr.bf16.mxu0 %v14251_v44  ;;  %v14305_v52 = vld [vmem:[#allocation37 + $0xd04] ss:$16 sps:$4 sm:$0xff]  }
 0x91b   :  { %6675 = vmatprep.subr.bf16.mxu1 %v14254_v59  ;;  %v14308_v44 = vld [vmem:[#allocation37 + $0xf04] ss:$16 sps:$4 sm:$0xff]   ;;  %v14303_v59 = vld [vmem:[#allocation37 + $0xd00] ss:$16 sps:$4 sm:$0xff]  }
 0x91d   :  { %6635 = vmatpush1.bf16.msra.mxu0 %v14249_v53  ;;  %v14306_v53 = vld [vmem:[#allocation37 + $0xf00] ss:$16 sps:$4 sm:$0xff]  }
 0x91e   :  { %6676 = vmatpush1.bf16.msra.mxu1 %v14252_v47  ;;  %6636 = vmatprep.subr.bf16.mxu0 %v14257_v5  ;;  %v14311_v47 = vld [vmem:[#allocation37 + $0xcec] ss:$16 sps:$4 sm:$0xff]  }
 0x91f   :  { %6677 = vmatprep.subr.bf16.mxu1 %v14260_v63  ;;  %v14314_v5 = vld [vmem:[#allocation37 + $0xeec] ss:$16 sps:$4 sm:$0xff]   ;;  %v14309_v63 = vld [vmem:[#allocation37 + $0xce8] ss:$16 sps:$4 sm:$0xff]  }
 0x921   :  { %6637 = vmatpush1.bf16.msra.mxu0 %v14255_v50  ;;  %v5974_v50 = vrot.slane %v17079_v6, 3 }
 0x922   :  { %6678 = vmatpush1.bf16.msra.mxu1 %v14258_v11  ;;  %6638 = vmatprep.subr.bf16.mxu0 %v14263_v21  ;;  %v14312_v11 = vld [vmem:[#allocation37 + $0xee8] ss:$16 sps:$4 sm:$0xff]   ;;  %v5976_v21 = vrot.slane %v17081_v32, 3 }
 0x923   :  { %6679 = vmatprep.subr.bf16.mxu1 %v14266_v1  ;;  %v14317_v1 = vld [vmem:[#allocation37 + $0xccc] ss:$16 sps:$4 sm:$0xff]  }
 0x925   :  { %6639 = vmatpush2.bf16.msra.mxu0 %v14261_v62 }
 0x926   :  { %6680 = vmatpush2.bf16.msra.mxu1 %v14264_v13  ;;  %6640 = vmatprep.subr.bf16.mxu0 %v14269_v46  ;;  %v14320_v13 = vld [vmem:[#allocation37 + $0xecc] ss:$16 sps:$4 sm:$0xff]  }
 0x927   :  { %6681 = vmatprep.subr.bf16.mxu1 %v14272_v37 }
 0x929   :  { %6641 = vmatpush2.bf16.msra.mxu0 %v14267_v41  ;;  %v14315_v41 = vld [vmem:[#allocation37 + $0xcc8] ss:$16 sps:$4 sm:$0xff]  }
 0x92a   :  { %6682 = vmatpush2.bf16.msra.mxu1 %v14270_v19  ;;  %6642 = vmatprep.subr.bf16.mxu0 %v14275_v9  ;;  %v17180_v19 = vpop.eup %15493 }
 0x92b   :  { %6683 = vmatprep.subr.bf16.mxu1 %v14278_v28  ;;  %v14318_v28 = vld [vmem:[#allocation37 + $0xec8] ss:$16 sps:$4 sm:$0xff]   ;;  %v2784_v29 = vmul.f32 1.0614054, %v17180_v19 }
 0x92d   :  { %6643 = vmatpush2.bf16.msra.mxu0 %v14273_v22  ;;  %v14323_v22 = vld [vmem:[#allocation37 + $0xcac] ss:$16 sps:$4 sm:$0xff]  }
 0x92e   :  { %6684 = vmatpush2.bf16.msra.mxu1 %v14276_v24  ;;  %6644 = vmatprep.subr.bf16.mxu0 %v14281_v51  ;;  %v17184_v24 = vpop.eup %15495 }
 0x92f   :  { %6685 = vmatprep.subr.bf16.mxu1 %v14284_v12  ;;  %v2786_v17 = vmul.f32 1.0614054, %v17184_v24 }
 0x931   :  { %6645 = vmatpush2.bf16.msra.mxu0 %v14279_v8  ;;  %v14326_v8 = vld [vmem:[#allocation37 + $0xeac] ss:$16 sps:$4 sm:$0xff]  }
 0x932   :  { %6686 = vmatpush2.bf16.msra.mxu1 %v14282_v15  ;;  %6646 = vmatprep.subr.bf16.mxu0 %v14287_v39 }
 0x933   :  { %6687 = vmatprep.subr.bf16.mxu1 %v14290_v45  ;;  %v14321_v45 = vld [vmem:[#allocation37 + $0xca8] ss:$16 sps:$4 sm:$0xff]  }
 0x935   :  { %6647 = vmatpush2.bf16.msra.mxu0 %v14285_v16 }
 0x936   :  { %6688 = vmatpush2.bf16.msra.mxu1 %v14288_v27  ;;  %6648 = vmatprep.subr.bf16.mxu0 %v14293_v56  ;;  %v2796_v27 = vadd.f32 -1.4531521, %v2784_v29  ;;  %v14327_v56 = vld [vmem:[#allocation37 + $0xc88] ss:$16 sps:$4 sm:$0xff]   ;;  %v14359_v29 = vld [vmem:[#allocation37 + $0xdec] ss:$16 sps:$4 sm:$0xff]  }
 0x937   :  { %6689 = vmatprep.subr.bf16.mxu1 %v14296_v4  ;;  %v2798_v4 = vadd.f32 -1.4531521, %v2786_v17  ;;  %v14357_v17 = vld [vmem:[#allocation37 + $0xde8] ss:$16 sps:$4 sm:$0xff]  }
 0x939   :  { %6649 = vmatpush2.bf16.msra.mxu0 %v14291_v23  ;;  %v14335_v23 = vld [vmem:[#allocation37 + $0xc6c] ss:$16 sps:$4 sm:$0xff]  }
 0x93a   :  { %6690 = vmatpush2.bf16.msra.mxu1 %v14294_v18  ;;  %6650 = vmatprep.subr.bf16.mxu0 %v14299_v58  ;;  %v2808_v18 = vmul.f32 %v17180_v19, %v2796_v27  ;;  %v14333_v58 = vld [vmem:[#allocation37 + $0xc68] ss:$16 sps:$4 sm:$0xff]  }
 0x93b   :  { %6691 = vmatprep.subr.bf16.mxu1 %v14302_v31  ;;  %v2810_v31 = vmul.f32 %v17184_v24, %v2798_v4  ;;  %v14363_v27 = vld [vmem:[#allocation37 + $0xdc8] ss:$16 sps:$4 sm:$0xff]  }
 0x93c   :  { %v14366_v4 = vld [vmem:[#allocation37 + $0xfc8] ss:$16 sps:$4 sm:$0xff]  }
 0x93d   :  { %6651 = vmatpush2.bf16.msra.mxu0 %v14297_v10  ;;  %v14336_v10 = vld [vmem:[#allocation37 + $0xe68] ss:$16 sps:$4 sm:$0xff]  }
 0x93e   :  { %6692 = vmatpush2.bf16.msra.mxu1 %v14300_v42  ;;  %6652 = vmatprep.subr.bf16.mxu0 %v14305_v52  ;;  %v14341_v42 = vld [vmem:[#allocation37 + $0xc4c] ss:$16 sps:$4 sm:$0xff]   ;;  %v2892_v52 = vsub.f32 0.0, %v17166_v33 }
 0x93f   :  { %6693 = vmatprep.subr.bf16.mxu1 %v14308_v44  ;;  %v14344_v44 = vld [vmem:[#allocation37 + $0xe4c] ss:$16 sps:$4 sm:$0xff]  }
 0x941   :  { %6653 = vmatpush2.bf16.msra.mxu0 %v14303_v59  ;;  %v2894_v59 = vsub.f32 0.0, %v17169_v26 }
 0x942   :  { %6694 = vmatpush2.bf16.msra.mxu1 %v14306_v53  ;;  %6704 = vmatprep.subr.bf16.mxu0 %v14311_v47  ;;  %v2820_v53 = vadd.f32 1.4214138, %v2808_v18  ;;  %v14339_v47 = vld [vmem:[#allocation37 + $0xc48] ss:$16 sps:$4 sm:$0xff]   ;;  %v17209_v18 = vmul.f32 0.70710677, %v17103_v54 }
 0x943   :  { %6745 = vmatprep.subr.bf16.mxu1 %v14314_v5  ;;  %v2822_v5 = vadd.f32 1.4214138, %v2810_v31  ;;  %v14369_v31 = vld [vmem:[#allocation37 + $0xda8] ss:$16 sps:$4 sm:$0xff]  }
 0x944   :  { %v4852_v62 = vpop.f32.mrf.mxu0  ;;  %6655 = vmatmul.mubr.bf16.vlgmr.msra.gmra.mxu0 %v5974_v50  ;;  %vm2965_vm11 = vcmp.ge.f32.partialorder %v17209_v18, 0.0 }
 0x945   :  { %v4853_v46 = vadd.f32 %v4852_v62, %v17133_v61  ;;  %v4893_v37 = vpop.f32.mrf.mxu1  ;;  %6696 = vmatmul.mubr.bf16.vlgmr.msra.gmra.mxu1 %v5976_v21  ;;  %6705 = vmatpush1.bf16.msra.mxu0 %v14309_v63  ;;  %v14342_v63 = vld [vmem:[#allocation37 + $0xe48] ss:$16 sps:$4 sm:$0xff]   ;;  %v14350_v62 = vld [vmem:[#allocation37 + $0xe2c] ss:$16 sps:$4 sm:$0xff]  }
 0x946   :  { %6736 = vmatprep.mubr.bf16.mxu0 %v5975_v25  ;;  %6746 = vmatpush1.bf16.msra.mxu1 %v14312_v11  ;;  %v4854_v9 = vpop.f32.mrf.mxu0  ;;  %v14347_v11 = vld [vmem:[#allocation37 + $0xc2c] ss:$16 sps:$4 sm:$0xff]  }
 0x947   :  { %v17186_v51 = vadd.f32 %v4893_v37, %v4853_v46  ;;  %6777 = vmatprep.mubr.bf16.mxu1 %v5977_v43  ;;  %v4855_v61 = vadd.f32 %v4854_v9, %v17141_v2  ;;  %v4895_v12 = vpop.f32.mrf.mxu1  ;;  %6706 = vmatprep.subr.bf16.mxu0 %v14317_v1  ;;  %v14329_v43 = vld [vmem:[#allocation37 + $0xc8c] ss:$16 sps:$4 sm:$0xff]   ;;  %v2904_v1 = vmul.f32 %v2892_v52, %v17166_v33  ;;  %v14345_v37 = vld [vmem:[#allocation37 + $0xc28] ss:$16 sps:$4 sm:$0xff]  }
 0x948   :  { %v4856_v15 = vpop.f32.mrf.mxu0  ;;  %6747 = vmatprep.subr.bf16.mxu1 %v14320_v13  ;;  %v2906_v13 = vmul.f32 %v2894_v59, %v17169_v26  ;;  %v2832_v46 = vmul.f32 %v17180_v19, %v2820_v53  ;;  %v14348_v9 = vld [vmem:[#allocation37 + $0xe28] ss:$16 sps:$4 sm:$0xff]   ;;  %v14377_v52 = vld [vmem:[#allocation37 + $0xd8c] ss:$16 sps:$4 sm:$0xff]  }
 0x949   :  { %v17192_v25 = vadd.f32 %v4895_v12, %v4855_v61  ;;  %v4897_v39 = vpop.f32.mrf.mxu1  ;;  %6707 = vmatpush1.bf16.msra.mxu0 %v14315_v41  ;;  %v2834_v41 = vmul.f32 %v17184_v24, %v2822_v5  ;;  %v14356_v61 = vld [vmem:[#allocation37 + $0xe0c] ss:$16 sps:$4 sm:$0xff]   ;;  %v14351_v33 = vld [vmem:[#allocation37 + $0xc08] ss:$16 sps:$4 sm:$0xff]  }
 0x94a   :  { %6748 = vmatpush1.bf16.msra.mxu1 %v14318_v28  ;;  %v4857_v16 = vpop.f32.mrf.mxu0  ;;  %6708 = vmatprep.subr.bf16.mxu0 %v14323_v22  ;;  %v14353_v28 = vld [vmem:[#allocation37 + $0xc0c] ss:$16 sps:$4 sm:$0xff]   ;;  %v2921_v22 = vmul.f32 1.442695, %v2904_v1  ;;  %v2925_v12 = vmul.f32 1.442695, %v2906_v13 }
 0x94b   :  { %v4898_v2 = vpop.f32.mrf.mxu1  ;;  %6749 = vmatprep.subr.bf16.mxu1 %v14326_v8  ;;  %v2844_v8 = vadd.f32 -0.28449672, %v2832_v46  ;;  %v2846_v15 = vadd.f32 -0.28449672, %v2834_v41  ;;  %v14354_v26 = vld [vmem:[#allocation37 + $0xe08] ss:$16 sps:$4 sm:$0xff]  }
 0x94c   :  { %15497 = vpow2.f32 %v2921_v22  ;;  %v14362_v39 = vld [vmem:[#allocation37 + $0xfec] ss:$16 sps:$4 sm:$0xff]   ;;  %v14381_v41 = vld [vmem:[#allocation37 + $0xd68] ss:$16 sps:$4 sm:$0xff]  }
 0x94d   :  { %6709 = vmatpush1.bf16.msra.mxu0 %v14321_v45  ;;  %15499 = vpow2.f32 %v2925_v12  ;;  %v2856_v45 = vmul.f32 %v17180_v19, %v2844_v8  ;;  %v2858_v16 = vmul.f32 %v17184_v24, %v2846_v15  ;;  %v14368_v2 = vld [vmem:[#allocation37 + $0xfcc] ss:$16 sps:$4 sm:$0xff]   ;;  %v14387_v15 = vld [vmem:[#allocation37 + $0xd48] ss:$16 sps:$4 sm:$0xff]  }
 0x94e   :  { %6750 = vmatpush1.bf16.msra.mxu1 %v14324_v30  ;;  %6710 = vmatprep.subr.bf16.mxu0 %v14329_v43  ;;  %v14360_v30 = vld [vmem:[#allocation37 + $0xfe8] ss:$16 sps:$4 sm:$0xff]   ;;  %v14365_v43 = vld [vmem:[#allocation37 + $0xdcc] ss:$16 sps:$4 sm:$0xff]  }
 0x94f   :  { %6751 = vmatprep.subr.bf16.mxu1 %v14332_v3  ;;  %v2868_v3 = vadd.f32 0.2548296, %v2856_v45  ;;  %v14380_v59 = vld [vmem:[#allocation37 + $0xf8c] ss:$16 sps:$4 sm:$0xff]  }
 0x950   :  { %v14383_v1 = vld [vmem:[#allocation37 + $0xd6c] ss:$16 sps:$4 sm:$0xff]  }
 0x951   :  { %6711 = vmatpush1.bf16.msra.mxu0 %v14327_v56  ;;  %v2870_v56 = vadd.f32 0.2548296, %v2858_v16  ;;  %v14386_v13 = vld [vmem:[#allocation37 + $0xf6c] ss:$16 sps:$4 sm:$0xff]   ;;  %v14393_v16 = vld [vmem:[#allocation37 + $0xd28] ss:$16 sps:$4 sm:$0xff]  }
 0x952   :  { %6752 = vmatpush1.bf16.msra.mxu1 %v14330_v34  ;;  %6712 = vmatprep.subr.bf16.mxu0 %v14335_v23  ;;  %v14371_v34 = vld [vmem:[#allocation37 + $0xdac] ss:$16 sps:$4 sm:$0xff]   ;;  %v17206_v23 = vmul.f32 0.70710677, %v17101_v14 }
 0x953   :  { %6753 = vmatprep.subr.bf16.mxu1 %v14338_v35  ;;  %v14374_v35 = vld [vmem:[#allocation37 + $0xfac] ss:$16 sps:$4 sm:$0xff]  }
 0x954   :  { %v14389_v22 = vld [vmem:[#allocation37 + $0xd4c] ss:$16 sps:$4 sm:$0xff]   ;;  %vm2963_vm10 = vcmp.ge.f32.partialorder %v17206_v23, 0.0 }
 0x955   :  { %6713 = vmatpush1.bf16.msra.mxu0 %v14333_v58  ;;  %v2880_v58 = vmul.f32 %v17180_v19, %v2868_v3  ;;  %v14375_v19 = vld [vmem:[#allocation37 + $0xd88] ss:$16 sps:$4 sm:$0xff]   ;;  %v14392_v12 = vld [vmem:[#allocation37 + $0xf4c] ss:$16 sps:$4 sm:$0xff]  }
 0x956   :  { %6754 = vmatpush1.bf16.msra.mxu1 %v14336_v10  ;;  %6714 = vmatprep.subr.bf16.mxu0 %v14341_v42  ;;  %v2882_v10 = vmul.f32 %v17184_v24, %v2870_v56  ;;  %v14372_v42 = vld [vmem:[#allocation37 + $0xfa8] ss:$16 sps:$4 sm:$0xff]   ;;  %v14398_v45 = vld [vmem:[#allocation37 + $0xf2c] ss:$16 sps:$4 sm:$0xff]  }
 0x957   :  { %6755 = vmatprep.subr.bf16.mxu1 %v14344_v44  ;;  %v17214_v44 = vand.u32 2147483647, %v17206_v23  ;;  %v14378_v24 = vld [vmem:[#allocation37 + $0xf88] ss:$16 sps:$4 sm:$0xff]   ;;  %v14404_v3 = vld [vmem:[#allocation37 + $0xf0c] ss:$16 sps:$4 sm:$0xff]  }
 0x958   :  { %v14500_v23 = vld [vmem:[#allocation37 + $0x1304] ss:$16 sps:$4 sm:$0xff]  }
 0x959   :  { %6715 = vmatpush1.bf16.msra.mxu0 %v14339_v47  ;;  %v15498_v53 = vpop.eup %15497  ;;  %v17217_v47 = vand.u32 2147483647, %v17209_v18 }
 0x95a   :  { %6756 = vmatpush1.bf16.msra.mxu1 %v14342_v63  ;;  %6716 = vmatprep.subr.bf16.mxu0 %v14347_v11  ;;  %v15500_v5 = vpop.eup %15499  ;;  %v2940_v63 = vmul.f32 %v15498_v53, %v2880_v58  ;;  %v14410_v58 = vld [vmem:[#allocation37 + $0x12e4] ss:$16 sps:$4 sm:$0xff]  }
 0x95b   :  { %6757 = vmatprep.subr.bf16.mxu1 %v14350_v62  ;;  %v2942_v11 = vmul.f32 %v15500_v5, %v2882_v10  ;;  %v2735_v62 = vmul.f32 0.3275911, %v17214_v44  ;;  %v2737_v46 = vmul.f32 0.3275911, %v17217_v47 }
 0x95d   :  { %6717 = vmatpush1.bf16.msra.mxu0 %v14345_v37  ;;  %v2952_v37 = vsub.f32 1.0, %v2940_v63  ;;  %v2749_v8 = vadd.f32 1.0, %v2737_v46  ;;  %v14419_v46 = vld [vmem:[#allocation37 + $0x10a4] ss:$16 sps:$4 sm:$0xff]  }
 0x95e   :  { %6758 = vmatpush1.bf16.msra.mxu1 %v14348_v9  ;;  %6718 = vmatprep.subr.bf16.mxu0 %v14353_v28  ;;  %v2954_v9 = vsub.f32 1.0, %v2942_v11  ;;  %v14384_v28 = vld [vmem:[#allocation37 + $0xf68] ss:$16 sps:$4 sm:$0xff]  }
 0x95f   :  { %6759 = vmatprep.subr.bf16.mxu1 %v14356_v61  ;;  %v2747_v61 = vadd.f32 1.0, %v2735_v62 }
 0x961   :  { %6719 = vmatpush1.bf16.msra.mxu0 %v14351_v33  ;;  %v2976_v33 = vsub.f32 0.0, %v2952_v37  ;;  %15501 = vrcp.f32 %v2747_v61 }
 0x962   :  { %6760 = vmatpush1.bf16.msra.mxu1 %v14354_v26  ;;  %6720 = vmatprep.subr.bf16.mxu0 %v14359_v29  ;;  %v2978_v26 = vsub.f32 0.0, %v2954_v9  ;;  %v14390_v29 = vld [vmem:[#allocation37 + $0xf48] ss:$16 sps:$4 sm:$0xff]   ;;  %15503 = vrcp.f32 %v2749_v8  ;;  %v14420_v8 = vld [vmem:[#allocation37 + $0x12a0] ss:$16 sps:$4 sm:$0xff]  }
 0x963   :  { %6761 = vmatprep.subr.bf16.mxu1 %v14362_v39  ;;  %v14395_v39 = vld [vmem:[#allocation37 + $0xd2c] ss:$16 sps:$4 sm:$0xff]  }
 0x965   :  { %6721 = vmatpush2.bf16.msra.mxu0 %v14357_v17  ;;  %v2988_v17 = vsel %vm2964_vm7, %v2952_v37, %v2976_v33  ;;  %v14422_v37 = vld [vmem:[#allocation37 + $0x12a4] ss:$16 sps:$4 sm:$0xff]  }
 0x966   :  { %6762 = vmatpush2.bf16.msra.mxu1 %v14360_v30  ;;  %6722 = vmatprep.subr.bf16.mxu0 %v14365_v43  ;;  %v2990_v30 = vsel %vm2966_vm9, %v2954_v9, %v2978_v26  ;;  %v14396_v43 = vld [vmem:[#allocation37 + $0xf28] ss:$16 sps:$4 sm:$0xff]   ;;  %v14425_v33 = vld [vmem:[#allocation37 + $0x1084] ss:$16 sps:$4 sm:$0xff]  }
 0x967   :  { %6763 = vmatprep.subr.bf16.mxu1 %v14368_v2  ;;  %v14401_v2 = vld [vmem:[#allocation37 + $0xd0c] ss:$16 sps:$4 sm:$0xff]   ;;  %v3002_v56 = vadd.f32 1.0, %v2990_v30 }
 0x969   :  { %6723 = vmatpush2.bf16.msra.mxu0 %v14363_v27  ;;  %v3000_v27 = vadd.f32 1.0, %v2988_v17  ;;  %v3014_v10 = vmul.f32 %v3002_v56, %v2702_v48  ;;  %v14431_v17 = vld [vmem:[#allocation37 + $0x1064] ss:$16 sps:$4 sm:$0xff]   ;;  %v14435_v48 = vld [vmem:[#allocation37 + $0x1040] ss:$16 sps:$4 sm:$0xff]  }
 0x96a   :  { %6764 = vmatpush2.bf16.msra.mxu1 %v14366_v4  ;;  %6724 = vmatprep.subr.bf16.mxu0 %v14371_v34  ;;  %v14399_v4 = vld [vmem:[#allocation37 + $0xd08] ss:$16 sps:$4 sm:$0xff]   ;;  %v2700_v34 = vmul.f32 0.5, %v17105_v60  ;;  %v14437_v56 = vld [vmem:[#allocation37 + $0x1044] ss:$16 sps:$4 sm:$0xff]  }
 0x96b   :  { %6765 = vmatprep.subr.bf16.mxu1 %v14374_v35  ;;  %v14407_v35 = vld [vmem:[#allocation37 + $0x10e4] ss:$16 sps:$4 sm:$0xff]  }
 0x96d   :  { %6725 = vmatpush2.bf16.msra.mxu0 %v14369_v31  ;;  %v3012_v31 = vmul.f32 %v3000_v27, %v2700_v34  ;;  %v14432_v27 = vld [vmem:[#allocation37 + $0x1260] ss:$16 sps:$4 sm:$0xff]   ;;  %v14440_v34 = vld [vmem:[#allocation37 + $0x1244] ss:$16 sps:$4 sm:$0xff]  }
 0x96e   :  { %6766 = vmatpush2.bf16.msra.mxu1 %v14372_v42  ;;  %6726 = vmatprep.subr.bf16.mxu0 %v14377_v52  ;;  %v14405_v42 = vld [vmem:[#allocation37 + $0x10e0] ss:$16 sps:$4 sm:$0xff]   ;;  %v17225_v53 = vpop.eup %15501 }
 0x96f   :  { %6767 = vmatprep.subr.bf16.mxu1 %v14380_v59  ;;  %v14408_v52 = vld [vmem:[#allocation37 + $0x12e0] ss:$16 sps:$4 sm:$0xff]   ;;  %v14413_v59 = vld [vmem:[#allocation37 + $0x10c4] ss:$16 sps:$4 sm:$0xff]   ;;  %v17227_v60 = vpack.c.bf16 %v3012_v31, %v3012_v31  ;;  %v17231_v63 = vpop.eup %15503  ;;  %v2783_v6 = vmul.f32 1.0614054, %v17225_v53 }
 0x970   :  { %v14438_v31 = vld [vmem:[#allocation37 + $0x1240] ss:$16 sps:$4 sm:$0xff]  }
 0x971   :  { %6727 = vmatpush2.bf16.msra.mxu0 %v14375_v19  ;;  %v17233_v19 = vpack.c.bf16 %v3014_v10, %v3014_v10  ;;  %v14443_v10 = vld [vmem:[#allocation37 + $0x1024] ss:$16 sps:$4 sm:$0xff]  }
 0x972   :  { %6768 = vmatpush2.bf16.msra.mxu1 %v14378_v24  ;;  %6728 = vmatprep.subr.bf16.mxu0 %v14383_v1  ;;  %v14411_v24 = vld [vmem:[#allocation37 + $0x10c0] ss:$16 sps:$4 sm:$0xff]  }
 0x973   :  { %6769 = vmatprep.subr.bf16.mxu1 %v14386_v13  ;;  %v14414_v13 = vld [vmem:[#allocation37 + $0x12c0] ss:$16 sps:$4 sm:$0xff]  }
 0x975   :  { %6729 = vmatpush2.bf16.msra.mxu0 %v14381_v41  ;;  %v2785_v41 = vmul.f32 1.0614054, %v17231_v63 }
 0x976   :  { %6770 = vmatpush2.bf16.msra.mxu1 %v14384_v28  ;;  %6730 = vmatprep.subr.bf16.mxu0 %v14389_v22  ;;  %v14417_v22 = vld [vmem:[#allocation37 + $0x10a0] ss:$16 sps:$4 sm:$0xff]  }
 0x977   :  { %6771 = vmatprep.subr.bf16.mxu1 %v14392_v12 }
 0x979   :  { %6731 = vmatpush2.bf16.msra.mxu0 %v14387_v15  ;;  %v2795_v15 = vadd.f32 -1.4531521, %v2783_v6  ;;  %v14455_v6 = vld [vmem:[#allocation37 + $0x11e4] ss:$16 sps:$4 sm:$0xff]  }
 0x97a   :  { %6772 = vmatpush2.bf16.msra.mxu1 %v14390_v29  ;;  %6732 = vmatprep.subr.bf16.mxu0 %v14395_v39  ;;  %v14428_v29 = vld [vmem:[#allocation37 + $0x1284] ss:$16 sps:$4 sm:$0xff]   ;;  %v14423_v39 = vld [vmem:[#allocation37 + $0x1080] ss:$16 sps:$4 sm:$0xff]  }
 0x97b   :  { %6773 = vmatprep.subr.bf16.mxu1 %v14398_v45  ;;  %v14426_v45 = vld [vmem:[#allocation37 + $0x1280] ss:$16 sps:$4 sm:$0xff]  }
 0x97d   :  { %6733 = vmatpush2.bf16.msra.mxu0 %v14393_v16  ;;  %v2807_v16 = vmul.f32 %v17225_v53, %v2795_v15  ;;  %v14462_v15 = vld [vmem:[#allocation37 + $0x13c0] ss:$16 sps:$4 sm:$0xff]  }
 0x97e   :  { %6774 = vmatpush2.bf16.msra.mxu1 %v14396_v43  ;;  %6734 = vmatprep.subr.bf16.mxu0 %v14401_v2  ;;  %v2891_v43 = vsub.f32 0.0, %v17214_v44  ;;  %v14429_v2 = vld [vmem:[#allocation37 + $0x1060] ss:$16 sps:$4 sm:$0xff]  }
 0x97f   :  { %6775 = vmatprep.subr.bf16.mxu1 %v14404_v3  ;;  %v2893_v3 = vsub.f32 0.0, %v17217_v47 }
 0x981   :  { %6735 = vmatpush2.bf16.msra.mxu0 %v14399_v4  ;;  %v2819_v4 = vadd.f32 1.4214138, %v2807_v16  ;;  %v14468_v16 = vld [vmem:[#allocation37 + $0x13a0] ss:$16 sps:$4 sm:$0xff]  }
 0x982   :  { %6776 = vmatpush2.bf16.msra.mxu1 %v14402_v40  ;;  %7563 = vmatprep.subr.bf16.mxu0 %v14407_v35  ;;  %v2903_v35 = vmul.f32 %v2891_v43, %v17214_v44  ;;  %v14444_v44 = vld [vmem:[#allocation37 + $0x1220] ss:$16 sps:$4 sm:$0xff]  }
 0x983   :  { %7604 = vmatprep.subr.bf16.mxu1 %v14410_v58  ;;  %v2905_v58 = vmul.f32 %v2893_v3, %v17217_v47  ;;  %v14452_v47 = vld [vmem:[#allocation37 + $0x1204] ss:$16 sps:$4 sm:$0xff]  }
 0x984   :  { %v5711_v5 = vpop.f32.mrf.mxu0  ;;  %6737 = vmatmul.mubr.bf16.vlgmr.msra.gmra.mxu0 %v5974_v50 }
 0x985   :  { %v5752_v11 = vpop.f32.mrf.mxu1  ;;  %6778 = vmatmul.mubr.bf16.vlgmr.msra.gmra.mxu1 %v5976_v21  ;;  %7564 = vmatpush1.bf16.msra.mxu0 %v14405_v42  ;;  %v2831_v42 = vmul.f32 %v17225_v53, %v2819_v4 }
 0x986   :  { %v5753_v1 = vadd.f32 %v5752_v11, %v5711_v5  ;;  %7595 = vmatprep.mubr.bf16.mxu0 %v17227_v60  ;;  %7605 = vmatpush1.bf16.msra.mxu1 %v14408_v52  ;;  %v5713_v62 = vpop.f32.mrf.mxu0  ;;  %v14446_v52 = vld [vmem:[#allocation37 + $0x1224] ss:$16 sps:$4 sm:$0xff]   ;;  %v2919_v5 = vmul.f32 1.442695, %v2903_v35  ;;  %v2923_v11 = vmul.f32 1.442695, %v2905_v58 }
 0x987   :  { %7636 = vmatprep.mubr.bf16.mxu1 %v17233_v19  ;;  %v5754_v50 = vpop.f32.mrf.mxu1  ;;  %7565 = vmatprep.subr.bf16.mxu0 %v14413_v59  ;;  %v14480_v35 = vld [vmem:[#allocation37 + $0x1360] ss:$16 sps:$4 sm:$0xff]  }
 0x988   :  { %v17242_v32 = vadd.f32 %v5753_v1, %v17152_v38  ;;  %v5755_v21 = vadd.f32 %v5754_v50, %v5713_v62  ;;  %v5715_v9 = vpop.f32.mrf.mxu0  ;;  %7606 = vmatprep.subr.bf16.mxu1 %v14416_v36  ;;  %v2797_v38 = vadd.f32 -1.4531521, %v2785_v41  ;;  %v14441_v36 = vld [vmem:[#allocation37 + $0x1020] ss:$16 sps:$4 sm:$0xff]   ;;  %v2843_v1 = vadd.f32 -0.28449672, %v2831_v42 }
 0x989   :  { %v5756_v28 = vpop.f32.mrf.mxu1  ;;  %7566 = vmatpush1.bf16.msra.mxu0 %v14411_v24  ;;  %v14449_v24 = vld [vmem:[#allocation37 + $0x1004] ss:$16 sps:$4 sm:$0xff]   ;;  %15505 = vpow2.f32 %v2919_v5  ;;  %v14456_v9 = vld [vmem:[#allocation37 + $0x13e0] ss:$16 sps:$4 sm:$0xff]  }
 0x98a   :  { %v17245_v61 = vadd.f32 %v5755_v21, %v17157_v7  ;;  %7607 = vmatpush1.bf16.msra.mxu1 %v14414_v13  ;;  %v5716_v12 = vpop.f32.mrf.mxu0  ;;  %7567 = vmatprep.subr.bf16.mxu0 %v14419_v46  ;;  %v14434_v7 = vld [vmem:[#allocation37 + $0x1264] ss:$16 sps:$4 sm:$0xff]   ;;  %v2809_v30 = vmul.f32 %v17231_v63, %v2797_v38  ;;  %v14447_v13 = vld [vmem:[#allocation37 + $0x1000] ss:$16 sps:$4 sm:$0xff]   ;;  %15507 = vpow2.f32 %v2923_v11  ;;  %v2855_v50 = vmul.f32 %v17225_v53, %v2843_v1 }
 0x98b   :  { %v5757_v26 = vpop.f32.mrf.mxu1  ;;  %7608 = vmatprep.subr.bf16.mxu1 %v14422_v37  ;;  %v14450_v46 = vld [vmem:[#allocation37 + $0x1200] ss:$16 sps:$4 sm:$0xff]   ;;  %v14458_v37 = vld [vmem:[#allocation37 + $0x13e4] ss:$16 sps:$4 sm:$0xff]  }
 0x98c   :  { %v2821_v40 = vadd.f32 1.4214138, %v2809_v30  ;;  %v14453_v21 = vld [vmem:[#allocation37 + $0x11e0] ss:$16 sps:$4 sm:$0xff]   ;;  %v14461_v28 = vld [vmem:[#allocation37 + $0x11c4] ss:$16 sps:$4 sm:$0xff]  }
 0x98d   :  { %7568 = vmatpush1.bf16.msra.mxu0 %v14417_v22  ;;  %v2867_v22 = vadd.f32 0.2548296, %v2855_v50  ;;  %v14464_v12 = vld [vmem:[#allocation37 + $0x13c4] ss:$16 sps:$4 sm:$0xff]   ;;  %v14483_v42 = vld [vmem:[#allocation37 + $0x1140] ss:$16 sps:$4 sm:$0xff]  }
 0x98e   :  { %7609 = vmatpush1.bf16.msra.mxu1 %v14420_v8  ;;  %7569 = vmatprep.subr.bf16.mxu0 %v14425_v33  ;;  %v2833_v59 = vmul.f32 %v17231_v63, %v2821_v40  ;;  %v14459_v33 = vld [vmem:[#allocation37 + $0x11c0] ss:$16 sps:$4 sm:$0xff]   ;;  %v14467_v26 = vld [vmem:[#allocation37 + $0x11a4] ss:$16 sps:$4 sm:$0xff]  }
 0x98f   :  { %7610 = vmatprep.subr.bf16.mxu1 %v14428_v29  ;;  %v2879_v29 = vmul.f32 %v17225_v53, %v2867_v22  ;;  %v14470_v38 = vld [vmem:[#allocation37 + $0x13a4] ss:$16 sps:$4 sm:$0xff]   ;;  %v14474_v53 = vld [vmem:[#allocation37 + $0x1380] ss:$16 sps:$4 sm:$0xff]   ;;  %v14504_v22 = vld [vmem:[#allocation37 + $0x12e8] ss:$16 sps:$4 sm:$0xff]  }
 0x990   :  { %v2845_v62 = vadd.f32 -0.28449672, %v2833_v59  ;;  %v14477_v40 = vld [vmem:[#allocation37 + $0x1160] ss:$16 sps:$4 sm:$0xff]   ;;  %v14491_v59 = vld [vmem:[#allocation37 + $0x1124] ss:$16 sps:$4 sm:$0xff]  }
 0x991   :  { %7570 = vmatpush1.bf16.msra.mxu0 %v14423_v39  ;;  %v14492_v1 = vld [vmem:[#allocation37 + $0x1320] ss:$16 sps:$4 sm:$0xff]  }
 0x992   :  { %7611 = vmatpush1.bf16.msra.mxu1 %v14426_v45  ;;  %7571 = vmatprep.subr.bf16.mxu0 %v14431_v17  ;;  %v2857_v41 = vmul.f32 %v17231_v63, %v2845_v62  ;;  %v14465_v45 = vld [vmem:[#allocation37 + $0x11a0] ss:$16 sps:$4 sm:$0xff]  }
 0x993   :  { %7612 = vmatprep.subr.bf16.mxu1 %v14434_v7  ;;  %v14473_v7 = vld [vmem:[#allocation37 + $0x1184] ss:$16 sps:$4 sm:$0xff]   ;;  %v14498_v50 = vld [vmem:[#allocation37 + $0x1300] ss:$16 sps:$4 sm:$0xff]  }
 0x994   :  { %v2869_v8 = vadd.f32 0.2548296, %v2857_v41 }
 0x995   :  { %7572 = vmatpush1.bf16.msra.mxu0 %v14429_v2  ;;  %v14476_v2 = vld [vmem:[#allocation37 + $0x1384] ss:$16 sps:$4 sm:$0xff]  }
 0x996   :  { %7613 = vmatpush1.bf16.msra.mxu1 %v14432_v27  ;;  %7573 = vmatprep.subr.bf16.mxu0 %v14437_v56  ;;  %v2881_v39 = vmul.f32 %v17231_v63, %v2869_v8  ;;  %v15506_v17 = vpop.eup %15505  ;;  %v14471_v27 = vld [vmem:[#allocation37 + $0x1180] ss:$16 sps:$4 sm:$0xff]   ;;  %v14479_v56 = vld [vmem:[#allocation37 + $0x1164] ss:$16 sps:$4 sm:$0xff]   ;;  %v14512_v8 = vld [vmem:[#allocation37 + $0x12cc] ss:$16 sps:$4 sm:$0xff]  }
 0x997   :  { %7614 = vmatprep.subr.bf16.mxu1 %v14440_v34  ;;  %v15508_v30 = vpop.eup %15507  ;;  %v2939_v43 = vmul.f32 %v15506_v17, %v2879_v29  ;;  %v14482_v63 = vld [vmem:[#allocation37 + $0x1364] ss:$16 sps:$4 sm:$0xff]   ;;  %v14518_v17 = vld [vmem:[#allocation37 + $0x12ac] ss:$16 sps:$4 sm:$0xff]  }
 0x998   :  { %v2941_v3 = vmul.f32 %v15508_v30, %v2881_v39  ;;  %v14515_v39 = vld [vmem:[#allocation37 + $0x10ac] ss:$16 sps:$4 sm:$0xff]  }
 0x999   :  { %7574 = vmatpush1.bf16.msra.mxu0 %v14435_v48  ;;  %v2951_v4 = vsub.f32 1.0, %v2939_v43  ;;  %v14485_v48 = vld [vmem:[#allocation37 + $0x1144] ss:$16 sps:$4 sm:$0xff]  }
 0x99a   :  { %7615 = vmatpush1.bf16.msra.mxu1 %v14438_v31  ;;  %7575 = vmatprep.subr.bf16.mxu0 %v14443_v10  ;;  %v2953_v34 = vsub.f32 1.0, %v2941_v3  ;;  %v14488_v31 = vld [vmem:[#allocation37 + $0x1344] ss:$16 sps:$4 sm:$0xff]  }
 0x99b   :  { %7616 = vmatprep.subr.bf16.mxu1 %v14446_v52  ;;  %v2975_v58 = vsub.f32 0.0, %v2951_v4  ;;  %v14486_v52 = vld [vmem:[#allocation37 + $0x1340] ss:$16 sps:$4 sm:$0xff]  }
 0x99c   :  { %v2977_v10 = vsub.f32 0.0, %v2953_v34 }
 0x99d   :  { %7576 = vmatpush1.bf16.msra.mxu0 %v14441_v36  ;;  %v2987_v5 = vsel %vm2963_vm10, %v2951_v4, %v2975_v58  ;;  %v14494_v36 = vld [vmem:[#allocation37 + $0x1324] ss:$16 sps:$4 sm:$0xff]   ;;  %v14533_v58 = vld [vmem:[#allocation37 + $0x104c] ss:$16 sps:$4 sm:$0xff]  }
 0x99e   :  { %7617 = vmatpush1.bf16.msra.mxu1 %v14444_v44  ;;  %7577 = vmatprep.subr.bf16.mxu0 %v14449_v24  ;;  %v2989_v11 = vsel %vm2965_vm11, %v2953_v34, %v2977_v10  ;;  %v14489_v44 = vld [vmem:[#allocation37 + $0x1120] ss:$16 sps:$4 sm:$0xff]   ;;  %v2999_v24 = vadd.f32 1.0, %v2987_v5  ;;  %v14522_v34 = vld [vmem:[#allocation37 + $0x1288] ss:$16 sps:$4 sm:$0xff]  }
 0x99f   :  { %7618 = vmatprep.subr.bf16.mxu1 %v14452_v47  ;;  %v14497_v47 = vld [vmem:[#allocation37 + $0x1104] ss:$16 sps:$4 sm:$0xff]   ;;  %v3001_v62 = vadd.f32 1.0, %v2989_v11  ;;  %v14531_v10 = vld [vmem:[#allocation37 + $0x1048] ss:$16 sps:$4 sm:$0xff]  }
 0x9a0   :  { %v14537_v5 = vld [vmem:[#allocation37 + $0x1028] ss:$16 sps:$4 sm:$0xff]   ;;  %v14545_v11 = vld [vmem:[#allocation37 + $0x100c] ss:$16 sps:$4 sm:$0xff]  }
 0x9a1   :  { %7578 = vmatpush1.bf16.msra.mxu0 %v14447_v13  ;;  %v2699_v13 = vmul.f32 0.5, %v17101_v14 }
 0x9a2   :  { %7619 = vmatpush1.bf16.msra.mxu1 %v14450_v46  ;;  %7579 = vmatprep.subr.bf16.mxu0 %v14455_v6  ;;  %v2701_v46 = vmul.f32 0.5, %v17103_v54  ;;  %v14495_v6 = vld [vmem:[#allocation37 + $0x1100] ss:$16 sps:$4 sm:$0xff]   ;;  %v14509_v54 = vld [vmem:[#allocation37 + $0x10cc] ss:$16 sps:$4 sm:$0xff]  }
 0x9a3   :  { %7620 = vmatprep.subr.bf16.mxu1 %v14458_v37  ;;  %v3011_v18 = vmul.f32 %v2999_v24, %v2699_v13  ;;  %v14503_v37 = vld [vmem:[#allocation37 + $0x10ec] ss:$16 sps:$4 sm:$0xff]   ;;  %v14543_v24 = vld [vmem:[#allocation37 + $0x1008] ss:$16 sps:$4 sm:$0xff]  }
 0x9a4   :  { %v3013_v41 = vmul.f32 %v3001_v62, %v2701_v46  ;;  %v14554_v62 = vld [vmem:[#allocation37 + $0x13ec] ss:$16 sps:$4 sm:$0xff]   ;;  %v14552_v13 = vld [vmem:[#allocation37 + $0x13e8] ss:$16 sps:$4 sm:$0xff]  }
 0x9a5   :  { %7580 = vmatpush2.bf16.msra.mxu0 %v14453_v21  ;;  %v14506_v21 = vld [vmem:[#allocation37 + $0x12ec] ss:$16 sps:$4 sm:$0xff]  }
 0x9a6   :  { %7621 = vmatpush2.bf16.msra.mxu1 %v14456_v9  ;;  %7581 = vmatprep.subr.bf16.mxu0 %v14461_v28  ;;  %v14501_v9 = vld [vmem:[#allocation37 + $0x10e8] ss:$16 sps:$4 sm:$0xff]   ;;  %v17263_v28 = vpack.c.bf16 %v3011_v18, %v3011_v18  ;;  %v17265_v14 = vpack.c.bf16 %v3013_v41, %v3013_v41  ;;  %v14557_v46 = vld [vmem:[#allocation37 + $0x11cc] ss:$16 sps:$4 sm:$0xff]  }
 0x9a7   :  { %7622 = vmatprep.subr.bf16.mxu1 %v14464_v12  ;;  %v14555_v18 = vld [vmem:[#allocation37 + $0x11c8] ss:$16 sps:$4 sm:$0xff]   ;;  %v14566_v41 = vld [vmem:[#allocation37 + $0x13ac] ss:$16 sps:$4 sm:$0xff]  }
 0x9a9   :  { %7582 = vmatpush2.bf16.msra.mxu0 %v14459_v33 }
 0x9aa   :  { %7623 = vmatpush2.bf16.msra.mxu1 %v14462_v15  ;;  %7583 = vmatprep.subr.bf16.mxu0 %v14467_v26  ;;  %v14507_v15 = vld [vmem:[#allocation37 + $0x10c8] ss:$16 sps:$4 sm:$0xff]  }
 0x9ab   :  { %7624 = vmatprep.subr.bf16.mxu1 %v14470_v38  ;;  %v14510_v38 = vld [vmem:[#allocation37 + $0x12c8] ss:$16 sps:$4 sm:$0xff]  }
 0x9ad   :  { %7584 = vmatpush2.bf16.msra.mxu0 %v14465_v45 }
 0x9ae   :  { %7625 = vmatpush2.bf16.msra.mxu1 %v14468_v16  ;;  %7585 = vmatprep.subr.bf16.mxu0 %v14473_v7 }
 0x9af   :  { %7626 = vmatprep.subr.bf16.mxu1 %v14476_v2  ;;  %v14513_v2 = vld [vmem:[#allocation37 + $0x10a8] ss:$16 sps:$4 sm:$0xff]  }
 0x9b1   :  { %7586 = vmatpush2.bf16.msra.mxu0 %v14471_v27 }
 0x9b2   :  { %7627 = vmatpush2.bf16.msra.mxu1 %v14474_v53  ;;  %7587 = vmatprep.subr.bf16.mxu0 %v14479_v56  ;;  %v14516_v53 = vld [vmem:[#allocation37 + $0x12a8] ss:$16 sps:$4 sm:$0xff]   ;;  %v14521_v56 = vld [vmem:[#allocation37 + $0x108c] ss:$16 sps:$4 sm:$0xff]  }
 0x9b3   :  { %7628 = vmatprep.subr.bf16.mxu1 %v14482_v63  ;;  %v14524_v63 = vld [vmem:[#allocation37 + $0x128c] ss:$16 sps:$4 sm:$0xff]  }
 0x9b5   :  { %7588 = vmatpush2.bf16.msra.mxu0 %v14477_v40  ;;  %v14527_v40 = vld [vmem:[#allocation37 + $0x106c] ss:$16 sps:$4 sm:$0xff]  }
 0x9b6   :  { %7629 = vmatpush2.bf16.msra.mxu1 %v14480_v35  ;;  %7589 = vmatprep.subr.bf16.mxu0 %v14485_v48  ;;  %v14530_v35 = vld [vmem:[#allocation37 + $0x126c] ss:$16 sps:$4 sm:$0xff]   ;;  %v14525_v48 = vld [vmem:[#allocation37 + $0x1068] ss:$16 sps:$4 sm:$0xff]  }
 0x9b7   :  { %7630 = vmatprep.subr.bf16.mxu1 %v14488_v31  ;;  %v14536_v31 = vld [vmem:[#allocation37 + $0x124c] ss:$16 sps:$4 sm:$0xff]  }
 0x9b9   :  { %7590 = vmatpush2.bf16.msra.mxu0 %v14483_v42  ;;  %v14534_v42 = vld [vmem:[#allocation37 + $0x1248] ss:$16 sps:$4 sm:$0xff]  }
 0x9ba   :  { %7631 = vmatpush2.bf16.msra.mxu1 %v14486_v52  ;;  %7591 = vmatprep.subr.bf16.mxu0 %v14491_v59  ;;  %v14539_v52 = vld [vmem:[#allocation37 + $0x102c] ss:$16 sps:$4 sm:$0xff]  }
 0x9bb   :  { %7632 = vmatprep.subr.bf16.mxu1 %v14494_v36  ;;  %v14542_v59 = vld [vmem:[#allocation37 + $0x122c] ss:$16 sps:$4 sm:$0xff]   ;;  %v14540_v36 = vld [vmem:[#allocation37 + $0x1228] ss:$16 sps:$4 sm:$0xff]  }
 0x9bd   :  { %7592 = vmatpush2.bf16.msra.mxu0 %v14489_v44  ;;  %v14548_v44 = vld [vmem:[#allocation37 + $0x120c] ss:$16 sps:$4 sm:$0xff]  }
 0x9be   :  { %7633 = vmatpush2.bf16.msra.mxu1 %v14492_v1  ;;  %7593 = vmatprep.subr.bf16.mxu0 %v14497_v47  ;;  %v14546_v1 = vld [vmem:[#allocation37 + $0x1208] ss:$16 sps:$4 sm:$0xff]   ;;  %v14551_v47 = vld [vmem:[#allocation37 + $0x11ec] ss:$16 sps:$4 sm:$0xff]  }
 0x9bf   :  { %7634 = vmatprep.subr.bf16.mxu1 %v14500_v23  ;;  %v14549_v23 = vld [vmem:[#allocation37 + $0x11e8] ss:$16 sps:$4 sm:$0xff]  }
 0x9c1   :  { %7594 = vmatpush2.bf16.msra.mxu0 %v14495_v6  ;;  %v14560_v6 = vld [vmem:[#allocation37 + $0x13cc] ss:$16 sps:$4 sm:$0xff]  }
 0x9c2   :  { %7635 = vmatpush2.bf16.msra.mxu1 %v14498_v50  ;;  %7645 = vmatprep.subr.bf16.mxu0 %v14503_v37  ;;  %v14558_v50 = vld [vmem:[#allocation37 + $0x13c8] ss:$16 sps:$4 sm:$0xff]   ;;  %v14563_v37 = vld [vmem:[#allocation37 + $0x11ac] ss:$16 sps:$4 sm:$0xff]  }
 0x9c3   :  { %7686 = vmatprep.subr.bf16.mxu1 %v14506_v21  ;;  %v14561_v21 = vld [vmem:[#allocation37 + $0x11a8] ss:$16 sps:$4 sm:$0xff]  }
 0x9c4   :  { %v5793_v12 = vpop.f32.mrf.mxu0  ;;  %7596 = vmatmul.mubr.bf16.vlgmr.msra.gmra.mxu0 %v17263_v28 }
 0x9c5   :  { %v5834_v33 = vpop.f32.mrf.mxu1  ;;  %7637 = vmatmul.mubr.bf16.vlgmr.msra.gmra.mxu1 %v17265_v14  ;;  %7646 = vmatpush1.bf16.msra.mxu0 %v14501_v9  ;;  %v14564_v9 = vld [vmem:[#allocation37 + $0x13a8] ss:$16 sps:$4 sm:$0xff]  }
 0x9c6   :  { %v5835_v26 = vadd.f32 %v5834_v33, %v5793_v12  ;;  %7677 = vmatprep.mubr.bf16.mxu0 %v17227_v60  ;;  %7687 = vmatpush1.bf16.msra.mxu1 %v14504_v22  ;;  %v5795_v29 = vpop.f32.mrf.mxu0  ;;  %v14569_v22 = vld [vmem:[#allocation37 + $0x118c] ss:$16 sps:$4 sm:$0xff]   ;;  %v14567_v12 = vld [vmem:[#allocation37 + $0x1188] ss:$16 sps:$4 sm:$0xff]  }
 0x9c7   :  { %7718 = vmatprep.mubr.bf16.mxu1 %v17233_v19  ;;  %v5836_v45 = vpop.f32.mrf.mxu1  ;;  %7647 = vmatprep.subr.bf16.mxu0 %v14509_v54  ;;  %v14572_v54 = vld [vmem:[#allocation37 + $0x138c] ss:$16 sps:$4 sm:$0xff]  }
 0x9c8   :  { %v17272_v16 = vadd.f32 %v5835_v26, %v17186_v51  ;;  %v5837_v7 = vadd.f32 %v5836_v45, %v5795_v29  ;;  %v5797_v30 = vpop.f32.mrf.mxu0  ;;  %7688 = vmatprep.subr.bf16.mxu1 %v14512_v8  ;;  %v14519_v51 = vld [vmem:[#allocation37 + $0x1088] ss:$16 sps:$4 sm:$0xff]   ;;  %v14575_v33 = vld [vmem:[#allocation37 + $0x116c] ss:$16 sps:$4 sm:$0xff]  }
 0x9c9   :  { %v5838_v43 = vpop.f32.mrf.mxu1  ;;  %7648 = vmatpush1.bf16.msra.mxu0 %v14507_v15  ;;  %v14570_v8 = vld [vmem:[#allocation37 + $0x1388] ss:$16 sps:$4 sm:$0xff]   ;;  %v14578_v15 = vld [vmem:[#allocation37 + $0x136c] ss:$16 sps:$4 sm:$0xff]  }
 0x9ca   :  { %v17275_v3 = vadd.f32 %v5837_v7, %v17192_v25  ;;  %7689 = vmatpush1.bf16.msra.mxu1 %v14510_v38  ;;  %v5798_v27 = vpop.f32.mrf.mxu0  ;;  %7649 = vmatprep.subr.bf16.mxu0 %v14515_v39  ;;  %v14528_v25 = vld [vmem:[#allocation37 + $0x1268] ss:$16 sps:$4 sm:$0xff]   ;;  %v14581_v38 = vld [vmem:[#allocation37 + $0x114c] ss:$16 sps:$4 sm:$0xff]  }
 0x9cb   :  { %v5839_v4 = vpop.f32.mrf.mxu1  ;;  %7690 = vmatprep.subr.bf16.mxu1 %v14518_v17  ;;  %v14573_v26 = vld [vmem:[#allocation37 + $0x1168] ss:$16 sps:$4 sm:$0xff]   ;;  %v14584_v39 = vld [vmem:[#allocation37 + $0x134c] ss:$16 sps:$4 sm:$0xff]  }
 0x9cc   :  { %v14576_v29 = vld [vmem:[#allocation37 + $0x1368] ss:$16 sps:$4 sm:$0xff]   ;;  %v14587_v7 = vld [vmem:[#allocation37 + $0x112c] ss:$16 sps:$4 sm:$0xff]  }
 0x9cd   :  { %7650 = vmatpush1.bf16.msra.mxu0 %v14513_v2  ;;  %v14579_v45 = vld [vmem:[#allocation37 + $0x1148] ss:$16 sps:$4 sm:$0xff]   ;;  %v14590_v30 = vld [vmem:[#allocation37 + $0x132c] ss:$16 sps:$4 sm:$0xff]  }
 0x9ce   :  { %7691 = vmatpush1.bf16.msra.mxu1 %v14516_v53  ;;  %7651 = vmatprep.subr.bf16.mxu0 %v14521_v56  ;;  %v14582_v17 = vld [vmem:[#allocation37 + $0x1348] ss:$16 sps:$4 sm:$0xff]   ;;  %v14593_v27 = vld [vmem:[#allocation37 + $0x110c] ss:$16 sps:$4 sm:$0xff]  }
 0x9cf   :  { %7692 = vmatprep.subr.bf16.mxu1 %v14524_v63  ;;  %v14585_v43 = vld [vmem:[#allocation37 + $0x1128] ss:$16 sps:$4 sm:$0xff]   ;;  %v14596_v53 = vld [vmem:[#allocation37 + $0x130c] ss:$16 sps:$4 sm:$0xff]   ;;  %v14599_v63 = vld [vmem:[#allocation37 + $0x14e4] ss:$16 sps:$4 sm:$0xff]  }
 0x9d0   :  { %v14588_v2 = vld [vmem:[#allocation37 + $0x1328] ss:$16 sps:$4 sm:$0xff]  }
 0x9d1   :  { %7652 = vmatpush1.bf16.msra.mxu0 %v14519_v51  ;;  %v14591_v56 = vld [vmem:[#allocation37 + $0x1108] ss:$16 sps:$4 sm:$0xff]   ;;  %v14602_v51 = vld [vmem:[#allocation37 + $0x16e4] ss:$16 sps:$4 sm:$0xff]  }
 0x9d2   :  { %7693 = vmatpush1.bf16.msra.mxu1 %v14522_v34  ;;  %7653 = vmatprep.subr.bf16.mxu0 %v14527_v40  ;;  %v14594_v4 = vld [vmem:[#allocation37 + $0x1308] ss:$16 sps:$4 sm:$0xff]   ;;  %v14597_v34 = vld [vmem:[#allocation37 + $0x14e0] ss:$16 sps:$4 sm:$0xff]  }
 0x9d3   :  { %7694 = vmatprep.subr.bf16.mxu1 %v14530_v35  ;;  %v14600_v40 = vld [vmem:[#allocation37 + $0x16e0] ss:$16 sps:$4 sm:$0xff]   ;;  %v14605_v35 = vld [vmem:[#allocation37 + $0x14c4] ss:$16 sps:$4 sm:$0xff]  }
 0x9d5   :  { %7654 = vmatpush1.bf16.msra.mxu0 %v14525_v48 }
 0x9d6   :  { %7695 = vmatpush1.bf16.msra.mxu1 %v14528_v25  ;;  %7655 = vmatprep.subr.bf16.mxu0 %v14533_v58  ;;  %v7865_v25 = vrot.slane %v17227_v60, 1  ;;  %v14608_v58 = vld [vmem:[#allocation37 + $0x16c4] ss:$16 sps:$4 sm:$0xff]  }
 0x9d7   :  { %7696 = vmatprep.subr.bf16.mxu1 %v14536_v31 }
 0x9d9   :  { %7656 = vmatpush1.bf16.msra.mxu0 %v14531_v10  ;;  %v7867_v10 = vrot.slane %v17233_v19, 1 }
 0x9da   :  { %7697 = vmatpush1.bf16.msra.mxu1 %v14534_v42  ;;  %7657 = vmatprep.subr.bf16.mxu0 %v14539_v52  ;;  %v14603_v42 = vld [vmem:[#allocation37 + $0x14c0] ss:$16 sps:$4 sm:$0xff]  }
 0x9db   :  { %7698 = vmatprep.subr.bf16.mxu1 %v14542_v59 }
 0x9dd   :  { %7658 = vmatpush1.bf16.msra.mxu0 %v14537_v5  ;;  %v14606_v5 = vld [vmem:[#allocation37 + $0x16c0] ss:$16 sps:$4 sm:$0xff]  }
 0x9de   :  { %7699 = vmatpush1.bf16.msra.mxu1 %v14540_v36  ;;  %7659 = vmatprep.subr.bf16.mxu0 %v14545_v11  ;;  %v14611_v36 = vld [vmem:[#allocation37 + $0x14a4] ss:$16 sps:$4 sm:$0xff]  }
 0x9df   :  { %7700 = vmatprep.subr.bf16.mxu1 %v14548_v44  ;;  %v14614_v44 = vld [vmem:[#allocation37 + $0x16a4] ss:$16 sps:$4 sm:$0xff]  }
 0x9e1   :  { %7660 = vmatpush1.bf16.msra.mxu0 %v14543_v24 }
 0x9e2   :  { %7701 = vmatpush1.bf16.msra.mxu1 %v14546_v1  ;;  %7661 = vmatprep.subr.bf16.mxu0 %v14551_v47 }
 0x9e3   :  { %7702 = vmatprep.subr.bf16.mxu1 %v14554_v62 }
 0x9e5   :  { %7662 = vmatpush2.bf16.msra.mxu0 %v14549_v23  ;;  %v14609_v23 = vld [vmem:[#allocation37 + $0x14a0] ss:$16 sps:$4 sm:$0xff]  }
 0x9e6   :  { %7703 = vmatpush2.bf16.msra.mxu1 %v14552_v13  ;;  %7663 = vmatprep.subr.bf16.mxu0 %v14557_v46 }
 0x9e7   :  { %7704 = vmatprep.subr.bf16.mxu1 %v14560_v6  ;;  %v14612_v6 = vld [vmem:[#allocation37 + $0x16a0] ss:$16 sps:$4 sm:$0xff]  }
 0x9e9   :  { %7664 = vmatpush2.bf16.msra.mxu0 %v14555_v18  ;;  %v14617_v18 = vld [vmem:[#allocation37 + $0x1484] ss:$16 sps:$4 sm:$0xff]  }
 0x9ea   :  { %7705 = vmatpush2.bf16.msra.mxu1 %v14558_v50  ;;  %7665 = vmatprep.subr.bf16.mxu0 %v14563_v37  ;;  %v14620_v37 = vld [vmem:[#allocation37 + $0x1684] ss:$16 sps:$4 sm:$0xff]  }
 0x9eb   :  { %7706 = vmatprep.subr.bf16.mxu1 %v14566_v41  ;;  %v14618_v41 = vld [vmem:[#allocation37 + $0x1680] ss:$16 sps:$4 sm:$0xff]  }
 0x9ed   :  { %7666 = vmatpush2.bf16.msra.mxu0 %v14561_v21  ;;  %v14623_v21 = vld [vmem:[#allocation37 + $0x1464] ss:$16 sps:$4 sm:$0xff]  }
 0x9ee   :  { %7707 = vmatpush2.bf16.msra.mxu1 %v14564_v9  ;;  %7667 = vmatprep.subr.bf16.mxu0 %v14569_v22  ;;  %v14626_v9 = vld [vmem:[#allocation37 + $0x1664] ss:$16 sps:$4 sm:$0xff]   ;;  %v14621_v22 = vld [vmem:[#allocation37 + $0x1460] ss:$16 sps:$4 sm:$0xff]  }
 0x9ef   :  { %7708 = vmatprep.subr.bf16.mxu1 %v14572_v54  ;;  %v14629_v54 = vld [vmem:[#allocation37 + $0x1444] ss:$16 sps:$4 sm:$0xff]  }
 0x9f1   :  { %7668 = vmatpush2.bf16.msra.mxu0 %v14567_v12  ;;  %v14632_v12 = vld [vmem:[#allocation37 + $0x1644] ss:$16 sps:$4 sm:$0xff]  }
 0x9f2   :  { %7709 = vmatpush2.bf16.msra.mxu1 %v14570_v8  ;;  %7669 = vmatprep.subr.bf16.mxu0 %v14575_v33  ;;  %v14627_v8 = vld [vmem:[#allocation37 + $0x1440] ss:$16 sps:$4 sm:$0xff]  }
 0x9f3   :  { %7710 = vmatprep.subr.bf16.mxu1 %v14578_v15  ;;  %v14630_v33 = vld [vmem:[#allocation37 + $0x1640] ss:$16 sps:$4 sm:$0xff]   ;;  %v14635_v15 = vld [vmem:[#allocation37 + $0x1424] ss:$16 sps:$4 sm:$0xff]  }
 0x9f5   :  { %7670 = vmatpush2.bf16.msra.mxu0 %v14573_v26  ;;  %v14638_v26 = vld [vmem:[#allocation37 + $0x1624] ss:$16 sps:$4 sm:$0xff]  }
 0x9f6   :  { %7711 = vmatpush2.bf16.msra.mxu1 %v14576_v29  ;;  %7671 = vmatprep.subr.bf16.mxu0 %v14581_v38  ;;  %v14633_v29 = vld [vmem:[#allocation37 + $0x1420] ss:$16 sps:$4 sm:$0xff]  }
 0x9f7   :  { %7712 = vmatprep.subr.bf16.mxu1 %v14584_v39  ;;  %v14636_v38 = vld [vmem:[#allocation37 + $0x1620] ss:$16 sps:$4 sm:$0xff]   ;;  %v14641_v39 = vld [vmem:[#allocation37 + $0x1404] ss:$16 sps:$4 sm:$0xff]  }
 0x9f9   :  { %7672 = vmatpush2.bf16.msra.mxu0 %v14579_v45  ;;  %v14644_v45 = vld [vmem:[#allocation37 + $0x1604] ss:$16 sps:$4 sm:$0xff]  }
 0x9fa   :  { %7713 = vmatpush2.bf16.msra.mxu1 %v14582_v17  ;;  %7673 = vmatprep.subr.bf16.mxu0 %v14587_v7  ;;  %v14639_v17 = vld [vmem:[#allocation37 + $0x1400] ss:$16 sps:$4 sm:$0xff]  }
 0x9fb   :  { %7714 = vmatprep.subr.bf16.mxu1 %v14590_v30  ;;  %v14642_v7 = vld [vmem:[#allocation37 + $0x1600] ss:$16 sps:$4 sm:$0xff]   ;;  %v14647_v30 = vld [vmem:[#allocation37 + $0x15e4] ss:$16 sps:$4 sm:$0xff]  }
 0x9fd   :  { %7674 = vmatpush2.bf16.msra.mxu0 %v14585_v43  ;;  %v14650_v43 = vld [vmem:[#allocation37 + $0x17e4] ss:$16 sps:$4 sm:$0xff]  }
 0x9fe   :  { %7715 = vmatpush2.bf16.msra.mxu1 %v14588_v2  ;;  %7675 = vmatprep.subr.bf16.mxu0 %v14593_v27  ;;  %v14645_v2 = vld [vmem:[#allocation37 + $0x15e0] ss:$16 sps:$4 sm:$0xff]  }
 0x9ff   :  { %7716 = vmatprep.subr.bf16.mxu1 %v14596_v53  ;;  %v14648_v27 = vld [vmem:[#allocation37 + $0x17e0] ss:$16 sps:$4 sm:$0xff]   ;;  %v14653_v53 = vld [vmem:[#allocation37 + $0x15c4] ss:$16 sps:$4 sm:$0xff]  }
 0xa01   :  { %7676 = vmatpush2.bf16.msra.mxu0 %v14591_v56  ;;  %v14656_v56 = vld [vmem:[#allocation37 + $0x17c4] ss:$16 sps:$4 sm:$0xff]  }
 0xa02   :  { %7717 = vmatpush2.bf16.msra.mxu1 %v14594_v4  ;;  %8512 = vmatprep.subr.bf16.mxu0 %v14599_v63  ;;  %v14651_v4 = vld [vmem:[#allocation37 + $0x15c0] ss:$16 sps:$4 sm:$0xff]  }
 0xa03   :  { %8553 = vmatprep.subr.bf16.mxu1 %v14602_v51  ;;  %v14654_v63 = vld [vmem:[#allocation37 + $0x17c0] ss:$16 sps:$4 sm:$0xff]   ;;  %v14659_v51 = vld [vmem:[#allocation37 + $0x15a4] ss:$16 sps:$4 sm:$0xff]  }
 0xa04   :  { %v6656_v48 = vpop.f32.mrf.mxu0  ;;  %7678 = vmatmul.mubr.bf16.vlgmr.msra.gmra.mxu0 %v17263_v28 }
 0xa05   :  { %v6697_v31 = vpop.f32.mrf.mxu1  ;;  %7719 = vmatmul.mubr.bf16.vlgmr.msra.gmra.mxu1 %v17265_v14  ;;  %8513 = vmatpush1.bf16.msra.mxu0 %v14597_v34  ;;  %v14662_v34 = vld [vmem:[#allocation37 + $0x17a4] ss:$16 sps:$4 sm:$0xff]  }
 0xa06   :  { %v6698_v52 = vadd.f32 %v6697_v31, %v6656_v48  ;;  %8544 = vmatprep.mubr.bf16.mxu0 %v7865_v25  ;;  %8554 = vmatpush1.bf16.msra.mxu1 %v14600_v40  ;;  %v6658_v59 = vpop.f32.mrf.mxu0  ;;  %v14657_v40 = vld [vmem:[#allocation37 + $0x15a0] ss:$16 sps:$4 sm:$0xff]   ;;  %v14665_v48 = vld [vmem:[#allocation37 + $0x1584] ss:$16 sps:$4 sm:$0xff]  }
 0xa07   :  { %8585 = vmatprep.mubr.bf16.mxu1 %v7867_v10  ;;  %v6699_v11 = vpop.f32.mrf.mxu1  ;;  %8514 = vmatprep.subr.bf16.mxu0 %v14605_v35  ;;  %v14660_v35 = vld [vmem:[#allocation37 + $0x17a0] ss:$16 sps:$4 sm:$0xff]  }
 0xa08   :  { %v17286_v24 = vadd.f32 %v6698_v52, %v17242_v32  ;;  %v6700_v1 = vadd.f32 %v6699_v11, %v6658_v59  ;;  %v6660_v47 = vpop.f32.mrf.mxu0  ;;  %8555 = vmatprep.subr.bf16.mxu1 %v14608_v58  ;;  %v14615_v32 = vld [vmem:[#allocation37 + $0x1480] ss:$16 sps:$4 sm:$0xff]   ;;  %v14668_v58 = vld [vmem:[#allocation37 + $0x1784] ss:$16 sps:$4 sm:$0xff]  }
 0xa09   :  { %v6701_v62 = vpop.f32.mrf.mxu1  ;;  %8515 = vmatpush1.bf16.msra.mxu0 %v14603_v42  ;;  %v14663_v31 = vld [vmem:[#allocation37 + $0x1580] ss:$16 sps:$4 sm:$0xff]   ;;  %v14671_v52 = vld [vmem:[#allocation37 + $0x1564] ss:$16 sps:$4 sm:$0xff]  }
 0xa0a   :  { %v17289_v13 = vadd.f32 %v6700_v1, %v17245_v61  ;;  %8556 = vmatpush1.bf16.msra.mxu1 %v14606_v5  ;;  %v6661_v46 = vpop.f32.mrf.mxu0  ;;  %8516 = vmatprep.subr.bf16.mxu0 %v14611_v36  ;;  %v14624_v61 = vld [vmem:[#allocation37 + $0x1660] ss:$16 sps:$4 sm:$0xff]   ;;  %v14674_v59 = vld [vmem:[#allocation37 + $0x1764] ss:$16 sps:$4 sm:$0xff]  }
 0xa0b   :  { %v6702_v50 = vpop.f32.mrf.mxu1  ;;  %8557 = vmatprep.subr.bf16.mxu1 %v14614_v44  ;;  %v14666_v42 = vld [vmem:[#allocation37 + $0x1780] ss:$16 sps:$4 sm:$0xff]   ;;  %v14677_v11 = vld [vmem:[#allocation37 + $0x1544] ss:$16 sps:$4 sm:$0xff]  }
 0xa0c   :  { %v14669_v5 = vld [vmem:[#allocation37 + $0x1560] ss:$16 sps:$4 sm:$0xff]   ;;  %v14680_v44 = vld [vmem:[#allocation37 + $0x1744] ss:$16 sps:$4 sm:$0xff]  }
 0xa0d   :  { %8517 = vmatpush1.bf16.msra.mxu0 %v14609_v23  ;;  %v14672_v36 = vld [vmem:[#allocation37 + $0x1760] ss:$16 sps:$4 sm:$0xff]   ;;  %v14683_v62 = vld [vmem:[#allocation37 + $0x1524] ss:$16 sps:$4 sm:$0xff]  }
 0xa0e   :  { %8558 = vmatpush1.bf16.msra.mxu1 %v14612_v6  ;;  %8518 = vmatprep.subr.bf16.mxu0 %v14617_v18  ;;  %v14675_v1 = vld [vmem:[#allocation37 + $0x1540] ss:$16 sps:$4 sm:$0xff]   ;;  %v14686_v23 = vld [vmem:[#allocation37 + $0x1724] ss:$16 sps:$4 sm:$0xff]  }
 0xa0f   :  { %8559 = vmatprep.subr.bf16.mxu1 %v14620_v37  ;;  %v14678_v47 = vld [vmem:[#allocation37 + $0x1740] ss:$16 sps:$4 sm:$0xff]   ;;  %v14689_v18 = vld [vmem:[#allocation37 + $0x1504] ss:$16 sps:$4 sm:$0xff]  }
 0xa10   :  { %v14681_v46 = vld [vmem:[#allocation37 + $0x1520] ss:$16 sps:$4 sm:$0xff]   ;;  %v14692_v50 = vld [vmem:[#allocation37 + $0x1704] ss:$16 sps:$4 sm:$0xff]  }
 0xa11   :  { %8519 = vmatpush1.bf16.msra.mxu0 %v14615_v32  ;;  %v14684_v6 = vld [vmem:[#allocation37 + $0x1720] ss:$16 sps:$4 sm:$0xff]  }
 0xa12   :  { %8560 = vmatpush1.bf16.msra.mxu1 %v14618_v41  ;;  %8520 = vmatprep.subr.bf16.mxu0 %v14623_v21  ;;  %v14687_v37 = vld [vmem:[#allocation37 + $0x1500] ss:$16 sps:$4 sm:$0xff]   ;;  %v14695_v41 = vld [vmem:[#allocation37 + $0x14ec] ss:$16 sps:$4 sm:$0xff]  }
 0xa13   :  { %8561 = vmatprep.subr.bf16.mxu1 %v14626_v9  ;;  %v14690_v32 = vld [vmem:[#allocation37 + $0x1700] ss:$16 sps:$4 sm:$0xff]   ;;  %v14698_v21 = vld [vmem:[#allocation37 + $0x16ec] ss:$16 sps:$4 sm:$0xff]   ;;  %v14693_v9 = vld [vmem:[#allocation37 + $0x14e8] ss:$16 sps:$4 sm:$0xff]  }
 0xa15   :  { %8521 = vmatpush1.bf16.msra.mxu0 %v14621_v22  ;;  %v7864_v22 = vrot.slane %v17263_v28, 1 }
 0xa16   :  { %8562 = vmatpush1.bf16.msra.mxu1 %v14624_v61  ;;  %8522 = vmatprep.subr.bf16.mxu0 %v14629_v54  ;;  %v14696_v61 = vld [vmem:[#allocation37 + $0x16e8] ss:$16 sps:$4 sm:$0xff]   ;;  %v7866_v54 = vrot.slane %v17265_v14, 1 }
 0xa17   :  { %8563 = vmatprep.subr.bf16.mxu1 %v14632_v12  ;;  %v14701_v12 = vld [vmem:[#allocation37 + $0x14cc] ss:$16 sps:$4 sm:$0xff]  }
 0xa19   :  { %8523 = vmatpush1.bf16.msra.mxu0 %v14627_v8 }
 0xa1a   :  { %8564 = vmatpush1.bf16.msra.mxu1 %v14630_v33  ;;  %8524 = vmatprep.subr.bf16.mxu0 %v14635_v15  ;;  %v14704_v33 = vld [vmem:[#allocation37 + $0x16cc] ss:$16 sps:$4 sm:$0xff]  }
 0xa1b   :  { %8565 = vmatprep.subr.bf16.mxu1 %v14638_v26  ;;  %v14699_v26 = vld [vmem:[#allocation37 + $0x14c8] ss:$16 sps:$4 sm:$0xff]  }
 0xa1d   :  { %8525 = vmatpush1.bf16.msra.mxu0 %v14633_v29 }
 0xa1e   :  { %8566 = vmatpush1.bf16.msra.mxu1 %v14636_v38  ;;  %8526 = vmatprep.subr.bf16.mxu0 %v14641_v39  ;;  %v14702_v39 = vld [vmem:[#allocation37 + $0x16c8] ss:$16 sps:$4 sm:$0xff]  }
 0xa1f   :  { %8567 = vmatprep.subr.bf16.mxu1 %v14644_v45  ;;  %v14707_v45 = vld [vmem:[#allocation37 + $0x14ac] ss:$16 sps:$4 sm:$0xff]  }
 0xa21   :  { %8527 = vmatpush1.bf16.msra.mxu0 %v14639_v17 }
 0xa22   :  { %8568 = vmatpush1.bf16.msra.mxu1 %v14642_v7  ;;  %8528 = vmatprep.subr.bf16.mxu0 %v14647_v30  ;;  %v14710_v7 = vld [vmem:[#allocation37 + $0x16ac] ss:$16 sps:$4 sm:$0xff]  }
 0xa23   :  { %8569 = vmatprep.subr.bf16.mxu1 %v14650_v43 }
 0xa25   :  { %8529 = vmatpush2.bf16.msra.mxu0 %v14645_v2 }
 0xa26   :  { %8570 = vmatpush2.bf16.msra.mxu1 %v14648_v27  ;;  %8530 = vmatprep.subr.bf16.mxu0 %v14653_v53  ;;  %v14705_v53 = vld [vmem:[#allocation37 + $0x14a8] ss:$16 sps:$4 sm:$0xff]  }
 0xa27   :  { %8571 = vmatprep.subr.bf16.mxu1 %v14656_v56 }
 0xa29   :  { %8531 = vmatpush2.bf16.msra.mxu0 %v14651_v4  ;;  %v14708_v4 = vld [vmem:[#allocation37 + $0x16a8] ss:$16 sps:$4 sm:$0xff]  }
 0xa2a   :  { %8572 = vmatpush2.bf16.msra.mxu1 %v14654_v63  ;;  %8532 = vmatprep.subr.bf16.mxu0 %v14659_v51  ;;  %v14716_v51 = vld [vmem:[#allocation37 + $0x168c] ss:$16 sps:$4 sm:$0xff]  }
 0xa2b   :  { %8573 = vmatprep.subr.bf16.mxu1 %v14662_v34  ;;  %v14714_v34 = vld [vmem:[#allocation37 + $0x1688] ss:$16 sps:$4 sm:$0xff]  }
 0xa2d   :  { %8533 = vmatpush2.bf16.msra.mxu0 %v14657_v40  ;;  %v14719_v40 = vld [vmem:[#allocation37 + $0x146c] ss:$16 sps:$4 sm:$0xff]  }
 0xa2e   :  { %8574 = vmatpush2.bf16.msra.mxu1 %v14660_v35  ;;  %8534 = vmatprep.subr.bf16.mxu0 %v14665_v48  ;;  %v14722_v35 = vld [vmem:[#allocation37 + $0x166c] ss:$16 sps:$4 sm:$0xff]   ;;  %v14717_v48 = vld [vmem:[#allocation37 + $0x1468] ss:$16 sps:$4 sm:$0xff]  }
 0xa2f   :  { %8575 = vmatprep.subr.bf16.mxu1 %v14668_v58  ;;  %v14725_v58 = vld [vmem:[#allocation37 + $0x144c] ss:$16 sps:$4 sm:$0xff]  }
 0xa31   :  { %8535 = vmatpush2.bf16.msra.mxu0 %v14663_v31  ;;  %v14728_v31 = vld [vmem:[#allocation37 + $0x164c] ss:$16 sps:$4 sm:$0xff]  }
 0xa32   :  { %8576 = vmatpush2.bf16.msra.mxu1 %v14666_v42  ;;  %8536 = vmatprep.subr.bf16.mxu0 %v14671_v52  ;;  %v14723_v42 = vld [vmem:[#allocation37 + $0x1448] ss:$16 sps:$4 sm:$0xff]  }
 0xa33   :  { %8577 = vmatprep.subr.bf16.mxu1 %v14674_v59  ;;  %v14726_v52 = vld [vmem:[#allocation37 + $0x1648] ss:$16 sps:$4 sm:$0xff]   ;;  %v14731_v59 = vld [vmem:[#allocation37 + $0x142c] ss:$16 sps:$4 sm:$0xff]  }
 0xa35   :  { %8537 = vmatpush2.bf16.msra.mxu0 %v14669_v5  ;;  %v14734_v5 = vld [vmem:[#allocation37 + $0x162c] ss:$16 sps:$4 sm:$0xff]  }
 0xa36   :  { %8578 = vmatpush2.bf16.msra.mxu1 %v14672_v36  ;;  %8538 = vmatprep.subr.bf16.mxu0 %v14677_v11  ;;  %v14729_v36 = vld [vmem:[#allocation37 + $0x1428] ss:$16 sps:$4 sm:$0xff]  }
 0xa37   :  { %8579 = vmatprep.subr.bf16.mxu1 %v14680_v44  ;;  %v14732_v11 = vld [vmem:[#allocation37 + $0x1628] ss:$16 sps:$4 sm:$0xff]   ;;  %v14737_v44 = vld [vmem:[#allocation37 + $0x140c] ss:$16 sps:$4 sm:$0xff]  }
 0xa39   :  { %8539 = vmatpush2.bf16.msra.mxu0 %v14675_v1  ;;  %v14740_v1 = vld [vmem:[#allocation37 + $0x160c] ss:$16 sps:$4 sm:$0xff]  }
 0xa3a   :  { %8580 = vmatpush2.bf16.msra.mxu1 %v14678_v47  ;;  %8540 = vmatprep.subr.bf16.mxu0 %v14683_v62  ;;  %v14735_v47 = vld [vmem:[#allocation37 + $0x1408] ss:$16 sps:$4 sm:$0xff]  }
 0xa3b   :  { %8581 = vmatprep.subr.bf16.mxu1 %v14686_v23  ;;  %v14738_v62 = vld [vmem:[#allocation37 + $0x1608] ss:$16 sps:$4 sm:$0xff]   ;;  %v14743_v23 = vld [vmem:[#allocation37 + $0x15ec] ss:$16 sps:$4 sm:$0xff]  }
 0xa3d   :  { %8541 = vmatpush2.bf16.msra.mxu0 %v14681_v46  ;;  %v14746_v46 = vld [vmem:[#allocation37 + $0x17ec] ss:$16 sps:$4 sm:$0xff]  }
 0xa3e   :  { %8582 = vmatpush2.bf16.msra.mxu1 %v14684_v6  ;;  %8542 = vmatprep.subr.bf16.mxu0 %v14689_v18  ;;  %v14741_v6 = vld [vmem:[#allocation37 + $0x15e8] ss:$16 sps:$4 sm:$0xff]  }
 0xa3f   :  { %8583 = vmatprep.subr.bf16.mxu1 %v14692_v50  ;;  %v14744_v18 = vld [vmem:[#allocation37 + $0x17e8] ss:$16 sps:$4 sm:$0xff]   ;;  %v14749_v50 = vld [vmem:[#allocation37 + $0x15cc] ss:$16 sps:$4 sm:$0xff]  }
 0xa41   :  { %8543 = vmatpush2.bf16.msra.mxu0 %v14687_v37  ;;  %v14752_v37 = vld [vmem:[#allocation37 + $0x17cc] ss:$16 sps:$4 sm:$0xff]  }
 0xa42   :  { %8584 = vmatpush2.bf16.msra.mxu1 %v14690_v32  ;;  %8594 = vmatprep.subr.bf16.mxu0 %v14695_v41  ;;  %v14747_v32 = vld [vmem:[#allocation37 + $0x15c8] ss:$16 sps:$4 sm:$0xff]  }
 0xa43   :  { %8635 = vmatprep.subr.bf16.mxu1 %v14698_v21  ;;  %v14750_v41 = vld [vmem:[#allocation37 + $0x17c8] ss:$16 sps:$4 sm:$0xff]   ;;  %v14755_v21 = vld [vmem:[#allocation37 + $0x15ac] ss:$16 sps:$4 sm:$0xff]  }
 0xa44   :  { %v6738_v8 = vpop.f32.mrf.mxu0  ;;  %8545 = vmatmul.mubr.bf16.vlgmr.msra.gmra.mxu0 %v7864_v22 }
 0xa45   :  { %v6779_v15 = vpop.f32.mrf.mxu1  ;;  %8586 = vmatmul.mubr.bf16.vlgmr.msra.gmra.mxu1 %v7866_v54  ;;  %8595 = vmatpush1.bf16.msra.mxu0 %v14693_v9  ;;  %v14758_v9 = vld [vmem:[#allocation37 + $0x17ac] ss:$16 sps:$4 sm:$0xff]  }
 0xa46   :  { %v6780_v29 = vadd.f32 %v6779_v15, %v6738_v8  ;;  %8626 = vmatprep.mubr.bf16.mxu0 %v7865_v25  ;;  %8636 = vmatpush1.bf16.msra.mxu1 %v14696_v61  ;;  %v6740_v38 = vpop.f32.mrf.mxu0  ;;  %v14753_v61 = vld [vmem:[#allocation37 + $0x15a8] ss:$16 sps:$4 sm:$0xff]   ;;  %v14761_v8 = vld [vmem:[#allocation37 + $0x158c] ss:$16 sps:$4 sm:$0xff]  }
 0xa47   :  { %8667 = vmatprep.mubr.bf16.mxu1 %v7867_v10  ;;  %v6781_v17 = vpop.f32.mrf.mxu1  ;;  %8596 = vmatprep.subr.bf16.mxu0 %v14701_v12  ;;  %v14713_v10 = vld [vmem:[#allocation37 + $0x148c] ss:$16 sps:$4 sm:$0xff]   ;;  %v14756_v12 = vld [vmem:[#allocation37 + $0x17a8] ss:$16 sps:$4 sm:$0xff]  }
 0xa48   :  { %v17302_v30 = vadd.f32 %v6780_v29, %v17272_v16  ;;  %v6782_v43 = vadd.f32 %v6781_v17, %v6740_v38  ;;  %v6742_v2 = vpop.f32.mrf.mxu0  ;;  %8637 = vmatprep.subr.bf16.mxu1 %v14704_v33  ;;  %v14711_v16 = vld [vmem:[#allocation37 + $0x1488] ss:$16 sps:$4 sm:$0xff]   ;;  %v14764_v33 = vld [vmem:[#allocation37 + $0x178c] ss:$16 sps:$4 sm:$0xff]  }
 0xa49   :  { %v6783_v27 = vpop.f32.mrf.mxu1  ;;  %8597 = vmatpush1.bf16.msra.mxu0 %v14699_v26  ;;  %v14759_v15 = vld [vmem:[#allocation37 + $0x1588] ss:$16 sps:$4 sm:$0xff]   ;;  %v14767_v29 = vld [vmem:[#allocation37 + $0x156c] ss:$16 sps:$4 sm:$0xff]  }
 0xa4a   :  { %v17305_v25 = vadd.f32 %v6782_v43, %v17275_v3  ;;  %8638 = vmatpush1.bf16.msra.mxu1 %v14702_v39  ;;  %v6743_v56 = vpop.f32.mrf.mxu0  ;;  %8598 = vmatprep.subr.bf16.mxu0 %v14707_v45  ;;  %v14720_v3 = vld [vmem:[#allocation37 + $0x1668] ss:$16 sps:$4 sm:$0xff]   ;;  %v14770_v38 = vld [vmem:[#allocation37 + $0x176c] ss:$16 sps:$4 sm:$0xff]  }
 0xa4b   :  { %v6784_v63 = vpop.f32.mrf.mxu1  ;;  %8639 = vmatprep.subr.bf16.mxu1 %v14710_v7  ;;  %v14762_v26 = vld [vmem:[#allocation37 + $0x1788] ss:$16 sps:$4 sm:$0xff]   ;;  %v14773_v17 = vld [vmem:[#allocation37 + $0x154c] ss:$16 sps:$4 sm:$0xff]  }
 0xa4c   :  { %v14765_v39 = vld [vmem:[#allocation37 + $0x1568] ss:$16 sps:$4 sm:$0xff]   ;;  %v14776_v7 = vld [vmem:[#allocation37 + $0x174c] ss:$16 sps:$4 sm:$0xff]  }
 0xa4d   :  { %8599 = vmatpush1.bf16.msra.mxu0 %v14705_v53  ;;  %v14768_v45 = vld [vmem:[#allocation37 + $0x1768] ss:$16 sps:$4 sm:$0xff]   ;;  %v14779_v27 = vld [vmem:[#allocation37 + $0x152c] ss:$16 sps:$4 sm:$0xff]  }
 0xa4e   :  { %8640 = vmatpush1.bf16.msra.mxu1 %v14708_v4  ;;  %8600 = vmatprep.subr.bf16.mxu0 %v14713_v10  ;;  %v14771_v43 = vld [vmem:[#allocation37 + $0x1548] ss:$16 sps:$4 sm:$0xff]   ;;  %v14782_v53 = vld [vmem:[#allocation37 + $0x172c] ss:$16 sps:$4 sm:$0xff]  }
 0xa4f   :  { %8641 = vmatprep.subr.bf16.mxu1 %v14716_v51  ;;  %v14774_v2 = vld [vmem:[#allocation37 + $0x1748] ss:$16 sps:$4 sm:$0xff]   ;;  %v14785_v10 = vld [vmem:[#allocation37 + $0x150c] ss:$16 sps:$4 sm:$0xff]  }
 0xa50   :  { %v14777_v56 = vld [vmem:[#allocation37 + $0x1528] ss:$16 sps:$4 sm:$0xff]   ;;  %v14788_v63 = vld [vmem:[#allocation37 + $0x170c] ss:$16 sps:$4 sm:$0xff]  }
 0xa51   :  { %8601 = vmatpush1.bf16.msra.mxu0 %v14711_v16  ;;  %v14780_v4 = vld [vmem:[#allocation37 + $0x1728] ss:$16 sps:$4 sm:$0xff]  }
 0xa52   :  { %8642 = vmatpush1.bf16.msra.mxu1 %v14714_v34  ;;  %8602 = vmatprep.subr.bf16.mxu0 %v14719_v40  ;;  %v14783_v51 = vld [vmem:[#allocation37 + $0x1508] ss:$16 sps:$4 sm:$0xff]   ;;  %v14791_v34 = vld [vmem:[#allocation37 + $0x18e4] ss:$16 sps:$4 sm:$0xff]  }
 0xa53   :  { %8643 = vmatprep.subr.bf16.mxu1 %v14722_v35  ;;  %v14786_v16 = vld [vmem:[#allocation37 + $0x1708] ss:$16 sps:$4 sm:$0xff]   ;;  %v14794_v40 = vld [vmem:[#allocation37 + $0x1ae4] ss:$16 sps:$4 sm:$0xff]   ;;  %v14789_v35 = vld [vmem:[#allocation37 + $0x18e0] ss:$16 sps:$4 sm:$0xff]  }
 0xa55   :  { %8603 = vmatpush1.bf16.msra.mxu0 %v14717_v48  ;;  %v14792_v48 = vld [vmem:[#allocation37 + $0x1ae0] ss:$16 sps:$4 sm:$0xff]  }
 0xa56   :  { %8644 = vmatpush1.bf16.msra.mxu1 %v14720_v3  ;;  %8604 = vmatprep.subr.bf16.mxu0 %v14725_v58  ;;  %v14797_v3 = vld [vmem:[#allocation37 + $0x18c4] ss:$16 sps:$4 sm:$0xff]  }
 0xa57   :  { %8645 = vmatprep.subr.bf16.mxu1 %v14728_v31  ;;  %v8810_v31 = vrot.slane %v17227_v60, 2 }
 0xa59   :  { %8605 = vmatpush1.bf16.msra.mxu0 %v14723_v42  ;;  %v14800_v42 = vld [vmem:[#allocation37 + $0x1ac4] ss:$16 sps:$4 sm:$0xff]  }
 0xa5a   :  { %8646 = vmatpush1.bf16.msra.mxu1 %v14726_v52  ;;  %8606 = vmatprep.subr.bf16.mxu0 %v14731_v59  ;;  %v8812_v59 = vrot.slane %v17233_v19, 2 }
 0xa5b   :  { %8647 = vmatprep.subr.bf16.mxu1 %v14734_v5  ;;  %v14795_v5 = vld [vmem:[#allocation37 + $0x18c0] ss:$16 sps:$4 sm:$0xff]  }
 0xa5d   :  { %8607 = vmatpush1.bf16.msra.mxu0 %v14729_v36 }
 0xa5e   :  { %8648 = vmatpush1.bf16.msra.mxu1 %v14732_v11  ;;  %8608 = vmatprep.subr.bf16.mxu0 %v14737_v44  ;;  %v14798_v44 = vld [vmem:[#allocation37 + $0x1ac0] ss:$16 sps:$4 sm:$0xff]  }
 0xa5f   :  { %8649 = vmatprep.subr.bf16.mxu1 %v14740_v1  ;;  %v14803_v1 = vld [vmem:[#allocation37 + $0x18a4] ss:$16 sps:$4 sm:$0xff]  }
 0xa61   :  { %8609 = vmatpush1.bf16.msra.mxu0 %v14735_v47  ;;  %v14806_v47 = vld [vmem:[#allocation37 + $0x1aa4] ss:$16 sps:$4 sm:$0xff]  }
 0xa62   :  { %8650 = vmatpush1.bf16.msra.mxu1 %v14738_v62  ;;  %8610 = vmatprep.subr.bf16.mxu0 %v14743_v23 }
 0xa63   :  { %8651 = vmatprep.subr.bf16.mxu1 %v14746_v46 }
 0xa65   :  { %8611 = vmatpush2.bf16.msra.mxu0 %v14741_v6  ;;  %v14801_v6 = vld [vmem:[#allocation37 + $0x18a0] ss:$16 sps:$4 sm:$0xff]  }
 0xa66   :  { %8652 = vmatpush2.bf16.msra.mxu1 %v14744_v18  ;;  %8612 = vmatprep.subr.bf16.mxu0 %v14749_v50 }
 0xa67   :  { %8653 = vmatprep.subr.bf16.mxu1 %v14752_v37  ;;  %v14804_v37 = vld [vmem:[#allocation37 + $0x1aa0] ss:$16 sps:$4 sm:$0xff]  }
 0xa69   :  { %8613 = vmatpush2.bf16.msra.mxu0 %v14747_v32  ;;  %v14809_v32 = vld [vmem:[#allocation37 + $0x1884] ss:$16 sps:$4 sm:$0xff]  }
 0xa6a   :  { %8654 = vmatpush2.bf16.msra.mxu1 %v14750_v41  ;;  %8614 = vmatprep.subr.bf16.mxu0 %v14755_v21  ;;  %v14812_v21 = vld [vmem:[#allocation37 + $0x1a84] ss:$16 sps:$4 sm:$0xff]  }
 0xa6b   :  { %8655 = vmatprep.subr.bf16.mxu1 %v14758_v9  ;;  %v14810_v9 = vld [vmem:[#allocation37 + $0x1a80] ss:$16 sps:$4 sm:$0xff]  }
 0xa6d   :  { %8615 = vmatpush2.bf16.msra.mxu0 %v14753_v61  ;;  %v14815_v61 = vld [vmem:[#allocation37 + $0x1864] ss:$16 sps:$4 sm:$0xff]  }
 0xa6e   :  { %8656 = vmatpush2.bf16.msra.mxu1 %v14756_v12  ;;  %8616 = vmatprep.subr.bf16.mxu0 %v14761_v8  ;;  %v14818_v12 = vld [vmem:[#allocation37 + $0x1a64] ss:$16 sps:$4 sm:$0xff]   ;;  %v14813_v8 = vld [vmem:[#allocation37 + $0x1860] ss:$16 sps:$4 sm:$0xff]  }
 0xa6f   :  { %8657 = vmatprep.subr.bf16.mxu1 %v14764_v33  ;;  %v14821_v33 = vld [vmem:[#allocation37 + $0x1844] ss:$16 sps:$4 sm:$0xff]  }
 0xa71   :  { %8617 = vmatpush2.bf16.msra.mxu0 %v14759_v15  ;;  %v14824_v15 = vld [vmem:[#allocation37 + $0x1a44] ss:$16 sps:$4 sm:$0xff]  }
 0xa72   :  { %8658 = vmatpush2.bf16.msra.mxu1 %v14762_v26  ;;  %8618 = vmatprep.subr.bf16.mxu0 %v14767_v29  ;;  %v14819_v26 = vld [vmem:[#allocation37 + $0x1840] ss:$16 sps:$4 sm:$0xff]  }
 0xa73   :  { %8659 = vmatprep.subr.bf16.mxu1 %v14770_v38  ;;  %v14822_v29 = vld [vmem:[#allocation37 + $0x1a40] ss:$16 sps:$4 sm:$0xff]   ;;  %v14827_v38 = vld [vmem:[#allocation37 + $0x1824] ss:$16 sps:$4 sm:$0xff]  }
 0xa75   :  { %8619 = vmatpush2.bf16.msra.mxu0 %v14765_v39  ;;  %v14830_v39 = vld [vmem:[#allocation37 + $0x1a24] ss:$16 sps:$4 sm:$0xff]  }
 0xa76   :  { %8660 = vmatpush2.bf16.msra.mxu1 %v14768_v45  ;;  %8620 = vmatprep.subr.bf16.mxu0 %v14773_v17  ;;  %v14825_v45 = vld [vmem:[#allocation37 + $0x1820] ss:$16 sps:$4 sm:$0xff]  }
 0xa77   :  { %8661 = vmatprep.subr.bf16.mxu1 %v14776_v7  ;;  %v14828_v17 = vld [vmem:[#allocation37 + $0x1a20] ss:$16 sps:$4 sm:$0xff]   ;;  %v14833_v7 = vld [vmem:[#allocation37 + $0x1804] ss:$16 sps:$4 sm:$0xff]  }
 0xa79   :  { %8621 = vmatpush2.bf16.msra.mxu0 %v14771_v43  ;;  %v14836_v43 = vld [vmem:[#allocation37 + $0x1a04] ss:$16 sps:$4 sm:$0xff]  }
 0xa7a   :  { %8662 = vmatpush2.bf16.msra.mxu1 %v14774_v2  ;;  %8622 = vmatprep.subr.bf16.mxu0 %v14779_v27  ;;  %v14831_v2 = vld [vmem:[#allocation37 + $0x1800] ss:$16 sps:$4 sm:$0xff]  }
 0xa7b   :  { %8663 = vmatprep.subr.bf16.mxu1 %v14782_v53  ;;  %v14834_v27 = vld [vmem:[#allocation37 + $0x1a00] ss:$16 sps:$4 sm:$0xff]   ;;  %v14839_v53 = vld [vmem:[#allocation37 + $0x19e4] ss:$16 sps:$4 sm:$0xff]  }
 0xa7d   :  { %8623 = vmatpush2.bf16.msra.mxu0 %v14777_v56  ;;  %v14842_v56 = vld [vmem:[#allocation37 + $0x1be4] ss:$16 sps:$4 sm:$0xff]  }
 0xa7e   :  { %8664 = vmatpush2.bf16.msra.mxu1 %v14780_v4  ;;  %8624 = vmatprep.subr.bf16.mxu0 %v14785_v10  ;;  %v14837_v4 = vld [vmem:[#allocation37 + $0x19e0] ss:$16 sps:$4 sm:$0xff]  }
 0xa7f   :  { %8665 = vmatprep.subr.bf16.mxu1 %v14788_v63  ;;  %v14840_v10 = vld [vmem:[#allocation37 + $0x1be0] ss:$16 sps:$4 sm:$0xff]   ;;  %v14845_v63 = vld [vmem:[#allocation37 + $0x19c4] ss:$16 sps:$4 sm:$0xff]  }
 0xa81   :  { %8625 = vmatpush2.bf16.msra.mxu0 %v14783_v51  ;;  %v14848_v51 = vld [vmem:[#allocation37 + $0x1bc4] ss:$16 sps:$4 sm:$0xff]  }
 0xa82   :  { %8666 = vmatpush2.bf16.msra.mxu1 %v14786_v16  ;;  %9457 = vmatprep.subr.bf16.mxu0 %v14791_v34  ;;  %v14843_v16 = vld [vmem:[#allocation37 + $0x19c0] ss:$16 sps:$4 sm:$0xff]  }
 0xa83   :  { %9498 = vmatprep.subr.bf16.mxu1 %v14794_v40  ;;  %v14846_v34 = vld [vmem:[#allocation37 + $0x1bc0] ss:$16 sps:$4 sm:$0xff]   ;;  %v14851_v40 = vld [vmem:[#allocation37 + $0x19a4] ss:$16 sps:$4 sm:$0xff]  }
 0xa84   :  { %v7597_v58 = vpop.f32.mrf.mxu0  ;;  %8627 = vmatmul.mubr.bf16.vlgmr.msra.gmra.mxu0 %v7864_v22 }
 0xa85   :  { %v7638_v52 = vpop.f32.mrf.mxu1  ;;  %8668 = vmatmul.mubr.bf16.vlgmr.msra.gmra.mxu1 %v7866_v54  ;;  %9458 = vmatpush1.bf16.msra.mxu0 %v14789_v35  ;;  %v14854_v35 = vld [vmem:[#allocation37 + $0x1ba4] ss:$16 sps:$4 sm:$0xff]  }
 0xa86   :  { %v7639_v36 = vadd.f32 %v7638_v52, %v7597_v58  ;;  %9489 = vmatprep.mubr.bf16.mxu0 %v8810_v31  ;;  %9499 = vmatpush1.bf16.msra.mxu1 %v14792_v48  ;;  %v7599_v11 = vpop.f32.mrf.mxu0  ;;  %v14849_v48 = vld [vmem:[#allocation37 + $0x19a0] ss:$16 sps:$4 sm:$0xff]   ;;  %v14857_v58 = vld [vmem:[#allocation37 + $0x1984] ss:$16 sps:$4 sm:$0xff]  }
 0xa87   :  { %9530 = vmatprep.mubr.bf16.mxu1 %v8812_v59  ;;  %v7640_v22 = vpop.f32.mrf.mxu1  ;;  %9459 = vmatprep.subr.bf16.mxu0 %v14797_v3  ;;  %v14852_v3 = vld [vmem:[#allocation37 + $0x1ba0] ss:$16 sps:$4 sm:$0xff]  }
 0xa88   :  { %v17318_v54 = vadd.f32 %v7639_v36, %v17286_v24  ;;  %v7641_v62 = vadd.f32 %v7640_v22, %v7599_v11  ;;  %v7601_v23 = vpop.f32.mrf.mxu0  ;;  %9500 = vmatprep.subr.bf16.mxu1 %v14800_v42  ;;  %v14807_v24 = vld [vmem:[#allocation37 + $0x1880] ss:$16 sps:$4 sm:$0xff]   ;;  %v14860_v42 = vld [vmem:[#allocation37 + $0x1b84] ss:$16 sps:$4 sm:$0xff]  }
 0xa89   :  { %v7642_v46 = vpop.f32.mrf.mxu1  ;;  %9460 = vmatpush1.bf16.msra.mxu0 %v14795_v5  ;;  %v14855_v52 = vld [vmem:[#allocation37 + $0x1980] ss:$16 sps:$4 sm:$0xff]   ;;  %v14863_v36 = vld [vmem:[#allocation37 + $0x1964] ss:$16 sps:$4 sm:$0xff]  }
 0xa8a   :  { %v17321_v18 = vadd.f32 %v7641_v62, %v17289_v13  ;;  %9501 = vmatpush1.bf16.msra.mxu1 %v14798_v44  ;;  %v7602_v50 = vpop.f32.mrf.mxu0  ;;  %9461 = vmatprep.subr.bf16.mxu0 %v14803_v1  ;;  %v14816_v13 = vld [vmem:[#allocation37 + $0x1a60] ss:$16 sps:$4 sm:$0xff]   ;;  %v14866_v11 = vld [vmem:[#allocation37 + $0x1b64] ss:$16 sps:$4 sm:$0xff]  }
 0xa8b   :  { %v7643_v41 = vpop.f32.mrf.mxu1  ;;  %9502 = vmatprep.subr.bf16.mxu1 %v14806_v47  ;;  %v14858_v5 = vld [vmem:[#allocation37 + $0x1b80] ss:$16 sps:$4 sm:$0xff]   ;;  %v14869_v22 = vld [vmem:[#allocation37 + $0x1944] ss:$16 sps:$4 sm:$0xff]  }
 0xa8c   :  { %v14861_v44 = vld [vmem:[#allocation37 + $0x1960] ss:$16 sps:$4 sm:$0xff]   ;;  %v14872_v47 = vld [vmem:[#allocation37 + $0x1b44] ss:$16 sps:$4 sm:$0xff]  }
 0xa8d   :  { %9462 = vmatpush1.bf16.msra.mxu0 %v14801_v6  ;;  %v14864_v1 = vld [vmem:[#allocation37 + $0x1b60] ss:$16 sps:$4 sm:$0xff]   ;;  %v14875_v46 = vld [vmem:[#allocation37 + $0x1924] ss:$16 sps:$4 sm:$0xff]  }
 0xa8e   :  { %9503 = vmatpush1.bf16.msra.mxu1 %v14804_v37  ;;  %9463 = vmatprep.subr.bf16.mxu0 %v14809_v32  ;;  %v14867_v62 = vld [vmem:[#allocation37 + $0x1940] ss:$16 sps:$4 sm:$0xff]   ;;  %v14878_v6 = vld [vmem:[#allocation37 + $0x1b24] ss:$16 sps:$4 sm:$0xff]  }
 0xa8f   :  { %9504 = vmatprep.subr.bf16.mxu1 %v14812_v21  ;;  %v14870_v23 = vld [vmem:[#allocation37 + $0x1b40] ss:$16 sps:$4 sm:$0xff]   ;;  %v14881_v32 = vld [vmem:[#allocation37 + $0x1904] ss:$16 sps:$4 sm:$0xff]  }
 0xa90   :  { %v14873_v50 = vld [vmem:[#allocation37 + $0x1920] ss:$16 sps:$4 sm:$0xff]   ;;  %v14884_v41 = vld [vmem:[#allocation37 + $0x1b04] ss:$16 sps:$4 sm:$0xff]  }
 0xa91   :  { %9464 = vmatpush1.bf16.msra.mxu0 %v14807_v24  ;;  %v14876_v37 = vld [vmem:[#allocation37 + $0x1b20] ss:$16 sps:$4 sm:$0xff]  }
 0xa92   :  { %9505 = vmatpush1.bf16.msra.mxu1 %v14810_v9  ;;  %9465 = vmatprep.subr.bf16.mxu0 %v14815_v61  ;;  %v14879_v21 = vld [vmem:[#allocation37 + $0x1900] ss:$16 sps:$4 sm:$0xff]   ;;  %v14887_v9 = vld [vmem:[#allocation37 + $0x18ec] ss:$16 sps:$4 sm:$0xff]  }
 0xa93   :  { %9506 = vmatprep.subr.bf16.mxu1 %v14818_v12  ;;  %v14882_v24 = vld [vmem:[#allocation37 + $0x1b00] ss:$16 sps:$4 sm:$0xff]   ;;  %v14890_v61 = vld [vmem:[#allocation37 + $0x1aec] ss:$16 sps:$4 sm:$0xff]   ;;  %v14885_v12 = vld [vmem:[#allocation37 + $0x18e8] ss:$16 sps:$4 sm:$0xff]  }
 0xa95   :  { %9466 = vmatpush1.bf16.msra.mxu0 %v14813_v8  ;;  %v8809_v8 = vrot.slane %v17263_v28, 2 }
 0xa96   :  { %9507 = vmatpush1.bf16.msra.mxu1 %v14816_v13  ;;  %9467 = vmatprep.subr.bf16.mxu0 %v14821_v33  ;;  %v14888_v13 = vld [vmem:[#allocation37 + $0x1ae8] ss:$16 sps:$4 sm:$0xff]   ;;  %v8811_v33 = vrot.slane %v17265_v14, 2 }
 0xa97   :  { %9508 = vmatprep.subr.bf16.mxu1 %v14824_v15  ;;  %v14893_v15 = vld [vmem:[#allocation37 + $0x18cc] ss:$16 sps:$4 sm:$0xff]  }
 0xa99   :  { %9468 = vmatpush1.bf16.msra.mxu0 %v14819_v26 }
 0xa9a   :  { %9509 = vmatpush1.bf16.msra.mxu1 %v14822_v29  ;;  %9469 = vmatprep.subr.bf16.mxu0 %v14827_v38  ;;  %v14896_v29 = vld [vmem:[#allocation37 + $0x1acc] ss:$16 sps:$4 sm:$0xff]  }
 0xa9b   :  { %9510 = vmatprep.subr.bf16.mxu1 %v14830_v39  ;;  %v14891_v39 = vld [vmem:[#allocation37 + $0x18c8] ss:$16 sps:$4 sm:$0xff]  }
 0xa9d   :  { %9470 = vmatpush1.bf16.msra.mxu0 %v14825_v45 }
 0xa9e   :  { %9511 = vmatpush1.bf16.msra.mxu1 %v14828_v17  ;;  %9471 = vmatprep.subr.bf16.mxu0 %v14833_v7  ;;  %v14894_v7 = vld [vmem:[#allocation37 + $0x1ac8] ss:$16 sps:$4 sm:$0xff]  }
 0xa9f   :  { %9512 = vmatprep.subr.bf16.mxu1 %v14836_v43  ;;  %v14899_v43 = vld [vmem:[#allocation37 + $0x18ac] ss:$16 sps:$4 sm:$0xff]  }
 0xaa1   :  { %9472 = vmatpush1.bf16.msra.mxu0 %v14831_v2 }
 0xaa2   :  { %9513 = vmatpush1.bf16.msra.mxu1 %v14834_v27  ;;  %9473 = vmatprep.subr.bf16.mxu0 %v14839_v53  ;;  %v14902_v27 = vld [vmem:[#allocation37 + $0x1aac] ss:$16 sps:$4 sm:$0xff]  }
 0xaa3   :  { %9514 = vmatprep.subr.bf16.mxu1 %v14842_v56 }
 0xaa5   :  { %9474 = vmatpush2.bf16.msra.mxu0 %v14837_v4 }
 0xaa6   :  { %9515 = vmatpush2.bf16.msra.mxu1 %v14840_v10  ;;  %9475 = vmatprep.subr.bf16.mxu0 %v14845_v63  ;;  %v14897_v63 = vld [vmem:[#allocation37 + $0x18a8] ss:$16 sps:$4 sm:$0xff]  }
 0xaa7   :  { %9516 = vmatprep.subr.bf16.mxu1 %v14848_v51 }
 0xaa9   :  { %9476 = vmatpush2.bf16.msra.mxu0 %v14843_v16  ;;  %v14900_v16 = vld [vmem:[#allocation37 + $0x1aa8] ss:$16 sps:$4 sm:$0xff]  }
 0xaaa   :  { %9517 = vmatpush2.bf16.msra.mxu1 %v14846_v34  ;;  %9477 = vmatprep.subr.bf16.mxu0 %v14851_v40  ;;  %v14908_v40 = vld [vmem:[#allocation37 + $0x1a8c] ss:$16 sps:$4 sm:$0xff]  }
 0xaab   :  { %9518 = vmatprep.subr.bf16.mxu1 %v14854_v35  ;;  %v14906_v35 = vld [vmem:[#allocation37 + $0x1a88] ss:$16 sps:$4 sm:$0xff]  }
 0xaad   :  { %9478 = vmatpush2.bf16.msra.mxu0 %v14849_v48  ;;  %v14911_v48 = vld [vmem:[#allocation37 + $0x186c] ss:$16 sps:$4 sm:$0xff]  }
 0xaae   :  { %9519 = vmatpush2.bf16.msra.mxu1 %v14852_v3  ;;  %9479 = vmatprep.subr.bf16.mxu0 %v14857_v58  ;;  %v14914_v3 = vld [vmem:[#allocation37 + $0x1a6c] ss:$16 sps:$4 sm:$0xff]   ;;  %v14909_v58 = vld [vmem:[#allocation37 + $0x1868] ss:$16 sps:$4 sm:$0xff]  }
 0xaaf   :  { %9520 = vmatprep.subr.bf16.mxu1 %v14860_v42  ;;  %v14917_v42 = vld [vmem:[#allocation37 + $0x184c] ss:$16 sps:$4 sm:$0xff]  }
 0xab1   :  { %9480 = vmatpush2.bf16.msra.mxu0 %v14855_v52  ;;  %v14920_v52 = vld [vmem:[#allocation37 + $0x1a4c] ss:$16 sps:$4 sm:$0xff]  }
 0xab2   :  { %9521 = vmatpush2.bf16.msra.mxu1 %v14858_v5  ;;  %9481 = vmatprep.subr.bf16.mxu0 %v14863_v36  ;;  %v14915_v5 = vld [vmem:[#allocation37 + $0x1848] ss:$16 sps:$4 sm:$0xff]  }
 0xab3   :  { %9522 = vmatprep.subr.bf16.mxu1 %v14866_v11  ;;  %v14918_v36 = vld [vmem:[#allocation37 + $0x1a48] ss:$16 sps:$4 sm:$0xff]   ;;  %v14923_v11 = vld [vmem:[#allocation37 + $0x182c] ss:$16 sps:$4 sm:$0xff]  }
 0xab5   :  { %9482 = vmatpush2.bf16.msra.mxu0 %v14861_v44  ;;  %v14926_v44 = vld [vmem:[#allocation37 + $0x1a2c] ss:$16 sps:$4 sm:$0xff]  }
 0xab6   :  { %9523 = vmatpush2.bf16.msra.mxu1 %v14864_v1  ;;  %9483 = vmatprep.subr.bf16.mxu0 %v14869_v22  ;;  %v14921_v1 = vld [vmem:[#allocation37 + $0x1828] ss:$16 sps:$4 sm:$0xff]  }
 0xab7   :  { %9524 = vmatprep.subr.bf16.mxu1 %v14872_v47  ;;  %v14924_v22 = vld [vmem:[#allocation37 + $0x1a28] ss:$16 sps:$4 sm:$0xff]   ;;  %v14929_v47 = vld [vmem:[#allocation37 + $0x180c] ss:$16 sps:$4 sm:$0xff]  }
 0xab9   :  { %9484 = vmatpush2.bf16.msra.mxu0 %v14867_v62  ;;  %v14932_v62 = vld [vmem:[#allocation37 + $0x1a0c] ss:$16 sps:$4 sm:$0xff]  }
 0xaba   :  { %9525 = vmatpush2.bf16.msra.mxu1 %v14870_v23  ;;  %9485 = vmatprep.subr.bf16.mxu0 %v14875_v46  ;;  %v14927_v23 = vld [vmem:[#allocation37 + $0x1808] ss:$16 sps:$4 sm:$0xff]  }
 0xabb   :  { %9526 = vmatprep.subr.bf16.mxu1 %v14878_v6  ;;  %v14930_v46 = vld [vmem:[#allocation37 + $0x1a08] ss:$16 sps:$4 sm:$0xff]   ;;  %v14935_v6 = vld [vmem:[#allocation37 + $0x19ec] ss:$16 sps:$4 sm:$0xff]  }
 0xabd   :  { %9486 = vmatpush2.bf16.msra.mxu0 %v14873_v50  ;;  %v14938_v50 = vld [vmem:[#allocation37 + $0x1bec] ss:$16 sps:$4 sm:$0xff]  }
 0xabe   :  { %9527 = vmatpush2.bf16.msra.mxu1 %v14876_v37  ;;  %9487 = vmatprep.subr.bf16.mxu0 %v14881_v32  ;;  %v14933_v37 = vld [vmem:[#allocation37 + $0x19e8] ss:$16 sps:$4 sm:$0xff]  }
 0xabf   :  { %9528 = vmatprep.subr.bf16.mxu1 %v14884_v41  ;;  %v14936_v32 = vld [vmem:[#allocation37 + $0x1be8] ss:$16 sps:$4 sm:$0xff]   ;;  %v14941_v41 = vld [vmem:[#allocation37 + $0x19cc] ss:$16 sps:$4 sm:$0xff]  }
 0xac1   :  { %9488 = vmatpush2.bf16.msra.mxu0 %v14879_v21  ;;  %v14944_v21 = vld [vmem:[#allocation37 + $0x1bcc] ss:$16 sps:$4 sm:$0xff]  }
 0xac2   :  { %9529 = vmatpush2.bf16.msra.mxu1 %v14882_v24  ;;  %9539 = vmatprep.subr.bf16.mxu0 %v14887_v9  ;;  %v14939_v24 = vld [vmem:[#allocation37 + $0x19c8] ss:$16 sps:$4 sm:$0xff]  }
 0xac3   :  { %9580 = vmatprep.subr.bf16.mxu1 %v14890_v61  ;;  %v14942_v9 = vld [vmem:[#allocation37 + $0x1bc8] ss:$16 sps:$4 sm:$0xff]   ;;  %v14947_v61 = vld [vmem:[#allocation37 + $0x19ac] ss:$16 sps:$4 sm:$0xff]  }
 0xac4   :  { %v7679_v26 = vpop.f32.mrf.mxu0  ;;  %9490 = vmatmul.mubr.bf16.vlgmr.msra.gmra.mxu0 %v8809_v8 }
 0xac5   :  { %v7720_v38 = vpop.f32.mrf.mxu1  ;;  %9531 = vmatmul.mubr.bf16.vlgmr.msra.gmra.mxu1 %v8811_v33  ;;  %9540 = vmatpush1.bf16.msra.mxu0 %v14885_v12  ;;  %v14950_v12 = vld [vmem:[#allocation37 + $0x1bac] ss:$16 sps:$4 sm:$0xff]  }
 0xac6   :  { %v7721_v45 = vadd.f32 %v7720_v38, %v7679_v26  ;;  %9571 = vmatprep.mubr.bf16.mxu0 %v8810_v31  ;;  %9581 = vmatpush1.bf16.msra.mxu1 %v14888_v13  ;;  %v7681_v17 = vpop.f32.mrf.mxu0  ;;  %v14945_v13 = vld [vmem:[#allocation37 + $0x19a8] ss:$16 sps:$4 sm:$0xff]   ;;  %v14953_v26 = vld [vmem:[#allocation37 + $0x198c] ss:$16 sps:$4 sm:$0xff]  }
 0xac7   :  { %9612 = vmatprep.mubr.bf16.mxu1 %v8812_v59  ;;  %v7722_v2 = vpop.f32.mrf.mxu1  ;;  %9541 = vmatprep.subr.bf16.mxu0 %v14893_v15  ;;  %v14905_v59 = vld [vmem:[#allocation37 + $0x188c] ss:$16 sps:$4 sm:$0xff]   ;;  %v14948_v15 = vld [vmem:[#allocation37 + $0x1ba8] ss:$16 sps:$4 sm:$0xff]  }
 0xac8   :  { %v17334_v53 = vadd.f32 %v7721_v45, %v17302_v30  ;;  %v7723_v56 = vadd.f32 %v7722_v2, %v7681_v17  ;;  %v7683_v4 = vpop.f32.mrf.mxu0  ;;  %9582 = vmatprep.subr.bf16.mxu1 %v14896_v29  ;;  %v14903_v30 = vld [vmem:[#allocation37 + $0x1888] ss:$16 sps:$4 sm:$0xff]   ;;  %v14956_v29 = vld [vmem:[#allocation37 + $0x1b8c] ss:$16 sps:$4 sm:$0xff]  }
 0xac9   :  { %v7724_v10 = vpop.f32.mrf.mxu1  ;;  %9542 = vmatpush1.bf16.msra.mxu0 %v14891_v39  ;;  %v14951_v38 = vld [vmem:[#allocation37 + $0x1988] ss:$16 sps:$4 sm:$0xff]   ;;  %v14959_v45 = vld [vmem:[#allocation37 + $0x196c] ss:$16 sps:$4 sm:$0xff]  }
 0xaca   :  { %v17337_v31 = vadd.f32 %v7723_v56, %v17305_v25  ;;  %9583 = vmatpush1.bf16.msra.mxu1 %v14894_v7  ;;  %v7684_v51 = vpop.f32.mrf.mxu0  ;;  %9543 = vmatprep.subr.bf16.mxu0 %v14899_v43  ;;  %v14912_v25 = vld [vmem:[#allocation37 + $0x1a68] ss:$16 sps:$4 sm:$0xff]   ;;  %v14962_v17 = vld [vmem:[#allocation37 + $0x1b6c] ss:$16 sps:$4 sm:$0xff]  }
 0xacb   :  { %v7725_v34 = vpop.f32.mrf.mxu1  ;;  %9584 = vmatprep.subr.bf16.mxu1 %v14902_v27  ;;  %v14954_v39 = vld [vmem:[#allocation37 + $0x1b88] ss:$16 sps:$4 sm:$0xff]   ;;  %v14965_v2 = vld [vmem:[#allocation37 + $0x194c] ss:$16 sps:$4 sm:$0xff]  }
 0xacc   :  { %v14957_v7 = vld [vmem:[#allocation37 + $0x1968] ss:$16 sps:$4 sm:$0xff]   ;;  %v14968_v27 = vld [vmem:[#allocation37 + $0x1b4c] ss:$16 sps:$4 sm:$0xff]  }
 0xacd   :  { %9544 = vmatpush1.bf16.msra.mxu0 %v14897_v63  ;;  %v14960_v43 = vld [vmem:[#allocation37 + $0x1b68] ss:$16 sps:$4 sm:$0xff]   ;;  %v14971_v10 = vld [vmem:[#allocation37 + $0x192c] ss:$16 sps:$4 sm:$0xff]  }
 0xace   :  { %9585 = vmatpush1.bf16.msra.mxu1 %v14900_v16  ;;  %9545 = vmatprep.subr.bf16.mxu0 %v14905_v59  ;;  %v14963_v56 = vld [vmem:[#allocation37 + $0x1948] ss:$16 sps:$4 sm:$0xff]   ;;  %v14974_v63 = vld [vmem:[#allocation37 + $0x1b2c] ss:$16 sps:$4 sm:$0xff]  }
 0xacf   :  { %9586 = vmatprep.subr.bf16.mxu1 %v14908_v40  ;;  %v14966_v4 = vld [vmem:[#allocation37 + $0x1b48] ss:$16 sps:$4 sm:$0xff]   ;;  %v14977_v59 = vld [vmem:[#allocation37 + $0x190c] ss:$16 sps:$4 sm:$0xff]  }
 0xad0   :  { %v14969_v51 = vld [vmem:[#allocation37 + $0x1928] ss:$16 sps:$4 sm:$0xff]   ;;  %v14980_v34 = vld [vmem:[#allocation37 + $0x1b0c] ss:$16 sps:$4 sm:$0xff]  }
 0xad1   :  { %9546 = vmatpush1.bf16.msra.mxu0 %v14903_v30  ;;  %v14972_v16 = vld [vmem:[#allocation37 + $0x1b28] ss:$16 sps:$4 sm:$0xff]  }
 0xad2   :  { %9587 = vmatpush1.bf16.msra.mxu1 %v14906_v35  ;;  %9547 = vmatprep.subr.bf16.mxu0 %v14911_v48  ;;  %v14975_v40 = vld [vmem:[#allocation37 + $0x1908] ss:$16 sps:$4 sm:$0xff]   ;;  %v14983_v35 = vld [vmem:[#allocation37 + $0x1ce4] ss:$16 sps:$4 sm:$0xff]  }
 0xad3   :  { %9588 = vmatprep.subr.bf16.mxu1 %v14914_v3  ;;  %v14978_v30 = vld [vmem:[#allocation37 + $0x1b08] ss:$16 sps:$4 sm:$0xff]   ;;  %v14986_v48 = vld [vmem:[#allocation37 + $0x1ee4] ss:$16 sps:$4 sm:$0xff]   ;;  %v14981_v3 = vld [vmem:[#allocation37 + $0x1ce0] ss:$16 sps:$4 sm:$0xff]  }
 0xad5   :  { %9548 = vmatpush1.bf16.msra.mxu0 %v14909_v58  ;;  %v14984_v58 = vld [vmem:[#allocation37 + $0x1ee0] ss:$16 sps:$4 sm:$0xff]  }
 0xad6   :  { %9589 = vmatpush1.bf16.msra.mxu1 %v14912_v25  ;;  %9549 = vmatprep.subr.bf16.mxu0 %v14917_v42  ;;  %v14989_v25 = vld [vmem:[#allocation37 + $0x1cc4] ss:$16 sps:$4 sm:$0xff]  }
 0xad7   :  { %9590 = vmatprep.subr.bf16.mxu1 %v14920_v52  ;;  %v9755_v52 = vrot.slane %v17227_v60, 3 }
 0xad9   :  { %9550 = vmatpush1.bf16.msra.mxu0 %v14915_v5  ;;  %v14992_v5 = vld [vmem:[#allocation37 + $0x1ec4] ss:$16 sps:$4 sm:$0xff]  }
 0xada   :  { %9591 = vmatpush1.bf16.msra.mxu1 %v14918_v36  ;;  %9551 = vmatprep.subr.bf16.mxu0 %v14923_v11  ;;  %v9757_v11 = vrot.slane %v17233_v19, 3 }
 0xadb   :  { %9592 = vmatprep.subr.bf16.mxu1 %v14926_v44  ;;  %v14987_v44 = vld [vmem:[#allocation37 + $0x1cc0] ss:$16 sps:$4 sm:$0xff]  }
 0xadd   :  { %9552 = vmatpush1.bf16.msra.mxu0 %v14921_v1 }
 0xade   :  { %9593 = vmatpush1.bf16.msra.mxu1 %v14924_v22  ;;  %9553 = vmatprep.subr.bf16.mxu0 %v14929_v47  ;;  %v14990_v47 = vld [vmem:[#allocation37 + $0x1ec0] ss:$16 sps:$4 sm:$0xff]  }
 0xadf   :  { %9594 = vmatprep.subr.bf16.mxu1 %v14932_v62  ;;  %v14995_v62 = vld [vmem:[#allocation37 + $0x1ca4] ss:$16 sps:$4 sm:$0xff]  }
 0xae1   :  { %9554 = vmatpush1.bf16.msra.mxu0 %v14927_v23  ;;  %v14998_v23 = vld [vmem:[#allocation37 + $0x1ea4] ss:$16 sps:$4 sm:$0xff]  }
 0xae2   :  { %9595 = vmatpush1.bf16.msra.mxu1 %v14930_v46  ;;  %9555 = vmatprep.subr.bf16.mxu0 %v14935_v6 }
 0xae3   :  { %9596 = vmatprep.subr.bf16.mxu1 %v14938_v50 }
 0xae5   :  { %9556 = vmatpush2.bf16.msra.mxu0 %v14933_v37  ;;  %v14993_v37 = vld [vmem:[#allocation37 + $0x1ca0] ss:$16 sps:$4 sm:$0xff]  }
 0xae6   :  { %9597 = vmatpush2.bf16.msra.mxu1 %v14936_v32  ;;  %9557 = vmatprep.subr.bf16.mxu0 %v14941_v41 }
 0xae7   :  { %9598 = vmatprep.subr.bf16.mxu1 %v14944_v21  ;;  %v14996_v21 = vld [vmem:[#allocation37 + $0x1ea0] ss:$16 sps:$4 sm:$0xff]  }
 0xae9   :  { %9558 = vmatpush2.bf16.msra.mxu0 %v14939_v24  ;;  %v15001_v24 = vld [vmem:[#allocation37 + $0x1c84] ss:$16 sps:$4 sm:$0xff]  }
 0xaea   :  { %9599 = vmatpush2.bf16.msra.mxu1 %v14942_v9  ;;  %9559 = vmatprep.subr.bf16.mxu0 %v14947_v61  ;;  %v15004_v61 = vld [vmem:[#allocation37 + $0x1e84] ss:$16 sps:$4 sm:$0xff]  }
 0xaeb   :  { %9600 = vmatprep.subr.bf16.mxu1 %v14950_v12  ;;  %v15002_v12 = vld [vmem:[#allocation37 + $0x1e80] ss:$16 sps:$4 sm:$0xff]  }
 0xaed   :  { %9560 = vmatpush2.bf16.msra.mxu0 %v14945_v13  ;;  %v15007_v13 = vld [vmem:[#allocation37 + $0x1c64] ss:$16 sps:$4 sm:$0xff]  }
 0xaee   :  { %9601 = vmatpush2.bf16.msra.mxu1 %v14948_v15  ;;  %9561 = vmatprep.subr.bf16.mxu0 %v14953_v26  ;;  %v15010_v15 = vld [vmem:[#allocation37 + $0x1e64] ss:$16 sps:$4 sm:$0xff]   ;;  %v15005_v26 = vld [vmem:[#allocation37 + $0x1c60] ss:$16 sps:$4 sm:$0xff]  }
 0xaef   :  { %9602 = vmatprep.subr.bf16.mxu1 %v14956_v29  ;;  %v15013_v29 = vld [vmem:[#allocation37 + $0x1c44] ss:$16 sps:$4 sm:$0xff]  }
 0xaf1   :  { %9562 = vmatpush2.bf16.msra.mxu0 %v14951_v38  ;;  %v15016_v38 = vld [vmem:[#allocation37 + $0x1e44] ss:$16 sps:$4 sm:$0xff]  }
 0xaf2   :  { %9603 = vmatpush2.bf16.msra.mxu1 %v14954_v39  ;;  %9563 = vmatprep.subr.bf16.mxu0 %v14959_v45  ;;  %v15011_v39 = vld [vmem:[#allocation37 + $0x1c40] ss:$16 sps:$4 sm:$0xff]  }
 0xaf3   :  { %9604 = vmatprep.subr.bf16.mxu1 %v14962_v17  ;;  %v15014_v45 = vld [vmem:[#allocation37 + $0x1e40] ss:$16 sps:$4 sm:$0xff]   ;;  %v15019_v17 = vld [vmem:[#allocation37 + $0x1c24] ss:$16 sps:$4 sm:$0xff]  }
 0xaf5   :  { %9564 = vmatpush2.bf16.msra.mxu0 %v14957_v7  ;;  %v15022_v7 = vld [vmem:[#allocation37 + $0x1e24] ss:$16 sps:$4 sm:$0xff]  }
 0xaf6   :  { %9605 = vmatpush2.bf16.msra.mxu1 %v14960_v43  ;;  %9565 = vmatprep.subr.bf16.mxu0 %v14965_v2  ;;  %v15017_v43 = vld [vmem:[#allocation37 + $0x1c20] ss:$16 sps:$4 sm:$0xff]  }
 0xaf7   :  { %9606 = vmatprep.subr.bf16.mxu1 %v14968_v27  ;;  %v15020_v2 = vld [vmem:[#allocation37 + $0x1e20] ss:$16 sps:$4 sm:$0xff]   ;;  %v15025_v27 = vld [vmem:[#allocation37 + $0x1c04] ss:$16 sps:$4 sm:$0xff]  }
 0xaf9   :  { %9566 = vmatpush2.bf16.msra.mxu0 %v14963_v56  ;;  %v15028_v56 = vld [vmem:[#allocation37 + $0x1e04] ss:$16 sps:$4 sm:$0xff]  }
 0xafa   :  { %9607 = vmatpush2.bf16.msra.mxu1 %v14966_v4  ;;  %9567 = vmatprep.subr.bf16.mxu0 %v14971_v10  ;;  %v15023_v4 = vld [vmem:[#allocation37 + $0x1c00] ss:$16 sps:$4 sm:$0xff]  }
 0xafb   :  { %9608 = vmatprep.subr.bf16.mxu1 %v14974_v63  ;;  %v15026_v10 = vld [vmem:[#allocation37 + $0x1e00] ss:$16 sps:$4 sm:$0xff]   ;;  %v15031_v63 = vld [vmem:[#allocation37 + $0x1de4] ss:$16 sps:$4 sm:$0xff]  }
 0xafd   :  { %9568 = vmatpush2.bf16.msra.mxu0 %v14969_v51  ;;  %v15034_v51 = vld [vmem:[#allocation37 + $0x1fe4] ss:$16 sps:$4 sm:$0xff]  }
 0xafe   :  { %9609 = vmatpush2.bf16.msra.mxu1 %v14972_v16  ;;  %9569 = vmatprep.subr.bf16.mxu0 %v14977_v59  ;;  %v15029_v16 = vld [vmem:[#allocation37 + $0x1de0] ss:$16 sps:$4 sm:$0xff]  }
 0xaff   :  { %9610 = vmatprep.subr.bf16.mxu1 %v14980_v34  ;;  %v15032_v59 = vld [vmem:[#allocation37 + $0x1fe0] ss:$16 sps:$4 sm:$0xff]   ;;  %v15037_v34 = vld [vmem:[#allocation37 + $0x1dc4] ss:$16 sps:$4 sm:$0xff]  }
 0xb01   :  { %9570 = vmatpush2.bf16.msra.mxu0 %v14975_v40  ;;  %v15040_v40 = vld [vmem:[#allocation37 + $0x1fc4] ss:$16 sps:$4 sm:$0xff]  }
 0xb02   :  { %9611 = vmatpush2.bf16.msra.mxu1 %v14978_v30  ;;  %10402 = vmatprep.subr.bf16.mxu0 %v14983_v35  ;;  %v15035_v30 = vld [vmem:[#allocation37 + $0x1dc0] ss:$16 sps:$4 sm:$0xff]  }
 0xb03   :  { %10443 = vmatprep.subr.bf16.mxu1 %v14986_v48  ;;  %v15038_v35 = vld [vmem:[#allocation37 + $0x1fc0] ss:$16 sps:$4 sm:$0xff]   ;;  %v15043_v48 = vld [vmem:[#allocation37 + $0x1da4] ss:$16 sps:$4 sm:$0xff]  }
 0xb04   :  { %v8546_v42 = vpop.f32.mrf.mxu0  ;;  %9572 = vmatmul.mubr.bf16.vlgmr.msra.gmra.mxu0 %v8809_v8 }
 0xb05   :  { %v8587_v36 = vpop.f32.mrf.mxu1  ;;  %9613 = vmatmul.mubr.bf16.vlgmr.msra.gmra.mxu1 %v8811_v33  ;;  %10403 = vmatpush1.bf16.msra.mxu0 %v14981_v3  ;;  %v15046_v3 = vld [vmem:[#allocation37 + $0x1fa4] ss:$16 sps:$4 sm:$0xff]  }
 0xb06   :  { %v8588_v1 = vadd.f32 %v8587_v36, %v8546_v42  ;;  %10434 = vmatprep.mubr.bf16.mxu0 %v9755_v52  ;;  %10444 = vmatpush1.bf16.msra.mxu1 %v14984_v58  ;;  %v8548_v22 = vpop.f32.mrf.mxu0  ;;  %v17356_v58 = vmul.f32 0.70710677, %v17113_v49  ;;  %v17359_v42 = vmul.f32 0.70710677, %v17115_v57  ;;  %v15049_v36 = vld [vmem:[#allocation37 + $0x1d84] ss:$16 sps:$4 sm:$0xff]  }
 0xb07   :  { %10475 = vmatprep.mubr.bf16.mxu1 %v9757_v11  ;;  %v8589_v8 = vpop.f32.mrf.mxu1  ;;  %10404 = vmatprep.subr.bf16.mxu0 %v14989_v25  ;;  %v15041_v25 = vld [vmem:[#allocation37 + $0x1da0] ss:$16 sps:$4 sm:$0xff]  }
 0xb08   :  { %v17350_v33 = vadd.f32 %v8588_v1, %v17318_v54  ;;  %v8590_v46 = vadd.f32 %v8589_v8, %v8548_v22  ;;  %v8550_v6 = vpop.f32.mrf.mxu0  ;;  %10445 = vmatprep.subr.bf16.mxu1 %v14992_v5  ;;  %v14999_v54 = vld [vmem:[#allocation37 + $0x1c80] ss:$16 sps:$4 sm:$0xff]   ;;  %v17362_v1 = vand.u32 2147483647, %v17356_v58  ;;  %v15055_v8 = vld [vmem:[#allocation37 + $0x1d64] ss:$16 sps:$4 sm:$0xff]  }
 0xb09   :  { %v8591_v50 = vpop.f32.mrf.mxu1  ;;  %10405 = vmatpush1.bf16.msra.mxu0 %v14987_v44  ;;  %v15044_v5 = vld [vmem:[#allocation37 + $0x1fa0] ss:$16 sps:$4 sm:$0xff]   ;;  %v15052_v44 = vld [vmem:[#allocation37 + $0x1f84] ss:$16 sps:$4 sm:$0xff]   ;;  %vm2968_vm12 = vcmp.ge.f32.partialorder %v17356_v58, 0.0  ;;  %vm2970_vm13 = vcmp.ge.f32.partialorder %v17359_v42, 0.0 }
 0xb0a   :  { %v17353_v32 = vadd.f32 %v8590_v46, %v17321_v18  ;;  %10446 = vmatpush1.bf16.msra.mxu1 %v14990_v47  ;;  %v8551_v41 = vpop.f32.mrf.mxu0  ;;  %10406 = vmatprep.subr.bf16.mxu0 %v14995_v62  ;;  %v15008_v18 = vld [vmem:[#allocation37 + $0x1e60] ss:$16 sps:$4 sm:$0xff]   ;;  %v17365_v47 = vand.u32 2147483647, %v17359_v42  ;;  %v2740_v46 = vmul.f32 0.3275911, %v17362_v1 }
 0xb0b   :  { %v8592_v9 = vpop.f32.mrf.mxu1  ;;  %10447 = vmatprep.subr.bf16.mxu1 %v14998_v23  ;;  %v15047_v22 = vld [vmem:[#allocation37 + $0x1d80] ss:$16 sps:$4 sm:$0xff]   ;;  %v15058_v23 = vld [vmem:[#allocation37 + $0x1f64] ss:$16 sps:$4 sm:$0xff]   ;;  %v15170_v58 = vld [vmem:[#allocation37 + $0x1f08] ss:$16 sps:$4 sm:$0xff]  }
 0xb0c   :  { %v15050_v62 = vld [vmem:[#allocation37 + $0x1f80] ss:$16 sps:$4 sm:$0xff]   ;;  %v2742_v50 = vmul.f32 0.3275911, %v17365_v47  ;;  %v15061_v41 = vld [vmem:[#allocation37 + $0x1d44] ss:$16 sps:$4 sm:$0xff]  }
 0xb0d   :  { %10407 = vmatpush1.bf16.msra.mxu0 %v14993_v37  ;;  %v15053_v6 = vld [vmem:[#allocation37 + $0x1d60] ss:$16 sps:$4 sm:$0xff]   ;;  %v2706_v42 = vmul.f32 0.5, %v17115_v57  ;;  %v15184_v57 = vld [vmem:[#allocation37 + $0x22c4] ss:$16 sps:$4 sm:$0xff]  }
 0xb0e   :  { %10448 = vmatpush1.bf16.msra.mxu1 %v14996_v21  ;;  %10408 = vmatprep.subr.bf16.mxu0 %v15001_v24  ;;  %v15056_v37 = vld [vmem:[#allocation37 + $0x1f60] ss:$16 sps:$4 sm:$0xff]   ;;  %v15064_v21 = vld [vmem:[#allocation37 + $0x1f44] ss:$16 sps:$4 sm:$0xff]   ;;  %v2752_v24 = vadd.f32 1.0, %v2740_v46 }
 0xb0f   :  { %10449 = vmatprep.subr.bf16.mxu1 %v15004_v61  ;;  %v15059_v9 = vld [vmem:[#allocation37 + $0x1d40] ss:$16 sps:$4 sm:$0xff]   ;;  %v2754_v61 = vadd.f32 1.0, %v2742_v50 }
 0xb10   :  { %15509 = vrcp.f32 %v2752_v24  ;;  %v15101_v24 = vld [vmem:[#allocation37 + $0x1c68] ss:$16 sps:$4 sm:$0xff]  }
 0xb11   :  { %10409 = vmatpush1.bf16.msra.mxu0 %v14999_v54  ;;  %v15062_v54 = vld [vmem:[#allocation37 + $0x1f40] ss:$16 sps:$4 sm:$0xff]   ;;  %15511 = vrcp.f32 %v2754_v61  ;;  %v15104_v61 = vld [vmem:[#allocation37 + $0x1e68] ss:$16 sps:$4 sm:$0xff]  }
 0xb12   :  { %10450 = vmatpush1.bf16.msra.mxu1 %v15002_v12  ;;  %10410 = vmatprep.subr.bf16.mxu0 %v15007_v13  ;;  %v15067_v12 = vld [vmem:[#allocation37 + $0x1d24] ss:$16 sps:$4 sm:$0xff]  }
 0xb13   :  { %10451 = vmatprep.subr.bf16.mxu1 %v15010_v15  ;;  %v15070_v13 = vld [vmem:[#allocation37 + $0x1f24] ss:$16 sps:$4 sm:$0xff]   ;;  %v15065_v15 = vld [vmem:[#allocation37 + $0x1d20] ss:$16 sps:$4 sm:$0xff]  }
 0xb15   :  { %10411 = vmatpush1.bf16.msra.mxu0 %v15005_v26  ;;  %v15068_v26 = vld [vmem:[#allocation37 + $0x1f20] ss:$16 sps:$4 sm:$0xff]  }
 0xb16   :  { %10452 = vmatpush1.bf16.msra.mxu1 %v15008_v18  ;;  %10412 = vmatprep.subr.bf16.mxu0 %v15013_v29  ;;  %v15073_v18 = vld [vmem:[#allocation37 + $0x1d04] ss:$16 sps:$4 sm:$0xff]  }
 0xb17   :  { %10453 = vmatprep.subr.bf16.mxu1 %v15016_v38  ;;  %v15076_v29 = vld [vmem:[#allocation37 + $0x1f04] ss:$16 sps:$4 sm:$0xff]   ;;  %v15071_v38 = vld [vmem:[#allocation37 + $0x1d00] ss:$16 sps:$4 sm:$0xff]  }
 0xb19   :  { %10413 = vmatpush1.bf16.msra.mxu0 %v15011_v39  ;;  %v15074_v39 = vld [vmem:[#allocation37 + $0x1f00] ss:$16 sps:$4 sm:$0xff]  }
 0xb1a   :  { %10454 = vmatpush1.bf16.msra.mxu1 %v15014_v45  ;;  %10414 = vmatprep.subr.bf16.mxu0 %v15019_v17  ;;  %v15079_v45 = vld [vmem:[#allocation37 + $0x1cec] ss:$16 sps:$4 sm:$0xff]  }
 0xb1b   :  { %10455 = vmatprep.subr.bf16.mxu1 %v15022_v7  ;;  %v15082_v17 = vld [vmem:[#allocation37 + $0x1eec] ss:$16 sps:$4 sm:$0xff]   ;;  %v15077_v7 = vld [vmem:[#allocation37 + $0x1ce8] ss:$16 sps:$4 sm:$0xff]  }
 0xb1d   :  { %10415 = vmatpush1.bf16.msra.mxu0 %v15017_v43  ;;  %v9754_v43 = vrot.slane %v17263_v28, 3  ;;  %v15182_v28 = vld [vmem:[#allocation37 + $0x22c0] ss:$16 sps:$4 sm:$0xff]  }
 0xb1e   :  { %10456 = vmatpush1.bf16.msra.mxu1 %v15020_v2  ;;  %10416 = vmatprep.subr.bf16.mxu0 %v15025_v27  ;;  %v15080_v2 = vld [vmem:[#allocation37 + $0x1ee8] ss:$16 sps:$4 sm:$0xff]   ;;  %v9756_v27 = vrot.slane %v17265_v14, 3 }
 0xb1f   :  { %10457 = vmatprep.subr.bf16.mxu1 %v15028_v56  ;;  %v15085_v56 = vld [vmem:[#allocation37 + $0x1ccc] ss:$16 sps:$4 sm:$0xff]  }
 0xb21   :  { %10417 = vmatpush1.bf16.msra.mxu0 %v15023_v4 }
 0xb22   :  { %10458 = vmatpush1.bf16.msra.mxu1 %v15026_v10  ;;  %10418 = vmatprep.subr.bf16.mxu0 %v15031_v63  ;;  %v15088_v10 = vld [vmem:[#allocation37 + $0x1ecc] ss:$16 sps:$4 sm:$0xff]  }
 0xb23   :  { %10459 = vmatprep.subr.bf16.mxu1 %v15034_v51  ;;  %v15083_v51 = vld [vmem:[#allocation37 + $0x1cc8] ss:$16 sps:$4 sm:$0xff]  }
 0xb25   :  { %10419 = vmatpush2.bf16.msra.mxu0 %v15029_v16  ;;  %v17375_v16 = vpop.eup %15509 }
 0xb26   :  { %10460 = vmatpush2.bf16.msra.mxu1 %v15032_v59  ;;  %10420 = vmatprep.subr.bf16.mxu0 %v15037_v34  ;;  %v2788_v60 = vmul.f32 1.0614054, %v17375_v16 }
 0xb27   :  { %10461 = vmatprep.subr.bf16.mxu1 %v15040_v40  ;;  %v15086_v40 = vld [vmem:[#allocation37 + $0x1ec8] ss:$16 sps:$4 sm:$0xff]  }
 0xb28   :  { %v2800_v46 = vadd.f32 -1.4531521, %v2788_v60 }
 0xb29   :  { %10421 = vmatpush2.bf16.msra.mxu0 %v15035_v30  ;;  %v15091_v30 = vld [vmem:[#allocation37 + $0x1cac] ss:$16 sps:$4 sm:$0xff]  }
 0xb2a   :  { %10462 = vmatpush2.bf16.msra.mxu1 %v15038_v35  ;;  %10422 = vmatprep.subr.bf16.mxu0 %v15043_v48  ;;  %v17379_v35 = vpop.eup %15511 }
 0xb2b   :  { %10463 = vmatprep.subr.bf16.mxu1 %v15046_v3  ;;  %v15094_v3 = vld [vmem:[#allocation37 + $0x1eac] ss:$16 sps:$4 sm:$0xff]  }
 0xb2d   :  { %10423 = vmatpush2.bf16.msra.mxu0 %v15041_v25 }
 0xb2e   :  { %10464 = vmatpush2.bf16.msra.mxu1 %v15044_v5  ;;  %10424 = vmatprep.subr.bf16.mxu0 %v15049_v36 }
 0xb2f   :  { %10465 = vmatprep.subr.bf16.mxu1 %v15052_v44  ;;  %v15089_v44 = vld [vmem:[#allocation37 + $0x1ca8] ss:$16 sps:$4 sm:$0xff]  }
 0xb31   :  { %10425 = vmatpush2.bf16.msra.mxu0 %v15047_v22  ;;  %v2790_v22 = vmul.f32 1.0614054, %v17379_v35 }
 0xb32   :  { %10466 = vmatpush2.bf16.msra.mxu1 %v15050_v62  ;;  %10426 = vmatprep.subr.bf16.mxu0 %v15055_v8  ;;  %v15097_v8 = vld [vmem:[#allocation37 + $0x1c8c] ss:$16 sps:$4 sm:$0xff]  }
 0xb33   :  { %10467 = vmatprep.subr.bf16.mxu1 %v15058_v23  ;;  %v15100_v23 = vld [vmem:[#allocation37 + $0x1e8c] ss:$16 sps:$4 sm:$0xff]   ;;  %v2802_v50 = vadd.f32 -1.4531521, %v2790_v22 }
 0xb34   :  { %v15136_v22 = vld [vmem:[#allocation37 + $0x1fcc] ss:$16 sps:$4 sm:$0xff]  }
 0xb35   :  { %10427 = vmatpush2.bf16.msra.mxu0 %v15053_v6  ;;  %v15095_v6 = vld [vmem:[#allocation37 + $0x1c88] ss:$16 sps:$4 sm:$0xff]  }
 0xb36   :  { %10468 = vmatpush2.bf16.msra.mxu1 %v15056_v37  ;;  %10428 = vmatprep.subr.bf16.mxu0 %v15061_v41  ;;  %v15098_v37 = vld [vmem:[#allocation37 + $0x1e88] ss:$16 sps:$4 sm:$0xff]   ;;  %v15103_v41 = vld [vmem:[#allocation37 + $0x1c6c] ss:$16 sps:$4 sm:$0xff]  }
 0xb37   :  { %10469 = vmatprep.subr.bf16.mxu1 %v15064_v21  ;;  %v15106_v21 = vld [vmem:[#allocation37 + $0x1e6c] ss:$16 sps:$4 sm:$0xff]  }
 0xb39   :  { %10429 = vmatpush2.bf16.msra.mxu0 %v15059_v9  ;;  %v2814_v9 = vmul.f32 %v17379_v35, %v2802_v50  ;;  %v17405_v50 = vmul.f32 0.70710677, %v17111_v20 }
 0xb3a   :  { %10470 = vmatpush2.bf16.msra.mxu1 %v15062_v54  ;;  %10430 = vmatprep.subr.bf16.mxu0 %v15067_v12  ;;  %v15109_v54 = vld [vmem:[#allocation37 + $0x1c4c] ss:$16 sps:$4 sm:$0xff]   ;;  %v2896_v12 = vsub.f32 0.0, %v17362_v1 }
 0xb3b   :  { %10471 = vmatprep.subr.bf16.mxu1 %v15070_v13  ;;  %v15112_v13 = vld [vmem:[#allocation37 + $0x1e4c] ss:$16 sps:$4 sm:$0xff]   ;;  %vm2969_vm15 = vcmp.ge.f32.partialorder %v17405_v50, 0.0 }
 0xb3d   :  { %10431 = vmatpush2.bf16.msra.mxu0 %v15065_v15  ;;  %v2898_v15 = vsub.f32 0.0, %v17365_v47 }
 0xb3e   :  { %10472 = vmatpush2.bf16.msra.mxu1 %v15068_v26  ;;  %10432 = vmatprep.subr.bf16.mxu0 %v15073_v18  ;;  %v15107_v18 = vld [vmem:[#allocation37 + $0x1c48] ss:$16 sps:$4 sm:$0xff]  }
 0xb3f   :  { %10473 = vmatprep.subr.bf16.mxu1 %v15076_v29  ;;  %v2826_v29 = vadd.f32 1.4214138, %v2814_v9 }
 0xb41   :  { %10433 = vmatpush2.bf16.msra.mxu0 %v15071_v38  ;;  %v15110_v38 = vld [vmem:[#allocation37 + $0x1e48] ss:$16 sps:$4 sm:$0xff]  }
 0xb42   :  { %10474 = vmatpush2.bf16.msra.mxu1 %v15074_v39  ;;  %10484 = vmatprep.subr.bf16.mxu0 %v15079_v45  ;;  %v15115_v39 = vld [vmem:[#allocation37 + $0x1c2c] ss:$16 sps:$4 sm:$0xff]   ;;  %v2908_v45 = vmul.f32 %v2896_v12, %v17362_v1  ;;  %v15119_v1 = vld [vmem:[#allocation37 + $0x1c08] ss:$16 sps:$4 sm:$0xff]   ;;  %v17413_v12 = vand.u32 2147483647, %v17405_v50 }
 0xb43   :  { %10525 = vmatprep.subr.bf16.mxu1 %v15082_v17  ;;  %v15118_v17 = vld [vmem:[#allocation37 + $0x1e2c] ss:$16 sps:$4 sm:$0xff]  }
 0xb44   :  { %v8628_v4 = vpop.f32.mrf.mxu0  ;;  %10435 = vmatmul.mubr.bf16.vlgmr.msra.gmra.mxu0 %v9754_v43 }
 0xb45   :  { %v8669_v63 = vpop.f32.mrf.mxu1  ;;  %10476 = vmatmul.mubr.bf16.vlgmr.msra.gmra.mxu1 %v9756_v27  ;;  %10485 = vmatpush1.bf16.msra.mxu0 %v15077_v7  ;;  %v2910_v7 = vmul.f32 %v2898_v15, %v17365_v47  ;;  %v15122_v47 = vld [vmem:[#allocation37 + $0x1e08] ss:$16 sps:$4 sm:$0xff]  }
 0xb46   :  { %v8670_v59 = vadd.f32 %v8669_v63, %v8628_v4  ;;  %10516 = vmatprep.mubr.bf16.mxu0 %v9755_v52  ;;  %10526 = vmatpush1.bf16.msra.mxu1 %v15080_v2  ;;  %v8630_v34 = vpop.f32.mrf.mxu0  ;;  %v2838_v4 = vmul.f32 %v17379_v35, %v2826_v29  ;;  %v15121_v63 = vld [vmem:[#allocation37 + $0x1c0c] ss:$16 sps:$4 sm:$0xff]  }
 0xb47   :  { %10557 = vmatprep.mubr.bf16.mxu1 %v9757_v11  ;;  %v8671_v48 = vpop.f32.mrf.mxu1  ;;  %10486 = vmatprep.subr.bf16.mxu0 %v15085_v56  ;;  %v15092_v11 = vld [vmem:[#allocation37 + $0x1ea8] ss:$16 sps:$4 sm:$0xff]  }
 0xb48   :  { %v17384_v25 = vadd.f32 %v8670_v59, %v17334_v53  ;;  %v8672_v5 = vadd.f32 %v8671_v48, %v8630_v34  ;;  %v8632_v36 = vpop.f32.mrf.mxu0  ;;  %10527 = vmatprep.subr.bf16.mxu1 %v15088_v10  ;;  %v15113_v56 = vld [vmem:[#allocation37 + $0x1c28] ss:$16 sps:$4 sm:$0xff]   ;;  %v15124_v59 = vld [vmem:[#allocation37 + $0x1e0c] ss:$16 sps:$4 sm:$0xff]   ;;  %v2933_v34 = vmul.f32 1.442695, %v2910_v7 }
 0xb49   :  { %v8673_v52 = vpop.f32.mrf.mxu1  ;;  %10487 = vmatpush1.bf16.msra.mxu0 %v15083_v51  ;;  %v15116_v10 = vld [vmem:[#allocation37 + $0x1e28] ss:$16 sps:$4 sm:$0xff]   ;;  %v2929_v51 = vmul.f32 1.442695, %v2908_v45  ;;  %v15127_v48 = vld [vmem:[#allocation37 + $0x1dec] ss:$16 sps:$4 sm:$0xff]  }
 0xb4a   :  { %v17389_v62 = vadd.f32 %v8672_v5, %v17337_v31  ;;  %10528 = vmatpush1.bf16.msra.mxu1 %v15086_v40  ;;  %v8633_v19 = vpop.f32.mrf.mxu0  ;;  %10488 = vmatprep.subr.bf16.mxu0 %v15091_v30  ;;  %v2812_v31 = vmul.f32 %v17375_v16, %v2800_v46  ;;  %v2850_v30 = vadd.f32 -0.28449672, %v2838_v4  ;;  %v15125_v36 = vld [vmem:[#allocation37 + $0x1de8] ss:$16 sps:$4 sm:$0xff]   ;;  %v17402_v46 = vmul.f32 0.70710677, %v17109_v55 }
 0xb4b   :  { %v8674_v53 = vpop.f32.mrf.mxu1  ;;  %10529 = vmatprep.subr.bf16.mxu1 %v15094_v3  ;;  %15513 = vpow2.f32 %v2929_v51  ;;  %v15130_v3 = vld [vmem:[#allocation37 + $0x1fec] ss:$16 sps:$4 sm:$0xff]   ;;  %v15128_v52 = vld [vmem:[#allocation37 + $0x1fe8] ss:$16 sps:$4 sm:$0xff]  }
 0xb4c   :  { %v2824_v26 = vadd.f32 1.4214138, %v2812_v31  ;;  %15515 = vpow2.f32 %v2933_v34  ;;  %v2862_v60 = vmul.f32 %v17379_v35, %v2850_v30  ;;  %v15134_v53 = vld [vmem:[#allocation37 + $0x1fc8] ss:$16 sps:$4 sm:$0xff]   ;;  %v17410_v9 = vand.u32 2147483647, %v17402_v46 }
 0xb4d   :  { %10489 = vmatpush1.bf16.msra.mxu0 %v15089_v44  ;;  %v15133_v44 = vld [vmem:[#allocation37 + $0x1dcc] ss:$16 sps:$4 sm:$0xff]   ;;  %v15140_v31 = vld [vmem:[#allocation37 + $0x1fa8] ss:$16 sps:$4 sm:$0xff]   ;;  %vm2967_vm14 = vcmp.ge.f32.partialorder %v17402_v46, 0.0 }
 0xb4e   :  { %10530 = vmatpush1.bf16.msra.mxu1 %v15092_v11  ;;  %10490 = vmatprep.subr.bf16.mxu0 %v15097_v8  ;;  %v2836_v2 = vmul.f32 %v17375_v16, %v2824_v26  ;;  %v15131_v11 = vld [vmem:[#allocation37 + $0x1dc8] ss:$16 sps:$4 sm:$0xff]   ;;  %v2874_v8 = vadd.f32 0.2548296, %v2862_v60  ;;  %v2739_v29 = vmul.f32 0.3275911, %v17410_v9 }
 0xb4f   :  { %10531 = vmatprep.subr.bf16.mxu1 %v15100_v23  ;;  %v15139_v23 = vld [vmem:[#allocation37 + $0x1dac] ss:$16 sps:$4 sm:$0xff]   ;;  %v15268_v46 = vld [vmem:[#allocation37 + $0x2304] ss:$16 sps:$4 sm:$0xff]  }
 0xb50   :  { %v2848_v40 = vadd.f32 -0.28449672, %v2836_v2  ;;  %v15152_v2 = vld [vmem:[#allocation37 + $0x1f68] ss:$16 sps:$4 sm:$0xff]   ;;  %v2751_v4 = vadd.f32 1.0, %v2739_v29 }
 0xb51   :  { %10491 = vmatpush1.bf16.msra.mxu0 %v15095_v6  ;;  %v15142_v6 = vld [vmem:[#allocation37 + $0x1fac] ss:$16 sps:$4 sm:$0xff]  }
 0xb52   :  { %10532 = vmatpush1.bf16.msra.mxu1 %v15098_v37  ;;  %10492 = vmatprep.subr.bf16.mxu0 %v15103_v41  ;;  %v2860_v5 = vmul.f32 %v17375_v16, %v2848_v40  ;;  %v15137_v41 = vld [vmem:[#allocation37 + $0x1da8] ss:$16 sps:$4 sm:$0xff]   ;;  %15517 = vrcp.f32 %v2751_v4  ;;  %v15166_v30 = vld [vmem:[#allocation37 + $0x1f2c] ss:$16 sps:$4 sm:$0xff]  }
 0xb53   :  { %10533 = vmatprep.subr.bf16.mxu1 %v15106_v21  ;;  %v2886_v21 = vmul.f32 %v17379_v35, %v2874_v8  ;;  %v15146_v35 = vld [vmem:[#allocation37 + $0x1f88] ss:$16 sps:$4 sm:$0xff]   ;;  %v15172_v60 = vld [vmem:[#allocation37 + $0x1f0c] ss:$16 sps:$4 sm:$0xff]   ;;  %v15178_v8 = vld [vmem:[#allocation37 + $0x22e4] ss:$16 sps:$4 sm:$0xff]  }
 0xb54   :  { %v2872_v19 = vadd.f32 0.2548296, %v2860_v5  ;;  %v15158_v40 = vld [vmem:[#allocation37 + $0x1f48] ss:$16 sps:$4 sm:$0xff]  }
 0xb55   :  { %10493 = vmatpush1.bf16.msra.mxu0 %v15101_v24  ;;  %v15145_v24 = vld [vmem:[#allocation37 + $0x1d8c] ss:$16 sps:$4 sm:$0xff]   ;;  %v15164_v5 = vld [vmem:[#allocation37 + $0x1f28] ss:$16 sps:$4 sm:$0xff]  }
 0xb56   :  { %10534 = vmatpush1.bf16.msra.mxu1 %v15104_v61  ;;  %10494 = vmatprep.subr.bf16.mxu0 %v15109_v54  ;;  %v2884_v37 = vmul.f32 %v17375_v16, %v2872_v19  ;;  %v15148_v61 = vld [vmem:[#allocation37 + $0x1f8c] ss:$16 sps:$4 sm:$0xff]   ;;  %v15143_v16 = vld [vmem:[#allocation37 + $0x1d88] ss:$16 sps:$4 sm:$0xff]   ;;  %v2704_v19 = vmul.f32 0.5, %v17113_v49 }
 0xb57   :  { %10535 = vmatprep.subr.bf16.mxu1 %v15112_v13 }
 0xb58   :  { %v15514_v54 = vpop.eup %15513 }
 0xb59   :  { %10495 = vmatpush1.bf16.msra.mxu0 %v15107_v18  ;;  %v15516_v13 = vpop.eup %15515  ;;  %v2944_v15 = vmul.f32 %v15514_v54, %v2884_v37  ;;  %v15151_v18 = vld [vmem:[#allocation37 + $0x1d6c] ss:$16 sps:$4 sm:$0xff]   ;;  %v15176_v37 = vld [vmem:[#allocation37 + $0x22e0] ss:$16 sps:$4 sm:$0xff]  }
 0xb5a   :  { %10536 = vmatpush1.bf16.msra.mxu1 %v15110_v38  ;;  %10496 = vmatprep.subr.bf16.mxu0 %v15115_v39  ;;  %v2946_v26 = vmul.f32 %v15516_v13, %v2886_v21  ;;  %v15154_v38 = vld [vmem:[#allocation37 + $0x1f6c] ss:$16 sps:$4 sm:$0xff]   ;;  %v2741_v39 = vmul.f32 0.3275911, %v17413_v12  ;;  %v15179_v13 = vld [vmem:[#allocation37 + $0x20c0] ss:$16 sps:$4 sm:$0xff]  }
 0xb5b   :  { %10537 = vmatprep.subr.bf16.mxu1 %v15118_v17  ;;  %v2956_v45 = vsub.f32 1.0, %v2944_v15  ;;  %v15149_v17 = vld [vmem:[#allocation37 + $0x1d68] ss:$16 sps:$4 sm:$0xff]  }
 0xb5c   :  { %v2958_v7 = vsub.f32 1.0, %v2946_v26 }
 0xb5d   :  { %10497 = vmatpush1.bf16.msra.mxu0 %v15113_v56  ;;  %v15157_v56 = vld [vmem:[#allocation37 + $0x1d4c] ss:$16 sps:$4 sm:$0xff]   ;;  %v2980_v51 = vsub.f32 0.0, %v2956_v45 }
 0xb5e   :  { %10538 = vmatpush1.bf16.msra.mxu1 %v15116_v10  ;;  %10498 = vmatprep.subr.bf16.mxu0 %v15121_v63  ;;  %v15160_v10 = vld [vmem:[#allocation37 + $0x1f4c] ss:$16 sps:$4 sm:$0xff]   ;;  %v2753_v63 = vadd.f32 1.0, %v2741_v39  ;;  %v2982_v34 = vsub.f32 0.0, %v2958_v7 }
 0xb5f   :  { %10539 = vmatprep.subr.bf16.mxu1 %v15124_v59  ;;  %v15155_v59 = vld [vmem:[#allocation37 + $0x1d48] ss:$16 sps:$4 sm:$0xff]   ;;  %v17421_v21 = vpop.eup %15517 }
 0xb60   :  { %15519 = vrcp.f32 %v2753_v63  ;;  %v2787_v26 = vmul.f32 1.0614054, %v17421_v21  ;;  %v15196_v63 = vld [vmem:[#allocation37 + $0x2284] ss:$16 sps:$4 sm:$0xff]  }
 0xb61   :  { %10499 = vmatpush1.bf16.msra.mxu0 %v15119_v1  ;;  %v15163_v1 = vld [vmem:[#allocation37 + $0x1d2c] ss:$16 sps:$4 sm:$0xff]  }
 0xb62   :  { %10540 = vmatpush1.bf16.msra.mxu1 %v15122_v47  ;;  %10500 = vmatprep.subr.bf16.mxu0 %v15127_v48  ;;  %v2992_v47 = vsel %vm2968_vm12, %v2956_v45, %v2980_v51  ;;  %v15161_v48 = vld [vmem:[#allocation37 + $0x1d28] ss:$16 sps:$4 sm:$0xff]   ;;  %v15185_v45 = vld [vmem:[#allocation37 + $0x20a0] ss:$16 sps:$4 sm:$0xff]   ;;  %v2799_v4 = vadd.f32 -1.4531521, %v2787_v26 }
 0xb63   :  { %10541 = vmatprep.subr.bf16.mxu1 %v15130_v3  ;;  %v2994_v3 = vsel %vm2970_vm13, %v2958_v7, %v2982_v34  ;;  %v15191_v51 = vld [vmem:[#allocation37 + $0x2080] ss:$16 sps:$4 sm:$0xff]   ;;  %v15199_v34 = vld [vmem:[#allocation37 + $0x2064] ss:$16 sps:$4 sm:$0xff]  }
 0xb64   :  { %v15221_v26 = vld [vmem:[#allocation37 + $0x21e0] ss:$16 sps:$4 sm:$0xff]  }
 0xb65   :  { %10501 = vmatpush2.bf16.msra.mxu0 %v15125_v36  ;;  %v15169_v36 = vld [vmem:[#allocation37 + $0x1d0c] ss:$16 sps:$4 sm:$0xff]  }
 0xb66   :  { %10542 = vmatpush2.bf16.msra.mxu1 %v15128_v52  ;;  %10502 = vmatprep.subr.bf16.mxu0 %v15133_v44  ;;  %v3004_v52 = vadd.f32 1.0, %v2992_v47  ;;  %v3006_v44 = vadd.f32 1.0, %v2994_v3  ;;  %v15197_v47 = vld [vmem:[#allocation37 + $0x2060] ss:$16 sps:$4 sm:$0xff]  }
 0xb67   :  { %10543 = vmatprep.subr.bf16.mxu1 %v15136_v22  ;;  %v15167_v22 = vld [vmem:[#allocation37 + $0x1d08] ss:$16 sps:$4 sm:$0xff]   ;;  %v15200_v3 = vld [vmem:[#allocation37 + $0x2260] ss:$16 sps:$4 sm:$0xff]  }
 0xb69   :  { %10503 = vmatpush2.bf16.msra.mxu0 %v15131_v11  ;;  %v15175_v11 = vld [vmem:[#allocation37 + $0x20e4] ss:$16 sps:$4 sm:$0xff]  }
 0xb6a   :  { %10544 = vmatpush2.bf16.msra.mxu1 %v15134_v53  ;;  %10504 = vmatprep.subr.bf16.mxu0 %v15139_v23  ;;  %v3016_v53 = vmul.f32 %v3004_v52, %v2704_v19  ;;  %v3018_v23 = vmul.f32 %v3006_v44, %v2706_v42 }
 0xb6b   :  { %10545 = vmatprep.subr.bf16.mxu1 %v15142_v6  ;;  %v15173_v6 = vld [vmem:[#allocation37 + $0x20e0] ss:$16 sps:$4 sm:$0xff]  }
 0xb6c   :  { %v17431_v54 = vpack.c.bf16 %v3018_v23, %v3018_v23 }
 0xb6d   :  { %10505 = vmatpush2.bf16.msra.mxu0 %v15137_v41  ;;  %v15181_v41 = vld [vmem:[#allocation37 + $0x20c4] ss:$16 sps:$4 sm:$0xff]  }
 0xb6e   :  { %10546 = vmatpush2.bf16.msra.mxu1 %v15140_v31  ;;  %10506 = vmatprep.subr.bf16.mxu0 %v15145_v24  ;;  %v17425_v31 = vpack.c.bf16 %v3016_v53, %v3016_v53  ;;  %v17427_v24 = vpop.eup %15519 }
 0xb6f   :  { %10547 = vmatprep.subr.bf16.mxu1 %v15148_v61  ;;  %v2789_v14 = vmul.f32 1.0614054, %v17427_v24 }
 0xb71   :  { %10507 = vmatpush2.bf16.msra.mxu0 %v15143_v16 }
 0xb72   :  { %10548 = vmatpush2.bf16.msra.mxu1 %v15146_v35  ;;  %10508 = vmatprep.subr.bf16.mxu0 %v15151_v18  ;;  %v15190_v18 = vld [vmem:[#allocation37 + $0x22a4] ss:$16 sps:$4 sm:$0xff]  }
 0xb73   :  { %10549 = vmatprep.subr.bf16.mxu1 %v15154_v38 }
 0xb75   :  { %10509 = vmatpush2.bf16.msra.mxu0 %v15149_v17 }
 0xb76   :  { %10550 = vmatpush2.bf16.msra.mxu1 %v15152_v2  ;;  %10510 = vmatprep.subr.bf16.mxu0 %v15157_v56  ;;  %v15188_v2 = vld [vmem:[#allocation37 + $0x22a0] ss:$16 sps:$4 sm:$0xff]   ;;  %v15193_v56 = vld [vmem:[#allocation37 + $0x2084] ss:$16 sps:$4 sm:$0xff]  }
 0xb77   :  { %10551 = vmatprep.subr.bf16.mxu1 %v15160_v10 }
 0xb79   :  { %10511 = vmatpush2.bf16.msra.mxu0 %v15155_v59  ;;  %v15194_v59 = vld [vmem:[#allocation37 + $0x2280] ss:$16 sps:$4 sm:$0xff]  }
 0xb7a   :  { %10552 = vmatpush2.bf16.msra.mxu1 %v15158_v40  ;;  %10512 = vmatprep.subr.bf16.mxu0 %v15163_v1  ;;  %v2811_v40 = vmul.f32 %v17421_v21, %v2799_v4 }
 0xb7b   :  { %10553 = vmatprep.subr.bf16.mxu1 %v15166_v30  ;;  %v2895_v30 = vsub.f32 0.0, %v17410_v9 }
 0xb7d   :  { %10513 = vmatpush2.bf16.msra.mxu0 %v15161_v48  ;;  %v2897_v48 = vsub.f32 0.0, %v17413_v12  ;;  %v2907_v44 = vmul.f32 %v2895_v30, %v17410_v9  ;;  %v15212_v9 = vld [vmem:[#allocation37 + $0x2220] ss:$16 sps:$4 sm:$0xff]   ;;  %v15247_v30 = vld [vmem:[#allocation37 + $0x2164] ss:$16 sps:$4 sm:$0xff]  }
 0xb7e   :  { %10554 = vmatpush2.bf16.msra.mxu1 %v15164_v5  ;;  %10514 = vmatprep.subr.bf16.mxu0 %v15169_v36  ;;  %v15205_v5 = vld [vmem:[#allocation37 + $0x2044] ss:$16 sps:$4 sm:$0xff]   ;;  %v2823_v36 = vadd.f32 1.4214138, %v2811_v40 }
 0xb7f   :  { %10555 = vmatprep.subr.bf16.mxu1 %v15172_v60  ;;  %v15208_v60 = vld [vmem:[#allocation37 + $0x2244] ss:$16 sps:$4 sm:$0xff]   ;;  %v2909_v19 = vmul.f32 %v2897_v48, %v17413_v12  ;;  %v2927_v23 = vmul.f32 1.442695, %v2907_v44 }
 0xb80   :  { %v2835_v42 = vmul.f32 %v17421_v21, %v2823_v36  ;;  %v15220_v12 = vld [vmem:[#allocation37 + $0x2204] ss:$16 sps:$4 sm:$0xff]  }
 0xb81   :  { %10515 = vmatpush2.bf16.msra.mxu0 %v15167_v22  ;;  %v15203_v22 = vld [vmem:[#allocation37 + $0x2040] ss:$16 sps:$4 sm:$0xff]   ;;  %15521 = vpow2.f32 %v2927_v23  ;;  %v15244_v40 = vld [vmem:[#allocation37 + $0x2384] ss:$16 sps:$4 sm:$0xff]  }
 0xb82   :  { %10556 = vmatpush2.bf16.msra.mxu1 %v15170_v58  ;;  %11343 = vmatprep.subr.bf16.mxu0 %v15175_v11  ;;  %v15206_v58 = vld [vmem:[#allocation37 + $0x2240] ss:$16 sps:$4 sm:$0xff]   ;;  %v15211_v11 = vld [vmem:[#allocation37 + $0x2024] ss:$16 sps:$4 sm:$0xff]  }
 0xb83   :  { %11384 = vmatprep.subr.bf16.mxu1 %v15178_v8  ;;  %v15214_v8 = vld [vmem:[#allocation37 + $0x2224] ss:$16 sps:$4 sm:$0xff]  }
 0xb84   :  { %v9491_v49 = vpop.f32.mrf.mxu0  ;;  %10517 = vmatmul.mubr.bf16.vlgmr.msra.gmra.mxu0 %v9754_v43  ;;  %v15187_v43 = vld [vmem:[#allocation37 + $0x20a4] ss:$16 sps:$4 sm:$0xff]  }
 0xb85   :  { %v9532_v61 = vpop.f32.mrf.mxu1  ;;  %10558 = vmatmul.mubr.bf16.vlgmr.msra.gmra.mxu1 %v9756_v27  ;;  %11344 = vmatpush1.bf16.msra.mxu0 %v15173_v6  ;;  %v15209_v6 = vld [vmem:[#allocation37 + $0x2020] ss:$16 sps:$4 sm:$0xff]   ;;  %v15253_v36 = vld [vmem:[#allocation37 + $0x2144] ss:$16 sps:$4 sm:$0xff]  }
 0xb86   :  { %v9533_v15 = vadd.f32 %v9532_v61, %v9491_v49  ;;  %11375 = vmatprep.mubr.bf16.mxu0 %v17425_v31  ;;  %11385 = vmatpush1.bf16.msra.mxu1 %v15176_v37  ;;  %v9493_v16 = vpop.f32.mrf.mxu0  ;;  %v2931_v37 = vmul.f32 1.442695, %v2909_v19  ;;  %v2847_v49 = vadd.f32 -0.28449672, %v2835_v42  ;;  %v15215_v61 = vld [vmem:[#allocation37 + $0x2000] ss:$16 sps:$4 sm:$0xff]  }
 0xb87   :  { %11416 = vmatprep.mubr.bf16.mxu1 %v17431_v54  ;;  %v9534_v35 = vpop.f32.mrf.mxu1  ;;  %11345 = vmatprep.subr.bf16.mxu0 %v15181_v41  ;;  %v15217_v41 = vld [vmem:[#allocation37 + $0x2004] ss:$16 sps:$4 sm:$0xff]   ;;  %v15254_v19 = vld [vmem:[#allocation37 + $0x2340] ss:$16 sps:$4 sm:$0xff]  }
 0xb88   :  { %v17438_v27 = vadd.f32 %v9533_v15, %v17350_v33  ;;  %v9535_v29 = vadd.f32 %v9534_v35, %v9493_v16  ;;  %v9495_v38 = vpop.f32.mrf.mxu0  ;;  %11386 = vmatprep.subr.bf16.mxu1 %v15184_v57  ;;  %v2801_v33 = vadd.f32 -1.4531521, %v2789_v14  ;;  %15523 = vpow2.f32 %v2931_v37  ;;  %v15223_v15 = vld [vmem:[#allocation37 + $0x21e4] ss:$16 sps:$4 sm:$0xff]   ;;  %v15224_v35 = vld [vmem:[#allocation37 + $0x23e0] ss:$16 sps:$4 sm:$0xff]  }
 0xb89   :  { %v9536_v39 = vpop.f32.mrf.mxu1  ;;  %11346 = vmatpush1.bf16.msra.mxu0 %v15179_v13  ;;  %v15218_v13 = vld [vmem:[#allocation37 + $0x2200] ss:$16 sps:$4 sm:$0xff]   ;;  %v2859_v16 = vmul.f32 %v17421_v21, %v2847_v49  ;;  %v15262_v42 = vld [vmem:[#allocation37 + $0x2324] ss:$16 sps:$4 sm:$0xff]   ;;  %v2705_v49 = vmul.f32 0.5, %v17111_v20 }
 0xb8a   :  { %v17441_v17 = vadd.f32 %v9535_v29, %v17353_v32  ;;  %11387 = vmatpush1.bf16.msra.mxu1 %v15182_v28  ;;  %v9496_v7 = vpop.f32.mrf.mxu0  ;;  %11347 = vmatprep.subr.bf16.mxu0 %v15187_v43  ;;  %v15202_v32 = vld [vmem:[#allocation37 + $0x2264] ss:$16 sps:$4 sm:$0xff]   ;;  %v2813_v1 = vmul.f32 %v17427_v24, %v2801_v33  ;;  %v15227_v39 = vld [vmem:[#allocation37 + $0x21c0] ss:$16 sps:$4 sm:$0xff]   ;;  %v15277_v20 = vld [vmem:[#allocation37 + $0x20cc] ss:$16 sps:$4 sm:$0xff]  }
 0xb8b   :  { %v9537_v10 = vpop.f32.mrf.mxu1  ;;  %11388 = vmatprep.subr.bf16.mxu1 %v15190_v18  ;;  %v15226_v28 = vld [vmem:[#allocation37 + $0x23e4] ss:$16 sps:$4 sm:$0xff]   ;;  %v2871_v14 = vadd.f32 0.2548296, %v2859_v16  ;;  %v15236_v33 = vld [vmem:[#allocation37 + $0x23a0] ss:$16 sps:$4 sm:$0xff]  }
 0xb8c   :  { %v2825_v52 = vadd.f32 1.4214138, %v2813_v1  ;;  %v15229_v18 = vld [vmem:[#allocation37 + $0x21c4] ss:$16 sps:$4 sm:$0xff]   ;;  %v15233_v10 = vld [vmem:[#allocation37 + $0x21a0] ss:$16 sps:$4 sm:$0xff]  }
 0xb8d   :  { %11348 = vmatpush1.bf16.msra.mxu0 %v15185_v45  ;;  %v15232_v29 = vld [vmem:[#allocation37 + $0x23c4] ss:$16 sps:$4 sm:$0xff]   ;;  %v15230_v45 = vld [vmem:[#allocation37 + $0x23c0] ss:$16 sps:$4 sm:$0xff]   ;;  %v15269_v16 = vld [vmem:[#allocation37 + $0x20e8] ss:$16 sps:$4 sm:$0xff]  }
 0xb8e   :  { %11389 = vmatpush1.bf16.msra.mxu1 %v15188_v2  ;;  %11349 = vmatprep.subr.bf16.mxu0 %v15193_v56  ;;  %v2837_v53 = vmul.f32 %v17427_v24, %v2825_v52  ;;  %v15235_v7 = vld [vmem:[#allocation37 + $0x21a4] ss:$16 sps:$4 sm:$0xff]   ;;  %v2883_v2 = vmul.f32 %v17421_v21, %v2871_v14  ;;  %v15239_v1 = vld [vmem:[#allocation37 + $0x2180] ss:$16 sps:$4 sm:$0xff]   ;;  %v15275_v14 = vld [vmem:[#allocation37 + $0x20c8] ss:$16 sps:$4 sm:$0xff]  }
 0xb8f   :  { %11390 = vmatprep.subr.bf16.mxu1 %v15196_v63  ;;  %v15238_v56 = vld [vmem:[#allocation37 + $0x23a4] ss:$16 sps:$4 sm:$0xff]   ;;  %v15522_v63 = vpop.eup %15521  ;;  %v15242_v21 = vld [vmem:[#allocation37 + $0x2380] ss:$16 sps:$4 sm:$0xff]  }
 0xb90   :  { %v2849_v57 = vadd.f32 -0.28449672, %v2837_v53  ;;  %v15256_v52 = vld [vmem:[#allocation37 + $0x2344] ss:$16 sps:$4 sm:$0xff]   ;;  %v15257_v53 = vld [vmem:[#allocation37 + $0x2120] ss:$16 sps:$4 sm:$0xff]  }
 0xb91   :  { %11350 = vmatpush1.bf16.msra.mxu0 %v15191_v51  ;;  %v15241_v51 = vld [vmem:[#allocation37 + $0x2184] ss:$16 sps:$4 sm:$0xff]  }
 0xb92   :  { %11391 = vmatpush1.bf16.msra.mxu1 %v15194_v59  ;;  %11351 = vmatprep.subr.bf16.mxu0 %v15199_v34  ;;  %v2861_v43 = vmul.f32 %v17427_v24, %v2849_v57  ;;  %v2943_v34 = vmul.f32 %v15522_v63, %v2883_v2  ;;  %v15265_v37 = vld [vmem:[#allocation37 + $0x2104] ss:$16 sps:$4 sm:$0xff]   ;;  %v15266_v57 = vld [vmem:[#allocation37 + $0x2300] ss:$16 sps:$4 sm:$0xff]   ;;  %v15286_v2 = vld [vmem:[#allocation37 + $0x22ac] ss:$16 sps:$4 sm:$0xff]  }
 0xb93   :  { %11392 = vmatprep.subr.bf16.mxu1 %v15202_v32 }
 0xb94   :  { %v2873_v38 = vadd.f32 0.2548296, %v2861_v43  ;;  %v15272_v43 = vld [vmem:[#allocation37 + $0x22e8] ss:$16 sps:$4 sm:$0xff]  }
 0xb95   :  { %11352 = vmatpush1.bf16.msra.mxu0 %v15197_v47  ;;  %v15524_v59 = vpop.eup %15523  ;;  %v2955_v47 = vsub.f32 1.0, %v2943_v34 }
 0xb96   :  { %11393 = vmatpush1.bf16.msra.mxu1 %v15200_v3  ;;  %11353 = vmatprep.subr.bf16.mxu0 %v15205_v5  ;;  %v2885_v4 = vmul.f32 %v17427_v24, %v2873_v38  ;;  %v15250_v24 = vld [vmem:[#allocation37 + $0x2364] ss:$16 sps:$4 sm:$0xff]   ;;  %v15245_v3 = vld [vmem:[#allocation37 + $0x2160] ss:$16 sps:$4 sm:$0xff]  }
 0xb97   :  { %11394 = vmatprep.subr.bf16.mxu1 %v15208_v60  ;;  %v15248_v5 = vld [vmem:[#allocation37 + $0x2360] ss:$16 sps:$4 sm:$0xff]   ;;  %v2979_v60 = vsub.f32 0.0, %v2955_v47 }
 0xb98   :  { %v2945_v32 = vmul.f32 %v15524_v59, %v2885_v4  ;;  %v15284_v59 = vld [vmem:[#allocation37 + $0x22a8] ss:$16 sps:$4 sm:$0xff]  }
 0xb99   :  { %11354 = vmatpush1.bf16.msra.mxu0 %v15203_v22  ;;  %v15251_v22 = vld [vmem:[#allocation37 + $0x2140] ss:$16 sps:$4 sm:$0xff]  }
 0xb9a   :  { %11395 = vmatpush1.bf16.msra.mxu1 %v15206_v58  ;;  %11355 = vmatprep.subr.bf16.mxu0 %v15211_v11  ;;  %v2957_v48 = vsub.f32 1.0, %v2945_v32  ;;  %v15259_v58 = vld [vmem:[#allocation37 + $0x2124] ss:$16 sps:$4 sm:$0xff]   ;;  %v2991_v11 = vsel %vm2967_vm14, %v2955_v47, %v2979_v60  ;;  %v15290_v32 = vld [vmem:[#allocation37 + $0x2288] ss:$16 sps:$4 sm:$0xff]  }
 0xb9b   :  { %11396 = vmatprep.subr.bf16.mxu1 %v15214_v8  ;;  %v3003_v23 = vadd.f32 1.0, %v2991_v11  ;;  %v15301_v47 = vld [vmem:[#allocation37 + $0x204c] ss:$16 sps:$4 sm:$0xff]   ;;  %v15305_v60 = vld [vmem:[#allocation37 + $0x2028] ss:$16 sps:$4 sm:$0xff]  }
 0xb9c   :  { %v2981_v44 = vsub.f32 0.0, %v2957_v48  ;;  %v15319_v11 = vld [vmem:[#allocation37 + $0x21ec] ss:$16 sps:$4 sm:$0xff]  }
 0xb9d   :  { %11356 = vmatpush1.bf16.msra.mxu0 %v15209_v6  ;;  %v15260_v6 = vld [vmem:[#allocation37 + $0x2320] ss:$16 sps:$4 sm:$0xff]  }
 0xb9e   :  { %11397 = vmatpush1.bf16.msra.mxu1 %v15212_v9  ;;  %11357 = vmatprep.subr.bf16.mxu0 %v15217_v41  ;;  %v2993_v8 = vsel %vm2969_vm15, %v2957_v48, %v2981_v44  ;;  %v2703_v41 = vmul.f32 0.5, %v17109_v55  ;;  %v15299_v48 = vld [vmem:[#allocation37 + $0x2048] ss:$16 sps:$4 sm:$0xff]   ;;  %v15313_v44 = vld [vmem:[#allocation37 + $0x200c] ss:$16 sps:$4 sm:$0xff]  }
 0xb9f   :  { %11398 = vmatprep.subr.bf16.mxu1 %v15220_v12  ;;  %v3005_v9 = vadd.f32 1.0, %v2993_v8  ;;  %v15263_v12 = vld [vmem:[#allocation37 + $0x2100] ss:$16 sps:$4 sm:$0xff]   ;;  %v15317_v8 = vld [vmem:[#allocation37 + $0x21e8] ss:$16 sps:$4 sm:$0xff]  }
 0xba0   :  { %v3015_v50 = vmul.f32 %v3003_v23, %v2703_v41  ;;  %v15325_v23 = vld [vmem:[#allocation37 + $0x21cc] ss:$16 sps:$4 sm:$0xff]  }
 0xba1   :  { %11358 = vmatpush1.bf16.msra.mxu0 %v15215_v61  ;;  %v15271_v61 = vld [vmem:[#allocation37 + $0x20ec] ss:$16 sps:$4 sm:$0xff]  }
 0xba2   :  { %11399 = vmatpush1.bf16.msra.mxu1 %v15218_v13  ;;  %11359 = vmatprep.subr.bf16.mxu0 %v15223_v15  ;;  %v3017_v13 = vmul.f32 %v3005_v9, %v2705_v49  ;;  %v15274_v15 = vld [vmem:[#allocation37 + $0x22ec] ss:$16 sps:$4 sm:$0xff]   ;;  %v15326_v9 = vld [vmem:[#allocation37 + $0x23c8] ss:$16 sps:$4 sm:$0xff]  }
 0xba3   :  { %11400 = vmatprep.subr.bf16.mxu1 %v15226_v28  ;;  %v17459_v28 = vpack.c.bf16 %v3015_v50, %v3015_v50  ;;  %v15334_v41 = vld [vmem:[#allocation37 + $0x23ac] ss:$16 sps:$4 sm:$0xff]   ;;  %v15329_v49 = vld [vmem:[#allocation37 + $0x21a8] ss:$16 sps:$4 sm:$0xff]  }
 0xba4   :  { %v17461_v55 = vpack.c.bf16 %v3017_v13, %v3017_v13  ;;  %v15337_v50 = vld [vmem:[#allocation37 + $0x218c] ss:$16 sps:$4 sm:$0xff]   ;;  %v15338_v13 = vld [vmem:[#allocation37 + $0x2388] ss:$16 sps:$4 sm:$0xff]  }
 0xba5   :  { %11360 = vmatpush2.bf16.msra.mxu0 %v15221_v26 }
 0xba6   :  { %11401 = vmatpush2.bf16.msra.mxu1 %v15224_v35  ;;  %11361 = vmatprep.subr.bf16.mxu0 %v15229_v18  ;;  %v15280_v35 = vld [vmem:[#allocation37 + $0x22cc] ss:$16 sps:$4 sm:$0xff]  }
 0xba7   :  { %11402 = vmatprep.subr.bf16.mxu1 %v15232_v29 }
 0xba9   :  { %11362 = vmatpush2.bf16.msra.mxu0 %v15227_v39  ;;  %v15278_v39 = vld [vmem:[#allocation37 + $0x22c8] ss:$16 sps:$4 sm:$0xff]  }
 0xbaa   :  { %11403 = vmatpush2.bf16.msra.mxu1 %v15230_v45  ;;  %11363 = vmatprep.subr.bf16.mxu0 %v15235_v7  ;;  %v15283_v45 = vld [vmem:[#allocation37 + $0x20ac] ss:$16 sps:$4 sm:$0xff]  }
 0xbab   :  { %11404 = vmatprep.subr.bf16.mxu1 %v15238_v56 }
 0xbad   :  { %11364 = vmatpush2.bf16.msra.mxu0 %v15233_v10 }
 0xbae   :  { %11405 = vmatpush2.bf16.msra.mxu1 %v15236_v33  ;;  %11365 = vmatprep.subr.bf16.mxu0 %v15241_v51  ;;  %v15281_v33 = vld [vmem:[#allocation37 + $0x20a8] ss:$16 sps:$4 sm:$0xff]  }
 0xbaf   :  { %11406 = vmatprep.subr.bf16.mxu1 %v15244_v40  ;;  %v15292_v40 = vld [vmem:[#allocation37 + $0x228c] ss:$16 sps:$4 sm:$0xff]  }
 0xbb1   :  { %11366 = vmatpush2.bf16.msra.mxu0 %v15239_v1  ;;  %v15295_v1 = vld [vmem:[#allocation37 + $0x206c] ss:$16 sps:$4 sm:$0xff]  }
 0xbb2   :  { %11407 = vmatpush2.bf16.msra.mxu1 %v15242_v21  ;;  %11367 = vmatprep.subr.bf16.mxu0 %v15247_v30  ;;  %v15298_v21 = vld [vmem:[#allocation37 + $0x226c] ss:$16 sps:$4 sm:$0xff]   ;;  %v15293_v30 = vld [vmem:[#allocation37 + $0x2068] ss:$16 sps:$4 sm:$0xff]  }
 0xbb3   :  { %11408 = vmatprep.subr.bf16.mxu1 %v15250_v24  ;;  %v15304_v24 = vld [vmem:[#allocation37 + $0x224c] ss:$16 sps:$4 sm:$0xff]  }
 0xbb5   :  { %11368 = vmatpush2.bf16.msra.mxu0 %v15245_v3  ;;  %v15302_v3 = vld [vmem:[#allocation37 + $0x2248] ss:$16 sps:$4 sm:$0xff]  }
 0xbb6   :  { %11409 = vmatpush2.bf16.msra.mxu1 %v15248_v5  ;;  %11369 = vmatprep.subr.bf16.mxu0 %v15253_v36  ;;  %v15307_v5 = vld [vmem:[#allocation37 + $0x202c] ss:$16 sps:$4 sm:$0xff]  }
 0xbb7   :  { %11410 = vmatprep.subr.bf16.mxu1 %v15256_v52  ;;  %v15310_v36 = vld [vmem:[#allocation37 + $0x222c] ss:$16 sps:$4 sm:$0xff]   ;;  %v15308_v52 = vld [vmem:[#allocation37 + $0x2228] ss:$16 sps:$4 sm:$0xff]  }
 0xbb9   :  { %11370 = vmatpush2.bf16.msra.mxu0 %v15251_v22  ;;  %v15316_v22 = vld [vmem:[#allocation37 + $0x220c] ss:$16 sps:$4 sm:$0xff]  }
 0xbba   :  { %11411 = vmatpush2.bf16.msra.mxu1 %v15254_v19  ;;  %11371 = vmatprep.subr.bf16.mxu0 %v15259_v58  ;;  %v15311_v19 = vld [vmem:[#allocation37 + $0x2008] ss:$16 sps:$4 sm:$0xff]  }
 0xbbb   :  { %11412 = vmatprep.subr.bf16.mxu1 %v15262_v42  ;;  %v15314_v58 = vld [vmem:[#allocation37 + $0x2208] ss:$16 sps:$4 sm:$0xff]   ;;  %v15322_v42 = vld [vmem:[#allocation37 + $0x23ec] ss:$16 sps:$4 sm:$0xff]  }
 0xbbd   :  { %11372 = vmatpush2.bf16.msra.mxu0 %v15257_v53  ;;  %v15320_v53 = vld [vmem:[#allocation37 + $0x23e8] ss:$16 sps:$4 sm:$0xff]  }
 0xbbe   :  { %11413 = vmatpush2.bf16.msra.mxu1 %v15260_v6  ;;  %11373 = vmatprep.subr.bf16.mxu0 %v15265_v37  ;;  %v15328_v6 = vld [vmem:[#allocation37 + $0x23cc] ss:$16 sps:$4 sm:$0xff]   ;;  %v15323_v37 = vld [vmem:[#allocation37 + $0x21c8] ss:$16 sps:$4 sm:$0xff]  }
 0xbbf   :  { %11414 = vmatprep.subr.bf16.mxu1 %v15268_v46  ;;  %v15331_v46 = vld [vmem:[#allocation37 + $0x21ac] ss:$16 sps:$4 sm:$0xff]  }
 0xbc1   :  { %11374 = vmatpush2.bf16.msra.mxu0 %v15263_v12  ;;  %v15332_v12 = vld [vmem:[#allocation37 + $0x23a8] ss:$16 sps:$4 sm:$0xff]  }
 0xbc2   :  { %11415 = vmatpush2.bf16.msra.mxu1 %v15266_v57  ;;  %11425 = vmatprep.subr.bf16.mxu0 %v15271_v61  ;;  %v15340_v57 = vld [vmem:[#allocation37 + $0x238c] ss:$16 sps:$4 sm:$0xff]   ;;  %v15335_v61 = vld [vmem:[#allocation37 + $0x2188] ss:$16 sps:$4 sm:$0xff]  }
 0xbc3   :  { %11466 = vmatprep.subr.bf16.mxu1 %v15274_v15  ;;  %v15343_v15 = vld [vmem:[#allocation37 + $0x216c] ss:$16 sps:$4 sm:$0xff]  }
 0xbc4   :  { %v9573_v26 = vpop.f32.mrf.mxu0  ;;  %11376 = vmatmul.mubr.bf16.vlgmr.msra.gmra.mxu0 %v17459_v28 }
 0xbc5   :  { %v9614_v18 = vpop.f32.mrf.mxu1  ;;  %11417 = vmatmul.mubr.bf16.vlgmr.msra.gmra.mxu1 %v17461_v55  ;;  %11426 = vmatpush1.bf16.msra.mxu0 %v15269_v16  ;;  %v15346_v16 = vld [vmem:[#allocation37 + $0x236c] ss:$16 sps:$4 sm:$0xff]  }
 0xbc6   :  { %v9615_v29 = vadd.f32 %v9614_v18, %v9573_v26  ;;  %11457 = vmatprep.mubr.bf16.mxu0 %v17425_v31  ;;  %11467 = vmatpush1.bf16.msra.mxu1 %v15272_v43  ;;  %v9575_v38 = vpop.f32.mrf.mxu0  ;;  %v15341_v43 = vld [vmem:[#allocation37 + $0x2168] ss:$16 sps:$4 sm:$0xff]   ;;  %v15349_v26 = vld [vmem:[#allocation37 + $0x214c] ss:$16 sps:$4 sm:$0xff]  }
 0xbc7   :  { %11498 = vmatprep.mubr.bf16.mxu1 %v17431_v54  ;;  %v9616_v7 = vpop.f32.mrf.mxu1  ;;  %11427 = vmatprep.subr.bf16.mxu0 %v15277_v20  ;;  %v15289_v54 = vld [vmem:[#allocation37 + $0x208c] ss:$16 sps:$4 sm:$0xff]   ;;  %v15344_v20 = vld [vmem:[#allocation37 + $0x2368] ss:$16 sps:$4 sm:$0xff]  }
 0xbc8   :  { %v17468_v56 = vadd.f32 %v9615_v29, %v17384_v25  ;;  %v9617_v4 = vadd.f32 %v9616_v7, %v9575_v38  ;;  %v9577_v10 = vpop.f32.mrf.mxu0  ;;  %11468 = vmatprep.subr.bf16.mxu1 %v15280_v35  ;;  %v15287_v25 = vld [vmem:[#allocation37 + $0x2088] ss:$16 sps:$4 sm:$0xff]   ;;  %v15352_v35 = vld [vmem:[#allocation37 + $0x234c] ss:$16 sps:$4 sm:$0xff]  }
 0xbc9   :  { %v9618_v63 = vpop.f32.mrf.mxu1  ;;  %11428 = vmatpush1.bf16.msra.mxu0 %v15275_v14  ;;  %v15347_v18 = vld [vmem:[#allocation37 + $0x2148] ss:$16 sps:$4 sm:$0xff]   ;;  %v15355_v29 = vld [vmem:[#allocation37 + $0x212c] ss:$16 sps:$4 sm:$0xff]  }
 0xbca   :  { %v17471_v31 = vadd.f32 %v9617_v4, %v17389_v62  ;;  %11469 = vmatpush1.bf16.msra.mxu1 %v15278_v39  ;;  %v9578_v51 = vpop.f32.mrf.mxu0  ;;  %11429 = vmatprep.subr.bf16.mxu0 %v15283_v45  ;;  %v15296_v62 = vld [vmem:[#allocation37 + $0x2268] ss:$16 sps:$4 sm:$0xff]   ;;  %v15358_v38 = vld [vmem:[#allocation37 + $0x232c] ss:$16 sps:$4 sm:$0xff]  }
 0xbcb   :  { %v9619_v34 = vpop.f32.mrf.mxu1  ;;  %11470 = vmatprep.subr.bf16.mxu1 %v15286_v2  ;;  %v15350_v14 = vld [vmem:[#allocation37 + $0x2348] ss:$16 sps:$4 sm:$0xff]   ;;  %v15361_v7 = vld [vmem:[#allocation37 + $0x210c] ss:$16 sps:$4 sm:$0xff]   ;;  %v11541_v51 = vld [vmem:[#allocation38 + $0xf0] sm:$0xff] }
 0xbcc   :  { %v15353_v39 = vld [vmem:[#allocation37 + $0x2128] ss:$16 sps:$4 sm:$0xff]   ;;  %v15364_v2 = vld [vmem:[#allocation37 + $0x230c] ss:$16 sps:$4 sm:$0xff]  }
 0xbcd   :  { %11430 = vmatpush1.bf16.msra.mxu0 %v15281_v33  ;;  %v15356_v45 = vld [vmem:[#allocation37 + $0x2328] ss:$16 sps:$4 sm:$0xff]  }
 0xbce   :  { %11471 = vmatpush1.bf16.msra.mxu1 %v15284_v59  ;;  %11431 = vmatprep.subr.bf16.mxu0 %v15289_v54  ;;  %v15359_v4 = vld [vmem:[#allocation37 + $0x2108] ss:$16 sps:$4 sm:$0xff]   ;;  %v11525_v54 = vld [vmem:[#allocation38 + $0x70] sm:$0xff] }
 0xbcf   :  { %11472 = vmatprep.subr.bf16.mxu1 %v15292_v40  ;;  %v15362_v10 = vld [vmem:[#allocation37 + $0x2308] ss:$16 sps:$4 sm:$0xff]  }
 0xbd0   :  { %v11542_v63 = vld [vmem:[#allocation38 + $0xf8] sm:$0xff]  ;;  %v11540_v40 = vld [vmem:[#allocation38 + $0xe8] sm:$0xff] }
 0xbd1   :  { %11432 = vmatpush1.bf16.msra.mxu0 %v15287_v25  ;;  %v11526_v33 = vld [vmem:[#allocation38 + $0x78] sm:$0xff] }
 0xbd2   :  { %11473 = vmatpush1.bf16.msra.mxu1 %v15290_v32  ;;  %11433 = vmatprep.subr.bf16.mxu0 %v15295_v1  ;;  %v11524_v1 = vld [vmem:[#allocation38 + $0x68] sm:$0xff] }
 0xbd3   :  { %11474 = vmatprep.subr.bf16.mxu1 %v15298_v21 }
 0xbd5   :  { %11434 = vmatpush1.bf16.msra.mxu0 %v15293_v30  ;;  %v11539_v30 = vld [vmem:[#allocation38 + $0xe0] sm:$0xff] }
 0xbd6   :  { %11475 = vmatpush1.bf16.msra.mxu1 %v15296_v62  ;;  %11435 = vmatprep.subr.bf16.mxu0 %v15301_v47 }
 0xbd7   :  { %11476 = vmatprep.subr.bf16.mxu1 %v15304_v24 }
 0xbd9   :  { %11436 = vmatpush1.bf16.msra.mxu0 %v15299_v48 }
 0xbda   :  { %11477 = vmatpush1.bf16.msra.mxu1 %v15302_v3  ;;  %11437 = vmatprep.subr.bf16.mxu0 %v15307_v5  ;;  %v11538_v3 = vld [vmem:[#allocation38 + $0xd8] sm:$0xff] }
 0xbdb   :  { %11478 = vmatprep.subr.bf16.mxu1 %v15310_v36  ;;  %v11522_v36 = vld [vmem:[#allocation38 + $0x58] sm:$0xff] }
 0xbdd   :  { %11438 = vmatpush1.bf16.msra.mxu0 %v15305_v60 }
 0xbde   :  { %11479 = vmatpush1.bf16.msra.mxu1 %v15308_v52  ;;  %11439 = vmatprep.subr.bf16.mxu0 %v15313_v44  ;;  %v11537_v52 = vld [vmem:[#allocation38 + $0xd0] sm:$0xff] }
 0xbdf   :  { %11480 = vmatprep.subr.bf16.mxu1 %v15316_v22  ;;  %v11521_v44 = vld [vmem:[#allocation38 + $0x50] sm:$0xff]  ;;  %v11574_v22 = vld [vmem:[#allocation38 + $0x1f8] sm:$0xff] }
 0xbe1   :  { %11440 = vmatpush1.bf16.msra.mxu0 %v15311_v19  ;;  %v11558_v19 = vld [vmem:[#allocation38 + $0x178] sm:$0xff] }
 0xbe2   :  { %11481 = vmatpush1.bf16.msra.mxu1 %v15314_v58  ;;  %11441 = vmatprep.subr.bf16.mxu0 %v15319_v11  ;;  %v11573_v58 = vld [vmem:[#allocation38 + $0x1f0] sm:$0xff]  ;;  %v11520_v11 = vld [vmem:[#allocation38 + $0x48] sm:$0xff] }
 0xbe3   :  { %11482 = vmatprep.subr.bf16.mxu1 %v15322_v42  ;;  %v11557_v42 = vld [vmem:[#allocation38 + $0x170] sm:$0xff] }
 0xbe5   :  { %11442 = vmatpush2.bf16.msra.mxu0 %v15317_v8  ;;  %v11572_v8 = vld [vmem:[#allocation38 + $0x1e8] sm:$0xff] }
 0xbe6   :  { %11483 = vmatpush2.bf16.msra.mxu1 %v15320_v53  ;;  %11443 = vmatprep.subr.bf16.mxu0 %v15325_v23  ;;  %v11519_v53 = vld [vmem:[#allocation38 + $0x40] sm:$0xff]  ;;  %v11556_v23 = vld [vmem:[#allocation38 + $0x168] sm:$0xff] }
 0xbe7   :  { %11484 = vmatprep.subr.bf16.mxu1 %v15328_v6  ;;  %v11534_v6 = vld [vmem:[#allocation38 + $0xb8] sm:$0xff] }
 0xbe9   :  { %11444 = vmatpush2.bf16.msra.mxu0 %v15323_v37  ;;  %v11571_v37 = vld [vmem:[#allocation38 + $0x1e0] sm:$0xff] }
 0xbea   :  { %11485 = vmatpush2.bf16.msra.mxu1 %v15326_v9  ;;  %11445 = vmatprep.subr.bf16.mxu0 %v15331_v46  ;;  %v11518_v9 = vld [vmem:[#allocation38 + $0x38] sm:$0xff]  ;;  %v11555_v46 = vld [vmem:[#allocation38 + $0x160] sm:$0xff] }
 0xbeb   :  { %11486 = vmatprep.subr.bf16.mxu1 %v15334_v41  ;;  %v11533_v41 = vld [vmem:[#allocation38 + $0xb0] sm:$0xff] }
 0xbed   :  { %11446 = vmatpush2.bf16.msra.mxu0 %v15329_v49  ;;  %v11570_v49 = vld [vmem:[#allocation38 + $0x1d8] sm:$0xff] }
 0xbee   :  { %11487 = vmatpush2.bf16.msra.mxu1 %v15332_v12  ;;  %11447 = vmatprep.subr.bf16.mxu0 %v15337_v50  ;;  %v11517_v12 = vld [vmem:[#allocation38 + $0x30] sm:$0xff]  ;;  %v11554_v50 = vld [vmem:[#allocation38 + $0x158] sm:$0xff] }
 0xbef   :  { %11488 = vmatprep.subr.bf16.mxu1 %v15340_v57  ;;  %v11532_v57 = vld [vmem:[#allocation38 + $0xa8] sm:$0xff] }
 0xbf1   :  { %11448 = vmatpush2.bf16.msra.mxu0 %v15335_v61  ;;  %v11569_v61 = vld [vmem:[#allocation38 + $0x1d0] sm:$0xff] }
 0xbf2   :  { %11489 = vmatpush2.bf16.msra.mxu1 %v15338_v13  ;;  %11449 = vmatprep.subr.bf16.mxu0 %v15343_v15  ;;  %v11516_v13 = vld [vmem:[#allocation38 + $0x28] sm:$0xff]  ;;  %v11553_v15 = vld [vmem:[#allocation38 + $0x150] sm:$0xff] }
 0xbf3   :  { %11490 = vmatprep.subr.bf16.mxu1 %v15346_v16  ;;  %v11531_v16 = vld [vmem:[#allocation38 + $0xa0] sm:$0xff] }
 0xbf5   :  { %11450 = vmatpush2.bf16.msra.mxu0 %v15341_v43  ;;  %v11568_v43 = vld [vmem:[#allocation38 + $0x1c8] sm:$0xff] }
 0xbf6   :  { %11491 = vmatpush2.bf16.msra.mxu1 %v15344_v20  ;;  %11451 = vmatprep.subr.bf16.mxu0 %v15349_v26  ;;  %v11515_v20 = vld [vmem:[#allocation38 + $0x20] sm:$0xff]  ;;  %v11552_v26 = vld [vmem:[#allocation38 + $0x148] sm:$0xff] }
 0xbf7   :  { %11492 = vmatprep.subr.bf16.mxu1 %v15352_v35  ;;  %v11530_v35 = vld [vmem:[#allocation38 + $0x98] sm:$0xff] }
 0xbf9   :  { %11452 = vmatpush2.bf16.msra.mxu0 %v15347_v18  ;;  %v11567_v18 = vld [vmem:[#allocation38 + $0x1c0] sm:$0xff] }
 0xbfa   :  { %11493 = vmatpush2.bf16.msra.mxu1 %v15350_v14  ;;  %11453 = vmatprep.subr.bf16.mxu0 %v15355_v29  ;;  %v11514_v14 = vld [vmem:[#allocation38 + $0x18] sm:$0xff]  ;;  %v11551_v29 = vld [vmem:[#allocation38 + $0x140] sm:$0xff] }
 0xbfb   :  { %11494 = vmatprep.subr.bf16.mxu1 %v15358_v38  ;;  %v11529_v38 = vld [vmem:[#allocation38 + $0x90] sm:$0xff] }
 0xbfd   :  { %11454 = vmatpush2.bf16.msra.mxu0 %v15353_v39  ;;  %v11566_v39 = vld [vmem:[#allocation38 + $0x1b8] sm:$0xff] }
 0xbfe   :  { %11495 = vmatpush2.bf16.msra.mxu1 %v15356_v45  ;;  %11455 = vmatprep.subr.bf16.mxu0 %v15361_v7  ;;  %v11513_v45 = vld [vmem:[#allocation38 + $0x10] sm:$0xff]  ;;  %v11550_v7 = vld [vmem:[#allocation38 + $0x138] sm:$0xff] }
 0xbff   :  { %11496 = vmatprep.subr.bf16.mxu1 %v15364_v2  ;;  %v11528_v2 = vld [vmem:[#allocation38 + $0x88] sm:$0xff] }
 0xc01   :  { %11456 = vmatpush2.bf16.msra.mxu0 %v15359_v4  ;;  %v11565_v4 = vld [vmem:[#allocation38 + $0x1b0] sm:$0xff] }
 0xc02   :  { %11497 = vmatpush2.bf16.msra.mxu1 %v15362_v10  ;;  %13318 = vmatprep.subr.mxu0 %v11542_v63  ;;  %v11512_v10 = vld [vmem:[#allocation38 + $0x8] sm:$0xff]  ;;  %v11549_v63 = vld [vmem:[#allocation38 + $0x130] sm:$0xff] }
 0xc03   :  { %13353 = vmatprep.subr.mxu1 %v11574_v22 }
 0xc04   :  { %v10436_v59 = vpop.f32.mrf.mxu0  ;;  %11458 = vmatmul.mubr.bf16.vlgmr.msra.gmra.mxu0 %v17459_v28  ;;  %v11523_v28 = vld [vmem:[#allocation38 + $0x60] sm:$0xff] }
 0xc05   :  { %v10477_v34 = vpop.f32.mrf.mxu1  ;;  %11499 = vmatmul.mubr.bf16.vlgmr.msra.gmra.mxu1 %v17461_v55  ;;  %13319 = vmatpush3.msra.mxu0 %v11526_v33  ;;  %v11527_v33 = vld [vmem:[#allocation38 + $0x80] sm:$0xff] }
 0xc06   :  { %v10478_v25 = vadd.f32 %v10477_v34, %v10436_v59  ;;  %v10438_v32 = vpop.f32.mrf.mxu0  ;;  %13320 = vmatprep.subr.mxu0 %v11541_v51  ;;  %13354 = vmatpush3.msra.mxu1 %v11558_v19  ;;  %v11564_v51 = vld [vmem:[#allocation38 + $0x1a8] sm:$0xff]  ;;  %v11511_v59 = vld [vmem:[#allocation38] sm:$0xff] }
 0xc07   :  { %v10479_v21 = vpop.f32.mrf.mxu1  ;;  %13321 = vmatpush3.msra.mxu0 %v11525_v54  ;;  %13355 = vmatprep.subr.mxu1 %v11573_v58  ;;  %v11548_v54 = vld [vmem:[#allocation38 + $0x128] sm:$0xff]  ;;  %v11563_v34 = vld [vmem:[#allocation38 + $0x1a0] sm:$0xff] }
 0xc08   :  { %v17476_v62 = vadd.f32 %v10478_v25, %v17438_v27  ;;  %v10480_v47 = vadd.f32 %v10479_v21, %v10438_v32  ;;  %v10440_v24 = vpop.f32.mrf.mxu0  ;;  %13322 = vmatprep.subr.mxu0 %v11540_v40  ;;  %v11536_v27 = vld [vmem:[#allocation38 + $0xc8] sm:$0xff]  ;;  %13356 = vmatpush3.msra.mxu1 %v11557_v42  ;;  %v11547_v40 = vld [vmem:[#allocation38 + $0x120] sm:$0xff] }
 0xc09   :  { %v10481_v48 = vpop.f32.mrf.mxu1  ;;  %13323 = vmatpush3.msra.mxu0 %v11524_v1  ;;  %13357 = vmatprep.subr.mxu1 %v11572_v8  ;;  %v11544_v19 = vld [vmem:[#allocation38 + $0x108] sm:$0xff]  ;;  %v11559_v58 = vld [vmem:[#allocation38 + $0x180] sm:$0xff] }
 0xc0a   :  { %v17479_v55 = vadd.f32 %v10480_v47, %v17441_v17  ;;  %v10441_v5 = vpop.f32.mrf.mxu0  ;;  %13324 = vmatprep.subr.mxu0 %v11539_v30  ;;  %v11535_v17 = vld [vmem:[#allocation38 + $0xc0] sm:$0xff]  ;;  %13358 = vmatpush3.msra.mxu1 %v11556_v23  ;;  %v11562_v48 = vld [vmem:[#allocation38 + $0x198] sm:$0xff] }
 0xc0b   :  { %v10482_v60 = vpop.f32.mrf.mxu1  ;;  %13325 = vmatpush3.msra.mxu0 %v11523_v28  ;;  %13359 = vmatprep.subr.mxu1 %v11571_v37 }
 0xc0c   :  { %13326 = vmatprep.subr.mxu0 %v11538_v3  ;;  %13360 = vmatpush3.msra.mxu1 %v11555_v46  ;;  %v11546_v3 = vld [vmem:[#allocation38 + $0x118] sm:$0xff] }
 0xc0d   :  { %13327 = vmatpush3.msra.mxu0 %v11522_v36  ;;  %13361 = vmatprep.subr.mxu1 %v11570_v49 }
 0xc0e   :  { %13328 = vmatprep.subr.mxu0 %v11537_v52  ;;  %13362 = vmatpush3.msra.mxu1 %v11554_v50  ;;  %v11561_v52 = vld [vmem:[#allocation38 + $0x190] sm:$0xff] }
 0xc0f   :  { %13329 = vmatpush3.msra.mxu0 %v11521_v44  ;;  %13363 = vmatprep.subr.mxu1 %v11569_v61  ;;  %v11545_v44 = vld [vmem:[#allocation38 + $0x110] sm:$0xff] }
 0xc10   :  { %13330 = vmatprep.subr.mxu0 %v11536_v27  ;;  %13364 = vmatpush3.msra.mxu1 %v11553_v15  ;;  %v11560_v27 = vld [vmem:[#allocation38 + $0x188] sm:$0xff] }
 0xc11   :  { %13331 = vmatpush3.msra.mxu0 %v11520_v11  ;;  %13365 = vmatprep.subr.mxu1 %v11568_v43 }
 0xc12   :  { %13332 = vmatprep.subr.mxu0 %v11535_v17  ;;  %13366 = vmatpush3.msra.mxu1 %v11552_v26 }
 0xc13   :  { %13333 = vmatpush3.msra.mxu0 %v11519_v53  ;;  %13367 = vmatprep.subr.mxu1 %v11567_v18 }
 0xc14   :  { %13334 = vmatprep.subr.mxu0 %v11534_v6  ;;  %13368 = vmatpush3.msra.mxu1 %v11551_v29 }
 0xc15   :  { %13335 = vmatpush3.msra.mxu0 %v11518_v9  ;;  %13369 = vmatprep.subr.mxu1 %v11566_v39 }
 0xc16   :  { %13336 = vmatprep.subr.mxu0 %v11533_v41  ;;  %13370 = vmatpush3.msra.mxu1 %v11550_v7 }
 0xc17   :  { %13337 = vmatpush3.msra.mxu0 %v11517_v12  ;;  %13371 = vmatprep.subr.mxu1 %v11565_v4 }
 0xc18   :  { %13338 = vmatprep.subr.mxu0 %v11532_v57  ;;  %13372 = vmatpush3.msra.mxu1 %v11549_v63 }
 0xc19   :  { %13339 = vmatpush3.msra.mxu0 %v11516_v13  ;;  %13373 = vmatprep.subr.mxu1 %v11564_v51 }
 0xc1a   :  { %13340 = vmatprep.subr.mxu0 %v11531_v16  ;;  %13374 = vmatpush3.msra.mxu1 %v11548_v54  ;;  %v11793_v54 = vld [vmem:[%s17573_s19 + $0x70] sm:$0xff] }
 0xc1b   :  { %13341 = vmatpush3.msra.mxu0 %v11515_v20  ;;  %13375 = vmatprep.subr.mxu1 %v11563_v34  ;;  %v11792_v34 = vld [vmem:[%s17573_s19 + $0x68] sm:$0xff] }
 0xc1c   :  { %13342 = vmatprep.subr.mxu0 %v11530_v35  ;;  %13376 = vmatpush3.msra.mxu1 %v11547_v40  ;;  %v11791_v40 = vld [vmem:[%s17573_s19 + $0x60] sm:$0xff] }
 0xc1d   :  { %13343 = vmatpush3.msra.mxu0 %v11514_v14  ;;  %13377 = vmatprep.subr.mxu1 %v11562_v48  ;;  %v13271_v14 = vld [vmem:[#allocation40] ss:$0 sm:$0xff] }
 0xc1e   :  { %13344 = vmatprep.subr.mxu0 %v11529_v38  ;;  %13378 = vmatpush3.msra.mxu1 %v11546_v3  ;;  %v11782_v48 = vld [vmem:[%s17573_s19 + $0x18] sm:$0xff]  ;;  %v11781_v3 = vld [vmem:[%s17573_s19 + $0x10] sm:$0xff] }
 0xc1f   :  { %13345 = vmatpush3.msra.mxu0 %v11513_v45  ;;  %13379 = vmatprep.subr.mxu1 %v11561_v52 }
 0xc20   :  { %13346 = vmatprep.subr.mxu0 %v11528_v2  ;;  %13380 = vmatpush3.msra.mxu1 %v11545_v44 }
 0xc21   :  { %13347 = vmatpush3.msra.mxu0 %v11512_v10  ;;  %13381 = vmatprep.subr.mxu1 %v11560_v27 }
 0xc22   :  { %13348 = vmatprep.subr.mxu0 %v11527_v33  ;;  %13382 = vmatpush3.msra.mxu1 %v11544_v19 }
 0xc23   :  { %13349 = vmatpush3.msra.mxu0 %v11511_v59  ;;  %13383 = vmatprep.subr.mxu1 %v11559_v58  ;;  %v11794_v59 = vld [vmem:[%s17573_s19 + $0x78] sm:$0xff]  ;;  %v13273_v58 = vld [vmem:[#allocation43] ss:$0 sm:$0xff] }
 0xc24   :  { %13509 = vmatprep.subr.mxu0 %v16308_v0 }
 0xc44   :  { %v10518_v25 = vpop.f32.mrf.mxu0 }
 0xc45   :  { %v10559_v32 = vpop.f32.mrf.mxu1 }
 0xc46   :  { %v10560_v1 = vadd.f32 %v10559_v32, %v10518_v25  ;;  %v10520_v21 = vpop.f32.mrf.mxu0  ;;  %v11790_v25 = vld [vmem:[%s17573_s19 + $0x58] sm:$0xff]  ;;  %v11789_v32 = vld [vmem:[%s17573_s19 + $0x50] sm:$0xff] }
 0xc47   :  { %v10561_v30 = vpop.f32.mrf.mxu1 }
 0xc48   :  { %v10568_v47 = vadd.f32 %v10560_v1, %v17468_v56  ;;  %v10562_v24 = vadd.f32 %v10561_v30, %v10520_v21  ;;  %v10522_v28 = vpop.f32.mrf.mxu0  ;;  %v11543_v56 = vld [vmem:[#allocation38 + $0x100] sm:$0xff]  ;;  %v11788_v1 = vld [vmem:[%s17573_s19 + $0x48] sm:$0xff] }
 0xc49   :  { %v10563_v5 = vpop.f32.mrf.mxu1  ;;  %13384 = vmatpush3.msra.mxu1 %v11543_v56  ;;  %v11787_v21 = vld [vmem:[%s17573_s19 + $0x40] sm:$0xff]  ;;  %v11786_v30 = vld [vmem:[%s17573_s19 + $0x38] sm:$0xff] }
 0xc4a   :  { %v10569_v36 = vadd.f32 %v10562_v24, %v17471_v31  ;;  %v10523_v60 = vpop.f32.mrf.mxu0  ;;  %13544 = vmatprep.subr.mxu1 %v16308_v0  ;;  %v11784_v24 = vld [vmem:[%s17573_s19 + $0x28] sm:$0xff]  ;;  %v11783_v28 = vld [vmem:[%s17573_s19 + $0x20] sm:$0xff] }
 0xc4b   :  { %v10564_v22 = vpop.f32.mrf.mxu1  ;;  %v11780_v5 = vld [vmem:[%s17573_s19 + $0x8] sm:$0xff] }
 0xc4c   :  { %v13272_v22 = vld [vmem:[#allocation41] ss:$0 sm:$0xff] }
 0xc84   :  { %v11377_v11 = vpop.f32.mrf.mxu0 }
 0xc85   :  { %v11418_v42 = vpop.f32.mrf.mxu1 }
 0xc86   :  { %v11379_v31 = vpop.f32.mrf.mxu0  ;;  %v11419_v17 = vadd.f32 %v11418_v42, %v11377_v11 }
 0xc87   :  { %v11420_v8 = vpop.f32.mrf.mxu1 }
 0xc88   :  { %v11421_v53 = vadd.f32 %v11420_v8, %v11379_v31  ;;  %v11381_v23 = vpop.f32.mrf.mxu0  ;;  %v11507_v46 = vadd.f32 %v11419_v17, %v17476_v62 }
 0xc89   :  { %v11422_v6 = vpop.f32.mrf.mxu1 }
 0xc8a   :  { %v11508_v37 = vadd.f32 %v11421_v53, %v17479_v55  ;;  %v11382_v9 = vpop.f32.mrf.mxu0 }
 0xc8b   :  { %v11423_v41 = vpop.f32.mrf.mxu1 }
 0xc8c   :  { %11646 = vmatprep.mubr.f32.mxu0 %v11508_v37 }
 0xc8d   :  { %11647 = vmatmul.mubr.f32.vlgmr.msra.gmra.mxu0 %v11507_v46 }
 0xc8e   :  { %13541 = vmatprep.mubr.msk.f32.mxu0 %vm16309_vm0, %v16308_v0  ;;  %13510 = vmatpush3.msra.mxu0 %v11794_v59  ;;  %v11930_v59 = vld [vmem:[#allocation49] sm:$0xff] }
 0xc8f   :  { %13511 = vmatprep.subr.mxu0 %v16308_v0 }
 0xc90   :  { %13512 = vmatpush3.msra.mxu0 %v11793_v54 }
 0xc91   :  { %13513 = vmatprep.subr.mxu0 %v16308_v0 }
 0xc92   :  { %13514 = vmatpush3.msra.mxu0 %v11792_v34 }
 0xc93   :  { %13515 = vmatprep.subr.mxu0 %v16308_v0 }
 0xc94   :  { %13516 = vmatpush3.msra.mxu0 %v11791_v40 }
 0xc95   :  { %13517 = vmatprep.subr.mxu0 %v16308_v0 }
 0xc96   :  { %13518 = vmatpush3.msra.mxu0 %v11790_v25 }
 0xc97   :  { %13519 = vmatprep.subr.mxu0 %v16308_v0 }
 0xc98   :  { %13520 = vmatpush3.msra.mxu0 %v11789_v32  ;;  %v13275_v32 = vld [vmem:[#allocation46] ss:$0 sm:$0xff] }
 0xc99   :  { %13521 = vmatprep.subr.mxu0 %v16308_v0 }
 0xc9a   :  { %13522 = vmatpush3.msra.mxu0 %v11788_v1 }
 0xc9b   :  { %13523 = vmatprep.subr.mxu0 %v16308_v0 }
 0xc9c   :  { %13524 = vmatpush3.msra.mxu0 %v11787_v21  ;;  %v13276_v21 = vld [vmem:[#allocation47] ss:$0 sm:$0xff] }
 0xc9d   :  { %13525 = vmatprep.subr.mxu0 %v16308_v0 }
 0xc9e   :  { %13526 = vmatpush3.msra.mxu0 %v11786_v30 }
 0xc9f   :  { %13527 = vmatprep.subr.mxu0 %v16308_v0 }
 0xcc4   :  { %v11459_v49 = vpop.f32.mrf.mxu0 }
 0xcc5   :  { %v11500_v12 = vpop.f32.mrf.mxu1 }
 0xcc6   :  { %v11461_v50 = vpop.f32.mrf.mxu0  ;;  %v11501_v57 = vadd.f32 %v11500_v12, %v11459_v49 }
 0xcc7   :  { %v11502_v61 = vpop.f32.mrf.mxu1 }
 0xcc8   :  { %v11503_v13 = vadd.f32 %v11502_v61, %v11461_v50  ;;  %v11463_v15 = vpop.f32.mrf.mxu0  ;;  %v11509_v55 = vadd.f32 %v11501_v57, %v10568_v47  ;;  %v11785_v47 = vld [vmem:[%s17573_s19 + $0x30] sm:$0xff] }
 0xcc9   :  { %v11504_v16 = vpop.f32.mrf.mxu1  ;;  %13528 = vmatpush3.msra.mxu0 %v11785_v47 }
 0xcca   :  { %v11510_v43 = vadd.f32 %v11503_v13, %v10569_v36  ;;  %v11464_v20 = vpop.f32.mrf.mxu0  ;;  %13529 = vmatprep.subr.mxu0 %v16308_v0  ;;  %v11779_v36 = vld [vmem:[%s17573_s19] sm:$0xff] }
 0xccb   :  { %v11505_v26 = vpop.f32.mrf.mxu1  ;;  %13530 = vmatpush3.msra.mxu0 %v11784_v24 }
 0xccc   :  { %11716 = vmatprep.mubr.f32.mxu1 %v11510_v43  ;;  %13531 = vmatprep.subr.mxu0 %v16308_v0 }
 0xccd   :  { %11717 = vmatmul.mubr.f32.vlgmr.msra.gmra.mxu1 %v11509_v55  ;;  %13532 = vmatpush3.msra.mxu0 %v11783_v28 }
 0xcce   :  { %13552 = vmatprep.mubr.msk.f32.mxu1 %vm16309_vm0, %v16308_v0  ;;  %13533 = vmatprep.subr.mxu0 %v16308_v0 }
 0xccf   :  { %13534 = vmatpush3.msra.mxu0 %v11782_v48 }
 0xcd0   :  { %13535 = vmatprep.subr.mxu0 %v16308_v0 }
 0xcd1   :  { %13536 = vmatpush3.msra.mxu0 %v11781_v3 }
 0xcd2   :  { %13537 = vmatprep.subr.mxu0 %v16308_v0 }
 0xcd3   :  { %13538 = vmatpush3.msra.mxu0 %v11780_v5 }
 0xcd4   :  { %13539 = vmatprep.subr.mxu0 %v16308_v0 }
 0xcd5   :  { %13540 = vmatpush3.msra.mxu0 %v11779_v36 }
 0xd4d   :  { %v13350_v62 = vpop.f32.mrf.mxu0 }
 0xd4f   :  { %v13351_v35 = vpop.f32.mrf.mxu0 }
 0xd50   :  { %v13352_v18 = vadd.f32 %v13351_v35, %v13350_v62 }
 0xd52   :  { %v11649_v39 = vadd.f32 %v13352_v18, %v13271_v14  ;;  %v13274_v18 = vld [vmem:[#allocation44] ss:$0 sm:$0xff] }
 0xd8d   :  { %v13385_v29 = vpop.f32.mrf.mxu1 }
 0xd8f   :  { %v13386_v38 = vpop.f32.mrf.mxu1 }
 0xd90   :  { %v13387_v45 = vadd.f32 %v13386_v38, %v13385_v29 }
 0xd92   :  { %v11719_v7 = vadd.f32 %v13387_v45, %v11649_v39 }
 0xd94   :  { %v11724_v2 = vsel %vm1896_vm8, %v11719_v7, 0.0 }
 0xd95   :  { %11725 = vadd.xlane.f32.xlu0 %v11724_v2 }
 0xe1e   :  { %v11726_v4 = vpop.xlane.xlu0 %11725 }
 0xe1f   :  { %v11728_v10 = vmul.f32 0.0078125, %v11726_v4 }
 0xe21   :  { %v11729_v63 = vsub.f32 %v11719_v7, %v11728_v10 }
 0xe23   :  { %v11730_v33 = vmul.f32 %v11729_v63, %v11729_v63 }
 0xe25   :  { %v11731_v51 = vsel %vm1896_vm8, %v11730_v33, 0.0  ;;  %vm11874_vm8 = vcmask 254976   ;;  %v11932_v33 = vld [vmem:[#allocation49 + $0x10] sm:$0xff] }
 0xe26   :  { %11732 = vadd.xlane.f32.xlu0 %v11731_v51  ;;  %v11931_v51 = vld [vmem:[#allocation49 + $0x8] sm:$0xff] }
 0xeaf   :  { %v11733_v60 = vpop.xlane.xlu0 %11732 }
 0xeb0   :  { %v11734_v52 = vmul.f32 0.0078125, %v11733_v60 }
 0xeb2   :  { %v11735_v44 = vadd.f32 1e-05, %v11734_v52 }
 0xeb4   :  { %15525 = vrsqrt.f32 %v11735_v44 }
 0xec1   :  { %v15526_v27 = vpop.eup %15525 }
 0xec2   :  { %v11737_v19 = vmul.f32 %v15526_v27, %v11729_v63  ;;  %v11933_v63 = vld [vmem:[#allocation49 + $0x18] sm:$0xff] }
 0xec3   :  { %13545 = vmatpush3.msra.mxu1 %v11933_v63 }
 0xec4   :  { %v11744_v56 = vmul.f32 %v13272_v22, %v11737_v19  ;;  %13546 = vmatprep.subr.mxu1 %v16308_v0 }
 0xec5   :  { %13547 = vmatpush3.msra.mxu1 %v11932_v33 }
 0xec6   :  { %v11751_v11 = vadd.f32 %v13273_v58, %v11744_v56  ;;  %13548 = vmatprep.subr.mxu1 %v16308_v0 }
 0xec7   :  { %13549 = vmatpush3.msra.mxu1 %v11931_v51 }
 0xec8   :  { %v11753_v42 = vmul.f32 0.70710677, %v11751_v11  ;;  %v11752_v26 = vmul.f32 0.5, %v11751_v11  ;;  %13550 = vmatprep.subr.mxu1 %v16308_v0 }
 0xec9   :  { %13551 = vmatpush3.msra.mxu1 %v11930_v59 }
 0xeca   :  { %v11754_v31 = vand.u32 2147483647, %v11753_v42  ;;  %vm11774_vm0 = vcmp.ge.f32.partialorder %v11753_v42, 0.0 }
 0xecc   :  { %v11755_v17 = vmul.f32 0.3275911, %v11754_v31  ;;  %v11768_v53 = vsub.f32 0.0, %v11754_v31 }
 0xece   :  { %v11756_v8 = vadd.f32 1.0, %v11755_v17  ;;  %v11769_v23 = vmul.f32 %v11768_v53, %v11754_v31 }
 0xed0   :  { %15527 = vrcp.f32 %v11756_v8  ;;  %v11770_v9 = vmul.f32 1.442695, %v11769_v23 }
 0xed2   :  { %15529 = vpow2.f32 %v11770_v9 }
 0xedd   :  { %v15528_v6 = vpop.eup %15527 }
 0xede   :  { %v11759_v37 = vmul.f32 1.0614054, %v15528_v6 }
 0xedf   :  { %v15530_v15 = vpop.eup %15529 }
 0xee0   :  { %v11760_v46 = vadd.f32 -1.4531521, %v11759_v37 }
 0xee2   :  { %v11761_v41 = vmul.f32 %v15528_v6, %v11760_v46  ;;  %v13277_v46 = vld [vmem:[#allocation50] ss:$0 sm:$0xff] }
 0xee4   :  { %v11762_v49 = vadd.f32 1.4214138, %v11761_v41 }
 0xee6   :  { %v11763_v12 = vmul.f32 %v15528_v6, %v11762_v49 }
 0xee8   :  { %v11764_v50 = vadd.f32 -0.28449672, %v11763_v12 }
 0xeea   :  { %v11765_v57 = vmul.f32 %v15528_v6, %v11764_v50 }
 0xeec   :  { %v11766_v61 = vadd.f32 0.2548296, %v11765_v57 }
 0xeee   :  { %v11767_v13 = vmul.f32 %v15528_v6, %v11766_v61 }
 0xef0   :  { %v11772_v16 = vmul.f32 %v15530_v15, %v11767_v13 }
 0xef2   :  { %v11773_v43 = vsub.f32 1.0, %v11772_v16 }
 0xef4   :  { %v11775_v20 = vsub.f32 0.0, %v11773_v43 }
 0xef6   :  { %v11776_v55 = vsel %vm11774_vm0, %v11773_v43, %v11775_v20 }
 0xef7   :  { %v11777_v62 = vadd.f32 1.0, %v11776_v55 }
 0xef9   :  { %v11778_v35 = vmul.f32 %v11777_v62, %v11752_v26 }
 0xefb   :  { %13542 = vmatmul.mubr.f32.vlgmr.msra.gmra.mxu0 %v11778_v35 }
 0xfbb   :  { %v11868_v14 = vpop.f32.mrf.mxu0 }
 0xfbc   :  { %v11869_v29 = vadd.f32 %v13274_v18, %v11868_v14 }
 0xfbd   :  { %v13543_v38 = vpop.f32.mrf.mxu0 }
 0xfbe   :  { %v11875_v39 = vsel %vm11874_vm8, %v11869_v29, 0.0 }
 0xfbf   :  { %11876 = vadd.xlane.f32.xlu1 %v11875_v39 }
0x1048   :  { %v11877_v45 = vpop.xlane.xlu1 %11876 }
0x1049   :  { %v11879_v7 = vmul.f32 0.03125, %v11877_v45 }
0x104b   :  { %v11880_v2 = vsub.f32 %v11869_v29, %v11879_v7 }
0x104d   :  { %v11881_v4 = vmul.f32 %v11880_v2, %v11880_v2 }
0x104f   :  { %v11882_v10 = vsel %vm11874_vm8, %v11881_v4, 0.0 }
0x1050   :  { %11883 = vadd.xlane.f32.xlu1 %v11882_v10 }
0x10d9   :  { %v11884_v54 = vpop.xlane.xlu1 %11883 }
0x10da   :  { %v11885_v34 = vmul.f32 0.03125, %v11884_v54 }
0x10dc   :  { %v11886_v40 = vadd.f32 1e-05, %v11885_v34 }
0x10de   :  { %15531 = vrsqrt.f32 %v11886_v40 }
0x10eb   :  { %v15532_v25 = vpop.eup %15531 }
0x10ec   :  { %v11888_v1 = vmul.f32 %v15532_v25, %v11880_v2 }
0x10ee   :  { %v11895_v30 = vmul.f32 %v13275_v32, %v11888_v1 }
0x10f0   :  { %v11902_v47 = vadd.f32 %v13276_v21, %v11895_v30 }
0x10f2   :  { %v11904_v24 = vmul.f32 0.70710677, %v11902_v47  ;;  %v11903_v6 = vmul.f32 0.5, %v11902_v47 }
0x10f4   :  { %v11905_v28 = vand.u32 2147483647, %v11904_v24  ;;  %vm11925_vm3 = vcmp.ge.f32.partialorder %v11904_v24, 0.0 }
0x10f6   :  { %v11906_v48 = vmul.f32 0.3275911, %v11905_v28  ;;  %v11919_v5 = vsub.f32 0.0, %v11905_v28 }
0x10f8   :  { %v11907_v3 = vadd.f32 1.0, %v11906_v48  ;;  %v11920_v36 = vmul.f32 %v11919_v5, %v11905_v28 }
0x10fa   :  { %15533 = vrcp.f32 %v11907_v3  ;;  %v11921_v52 = vmul.f32 1.442695, %v11920_v36 }
0x10fc   :  { %15535 = vpow2.f32 %v11921_v52 }
0x1107   :  { %v15534_v60 = vpop.eup %15533 }
0x1108   :  { %v11910_v0 = vmul.f32 1.0614054, %v15534_v60 }
0x1109   :  { %v15536_v31 = vpop.eup %15535 }
0x110a   :  { %v11911_v44 = vadd.f32 -1.4531521, %v11910_v0 }
0x110c   :  { %v11912_v27 = vmul.f32 %v15534_v60, %v11911_v44 }
0x110e   :  { %v11913_v22 = vadd.f32 1.4214138, %v11912_v27 }
0x1110   :  { %v11914_v19 = vmul.f32 %v15534_v60, %v11913_v22 }
0x1112   :  { %v11915_v58 = vadd.f32 -0.28449672, %v11914_v19 }
0x1114   :  { %v11916_v56 = vmul.f32 %v15534_v60, %v11915_v58 }
0x1116   :  { %v11917_v11 = vadd.f32 0.2548296, %v11916_v56 }
0x1118   :  { %v11918_v42 = vmul.f32 %v15534_v60, %v11917_v11 }
0x111a   :  { %v11923_v17 = vmul.f32 %v15536_v31, %v11918_v42 }
0x111c   :  { %v11924_v8 = vsub.f32 1.0, %v11923_v17 }
0x111e   :  { %v11926_v53 = vsub.f32 0.0, %v11924_v8 }
0x1120   :  { %v11927_v23 = vsel %vm11925_vm3, %v11924_v8, %v11926_v53 }
0x1121   :  { %v11928_v37 = vadd.f32 1.0, %v11927_v23 }
0x1123   :  { %v11929_v9 = vmul.f32 %v11928_v37, %v11903_v6 }
0x1125   :  { %13553 = vmatmul.mubr.msk.f32.vlgmr.msra.gmra.mxu1 %vm11941_vm4, %v11929_v9 }
0x11e5   :  { %v12011_v41 = vpop.f32.mrf.mxu1 }
0x11e6   :  { %v12012_v49 = vadd.f32 %v13277_v46, %v12011_v41 }
0x11e7   :  { %v13554_v12 = vpop.f32.mrf.mxu1 }
0x11e8   :  { %12015 = vst [vmem:[#allocation52] sm:$0x3] %v12012_v49 }
0x11e9   :  { %16188 = shalt.err (!%p16185_p10)
}
0x11ea   :  { %12025 = dma.vmem_to_hbm [thread:$0]  %s12023_s4, 32, %s16504_s29, [#allocation4]  }
0x11eb   :  { %16231 = dma.done.wait [#allocation4], 32  }
0x11ec   :  { %16232 = vsyncadd [#allocation4], 4294967264 }
0x11ed   :  { %12029 = vsyncpa [#allocation3], 1 }
0x11ee   :  { %12030 = vsyncpa [#allocation6], 1 }
0x11ef   :  { %12031 = vsyncpa [#allocation9], 1 }
0x11f0   :  { %12032 = vsyncpa [#allocation12], 1 }
0x11f1   :  { %12033 = vsyncpa [#allocation15], 1 }
0x11f2   :  { %12034 = vsyncpa [#allocation18], 1 }
0x11f3   :  { %12035 = vsyncpa [#allocation21], 1 }
0x11f4   :  { %12036 = vsyncpa [#allocation24], 1 }
0x11f5   :  { %12037 = vsyncpa [#allocation27], 1 }
0x11f6   :  { %12038 = vsyncpa [#allocation30], 1 }
0x11f7   :  { %12039 = vsyncpa [#allocation33], 1 }
0x11f8   :  { %12040 = vsyncpa [#allocation36], 1 }
0x11f9   :  { %12041 = vsyncpa [#allocation39], 1 }
0x11fa   :  { %12042 = vsyncpa [#allocation42], 1 }
0x11fb   :  { %12043 = vsyncpa [#allocation45], 1 }
0x11fc   :  { %12044 = vsyncpa [#allocation48], 1 }
0x11fd   :  { %12045 = vsyncpa [#allocation51], 1 }
0x11fe   :  { %12046 = vsyncpa [#allocation4], 1 }

</bundles_post_ra>
